<compile_context>
chip_gen: v7x
topology: tpu7x:2x2x1
jax: 0.10.0
libtpu: 0.0.40
codegen_flags: <defaults>
</compile_context>

<pallas_src>
import jax
import jax.numpy as jnp
from jax import lax
from jax.experimental import pallas as pl
from jax.experimental.pallas import tpu as pltpu


# ----------------------------------------------------------------------------
# Weight preprocessing (tiny, runs in the JAX wrapper)
# ----------------------------------------------------------------------------
def _banded_conv_weight(w, w_in, w_out, in_stride=1):
    """Merged-tap banded matmul weight for a VALID conv over a packed activation.

    w: (Cout, Cin, KH, KW) PyTorch layout.
    Returns B of shape (KH*w_in*Cin, w_out*Cout) with
        B[a*w_in*Cin + jp*Cin + ci, j*Cout + co] = w[co, ci, a, b]
    where jp == in_stride*(j + b) for some 0 <= b < KW (zero otherwise).
    in_stride > 1 folds a preceding stride-`in_stride` column downsample
    (max-pool column selection) into the conv.
    """
    cout, cin, kh, kw = w.shape
    wt = jnp.transpose(w, (2, 3, 1, 0))                     # (KH, KW, Cin, Cout)
    jp = jnp.arange(w_in)[:, None]                          # input column index
    j = jnp.arange(w_out)[None, :]                          # output column index
    b = jp // in_stride - j                                  # kernel-column tap
    valid = (jp % in_stride == 0) & (b >= 0) & (b < kw)
    g = wt[:, jnp.clip(b, 0, kw - 1), :, :]                 # (KH, w_in, w_out, Cin, Cout)
    g = jnp.where(valid[None, :, :, None, None], g, 0.0)
    g = jnp.transpose(g, (0, 1, 3, 2, 4))                   # (KH, w_in, Cin, w_out, Cout)
    return g.reshape(kh * w_in * cin, w_out * cout)


def _pool_row_select(ho, p):
    """(ho, p*(ho-1)+1) 0/1 matrix selecting every p-th row (row downsample)."""
    r = p * (ho - 1) + 1
    return (jnp.arange(r)[None, :] == (p * jnp.arange(ho))[:, None]).astype(jnp.float32)


# ----------------------------------------------------------------------------
# Fused kernel (all shapes static, traced once)
# ----------------------------------------------------------------------------
def _make_fused_kernel(cfg):
    (H1, R1, L1, H2, R2, L2, H3, W3) = cfg
    C1, C2, C3 = 16, 32, 64
    KH1, KH2, KH3 = 7, 3, 3
    P1, P2 = 5, 3

    def _merged_lhs(x_bf16, kh, h_out):
        # Concatenate the kh row-shifted slices along lanes -> (h_out, kh*width).
        taps = [x_bf16[a:a + h_out, :] for a in range(kh)]
        return taps[0] if kh == 1 else jnp.concatenate(taps, axis=1)

    def _row_window_max(y, p, nrows):
        # m[r, :] = max_{0<=s<p} y[r+s, :]   (contiguous sublane slices only)
        m = y[0:nrows, :]
        for s in range(1, p):
            m = jnp.maximum(m, y[s:s + nrows, :])
        return m

    def _col_window_max(y, c, p, width):
        # m[:, jp*c+ch] = max_{0<=s<p} y[:, (jp+s)*c+ch]   ((p-1) shifted maxima)
        m = y[:, 0:width]
        for s in range(1, p):
            m = jnp.maximum(m, y[:, s * c:s * c + width])
        return m

    def kernel(x_ref, b1_ref, sb1_ref, sel1_ref,
               b2_ref, sb2_ref, sel2_ref,
               b3_ref, sb3_ref,
               fw1_ref, fb1_ref, fw2_ref, fb2_ref, o_ref):
        # ---- conv1 (7x7, 1->16) + BN1 + ReLU -------------------------------
        x0 = x_ref[0].astype(jnp.bfloat16)                   # cast once, (H, W)
        y1 = jnp.dot(_merged_lhs(x0, KH1, H1), b1_ref[...],
                     preferred_element_type=jnp.float32)     # (H1, W1*16)
        y1 = jnp.maximum(y1 * sb1_ref[0:1, :] + sb1_ref[1:2, :], 0.0)

        # ---- MaxPool(5): row window max -> selection matmul -> col window max
        r1 = _row_window_max(y1, P1, R1)                     # (R1, W1*16)
        z1 = jnp.dot(sel1_ref[...], r1,
                     preferred_element_type=jnp.float32)     # (HP1, W1*16)
        z1 = _col_window_max(z1, C1, P1, L1).astype(jnp.bfloat16)  # (HP1, W1M*16)
        # (column stride-5 downsample is folded into b2)

        # ---- conv2 (3x3, 16->32) + BN2 + ReLU ------------------------------
        y2 = jnp.dot(_merged_lhs(z1, KH2, H2), b2_ref[...],
                     preferred_element_type=jnp.float32)     # (H2, W2*32)
        y2 = jnp.maximum(y2 * sb2_ref[0:1, :] + sb2_ref[1:2, :], 0.0)

        # ---- MaxPool(3) -----------------------------------------------------
        r2 = _row_window_max(y2, P2, R2)                     # (R2, W2*32)
        z2 = jnp.dot(sel2_ref[...], r2,
                     preferred_element_type=jnp.float32)     # (HP2, W2*32)
        z2 = _col_window_max(z2, C2, P2, L2).astype(jnp.bfloat16)  # (HP2, W2M*32)

        # ---- conv3 (3x3, 32->64) + BN3 + ReLU ------------------------------
        y3 = jnp.dot(_merged_lhs(z2, KH3, H3), b3_ref[...],
                     preferred_element_type=jnp.float32)     # (H3, W3*64)
        y3 = jnp.maximum(y3 * sb3_ref[0:1, :] + sb3_ref[1:2, :], 0.0)

        # ---- AdaptiveMaxPool2d((1,1)): global spatial max -> (1, 64) --------
        g = y3 if H3 == 1 else jnp.max(y3, axis=0, keepdims=True)
        feat = g[:, 0:C3]
        for v in range(1, W3):
            feat = jnp.maximum(feat, g[:, v * C3:(v + 1) * C3])

        # ---- fc1 + ReLU, fc2 (fc2 lane-padded to 128 -> dense store) --------
        hfc = jnp.dot(feat, fw1_ref[...], preferred_element_type=jnp.float32) + fb1_ref[...]
        hfc = jnp.maximum(hfc, 0.0)
        out = jnp.dot(hfc, fw2_ref[...], preferred_element_type=jnp.float32) + fb2_ref[...]
        o_ref[0] = out.astype(o_ref.dtype)                   # (1, 128) dense store

    return kernel


# ----------------------------------------------------------------------------
# Full forward pass (mirrors MyModule.forward, eval-mode BatchNorm)
# ----------------------------------------------------------------------------
def my_module_forward(params, x_nchw, *, eps=1e-5):
    n, cin, h, w = x_nchw.shape
    assert cin == 1, "MyModule.conv1 expects a single input channel"
    # spatial sizes (VALID convs, floor-mode pools)
    h1, w1 = h - 6, w - 6
    hp1, wp1 = h1 // 5, w1 // 5
    h2, w2 = hp1 - 2, wp1 - 2
    hp2, wp2 = h2 // 3, w2 // 3
    h3, w3 = hp2 - 2, wp2 - 2
    assert h3 >= 1 and w3 >= 1, "input too small for the conv/pool stack"

    # pooling helper sizes
    r1 = 5 * (hp1 - 1) + 1          # rows of row-window-max before pool-1 select
    r2 = 3 * (hp2 - 1) + 1
    w1m = w1 - 4                    # columns of col-window-max after pool-1
    w2m = w2 - 2
    l1 = w1m * 16
    l2 = w2m * 32

    # fold conv bias + eval-mode BN into per-packed-column scale/bias (f32)
    def fold_bn(conv_b, bn, wout):
        gamma, beta, mean, var = bn
        scale = gamma * lax.rsqrt(var + eps)
        bias = (conv_b - mean) * scale + beta
        return jnp.stack([jnp.tile(scale, wout),
                          jnp.tile(bias, wout)]).astype(jnp.float32)

    sb1 = fold_bn(params["conv1_b"], params["bn1"], w1)      # (2, w1*16)
    sb2 = fold_bn(params["conv2_b"], params["bn2"], w2)      # (2, w2*32)
    sb3 = fold_bn(params["conv3_b"], params["bn3"], w3)      # (2, w3*64)

    # merged-tap banded weights; pool column stride folded into conv2/conv3
    b1 = _banded_conv_weight(params["conv1_w"], w, w1, 1).astype(jnp.bfloat16)
    b2 = _banded_conv_weight(params["conv2_w"], w1m, w2, 5).astype(jnp.bfloat16)
    b3 = _banded_conv_weight(params["conv3_w"], w2m, w3, 3).astype(jnp.bfloat16)

    sel1 = _pool_row_select(hp1, 5)                          # (hp1, r1)
    sel2 = _pool_row_select(hp2, 3)                          # (hp2, r2)

    fw1 = jnp.transpose(params["fc1_w"]).astype(jnp.float32)            # (64, 32)
    fb1 = params["fc1_b"].reshape(1, -1).astype(jnp.float32)            # (1, 32)
    fw2p = jnp.zeros((32, 128), jnp.float32).at[:, :4].set(
        jnp.transpose(params["fc2_w"]).astype(jnp.float32))             # (32, 128)
    fb2p = jnp.zeros((1, 128), jnp.float32).at[:, :4].set(
        params["fc2_b"].reshape(1, -1).astype(jnp.float32))             # (1, 128)

    x2d = x_nchw[:, 0, :, :].astype(jnp.float32)                        # (N, H, W)

    cfg = (h1, r1, l1, h2, r2, l2, h3, w3)
    kernel = _make_fused_kernel(cfg)

    def resident(arr):  # weight-like operand: full block, VMEM-resident
        return pl.BlockSpec(arr.shape, lambda i, _r=arr.ndim: (0,) * _r)

    out = pl.pallas_call(
        kernel,
        out_shape=jax.ShapeDtypeStruct((n, 1, 128), jnp.float32),
        grid=(n,),
        in_specs=[
            pl.BlockSpec((1, h, w), lambda i: (i, 0, 0)),
            resident(b1), resident(sb1), resident(sel1),
            resident(b2), resident(sb2), resident(sel2),
            resident(b3), resident(sb3),
            resident(fw1), resident(fb1), resident(fw2p), resident(fb2p),
        ],
        out_specs=pl.BlockSpec((1, 1, 128), lambda i: (i, 0, 0)),
        compiler_params=pltpu.CompilerParams(
            dimension_semantics=("parallel",)),
    )(x2d, b1, sb1, sel1, b2, sb2, sel2, b3, sb3, fw1, fb1, fw2p, fb2p)
    return out[:, 0, :4]


# ----------------------------------------------------------------------------
# Deterministic parameter initialization (PyTorch-default-style uniform ranges)
# ----------------------------------------------------------------------------
def init_params(key):
    keys = iter(jax.random.split(key, 8))

    def conv_init(k, cout, cin, ksz):
        k1, k2 = jax.random.split(k)
        bound = 1.0 / float((cin * ksz * ksz) ** 0.5)
        wq = jax.random.uniform(k1, (cout, cin, ksz, ksz), jnp.float32, -bound, bound)
        bq = jax.random.uniform(k2, (cout,), jnp.float32, -bound, bound)
        return wq, bq

    def bn_init(k, c):
        k1, k2, k3, k4 = jax.random.split(k, 4)
        gamma = jax.random.uniform(k1, (c,), jnp.float32, 0.5, 1.5)
        beta = 0.1 * jax.random.normal(k2, (c,), jnp.float32)
        mean = 0.1 * jax.random.normal(k3, (c,), jnp.float32)
        var = jax.random.uniform(k4, (c,), jnp.float32, 0.5, 1.5)
        return gamma, beta, mean, var

    def linear_init(k, cout, cin):
        k1, k2 = jax.random.split(k)
        bound = 1.0 / float(cin ** 0.5)
        wq = jax.random.uniform(k1, (cout, cin), jnp.float32, -bound, bound)
        bq = jax.random.uniform(k2, (cout,), jnp.float32, -bound, bound)
        return wq, bq

    p = {}
    p["conv1_w"], p["conv1_b"] = conv_init(next(keys), 16, 1, 7)
    p["conv2_w"], p["conv2_b"] = conv_init(next(keys), 32, 16, 3)
    p["conv3_w"], p["conv3_b"] = conv_init(next(keys), 64, 32, 3)
    p["bn1"] = bn_init(next(keys), 16)
    p["bn2"] = bn_init(next(keys), 32)
    p["bn3"] = bn_init(next(keys), 64)
    p["fc1_w"], p["fc1_b"] = linear_init(next(keys), 32, 64)
    p["fc2_w"], p["fc2_b"] = linear_init(next(keys), 4, 32)
    return p


if __name__ == "__main__":
    key = jax.random.PRNGKey(0)
    pkey, xkey = jax.random.split(key)
    params = init_params(pkey)

    # Smallest convenient input that survives the conv/pool stack:
    # 64 -> conv7: 58 -> pool5: 11 -> conv3: 9 -> pool3: 3 -> conv3: 1 -> 1x1
    x = jax.random.normal(xkey, (2, 1, 64, 64), jnp.float32)   # NCHW, like PyTorch

    fwd = jax.jit(my_module_forward)
    out = jax.block_until_ready(fwd(params, x))
    assert out.shape == (2, 4) and out.dtype == jnp.float32
    print("KERNEL_OK")
</pallas_src>

<mosaic_0001>
module attributes {stable_mosaic.version = 11 : i64} {
  func.func @kernel(%arg0: i32, %arg1: memref<1x64x64xf32, #tpu.memory_space<vmem>>, %arg2: memref<448x928xbf16, #tpu.memory_space<vmem>>, %arg3: memref<2x928xf32, #tpu.memory_space<vmem>>, %arg4: memref<11x51xf32, #tpu.memory_space<vmem>>, %arg5: memref<2592x288xbf16, #tpu.memory_space<vmem>>, %arg6: memref<2x288xf32, #tpu.memory_space<vmem>>, %arg7: memref<3x7xf32, #tpu.memory_space<vmem>>, %arg8: memref<672x64xbf16, #tpu.memory_space<vmem>>, %arg9: memref<2x64xf32, #tpu.memory_space<vmem>>, %arg10: memref<64x32xf32, #tpu.memory_space<vmem>>, %arg11: memref<1x32xf32, #tpu.memory_space<vmem>>, %arg12: memref<32x128xf32, #tpu.memory_space<vmem>>, %arg13: memref<1x128xf32, #tpu.memory_space<vmem>>, %arg14: memref<1x1x128xf32, #tpu.memory_space<vmem>>) attributes {dimension_semantics = [#tpu.dimension_semantics<parallel>], iteration_bounds = array<i64: 2>, scalar_prefetch = 0 : i64, scratch_operands = 0 : i64, tpu.core_type = #tpu.core_type<tc>, window_params = [{transform_indices = @transform_0, window_bounds = array<i64: 1, 64, 64>}, {pipeline_mode = #tpu.pipeline_mode<synchronous>, transform_indices = @transform_1, window_bounds = array<i64: 448, 928>}, {pipeline_mode = #tpu.pipeline_mode<synchronous>, transform_indices = @transform_2, window_bounds = array<i64: 2, 928>}, {pipeline_mode = #tpu.pipeline_mode<synchronous>, transform_indices = @transform_3, window_bounds = array<i64: 11, 51>}, {pipeline_mode = #tpu.pipeline_mode<synchronous>, transform_indices = @transform_4, window_bounds = array<i64: 2592, 288>}, {pipeline_mode = #tpu.pipeline_mode<synchronous>, transform_indices = @transform_5, window_bounds = array<i64: 2, 288>}, {pipeline_mode = #tpu.pipeline_mode<synchronous>, transform_indices = @transform_6, window_bounds = array<i64: 3, 7>}, {pipeline_mode = #tpu.pipeline_mode<synchronous>, transform_indices = @transform_7, window_bounds = array<i64: 672, 64>}, {pipeline_mode = #tpu.pipeline_mode<synchronous>, transform_indices = @transform_8, window_bounds = array<i64: 2, 64>}, {pipeline_mode = #tpu.pipeline_mode<synchronous>, transform_indices = @transform_9, window_bounds = array<i64: 64, 32>}, {pipeline_mode = #tpu.pipeline_mode<synchronous>, transform_indices = @transform_10, window_bounds = array<i64: 1, 32>}, {pipeline_mode = #tpu.pipeline_mode<synchronous>, transform_indices = @transform_11, window_bounds = array<i64: 32, 128>}, {pipeline_mode = #tpu.pipeline_mode<synchronous>, transform_indices = @transform_12, window_bounds = array<i64: 1, 128>}, {transform_indices = @transform_13, window_bounds = array<i64: 1, 1, 128>}]} {
    %c0 = arith.constant 0 : index
    %c0_0 = arith.constant 0 : index
    %c0_1 = arith.constant 0 : index
    %0 = vector.load %arg1[%c0, %c0_0, %c0_1] : memref<1x64x64xf32, #tpu.memory_space<vmem>>, vector<1x64x64xf32>
    %1 = vector.shape_cast %0 : vector<1x64x64xf32> to vector<64x64xf32>
    %2 = arith.truncf %1 : vector<64x64xf32> to vector<64x64xbf16>
    %3 = vector.extract_strided_slice %2 {offsets = [0, 0], sizes = [58, 64], strides = [1, 1]} : vector<64x64xbf16> to vector<58x64xbf16>
    %4 = vector.extract_strided_slice %2 {offsets = [1, 0], sizes = [58, 64], strides = [1, 1]} : vector<64x64xbf16> to vector<58x64xbf16>
    %5 = vector.extract_strided_slice %2 {offsets = [2, 0], sizes = [58, 64], strides = [1, 1]} : vector<64x64xbf16> to vector<58x64xbf16>
    %6 = vector.extract_strided_slice %2 {offsets = [3, 0], sizes = [58, 64], strides = [1, 1]} : vector<64x64xbf16> to vector<58x64xbf16>
    %7 = vector.extract_strided_slice %2 {offsets = [4, 0], sizes = [58, 64], strides = [1, 1]} : vector<64x64xbf16> to vector<58x64xbf16>
    %8 = vector.extract_strided_slice %2 {offsets = [5, 0], sizes = [58, 64], strides = [1, 1]} : vector<64x64xbf16> to vector<58x64xbf16>
    %9 = vector.extract_strided_slice %2 {offsets = [6, 0], sizes = [58, 64], strides = [1, 1]} : vector<64x64xbf16> to vector<58x64xbf16>
    %10 = tpu.concatenate %3, %4, %5, %6, %7, %8, %9 in 1 : vector<58x64xbf16>, vector<58x64xbf16>, vector<58x64xbf16>, vector<58x64xbf16>, vector<58x64xbf16>, vector<58x64xbf16>, vector<58x64xbf16> -> vector<58x448xbf16>
    %c0_2 = arith.constant 0 : index
    %c0_3 = arith.constant 0 : index
    %11 = vector.load %arg2[%c0_2, %c0_3] : memref<448x928xbf16, #tpu.memory_space<vmem>>, vector<448x928xbf16>
    %cst = arith.constant dense<0.000000e+00> : vector<58x928xf32>
    %12 = tpu.matmul %10, %11, %cst {dimension_numbers = #tpu.dot_dimension_numbers<[1], [0], [0], [1], [0, 0, 1, 1], [], []>} : vector<58x448xbf16>, vector<448x928xbf16>, vector<58x928xf32> -> vector<58x928xf32>
    %c0_4 = arith.constant 0 : index
    %c0_5 = arith.constant 0 : index
    %13 = vector.load %arg3[%c0_4, %c0_5] : memref<2x928xf32, #tpu.memory_space<vmem>>, vector<1x928xf32>
    %14 = vector.broadcast %13 : vector<1x928xf32> to vector<58x928xf32>
    %15 = arith.mulf %12, %14 : vector<58x928xf32>
    %c1 = arith.constant 1 : index
    %c0_6 = arith.constant 0 : index
    %16 = vector.load %arg3[%c1, %c0_6] : memref<2x928xf32, #tpu.memory_space<vmem>>, vector<1x928xf32>
    %17 = vector.broadcast %16 : vector<1x928xf32> to vector<58x928xf32>
    %18 = arith.addf %15, %17 : vector<58x928xf32>
    %cst_7 = arith.constant 0.000000e+00 : f32
    %19 = vector.broadcast %cst_7 : f32 to vector<58x928xf32>
    %20 = arith.maximumf %18, %19 : vector<58x928xf32>
    %21 = vector.extract_strided_slice %20 {offsets = [0, 0], sizes = [51, 928], strides = [1, 1]} : vector<58x928xf32> to vector<51x928xf32>
    %22 = vector.extract_strided_slice %20 {offsets = [1, 0], sizes = [51, 928], strides = [1, 1]} : vector<58x928xf32> to vector<51x928xf32>
    %23 = arith.maximumf %21, %22 : vector<51x928xf32>
    %24 = vector.extract_strided_slice %20 {offsets = [2, 0], sizes = [51, 928], strides = [1, 1]} : vector<58x928xf32> to vector<51x928xf32>
    %25 = arith.maximumf %23, %24 : vector<51x928xf32>
    %26 = vector.extract_strided_slice %20 {offsets = [3, 0], sizes = [51, 928], strides = [1, 1]} : vector<58x928xf32> to vector<51x928xf32>
    %27 = arith.maximumf %25, %26 : vector<51x928xf32>
    %28 = vector.extract_strided_slice %20 {offsets = [4, 0], sizes = [51, 928], strides = [1, 1]} : vector<58x928xf32> to vector<51x928xf32>
    %29 = arith.maximumf %27, %28 : vector<51x928xf32>
    %c0_8 = arith.constant 0 : index
    %c0_9 = arith.constant 0 : index
    %30 = vector.load %arg4[%c0_8, %c0_9] : memref<11x51xf32, #tpu.memory_space<vmem>>, vector<11x51xf32>
    %cst_10 = arith.constant dense<0.000000e+00> : vector<11x928xf32>
    %31 = tpu.matmul %30, %29, %cst_10 {dimension_numbers = #tpu.dot_dimension_numbers<[1], [0], [0], [1], [0, 0, 1, 1], [], []>} : vector<11x51xf32>, vector<51x928xf32>, vector<11x928xf32> -> vector<11x928xf32>
    %32 = vector.extract_strided_slice %31 {offsets = [0, 0], sizes = [11, 864], strides = [1, 1]} : vector<11x928xf32> to vector<11x864xf32>
    %33 = vector.extract_strided_slice %31 {offsets = [0, 16], sizes = [11, 864], strides = [1, 1]} : vector<11x928xf32> to vector<11x864xf32>
    %34 = arith.maximumf %32, %33 : vector<11x864xf32>
    %35 = vector.extract_strided_slice %31 {offsets = [0, 32], sizes = [11, 864], strides = [1, 1]} : vector<11x928xf32> to vector<11x864xf32>
    %36 = arith.maximumf %34, %35 : vector<11x864xf32>
    %37 = vector.extract_strided_slice %31 {offsets = [0, 48], sizes = [11, 864], strides = [1, 1]} : vector<11x928xf32> to vector<11x864xf32>
    %38 = arith.maximumf %36, %37 : vector<11x864xf32>
    %39 = vector.extract_strided_slice %31 {offsets = [0, 64], sizes = [11, 864], strides = [1, 1]} : vector<11x928xf32> to vector<11x864xf32>
    %40 = arith.maximumf %38, %39 : vector<11x864xf32>
    %41 = arith.truncf %40 : vector<11x864xf32> to vector<11x864xbf16>
    %42 = vector.extract_strided_slice %41 {offsets = [0, 0], sizes = [9, 864], strides = [1, 1]} : vector<11x864xbf16> to vector<9x864xbf16>
    %43 = vector.extract_strided_slice %41 {offsets = [1, 0], sizes = [9, 864], strides = [1, 1]} : vector<11x864xbf16> to vector<9x864xbf16>
    %44 = vector.extract_strided_slice %41 {offsets = [2, 0], sizes = [9, 864], strides = [1, 1]} : vector<11x864xbf16> to vector<9x864xbf16>
    %45 = tpu.concatenate %42, %43, %44 in 1 : vector<9x864xbf16>, vector<9x864xbf16>, vector<9x864xbf16> -> vector<9x2592xbf16>
    %c0_11 = arith.constant 0 : index
    %c0_12 = arith.constant 0 : index
    %46 = vector.load %arg5[%c0_11, %c0_12] : memref<2592x288xbf16, #tpu.memory_space<vmem>>, vector<2592x288xbf16>
    %cst_13 = arith.constant dense<0.000000e+00> : vector<9x288xf32>
    %47 = tpu.matmul %45, %46, %cst_13 {dimension_numbers = #tpu.dot_dimension_numbers<[1], [0], [0], [1], [0, 0, 1, 1], [], []>} : vector<9x2592xbf16>, vector<2592x288xbf16>, vector<9x288xf32> -> vector<9x288xf32>
    %c0_14 = arith.constant 0 : index
    %c0_15 = arith.constant 0 : index
    %48 = vector.load %arg6[%c0_14, %c0_15] : memref<2x288xf32, #tpu.memory_space<vmem>>, vector<1x288xf32>
    %49 = vector.broadcast %48 : vector<1x288xf32> to vector<9x288xf32>
    %50 = arith.mulf %47, %49 : vector<9x288xf32>
    %c1_16 = arith.constant 1 : index
    %c0_17 = arith.constant 0 : index
    %51 = vector.load %arg6[%c1_16, %c0_17] : memref<2x288xf32, #tpu.memory_space<vmem>>, vector<1x288xf32>
    %52 = vector.broadcast %51 : vector<1x288xf32> to vector<9x288xf32>
    %53 = arith.addf %50, %52 : vector<9x288xf32>
    %cst_18 = arith.constant 0.000000e+00 : f32
    %54 = vector.broadcast %cst_18 : f32 to vector<9x288xf32>
    %55 = arith.maximumf %53, %54 : vector<9x288xf32>
    %56 = vector.extract_strided_slice %55 {offsets = [0, 0], sizes = [7, 288], strides = [1, 1]} : vector<9x288xf32> to vector<7x288xf32>
    %57 = vector.extract_strided_slice %55 {offsets = [1, 0], sizes = [7, 288], strides = [1, 1]} : vector<9x288xf32> to vector<7x288xf32>
    %58 = arith.maximumf %56, %57 : vector<7x288xf32>
    %59 = vector.extract_strided_slice %55 {offsets = [2, 0], sizes = [7, 288], strides = [1, 1]} : vector<9x288xf32> to vector<7x288xf32>
    %60 = arith.maximumf %58, %59 : vector<7x288xf32>
    %c0_19 = arith.constant 0 : index
    %c0_20 = arith.constant 0 : index
    %61 = vector.load %arg7[%c0_19, %c0_20] : memref<3x7xf32, #tpu.memory_space<vmem>>, vector<3x7xf32>
    %cst_21 = arith.constant dense<0.000000e+00> : vector<3x288xf32>
    %62 = tpu.matmul %61, %60, %cst_21 {dimension_numbers = #tpu.dot_dimension_numbers<[1], [0], [0], [1], [0, 0, 1, 1], [], []>} : vector<3x7xf32>, vector<7x288xf32>, vector<3x288xf32> -> vector<3x288xf32>
    %63 = vector.extract_strided_slice %62 {offsets = [0, 0], sizes = [3, 224], strides = [1, 1]} : vector<3x288xf32> to vector<3x224xf32>
    %64 = vector.extract_strided_slice %62 {offsets = [0, 32], sizes = [3, 224], strides = [1, 1]} : vector<3x288xf32> to vector<3x224xf32>
    %65 = arith.maximumf %63, %64 : vector<3x224xf32>
    %66 = vector.extract_strided_slice %62 {offsets = [0, 64], sizes = [3, 224], strides = [1, 1]} : vector<3x288xf32> to vector<3x224xf32>
    %67 = arith.maximumf %65, %66 : vector<3x224xf32>
    %68 = arith.truncf %67 : vector<3x224xf32> to vector<3x224xbf16>
    %69 = vector.extract_strided_slice %68 {offsets = [0, 0], sizes = [1, 224], strides = [1, 1]} : vector<3x224xbf16> to vector<1x224xbf16>
    %70 = vector.extract_strided_slice %68 {offsets = [1, 0], sizes = [1, 224], strides = [1, 1]} : vector<3x224xbf16> to vector<1x224xbf16>
    %71 = vector.extract_strided_slice %68 {offsets = [2, 0], sizes = [1, 224], strides = [1, 1]} : vector<3x224xbf16> to vector<1x224xbf16>
    %72 = tpu.concatenate %69, %70, %71 in 1 : vector<1x224xbf16>, vector<1x224xbf16>, vector<1x224xbf16> -> vector<1x672xbf16>
    %c0_22 = arith.constant 0 : index
    %c0_23 = arith.constant 0 : index
    %73 = vector.load %arg8[%c0_22, %c0_23] : memref<672x64xbf16, #tpu.memory_space<vmem>>, vector<672x64xbf16>
    %cst_24 = arith.constant dense<0.000000e+00> : vector<1x64xf32>
    %74 = tpu.matmul %72, %73, %cst_24 {dimension_numbers = #tpu.dot_dimension_numbers<[1], [0], [0], [1], [0, 0, 1, 1], [], []>} : vector<1x672xbf16>, vector<672x64xbf16>, vector<1x64xf32> -> vector<1x64xf32>
    %c0_25 = arith.constant 0 : index
    %c0_26 = arith.constant 0 : index
    %75 = vector.load %arg9[%c0_25, %c0_26] : memref<2x64xf32, #tpu.memory_space<vmem>>, vector<1x64xf32>
    %76 = arith.mulf %74, %75 : vector<1x64xf32>
    %c1_27 = arith.constant 1 : index
    %c0_28 = arith.constant 0 : index
    %77 = vector.load %arg9[%c1_27, %c0_28] : memref<2x64xf32, #tpu.memory_space<vmem>>, vector<1x64xf32>
    %78 = arith.addf %76, %77 : vector<1x64xf32>
    %cst_29 = arith.constant 0.000000e+00 : f32
    %79 = vector.broadcast %cst_29 : f32 to vector<1x64xf32>
    %80 = arith.maximumf %78, %79 : vector<1x64xf32>
    %c0_30 = arith.constant 0 : index
    %c0_31 = arith.constant 0 : index
    %81 = vector.load %arg10[%c0_30, %c0_31] : memref<64x32xf32, #tpu.memory_space<vmem>>, vector<64x32xf32>
    %cst_32 = arith.constant dense<0.000000e+00> : vector<1x32xf32>
    %82 = tpu.matmul %80, %81, %cst_32 {dimension_numbers = #tpu.dot_dimension_numbers<[1], [0], [0], [1], [0, 0, 1, 1], [], []>} : vector<1x64xf32>, vector<64x32xf32>, vector<1x32xf32> -> vector<1x32xf32>
    %c0_33 = arith.constant 0 : index
    %c0_34 = arith.constant 0 : index
    %83 = vector.load %arg11[%c0_33, %c0_34] : memref<1x32xf32, #tpu.memory_space<vmem>>, vector<1x32xf32>
    %84 = arith.addf %82, %83 : vector<1x32xf32>
    %cst_35 = arith.constant 0.000000e+00 : f32
    %85 = vector.broadcast %cst_35 : f32 to vector<1x32xf32>
    %86 = arith.maximumf %84, %85 : vector<1x32xf32>
    %c0_36 = arith.constant 0 : index
    %c0_37 = arith.constant 0 : index
    %87 = vector.load %arg12[%c0_36, %c0_37] : memref<32x128xf32, #tpu.memory_space<vmem>>, vector<32x128xf32>
    %cst_38 = arith.constant dense<0.000000e+00> : vector<1x128xf32>
    %88 = tpu.matmul %86, %87, %cst_38 {dimension_numbers = #tpu.dot_dimension_numbers<[1], [0], [0], [1], [0, 0, 1, 1], [], []>} : vector<1x32xf32>, vector<32x128xf32>, vector<1x128xf32> -> vector<1x128xf32>
    %c0_39 = arith.constant 0 : index
    %c0_40 = arith.constant 0 : index
    %89 = vector.load %arg13[%c0_39, %c0_40] : memref<1x128xf32, #tpu.memory_space<vmem>>, vector<1x128xf32>
    %90 = arith.addf %88, %89 : vector<1x128xf32>
    %c0_41 = arith.constant 0 : index
    %c0_42 = arith.constant 0 : index
    %c0_43 = arith.constant 0 : index
    %91 = vector.load %arg14[%c0_41, %c0_42, %c0_43] : memref<1x1x128xf32, #tpu.memory_space<vmem>>, vector<1x1x128xf32>
    %92 = vector.shape_cast %91 : vector<1x1x128xf32> to vector<1x128xf32>
    %93 = vector.shape_cast %90 : vector<1x128xf32> to vector<1x1x128xf32>
    tpu.vector_store %arg14[%c0_41, %c0_42, %c0_43], %93 {strides = array<i32>} : memref<1x1x128xf32, #tpu.memory_space<vmem>>, vector<1x1x128xf32>,
    return
  }
  func.func @transform_0(%arg0: i32) -> (i32, i32, i32) {
    %c0_i32 = arith.constant 0 : i32
    %c0_i32_0 = arith.constant 0 : i32
    %c0_i32_1 = arith.constant 0 : i32
    return %arg0, %c0_i32, %c0_i32_0 : i32, i32, i32
  }
  func.func @transform_1(%arg0: i32) -> (i32, i32) {
    %c0_i32 = arith.constant 0 : i32
    %c0_i32_0 = arith.constant 0 : i32
    %c0_i32_1 = arith.constant 0 : i32
    return %c0_i32, %c0_i32_0 : i32, i32
  }
  func.func @transform_2(%arg0: i32) -> (i32, i32) {
    %c0_i32 = arith.constant 0 : i32
    %c0_i32_0 = arith.constant 0 : i32
    %c0_i32_1 = arith.constant 0 : i32
    return %c0_i32, %c0_i32_0 : i32, i32
  }
  func.func @transform_3(%arg0: i32) -> (i32, i32) {
    %c0_i32 = arith.constant 0 : i32
    %c0_i32_0 = arith.constant 0 : i32
    %c0_i32_1 = arith.constant 0 : i32
    return %c0_i32, %c0_i32_0 : i32, i32
  }
  func.func @transform_4(%arg0: i32) -> (i32, i32) {
    %c0_i32 = arith.constant 0 : i32
    %c0_i32_0 = arith.constant 0 : i32
    %c0_i32_1 = arith.constant 0 : i32
    return %c0_i32, %c0_i32_0 : i32, i32
  }
  func.func @transform_5(%arg0: i32) -> (i32, i32) {
    %c0_i32 = arith.constant 0 : i32
    %c0_i32_0 = arith.constant 0 : i32
    %c0_i32_1 = arith.constant 0 : i32
    return %c0_i32, %c0_i32_0 : i32, i32
  }
  func.func @transform_6(%arg0: i32) -> (i32, i32) {
    %c0_i32 = arith.constant 0 : i32
    %c0_i32_0 = arith.constant 0 : i32
    %c0_i32_1 = arith.constant 0 : i32
    return %c0_i32, %c0_i32_0 : i32, i32
  }
  func.func @transform_7(%arg0: i32) -> (i32, i32) {
    %c0_i32 = arith.constant 0 : i32
    %c0_i32_0 = arith.constant 0 : i32
    %c0_i32_1 = arith.constant 0 : i32
    return %c0_i32, %c0_i32_0 : i32, i32
  }
  func.func @transform_8(%arg0: i32) -> (i32, i32) {
    %c0_i32 = arith.constant 0 : i32
    %c0_i32_0 = arith.constant 0 : i32
    %c0_i32_1 = arith.constant 0 : i32
    return %c0_i32, %c0_i32_0 : i32, i32
  }
  func.func @transform_9(%arg0: i32) -> (i32, i32) {
    %c0_i32 = arith.constant 0 : i32
    %c0_i32_0 = arith.constant 0 : i32
    %c0_i32_1 = arith.constant 0 : i32
    return %c0_i32, %c0_i32_0 : i32, i32
  }
  func.func @transform_10(%arg0: i32) -> (i32, i32) {
    %c0_i32 = arith.constant 0 : i32
    %c0_i32_0 = arith.constant 0 : i32
    %c0_i32_1 = arith.constant 0 : i32
    return %c0_i32, %c0_i32_0 : i32, i32
  }
  func.func @transform_11(%arg0: i32) -> (i32, i32) {
    %c0_i32 = arith.constant 0 : i32
    %c0_i32_0 = arith.constant 0 : i32
    %c0_i32_1 = arith.constant 0 : i32
    return %c0_i32, %c0_i32_0 : i32, i32
  }
  func.func @transform_12(%arg0: i32) -> (i32, i32) {
    %c0_i32 = arith.constant 0 : i32
    %c0_i32_0 = arith.constant 0 : i32
    %c0_i32_1 = arith.constant 0 : i32
    return %c0_i32, %c0_i32_0 : i32, i32
  }
  func.func @transform_13(%arg0: i32) -> (i32, i32, i32) {
    %c0_i32 = arith.constant 0 : i32
    %c0_i32_0 = arith.constant 0 : i32
    %c0_i32_1 = arith.constant 0 : i32
    return %arg0, %c0_i32, %c0_i32_0 : i32, i32, i32
  }
}

</mosaic_0001>

<bundles_post_ra>
// kernel: tile.25
= control target key start
LH: loop header
LB: loop body
LE: loop exit
PB: predicated region body
PF: predicated region fallthrough
CT: control target
= control target key end

     0   :  { %s64_s0 = inlined_call_operand.vmem [shape: f32[16], index: 0, kind: input, shape index: {}]   ;;  %s65_s1 = inlined_call_operand.vmem [shape: f32[58,16], index: 1, kind: output, shape index: {}]  }
   0x1   :  { %v4_v0 = vld [vmem:[%s64_s0] ss:$0 sm:$0xff] }
   0x2   :  { %5 = vst [vmem:[%s65_s1] sm:$0xff] %v4_v0  ;;  %20 = vst [vmem:[%s65_s1 + $0x8] sm:$0xff] %v4_v0 }
   0x3   :  { %21 = vst [vmem:[%s65_s1 + $0x10] sm:$0xff] %v4_v0  ;;  %22 = vst [vmem:[%s65_s1 + $0x18] sm:$0xff] %v4_v0 }
   0x4   :  { %23 = vst [vmem:[%s65_s1 + $0x20] sm:$0xff] %v4_v0  ;;  %24 = vst [vmem:[%s65_s1 + $0x28] sm:$0xff] %v4_v0 }
   0x5   :  { %25 = vst [vmem:[%s65_s1 + $0x30] sm:$0xff] %v4_v0  ;;  %26 = vst [vmem:[%s65_s1 + $0x38] sm:$0xff] %v4_v0 }

// kernel: tile.30
= control target key start
LH: loop header
LB: loop body
LE: loop exit
PB: predicated region body
PF: predicated region fallthrough
CT: control target
= control target key end

     0   :  { %vm13_vm0 = vcmask 1046532   ;;  %s167_s16 = smov 112   ;;  %s168_s19 = smov 80   ;;  %vm4_vm1 = vcmask 1047556   ;;  %vm6_vm2 = vcmask 130048   ;;  %vm17_vm3 = vcmask 1048448   ;;  %s264_s0 = inlined_call_operand.vmem [shape: f32[58,16], index: 0, kind: input, shape index: {}]   ;;  %s265_s1 = inlined_call_operand.vmem [shape: f32[1,928], index: 1, kind: output, shape index: {}]  }
   0x1   :  { %v139_v0 = vld [vmem:[%s264_s0 + $0x7] ss:$8 sm:$0xf]   ;;  %v143_v2 = vld [vmem:[%s264_s0 + $0x5] ss:$8 sm:$0xf]  }
   0x2   :  { %v140_v1 = vld [vmem:[%s264_s0 + $0x7] ss:$8 sm:$0x70]   ;;  %v144_v4 = vld [vmem:[%s264_s0 + $0x5] ss:$8 sm:$0x70]  }
   0x3   :  { %v14_v3 = vsel %vm13_vm0, %v140_v1, %v139_v0  ;;  %v141_v5 = vld [vmem:[%s264_s0 + $0x6] ss:$8 sm:$0xf]   ;;  %v36_v6 = vsel %vm13_vm0, %v144_v4, %v143_v2  ;;  %v145_v9 = vld [vmem:[%s264_s0 + $0x4] ss:$8 sm:$0xf]  }
   0x4   :  { %15 = vrot.lane.b32.xlu0 %v14_v3, %s167_s16  ;;  %v142_v7 = vld [vmem:[%s264_s0 + $0x6] ss:$8 sm:$0x70]   ;;  %37 = vrot.lane.b32.xlu1 %v36_v6, %s168_s19  ;;  %v146_v10 = vld [vmem:[%s264_s0 + $0x4] ss:$8 sm:$0x70]  }
   0x5   :  { %v25_v8 = vsel %vm13_vm0, %v142_v7, %v141_v5  ;;  %v47_v11 = vsel %vm13_vm0, %v146_v10, %v145_v9  ;;  %v147_v12 = vld [vmem:[%s264_s0 + $0x3] ss:$8 sm:$0xf]   ;;  %v149_v14 = vld [vmem:[%s264_s0 + $0x2] ss:$8 sm:$0xf]  }
   0x6   :  { %v148_v13 = vld [vmem:[%s264_s0 + $0x3] ss:$8 sm:$0x70]   ;;  %s169_s30 = smov 96   ;;  %s170_s6 = smov 64   ;;  %vm28_vm4 = vcmask 917248  }
   0x7   :  { %v150_v15 = vld [vmem:[%s264_s0 + $0x2] ss:$8 sm:$0x70]   ;;  %v151_v16 = vld [vmem:[%s264_s0 + $0x1] ss:$8 sm:$0xf]   ;;  %v58_v17 = vsel %vm13_vm0, %v148_v13, %v147_v12 }
   0x8   :  { %26 = vrot.lane.b32.xlu0 %v25_v8, %s169_s30  ;;  %48 = vrot.lane.b32.xlu1 %v47_v11, %s170_s6  ;;  %v152_v18 = vld [vmem:[%s264_s0 + $0x1] ss:$8 sm:$0xf0]   ;;  %v69_v19 = vsel %vm13_vm0, %v150_v15, %v149_v14  ;;  %v2_v20 = vld [vmem:[%s264_s0] ss:$8 sm:$0xf]  }
   0x9   :  { %v3_v21 = vld [vmem:[%s264_s0] ss:$8 sm:$0xf0]   ;;  %s171_s0 = smov 48   ;;  %s172_s13 = smov 32   ;;  %v80_v23 = vsel %vm4_vm1, %v152_v18, %v151_v16  ;;  %vm39_vm5 = vcmask 786048  }
   0xa   :  { %v5_v22 = vsel %vm4_vm1, %v3_v21, %v2_v20  ;;  %s173_s14 = smov 16   ;;  %vm50_vm6 = vcmask 654848   ;;  %vm61_vm7 = vcmask 523648   ;;  %vm72_vm8 = vcmask 392448  }
   0xb   :  { %7 = vst.msk [vmem:[#allocation0] ss:$8 sm:$0xf] %vm6_vm2, %v5_v22   ;;  %8 = vst.msk [vmem:[#allocation0] ss:$8 sm:$0xf0] %vm6_vm2, %v5_v22  }
   0xc   :  { %59 = vrot.lane.b32.xlu0 %v58_v17, %s171_s0  ;;  %70 = vrot.lane.b32.xlu1 %v69_v19, %s172_s13  ;;  %vm83_vm9 = vcmask 261248  }
  0x10   :  { %81 = vrot.lane.b32.xlu0 %v80_v23, %s173_s14 }
  0x76   :  { %v16_v24 = vpop.permute.xlu0 %15   ;;  %v38_v25 = vpop.permute.xlu1 %37  }
  0x77   :  { %18 = vst.msk [vmem:[#allocation0] ss:$8 sm:$0xf] %vm17_vm3, %v16_v24   ;;  %19 = vst.msk [vmem:[#allocation0] ss:$8 sm:$0x70] %vm17_vm3, %v16_v24  }
  0x7a   :  { %v27_v26 = vpop.permute.xlu0 %26   ;;  %v49_v27 = vpop.permute.xlu1 %48  }
  0x7b   :  { %29 = vst.msk [vmem:[#allocation0] ss:$8 sm:$0xf] %vm28_vm4, %v27_v26   ;;  %30 = vst.msk [vmem:[#allocation0] ss:$8 sm:$0x70] %vm28_vm4, %v27_v26  }
  0x7c   :  { %40 = vst.msk [vmem:[#allocation0] ss:$8 sm:$0xf] %vm39_vm5, %v38_v25   ;;  %41 = vst.msk [vmem:[#allocation0] ss:$8 sm:$0x70] %vm39_vm5, %v38_v25  }
  0x7d   :  { %51 = vst.msk [vmem:[#allocation0] ss:$8 sm:$0xf] %vm50_vm6, %v49_v27   ;;  %52 = vst.msk [vmem:[#allocation0] ss:$8 sm:$0x70] %vm50_vm6, %v49_v27  }
  0x7e   :  { %v60_v28 = vpop.permute.xlu0 %59   ;;  %v71_v29 = vpop.permute.xlu1 %70  }
  0x7f   :  { %62 = vst.msk [vmem:[#allocation0] ss:$8 sm:$0xf] %vm61_vm7, %v60_v28   ;;  %63 = vst.msk [vmem:[#allocation0] ss:$8 sm:$0x70] %vm61_vm7, %v60_v28  }
  0x80   :  { %73 = vst.msk [vmem:[#allocation0] ss:$8 sm:$0xf] %vm72_vm8, %v71_v29   ;;  %74 = vst.msk [vmem:[#allocation0] ss:$8 sm:$0x70] %vm72_vm8, %v71_v29  }
  0x82   :  { %v82_v30 = vpop.permute.xlu0 %81  }
  0x83   :  { %84 = vst.msk [vmem:[#allocation0] ss:$8 sm:$0xf] %vm83_vm9, %v82_v30   ;;  %85 = vst.msk [vmem:[#allocation0] ss:$8 sm:$0xf0] %vm83_vm9, %v82_v30  }
  0x8a   :  { %v89_v31 = vld [vmem:[#allocation0] sm:$0x1]  ;;  %v93_v32 = vld [vmem:[#allocation0 + $0x8] sm:$0x1]  ;;  %v98_v33 = vld [vmem:[#allocation0 + $0x10] sm:$0x1] }
  0x8b   :  { %91 = vst [vmem:[%s265_s1] sm:$0x1] %v89_v31  ;;  %153 = vst [vmem:[%s265_s1 + $0x1] sm:$0x1] %v93_v32  ;;  %v104_v34 = vld [vmem:[#allocation0 + $0x18] sm:$0x1] }
  0x8c   :  { %154 = vst [vmem:[%s265_s1 + $0x2] sm:$0x1] %v98_v33  ;;  %v110_v35 = vld [vmem:[#allocation0 + $0x20] sm:$0x1]  ;;  %v116_v36 = vld [vmem:[#allocation0 + $0x28] sm:$0x1] }
  0x8d   :  { %155 = vst [vmem:[%s265_s1 + $0x3] sm:$0x1] %v104_v34  ;;  %156 = vst [vmem:[%s265_s1 + $0x4] sm:$0x1] %v110_v35  ;;  %v122_v37 = vld [vmem:[#allocation0 + $0x30] sm:$0x1] }
  0x8e   :  { %157 = vst [vmem:[%s265_s1 + $0x5] sm:$0x1] %v116_v36  ;;  %v128_v38 = vld [vmem:[#allocation0 + $0x38] sm:$0x1]  ;;  %158 = vst [vmem:[%s265_s1 + $0x6] sm:$0x1] %v122_v37 }
  0x8f   :  { %159 = vst [vmem:[%s265_s1 + $0x7] sm:$0x1] %v128_v38 }

// kernel: tile.35
= control target key start
LH: loop header
LB: loop body
LE: loop exit
PB: predicated region body
PF: predicated region fallthrough
CT: control target
= control target key end

     0   :  { %s28_s0 = inlined_call_operand.vmem [shape: f32[32], index: 0, kind: input, shape index: {}]   ;;  %s29_s1 = inlined_call_operand.vmem [shape: f32[9,32], index: 1, kind: output, shape index: {}]  }
   0x1   :  { %v4_v0 = vld [vmem:[%s28_s0] ss:$0 sm:$0xff] }
   0x2   :  { %5 = vst [vmem:[%s29_s1] sm:$0xff] %v4_v0  ;;  %8 = vst [vmem:[%s29_s1 + $0x8] sm:$0xff] %v4_v0 }

// kernel: tile.40
= control target key start
LH: loop header
LB: loop body
LE: loop exit
PB: predicated region body
PF: predicated region fallthrough
CT: control target
= control target key end

     0   :  { %s6_s6 = smov 3  ;;  %s13_s11 = smov 3  ;;  %vm3_vm0 = vcmask 261120   ;;  %vm10_vm1 = vcmask 1048320   ;;  %vm17_vm2 = vcmask 785920   ;;  %vm24_vm3 = vcmask 523520   ;;  %s86_s0 = inlined_call_operand.vmem [shape: f32[9,32], index: 0, kind: input, shape index: {}]   ;;  %s87_s1 = inlined_call_operand.vmem [shape: f32[1,288], index: 1, kind: output, shape index: {}]  }
   0x1   :  { %v2_v0 = vld [vmem:[%s86_s0] ss:$4 sm:$0x7]   ;;  %v44_v1 = vld [vmem:[%s86_s0 + $0x3] ss:$4 sm:%s6_s6]   ;;  %s52_s12 = smov 96  }
   0x2   :  { %8 = vrot.lane.b32.xlu0 %v44_v1, %s52_s12  ;;  %s20_s13 = smov 3  ;;  %4 = vst.msk [vmem:[#allocation0] ss:$8 sm:$0x7] %vm3_vm0, %v2_v0   ;;  %v45_v2 = vld [vmem:[%s86_s0 + $0x2] ss:$4 sm:%s13_s11]  }
   0x3   :  { %v46_v3 = vld [vmem:[%s86_s0 + $0x1] ss:$4 sm:%s20_s13]   ;;  %s53_s0 = smov 32   ;;  %s54_s18 = smov 64  }
   0x4   :  { %22 = vrot.lane.b32.xlu1 %v46_v3, %s53_s0 }
   0x6   :  { %15 = vrot.lane.b32.xlu0 %v45_v2, %s54_s18 }
   0x9   :  { %v38_v4 = vld [vmem:[#allocation0 + $0x10] sm:$0x1] }
   0xa   :  { %48 = vst [vmem:[%s87_s1 + $0x2] sm:$0x1] %v38_v4 }
  0x74   :  { %v9_v5 = vpop.permute.xlu0 %8  }
  0x75   :  { %11 = vst.msk [vmem:[#allocation0] ss:$8 sm:$0x3] %vm10_vm1, %v9_v5  }
  0x76   :  { %v23_v6 = vpop.permute.xlu1 %22  }
  0x78   :  { %v16_v7 = vpop.permute.xlu0 %15  }
  0x79   :  { %18 = vst.msk [vmem:[#allocation0] ss:$8 sm:$0x3] %vm17_vm2, %v16_v7  }
  0x7a   :  { %25 = vst.msk [vmem:[#allocation0] ss:$8 sm:$0x3] %vm24_vm3, %v23_v6  }
  0x81   :  { %v29_v8 = vld [vmem:[#allocation0] sm:$0x1]  ;;  %v33_v9 = vld [vmem:[#allocation0 + $0x8] sm:$0x1] }
  0x82   :  { %31 = vst [vmem:[%s87_s1] sm:$0x1] %v29_v8  ;;  %47 = vst [vmem:[%s87_s1 + $0x1] sm:$0x1] %v33_v9 }

// kernel: my_module_forward.1
= control target key start
LH: loop header
LB: loop body
LE: loop exit
PB: predicated region body
PF: predicated region fallthrough
CT: control target
= control target key end

     0   :  { %18 = vsyncpa [#allocation3], 0  ;;  %s16473_s0 = inlined_call_operand.vmem [shape: f32[2,64,64], index: 0, kind: input, shape index: {}]   ;;  %s16474_s1 = inlined_call_operand.vmem [shape: bf16[448,928], index: 1, kind: input, shape index: {}]   ;;  %s16475_s2 = inlined_call_operand.vmem [shape: f32[2,928], index: 2, kind: input, shape index: {}]   ;;  %s16476_s3 = inlined_call_operand.vmem [shape: f32[11,51], index: 3, kind: input, shape index: {}]   ;;  %s16477_s4 = inlined_call_operand.vmem [shape: bf16[2592,288], index: 4, kind: input, shape index: {}]   ;;  %s16478_s5 = inlined_call_operand.vmem [shape: f32[2,288], index: 5, kind: input, shape index: {}]   ;;  %s16479_s6 = inlined_call_operand.vmem [shape: f32[3,7], index: 6, kind: input, shape index: {}]   ;;  %s16480_s7 = inlined_call_operand.vmem [shape: bf16[672,64], index: 7, kind: input, shape index: {}]   ;;  %s16481_s8 = inlined_call_operand.vmem [shape: f32[2,64], index: 8, kind: input, shape index: {}]   ;;  %s16482_s9 = inlined_call_operand.vmem [shape: f32[64,32], index: 9, kind: input, shape index: {}]   ;;  %s16483_s10 = inlined_call_operand.vmem [shape: f32[1,32], index: 10, kind: input, shape index: {}]   ;;  %s16484_s11 = inlined_call_operand.vmem [shape: f32[32,128], index: 11, kind: input, shape index: {}]   ;;  %s16485_s12 = inlined_call_operand.vmem [shape: f32[1,128], index: 12, kind: input, shape index: {}]   ;;  %s16486_s13 = inlined_call_operand.hbm [shape: f32[2,1,128], index: 13, kind: output, shape index: {}]  }
   0x1   :  { %20 = vsyncpa [#allocation3 + $0x1], 0  ;;  %s11988_s25 = smov 0   ;;  %s11990_s26 = smov 0  }
   0x2   :  { %s11992_s27 = smov 0   ;;  %s11994_s28 = smov 0  }
   0x3 LB: > { %16499 = sst [smem:[#allocation5_spill]] %s11895_s25  ;;  %s12009_s29 = sadd.s32 4294967295, %s11907_s28   ;;  %s11907_s28 = sphi %s11994_s28, %s16582_s28   ;;  %s11903_s27 = sphi %s11992_s27, %s16584_s27   ;;  %s11899_s26 = sphi %s11990_s26, %s16586_s26   ;;  %s11895_s25 = sphi %s11988_s25, %s16585_s25  }
   0x4   : > { %16500 = sst [smem:[#allocation6_spill]] %s11903_s27  ;;  %s9644_s30 = sadd.s32 4294967294, %s11907_s28  }
   0x5   : > { %s12013_s14 = sadd.s32 1, %s11907_s28   ;;  %s311_s15 = sadd.s32 1, %s11903_s27 }
   0x6   : > { %16501 = sst [smem:[#allocation7_spill]] %s12013_s14  ;;  %s308_s16 = ssub.s32 %s11907_s28, %s12013_s14 }
   0x7   : > { %p321_p0 = scmp.ne.s32.totalorder %s11903_s27, %s11899_s26  ;;  %p309_p1 = scmp.eq.s32.totalorder %s308_s16, 0 }
   0x8   : > { %p322_p2 = scmp.eq.s32.totalorder %s12009_s29, 1  ;;  %p327_p3 = scmp.ne.s32.totalorder %s11899_s26, %s11895_s25 }
   0x9   : > { %p328_p4 = scmp.eq.s32.totalorder %s9644_s30, 1  ;;  %p9647_p7 = scmp.ge.s32.totalorder %s11907_s28, 1 }
   0xa   : > { %s12024_s17 = scalar_select %p309_p1, %s11903_s27, %s311_s15  }
   0xb   : > { %p12026_p5 = por %p322_p2, %p321_p0  ;;  %p12030_p6 = por %p328_p4, %p327_p3 }
   0xc   : > { %16502 = sst [smem:[#allocation8_spill]] %s12024_s17  ;;  %p390_p8 = scmp.lt.s32.totalorder %s11907_s28, 3 }
   0xd   : > { %s16504_s19 = scalar_select %p12030_p6, 1, 0 }
   0xe   : > { %p391_p9 = pnand %p9647_p7, %p390_p8 }
   0xf   : > { %16505 = sst [smem:[#allocation9_spill]] %s16504_s19  ;;  %p433_p10 = scmp.lt.s32.totalorder (!%p391_p9), %s12009_s29, 1  ;;  %v612_v0 = vld [vmem:[%s16474_s1] sm:$0xff] (!%p391_p9)  ;;  %vm503_vm0 = vsmask.f32 (!%p391_p9), 6400  ;;  %vm559_vm3 = vcmask (!%p391_p9), 1044480  }
  0x10   : > { %394 = sbr.rel (%p391_p9) target bundleno = 2932 (0xb74), region = 72  ;;  %v616_v1 = vld [vmem:[%s16474_s1 + $0x20] sm:$0xff] (!%p391_p9)  ;;  %vm451_vm1 = vsmask.f32 (!%p391_p9), 7424  ;;  %s16497_s23 = smov (!%p391_p9), 64   ;;  %vm567_vm4 = vcmask (!%p391_p9), 523264  }
  0x11   : > { %v620_v2 = vld [vmem:[%s16474_s1 + $0x40] sm:$0xff] (!%p391_p9)  ;;  %v9651_v3 = vcombine.high (!%p391_p9), %v612_v0, %v616_v1  ;;  %v9650_v4 = vcombine.low (!%p391_p9), %v612_v0, %v616_v1  ;;  %vm535_vm2 = vsmask.f32 (!%p391_p9), 5376  ;;  %vm495_vm5 = vcmask (!%p391_p9), 1046528   ;;  %s11912_s20 = smov (!%p391_p9), 96   ;;  %s16495_s21 = smov (!%p391_p9), 80  }
  0x12   : > { %v624_v5 = vld [vmem:[%s16474_s1 + $0x60] sm:$0xff] (!%p391_p9)  ;;  %vm527_vm6 = vcmask (!%p391_p9), 1045504   ;;  %vm3496_vm7 = vcmask (!%p391_p9), 1043456   ;;  %vm3722_vm8 = vcmask (!%p391_p9), 1042432   ;;  %vm3715_vm9 = vcmask (!%p391_p9), 416768   ;;  %s10446_s17 = sshll.u32 (!%p391_p9), %s12009_s29, 4 }
  0x13   : > { %v9659_v6 = vcombine.high (!%p391_p9), %v620_v2, %v624_v5  ;;  %v628_v7 = vld [vmem:[%s16474_s1 + $0x80] sm:$0xff] (!%p391_p9)  ;;  %1968 = vmatprep.subr.bf16.mxu1 (!%p391_p9), %v9651_v3  ;;  %v9658_v9 = vcombine.low (!%p391_p9), %v620_v2, %v624_v5  ;;  %vm4097_vm10 = vcmask (!%p391_p9), 916480   ;;  %vm4166_vm11 = vcmask (!%p391_p9), 785408   ;;  %s16431_s14 = scalar_lea.hbm (!%p391_p9), %s16486_s13, %s10446_s17 }
  0x14   : > { %v632_v8 = vld [vmem:[%s16474_s1 + $0xa0] sm:$0xff] (!%p391_p9)  ;;  %1969 = vmatpush1.bf16.msra.mxu1 (!%p391_p9), %v9650_v4  ;;  %vm4241_vm12 = vcmask (!%p391_p9), 654336   ;;  %vm7729_vm13 = vcmask (!%p391_p9), 261120   ;;  %vm11915_vm14 = vmmov (!%p391_p9), 0   ;;  %vm8741_vm15 = vcmask (!%p391_p9), 56320  }
  0x15   : > { %v636_v10 = vld [vmem:[%s16474_s1 + $0xc0] sm:$0xff] (!%p391_p9)  ;;  %1970 = vmatprep.subr.bf16.mxu1 (!%p391_p9), %v9659_v6  ;;  %v9667_v15 = vcombine.high (!%p391_p9), %v628_v7, %v632_v8  ;;  %v9666_v24 = vcombine.low (!%p391_p9), %v628_v7, %v632_v8 }
  0x16   : > { %v640_v11 = vld [vmem:[%s16474_s1 + $0xe0] sm:$0xff] (!%p391_p9) }
  0x17   : > { %s434_s15 = scalar_select %p433_p10, %s12009_s29, 1  ;;  %v9675_v28 = vcombine.high %v636_v10, %v640_v11  ;;  %v644_v37 = vld [vmem:[%s16474_s1 + $0x100] sm:$0xff]  ;;  %v9674_v42 = vcombine.low %v636_v10, %v640_v11 }
  0x18   : > { %1971 = vmatpush1.bf16.msra.mxu1 %v9658_v9  ;;  %v648_v38 = vld [vmem:[%s16474_s1 + $0x120] sm:$0xff]  ;;  %s11917_s29 = smov [#allocation2]  }
  0x19   : > { %s10449_s22 = sshll.u32 %s434_s15, 6  ;;  %1972 = vmatprep.subr.bf16.mxu1 %v9667_v15  ;;  %v9683_v50 = vcombine.high %v644_v37, %v648_v38  ;;  %v652_v55 = vld [vmem:[%s16474_s1 + $0x140] sm:$0xff]  ;;  %v9682_v59 = vcombine.low %v644_v37, %v648_v38  ;;  %s11911_s15 = smov 112  }
  0x1a   : > { %s437_s30 = scalar_lea.vmem %s16473_s0, %s10449_s22  ;;  %v656_v56 = vld [vmem:[%s16474_s1 + $0x160] sm:$0xff]  ;;  %s16578_s22 = smov 80  }
  0x1b   : > { %v439_v12 = vld [vmem:[%s437_s30] sm:$0xff]  ;;  %v440_v13 = vld [vmem:[%s437_s30 + $0x8] sm:$0xff]  ;;  %v441_v14 = vld [vmem:[%s437_s30 + $0x10] sm:$0xff]  ;;  %v9691_v0 = vcombine.high %v652_v55, %v656_v56  ;;  %v9690_v10 = vcombine.low %v652_v55, %v656_v56  ;;  %s11849_s24 = sshll.u32 %s11917_s29, 4  ;;  %s11850_s24 = int_to_ptr.vmem [resolvable:$false] %s11849_s24 }
  0x1c   : > { %v442_v16 = vld [vmem:[%s437_s30 + $0x18] sm:$0xff]  ;;  %v12065_v17 = vpack.c.bf16 %v440_v13, %v439_v12  ;;  %v443_v18 = vld [vmem:[%s437_s30 + $0x20] sm:$0xff]  ;;  %v444_v19 = vld [vmem:[%s437_s30 + $0x28] sm:$0xff]  ;;  %1973 = vmatpush1.bf16.msra.mxu1 %v9666_v24 }
  0x1d   : > { %v12067_v20 = vpack.c.bf16 %v442_v16, %v441_v14  ;;  %v12069_v21 = vpack.c.bf16 %v444_v19, %v443_v18  ;;  %v445_v22 = vld [vmem:[%s437_s30 + $0x30] sm:$0xff]  ;;  %v446_v23 = vld [vmem:[%s437_s30 + $0x38] sm:$0xff]  ;;  %1974 = vmatprep.subr.bf16.mxu1 %v9675_v28  ;;  %v740_v60 = vld [vmem:[%s16474_s1 + $0x400] sm:$0xff] }
  0x1e   : > { %v12072_v25 = vshrl.u32 %v12065_v17, 16  ;;  %v12075_v26 = vshll.u32 %v12065_v17, 16  ;;  %v12077_v27 = vpack.c.bf16 %v446_v23, %v445_v22  ;;  %v744_v61 = vld [vmem:[%s16474_s1 + $0x420] sm:$0xff] }
  0x1f   : > { %v12080_v29 = vshll.u32 %v12067_v20, 16  ;;  %v12083_v30 = vshrl.u32 %v12067_v20, 16  ;;  %v12086_v31 = vshll.u32 %v12069_v21, 16  ;;  %v12089_v32 = vshrl.u32 %v12069_v21, 16  ;;  %v660_v1 = vld [vmem:[%s16474_s1 + $0x180] sm:$0xff] }
  0x20   : > { %v504_v33 = vrot.slane %v12072_v25, 1  ;;  %v505_v34 = vrot.slane %v12075_v26, 2  ;;  %v457_v35 = vrot.slane %v12075_v26, 1  ;;  %v12095_v36 = vshll.u32 %v12077_v27, 16  ;;  %1975 = vmatpush1.bf16.msra.mxu1 %v9674_v42  ;;  %v664_v2 = vld [vmem:[%s16474_s1 + $0x1a0] sm:$0xff] }
  0x21   : > { %v507_v39 = vrot.slane %v12083_v30, 1  ;;  %v508_v40 = vrot.slane %v12080_v29, 2  ;;  %v511_v41 = vrot.slane %v12089_v32, 1  ;;  %v462_v44 = vrot.slane %v12080_v29, 1  ;;  %1976 = vmatprep.subr.bf16.mxu1 %v9683_v50  ;;  %v748_v7 = vld [vmem:[%s16474_s1 + $0x440] sm:$0xff] }
  0x22   : > { %v506_v43 = vor.u32 %v505_v34, %v504_v33  ;;  %v512_v45 = vrot.slane %v12086_v31, 2  ;;  %v12109_v46 = vshrl.u32 %v12077_v27, 16  ;;  %v458_v48 = vor.u32 %v457_v35, %v12072_v25  ;;  %v752_v8 = vld [vmem:[%s16474_s1 + $0x460] sm:$0xff] }
  0x23   : > { %v509_v47 = vor.u32 %v508_v40, %v507_v39  ;;  %v516_v49 = vrot.slane %v12095_v36, 2  ;;  %v466_v53 = vor.u32 %v12083_v30, %v462_v44  ;;  %v470_v54 = vrot.slane %v12086_v31, 1  ;;  %v668_v18 = vld [vmem:[%s16474_s1 + $0x1c0] sm:$0xff] }
  0x24   : > { %v513_v51 = vor.u32 %v512_v45, %v511_v41  ;;  %v515_v52 = vrot.slane %v12109_v46, 1  ;;  %v463_v62 = vsel %vm451_vm1, %v458_v48, %v462_v44  ;;  %v478_v5 = vrot.slane %v12095_v36, 1  ;;  %1977 = vmatpush1.bf16.msra.mxu1 %v9682_v59  ;;  %v672_v19 = vld [vmem:[%s16474_s1 + $0x1e0] sm:$0xff]  ;;  %v12190_v44 = vld [vmem:[%s16474_s1 + $0x8] sm:$0xff] }
  0x25   : > { %v510_v57 = vsel %vm503_vm0, %v506_v43, %v509_v47  ;;  %v471_v3 = vsel %vm451_vm1, %v466_v53, %v470_v54  ;;  %v474_v4 = vor.u32 %v12089_v32, %v470_v54  ;;  %v9779_v6 = vcombine.high %v740_v60, %v744_v61  ;;  %1978 = vmatprep.subr.bf16.mxu1 %v9691_v0  ;;  %v756_v28 = vld [vmem:[%s16474_s1 + $0x480] sm:$0xff]  ;;  %v12230_v0 = vld [vmem:[%s16474_s1 + $0x10] sm:$0xff] }
  0x26   : > { %519 = vrot.lane.b32.xlu0 %v510_v57, %s16497_s23  ;;  %v514_v58 = vsel %vm503_vm0, %v509_v47, %v513_v51  ;;  %v517_v63 = vor.u32 %v516_v49, %v515_v52  ;;  %v536_v9 = vrot.slane %v12072_v25, 2  ;;  %v9699_v11 = vcombine.high %v660_v1, %v664_v2  ;;  %v676_v39 = vld [vmem:[%s16474_s1 + $0x200] sm:$0xff] }
  0x27   : > { %521 = vrot.lane.b32.xlu1 %v514_v58, %s16497_s23  ;;  %v9778_v12 = vcombine.low %v740_v60, %v744_v61  ;;  %v537_v14 = vrot.slane %v12075_v26, 3  ;;  %v539_v15 = vrot.slane %v12083_v30, 2  ;;  %v540_v16 = vrot.slane %v12080_v29, 3  ;;  %2039 = vmatprep.subr.bf16.mxu0 %v9779_v6  ;;  %v760_v29 = vld [vmem:[%s16474_s1 + $0x4a0] sm:$0xff] }
  0x28   : > { %v518_v13 = vsel %vm503_vm0, %v513_v51, %v517_v63  ;;  %v479_v22 = vsel %vm451_vm1, %v474_v4, %v478_v5  ;;  %v543_v23 = vrot.slane %v12089_v32, 2  ;;  %v544_v24 = vrot.slane %v12086_v31, 3  ;;  %1979 = vmatpush1.bf16.msra.mxu1 %v9690_v10  ;;  %v680_v40 = vld [vmem:[%s16474_s1 + $0x220] sm:$0xff] }
  0x29   : > { %v9787_v25 = vcombine.high %v748_v7, %v752_v8  ;;  %2040 = vmatpush1.bf16.msra.mxu0 %v9778_v12  ;;  %v9786_v26 = vcombine.low %v748_v7, %v752_v8  ;;  %v482_v30 = vor.u32 %v12109_v46, %v478_v5  ;;  %v9698_v32 = vcombine.low %v660_v1, %v664_v2  ;;  %v764_v43 = vld [vmem:[%s16474_s1 + $0x4c0] sm:$0xff]  ;;  %v12235_v1 = vld [vmem:[%s16474_s1 + $0x30] sm:$0xff] }
  0x2a   : > { %483 = vrot.lane.b32.xlu0 %v463_v62, %s16497_s23  ;;  %v9707_v33 = vcombine.high %v668_v18, %v672_v19  ;;  %v538_v31 = vor.u32 %v537_v14, %v536_v9  ;;  %v541_v34 = vor.u32 %v540_v16, %v539_v15  ;;  %v547_v35 = vrot.slane %v12109_v46, 2  ;;  %1980 = vmatprep.subr.bf16.mxu1 %v9699_v11  ;;  %v12196_v46 = vld [vmem:[%s16474_s1 + $0x28] sm:$0xff]  ;;  %v684_v50 = vld [vmem:[%s16474_s1 + $0x240] sm:$0xff] }
  0x2b   : > { %485 = vrot.lane.b32.xlu1 %v471_v3, %s16497_s23  ;;  %v548_v37 = vrot.slane %v12095_v36, 3  ;;  %v545_v38 = vor.u32 %v544_v24, %v543_v23  ;;  %2041 = vmatprep.subr.bf16.mxu0 %v9787_v25  ;;  %v9795_v41 = vcombine.high %v756_v28, %v760_v29  ;;  %v9794_v42 = vcombine.low %v756_v28, %v760_v29  ;;  %v768_v36 = vld [vmem:[%s16474_s1 + $0x4e0] sm:$0xff] }
  0x2c   : > { %1981 = vmatpush1.bf16.msra.mxu1 %v9698_v32  ;;  %v9706_v45 = vcombine.low %v668_v18, %v672_v19  ;;  %v542_v47 = vsel %vm535_vm2, %v538_v31, %v541_v34  ;;  %v9715_v49 = vcombine.high %v676_v39, %v680_v40  ;;  %v688_v51 = vld [vmem:[%s16474_s1 + $0x260] sm:$0xff]  ;;  %v9803_v54 = vcombine.high %v764_v43, %v768_v36 }
  0x2d   : > { %2042 = vmatpush1.bf16.msra.mxu0 %v9786_v26  ;;  %v549_v48 = vor.u32 %v548_v37, %v547_v35  ;;  %1982 = vmatprep.subr.bf16.mxu1 %v9707_v33  ;;  %v772_v52 = vld [vmem:[%s16474_s1 + $0x500] sm:$0xff]  ;;  %v546_v53 = vsel %vm535_vm2, %v541_v34, %v545_v38  ;;  %v9802_v56 = vcombine.low %v764_v43, %v768_v36  ;;  %v560_v5 = vrot.slane %v12065_v17, 3 }
  0x2e   : > { %523 = vrot.lane.b32.xlu0 %v518_v13, %s16497_s23  ;;  %2043 = vmatprep.subr.bf16.mxu0 %v9795_v41  ;;  %v776_v55 = vld [vmem:[%s16474_s1 + $0x520] sm:$0xff]  ;;  %v9652_v58 = vcombine.low %v12190_v44, %v12196_v46  ;;  %v9714_v59 = vcombine.low %v676_v39, %v680_v40  ;;  %v9723_v62 = vcombine.high %v684_v50, %v688_v51  ;;  %v561_v6 = vrot.slane %v12067_v20, 3 }
  0x2f   : > { %487 = vrot.lane.b32.xlu1 %v479_v22, %s16497_s23  ;;  %v780_v57 = vld [vmem:[%s16474_s1 + $0x540] sm:$0xff]  ;;  %v550_v61 = vsel %vm535_vm2, %v545_v38, %v549_v48  ;;  %v9811_v3 = vcombine.high %v772_v52, %v776_v55  ;;  %v9810_v4 = vcombine.low %v772_v52, %v776_v55  ;;  %v9722_v7 = vcombine.low %v684_v50, %v688_v51 }
  0x30   : > { %1983 = vmatpush1.bf16.msra.mxu1 %v9706_v45  ;;  %v692_v60 = vld [vmem:[%s16474_s1 + $0x280] sm:$0xff]  ;;  %v9654_v9 = vcombine.low %v12230_v0, %v12235_v1  ;;  %v12258_v14 = vsel %vm559_vm3, %v560_v5, %v561_v6  ;;  %v496_v5 = vrot.slane %v12065_v17, 1 }
  0x31   : > { %2044 = vmatpush1.bf16.msra.mxu0 %v9794_v42  ;;  %1984 = vmatprep.subr.bf16.mxu1 %v9715_v49  ;;  %v696_v2 = vld [vmem:[%s16474_s1 + $0x2a0] sm:$0xff] }
  0x32   : > { %525 = vrot.lane.b32.xlu0 %v517_v63, %s16497_s23  ;;  %v784_v63 = vld [vmem:[%s16474_s1 + $0x560] sm:$0xff]  ;;  %2045 = vmatprep.subr.bf16.mxu0 %v9803_v54  ;;  %v9731_v10 = vcombine.high %v692_v60, %v696_v2  ;;  %v9730_v18 = vcombine.low %v692_v60, %v696_v2  ;;  %v9653_v2 = vcombine.high %v12190_v44, %v12196_v46  ;;  %v528_v46 = vrot.slane %v12065_v17, 2 }
  0x33   : > { %489 = vrot.lane.b32.xlu1 %v482_v30, %s16497_s23  ;;  %v9819_v8 = vcombine.high %v780_v57, %v784_v63  ;;  %v700_v11 = vld [vmem:[%s16474_s1 + $0x2c0] sm:$0xff]  ;;  %9874 = vmatprep.mubr.msk.bf16.mxu0 %vm567_vm4, %v12258_v14  ;;  %v9818_v16 = vcombine.low %v780_v57, %v784_v63 }
  0x34   : > { %1985 = vmatpush1.bf16.msra.mxu1 %v9714_v59  ;;  %v788_v12 = vld [vmem:[%s16474_s1 + $0x580] sm:$0xff] }
  0x35   : > { %2046 = vmatpush1.bf16.msra.mxu0 %v9802_v56  ;;  %1986 = vmatprep.subr.bf16.mxu1 %v9723_v62  ;;  %v792_v13 = vld [vmem:[%s16474_s1 + $0x5a0] sm:$0xff] }
  0x36   : > { %551 = vrot.lane.b32.xlu0 %v542_v47, %s16497_s23  ;;  %v704_v15 = vld [vmem:[%s16474_s1 + $0x2e0] sm:$0xff]  ;;  %2047 = vmatprep.subr.bf16.mxu0 %v9811_v3  ;;  %v9827_v19 = vcombine.high %v788_v12, %v792_v13  ;;  %v9826_v28 = vcombine.low %v788_v12, %v792_v13  ;;  %v621_v12 = vld [vmem:[%s16474_s1 + $0x48] sm:$0xff] }
  0x37   : > { %553 = vrot.lane.b32.xlu1 %v546_v53, %s16497_s23  ;;  %v9739_v22 = vcombine.high %v700_v11, %v704_v15  ;;  %v708_v23 = vld [vmem:[%s16474_s1 + $0x300] sm:$0xff]  ;;  %v9738_v29 = vcombine.low %v700_v11, %v704_v15  ;;  %v625_v13 = vld [vmem:[%s16474_s1 + $0x68] sm:$0xff] }
  0x38   : > { %1987 = vmatpush1.bf16.msra.mxu1 %v9722_v7  ;;  %v796_v24 = vld [vmem:[%s16474_s1 + $0x5c0] sm:$0xff]  ;;  %v497_v7 = vrot.slane %v12067_v20, 1 }
  0x39   : > { %2048 = vmatpush1.bf16.msra.mxu0 %v9810_v4  ;;  %1988 = vmatprep.subr.bf16.mxu1 %v9731_v10  ;;  %v800_v25 = vld [vmem:[%s16474_s1 + $0x5e0] sm:$0xff]  ;;  %v9655_v4 = vcombine.high %v12230_v0, %v12235_v1 }
  0x3a   : > { %555 = vrot.lane.b32.xlu0 %v550_v61, %s16497_s23  ;;  %2049 = vmatprep.subr.bf16.mxu0 %v9819_v8  ;;  %v712_v26 = vld [vmem:[%s16474_s1 + $0x320] sm:$0xff]  ;;  %v9835_v30 = vcombine.high %v796_v24, %v800_v25  ;;  %v9834_v37 = vcombine.low %v796_v24, %v800_v25  ;;  %v499_v8 = vrot.slane %v12069_v21, 1  ;;  %v498_v10 = vsel %vm495_vm5, %v496_v5, %v497_v7  ;;  %v629_v25 = vld [vmem:[%s16474_s1 + $0x88] sm:$0xff] }
  0x3b   : > { %557 = vrot.lane.b32.xlu1 %v549_v48, %s16497_s23  ;;  %v9747_v32 = vcombine.high %v708_v23, %v712_v26  ;;  %v716_v33 = vld [vmem:[%s16474_s1 + $0x340] sm:$0xff]  ;;  %v9746_v38 = vcombine.low %v708_v23, %v712_v26  ;;  %v501_v23 = vrot.slane %v12077_v27, 1  ;;  %v9661_v24 = vcombine.high %v621_v12, %v625_v13  ;;  %v633_v26 = vld [vmem:[%s16474_s1 + $0xa8] sm:$0xff] }
  0x3c   : > { %1989 = vmatpush1.bf16.msra.mxu1 %v9730_v18  ;;  %v804_v31 = vld [vmem:[%s16474_s1 + $0x600] sm:$0xff] }
  0x3d   : > { %2050 = vmatpush1.bf16.msra.mxu0 %v9818_v16  ;;  %1990 = vmatprep.subr.bf16.mxu1 %v9739_v22  ;;  %v808_v34 = vld [vmem:[%s16474_s1 + $0x620] sm:$0xff]  ;;  %v500_v16 = vsel %vm495_vm5, %v497_v7, %v499_v8 }
  0x3e   : > { %2051 = vmatprep.subr.bf16.mxu0 %v9827_v19  ;;  %v720_v35 = vld [vmem:[%s16474_s1 + $0x360] sm:$0xff]  ;;  %v9843_v39 = vcombine.high %v804_v31, %v808_v34  ;;  %v9842_v45 = vcombine.low %v804_v31, %v808_v34  ;;  %v637_v31 = vld [vmem:[%s16474_s1 + $0xc8] sm:$0xff] }
  0x3f   : > { %v9755_v40 = vcombine.high %v716_v33, %v720_v35  ;;  %v724_v41 = vld [vmem:[%s16474_s1 + $0x380] sm:$0xff]  ;;  %v9754_v47 = vcombine.low %v716_v33, %v720_v35  ;;  %v9669_v33 = vcombine.high %v629_v25, %v633_v26  ;;  %v641_v34 = vld [vmem:[%s16474_s1 + $0xe8] sm:$0xff]  ;;  %v502_v35 = vsel %vm495_vm5, %v499_v8, %v501_v23 }
  0x40   : > { %1991 = vmatpush1.bf16.msra.mxu1 %v9738_v29  ;;  %v812_v42 = vld [vmem:[%s16474_s1 + $0x640] sm:$0xff] }
  0x41   : > { %2052 = vmatpush1.bf16.msra.mxu0 %v9826_v28  ;;  %1992 = vmatprep.subr.bf16.mxu1 %v9747_v32  ;;  %v816_v43 = vld [vmem:[%s16474_s1 + $0x660] sm:$0xff] }
  0x42   : > { %2053 = vmatprep.subr.bf16.mxu0 %v9835_v30  ;;  %v728_v36 = vld [vmem:[%s16474_s1 + $0x3a0] sm:$0xff]  ;;  %v9851_v48 = vcombine.high %v812_v42, %v816_v43  ;;  %v9850_v54 = vcombine.low %v812_v42, %v816_v43  ;;  %v9660_v30 = vcombine.low %v621_v12, %v625_v13  ;;  %v9677_v42 = vcombine.high %v637_v31, %v641_v34  ;;  %v622_v43 = vld [vmem:[%s16474_s1 + $0x50] sm:$0xff]  ;;  %v673_v12 = vld [vmem:[%s16474_s1 + $0x1e8] sm:$0xff] }
  0x43   : > { %v9763_v49 = vcombine.high %v724_v41, %v728_v36  ;;  %v732_v50 = vld [vmem:[%s16474_s1 + $0x3c0] sm:$0xff]  ;;  %v9762_v55 = vcombine.low %v724_v41, %v728_v36  ;;  %v626_v36 = vld [vmem:[%s16474_s1 + $0x70] sm:$0xff] }
  0x44   : > { %1993 = vmatpush1.bf16.msra.mxu1 %v9746_v38  ;;  %v820_v51 = vld [vmem:[%s16474_s1 + $0x680] sm:$0xff]  ;;  %v9668_v38 = vcombine.low %v629_v25, %v633_v26 }
  0x45   : > { %2054 = vmatpush1.bf16.msra.mxu0 %v9834_v37  ;;  %1994 = vmatprep.subr.bf16.mxu1 %v9755_v40  ;;  %v824_v52 = vld [vmem:[%s16474_s1 + $0x6a0] sm:$0xff]  ;;  %v649_v40 = vld [vmem:[%s16474_s1 + $0x128] sm:$0xff] }
  0x46   : > { %2055 = vmatprep.subr.bf16.mxu0 %v9843_v39  ;;  %v736_v53 = vld [vmem:[%s16474_s1 + $0x3e0] sm:$0xff]  ;;  %v9859_v56 = vcombine.high %v820_v51, %v824_v52  ;;  %v9858_v61 = vcombine.low %v820_v51, %v824_v52  ;;  %v645_v39 = vld [vmem:[%s16474_s1 + $0x108] sm:$0xff] }
  0x47   : > { %v9771_v57 = vcombine.high %v732_v50, %v736_v53  ;;  %v828_v59 = vld [vmem:[%s16474_s1 + $0x6c0] sm:$0xff]  ;;  %v9770_v62 = vcombine.low %v732_v50, %v736_v53  ;;  %v653_v50 = vld [vmem:[%s16474_s1 + $0x148] sm:$0xff]  ;;  %v9685_v53 = vcombine.high %v645_v39, %v649_v40 }
  0x48   : > { %1995 = vmatpush1.bf16.msra.mxu1 %v9754_v47  ;;  %v832_v60 = vld [vmem:[%s16474_s1 + $0x6e0] sm:$0xff]  ;;  %v657_v51 = vld [vmem:[%s16474_s1 + $0x168] sm:$0xff] }
  0x49   : > { %2056 = vmatpush1.bf16.msra.mxu0 %v9842_v45  ;;  %1996 = vmatprep.subr.bf16.mxu1 %v9763_v49  ;;  %v9867_v63 = vcombine.high %v828_v59, %v832_v60  ;;  %v9866_v3 = vcombine.low %v828_v59, %v832_v60  ;;  %v9676_v49 = vcombine.low %v637_v31, %v641_v34 }
  0x4a   : > { %2057 = vmatprep.subr.bf16.mxu0 %v9851_v48  ;;  %v563_v48 = vrot.slane %v12069_v21, 3  ;;  %v9692_v8 = vcombine.low %v653_v50, %v657_v51 }
  0x4c   : > { %1997 = vmatpush1.bf16.msra.mxu1 %v9762_v55  ;;  %v531_v55 = vrot.slane %v12069_v21, 2  ;;  %v12411_v60 = vsel %vm559_vm3, %v561_v6, %v563_v48  ;;  %v642_v6 = vld [vmem:[%s16474_s1 + $0xf0] sm:$0xff] }
  0x4d   : > { %2058 = vmatpush1.bf16.msra.mxu0 %v9850_v54  ;;  %1998 = vmatprep.subr.bf16.mxu1 %v9771_v57  ;;  %v9663_v54 = vcombine.high %v622_v43, %v626_v36  ;;  %v634_v57 = vld [vmem:[%s16474_s1 + $0xb0] sm:$0xff] }
  0x4e   : > { %2059 = vmatprep.subr.bf16.mxu0 %v9859_v56  ;;  %v630_v56 = vld [vmem:[%s16474_s1 + $0x90] sm:$0xff] }
  0x50   : > { %1999 = vmatpush1.bf16.msra.mxu1 %v9770_v62  ;;  %v9684_v62 = vcombine.low %v645_v39, %v649_v40  ;;  %v685_v39 = vld [vmem:[%s16474_s1 + $0x248] sm:$0xff] }
  0x51   : > { %2060 = vmatpush1.bf16.msra.mxu0 %v9858_v61  ;;  %2110 = vmatprep.subr.bf16.mxu1 %v9653_v2  ;;  %v661_v2 = vld [vmem:[%s16474_s1 + $0x188] sm:$0xff] }
  0x52   : > { %2061 = vmatprep.subr.bf16.mxu0 %v9867_v63  ;;  %v9662_v63 = vcombine.low %v622_v43, %v626_v36  ;;  %v689_v40 = vld [vmem:[%s16474_s1 + $0x268] sm:$0xff] }
  0x55   : > { %2062 = vmatpush1.bf16.msra.mxu0 %v9866_v3  ;;  %v9671_v3 = vcombine.high %v630_v56, %v634_v57 }
  0x56   : > { %2252 = vmatprep.subr.bf16.mxu0 %v9655_v4  ;;  %v12436_v4 = vrot.slane %v12077_v27, 3 }
  0x98   : > { %v520_v11 = vpop.permute.xlu0 %519 }
  0x99   : > { %v12334_v15 = vsel %vm567_vm4, %v498_v10, %v520_v11  ;;  %v522_v18 = vpop.permute.xlu1 %521  ;;  %v9670_v10 = vcombine.low %v630_v56, %v634_v57  ;;  %v669_v11 = vld [vmem:[%s16474_s1 + $0x1c8] sm:$0xff]  ;;  %v9724_v56 = vcombine.low %v685_v39, %v689_v40 }
  0x9a   : > { %2000 = vmatprep.mubr.bf16.mxu1 %v12334_v15  ;;  %v12339_v22 = vsel %vm567_vm4, %v500_v16, %v522_v18  ;;  %v533_v18 = vrot.slane %v12077_v27, 2 }
  0x9c   : > { %v484_v19 = vpop.permute.xlu0 %483  ;;  %v534_v31 = vsel %vm527_vm6, %v531_v55, %v533_v18 }
  0x9d   : > { %v12350_v28 = vsel %vm567_vm4, %v12065_v17, %v484_v19  ;;  %v486_v29 = vpop.permute.xlu1 %485  ;;  %v646_v19 = vld [vmem:[%s16474_s1 + $0x110] sm:$0xff] }
  0x9e   : > { %2001 = vmatmul.mubr.bf16.vlgmr.msra.gmra.mrb[0].mxu1 %v12350_v28  ;;  %v12370_v37 = vsel %vm567_vm4, %v12067_v20, %v486_v29 }
  0x9f   : > { %2111 = vmatpush1.bf16.msra.mxu1 %v9652_v58  ;;  %2010 = vmatprep.mubr.bf16.mxu1 %v12339_v22  ;;  %v529_v58 = vrot.slane %v12067_v20, 2  ;;  %v665_v20 = vld [vmem:[%s16474_s1 + $0x1a8] sm:$0xff] }
  0xa0   : > { %v524_v32 = vpop.permute.xlu0 %523  ;;  %2112 = vmatprep.subr.bf16.mxu1 %v9661_v24  ;;  %v9701_v13 = vcombine.high %v661_v2, %v665_v20  ;;  %v12464_v24 = vsel %vm559_vm3, %v563_v48, %v12436_v4  ;;  %v9700_v26 = vcombine.low %v661_v2, %v665_v20  ;;  %v693_v48 = vld [vmem:[%s16474_s1 + $0x288] sm:$0xff]  ;;  %v678_v2 = vld [vmem:[%s16474_s1 + $0x210] sm:$0xff] }
  0xa1   : > { %v488_v44 = vpop.permute.xlu1 %487  ;;  %v12379_v41 = vsel %vm567_vm4, %v502_v35, %v524_v32  ;;  %v530_v45 = vsel %vm527_vm6, %v528_v46, %v529_v58  ;;  %v532_v0 = vsel %vm527_vm6, %v529_v58, %v531_v55  ;;  %v681_v32 = vld [vmem:[%s16474_s1 + $0x228] sm:$0xff]  ;;  %v9709_v35 = vcombine.high %v669_v11, %v673_v12  ;;  %v682_v20 = vld [vmem:[%s16474_s1 + $0x230] sm:$0xff] }
  0xa2   : > { %v12415_v61 = vsel %vm567_vm4, %v12069_v21, %v488_v44  ;;  %v638_v21 = vld [vmem:[%s16474_s1 + $0xd0] sm:$0xff]  ;;  %v9708_v58 = vcombine.low %v669_v11, %v673_v12  ;;  %v9719_v12 = vcombine.high %v678_v2, %v682_v20 }
  0xa3   : > { %2113 = vmatpush1.bf16.msra.mxu1 %v9660_v30  ;;  %v9679_v16 = vcombine.high %v638_v21, %v642_v6  ;;  %v9678_v29 = vcombine.low %v638_v21, %v642_v6  ;;  %v677_v30 = vld [vmem:[%s16474_s1 + $0x208] sm:$0xff] }
  0xa4   : > { %v526_v17 = vpop.permute.xlu0 %525  ;;  %2114 = vmatprep.subr.bf16.mxu1 %v9669_v33  ;;  %v654_v33 = vld [vmem:[%s16474_s1 + $0x150] sm:$0xff]  ;;  %v9717_v43 = vcombine.high %v677_v30, %v681_v32 }
  0xa5   : > { %v490_v47 = vpop.permute.xlu1 %489  ;;  %v12441_v5 = vsel %vm567_vm4, %v501_v23, %v526_v17  ;;  %v650_v23 = vld [vmem:[%s16474_s1 + $0x130] sm:$0xff] }
  0xa6   : > { %2011 = vmatmul.mubr.bf16.gmra.mrb[4].mxu1 %v12370_v37  ;;  %v12468_v25 = vsel %vm567_vm4, %v12077_v27, %v490_v47  ;;  %v658_v27 = vld [vmem:[%s16474_s1 + $0x170] sm:$0xff]  ;;  %v9687_v44 = vcombine.high %v646_v19, %v650_v23 }
  0xa7   : > { %2115 = vmatpush1.bf16.msra.mxu1 %v9668_v38  ;;  %2020 = vmatprep.mubr.bf16.mxu1 %v12379_v41  ;;  %v9686_v38 = vcombine.low %v646_v19, %v650_v23  ;;  %v662_v17 = vld [vmem:[%s16474_s1 + $0x190] sm:$0xff]  ;;  %v9695_v36 = vcombine.high %v654_v33, %v658_v27  ;;  %v9694_v47 = vcombine.low %v654_v33, %v658_v27  ;;  %v721_v19 = vld [vmem:[%s16474_s1 + $0x368] sm:$0xff] }
  0xa8   : > { %v552_v52 = vpop.permute.xlu0 %551  ;;  %2116 = vmatprep.subr.bf16.mxu1 %v9677_v42  ;;  %v666_v42 = vld [vmem:[%s16474_s1 + $0x1b0] sm:$0xff]  ;;  %v725_v27 = vld [vmem:[%s16474_s1 + $0x388] sm:$0xff] }
  0xa9   : > { %v12405_v59 = vsel %vm567_vm4, %v530_v45, %v552_v52  ;;  %v554_v1 = vpop.permute.xlu1 %553  ;;  %v9716_v45 = vcombine.low %v677_v30, %v681_v32  ;;  %v9703_v52 = vcombine.high %v662_v17, %v666_v42  ;;  %v9702_v57 = vcombine.low %v662_v17, %v666_v42  ;;  %v694_v23 = vld [vmem:[%s16474_s1 + $0x290] sm:$0xff]  ;;  %v737_v17 = vld [vmem:[%s16474_s1 + $0x3e8] sm:$0xff] }
  0xaa   : > { %2072 = vmatmul.mubr.bf16.vlgmr.msra.gmra.mrb[0].mxu0 %v12405_v59  ;;  %v12445_v7 = vsel %vm567_vm4, %v532_v0, %v554_v1  ;;  %v710_v42 = vld [vmem:[%s16474_s1 + $0x310] sm:$0xff] }
  0xab   : > { %2117 = vmatpush1.bf16.msra.mxu1 %v9676_v49  ;;  %2253 = vmatpush1.bf16.msra.mxu0 %v9654_v9  ;;  %v9693_v9 = vcombine.high %v653_v50, %v657_v51  ;;  %v697_v49 = vld [vmem:[%s16474_s1 + $0x2a8] sm:$0xff]  ;;  %v9725_v51 = vcombine.high %v685_v39, %v689_v40 }
  0xac   : > { %2118 = vmatprep.subr.bf16.mxu1 %v9685_v53  ;;  %2254 = vmatprep.subr.bf16.mxu0 %v9663_v54  ;;  %v556_v34 = vpop.permute.xlu0 %555  ;;  %v670_v53 = vld [vmem:[%s16474_s1 + $0x1d0] sm:$0xff]  ;;  %v9733_v21 = vcombine.high %v693_v48, %v697_v49  ;;  %v9732_v0 = vcombine.low %v693_v48, %v697_v49  ;;  %v733_v40 = vld [vmem:[%s16474_s1 + $0x3c8] sm:$0xff] }
  0xad   : > { %9875 = vmatprep.mubr.msk.bf16.mxu0 %vm567_vm4, %v12411_v60  ;;  %v12487_v46 = vsel %vm567_vm4, %v534_v31, %v556_v34  ;;  %v558_v50 = vpop.permute.xlu1 %557  ;;  %v674_v54 = vld [vmem:[%s16474_s1 + $0x1f0] sm:$0xff]  ;;  %v729_v31 = vld [vmem:[%s16474_s1 + $0x3a8] sm:$0xff] }
  0xae   : > { %2021 = vmatmul.mubr.bf16.gmra.mrb[8].mxu1 %v12415_v61  ;;  %v12518_v55 = vsel %vm567_vm4, %v533_v18, %v558_v50  ;;  %v9711_v6 = vcombine.high %v670_v53, %v674_v54  ;;  %v9710_v1 = vcombine.low %v670_v53, %v674_v54  ;;  %v717_v18 = vld [vmem:[%s16474_s1 + $0x348] sm:$0xff]  ;;  %v718_v53 = vld [vmem:[%s16474_s1 + $0x350] sm:$0xff] }
  0xaf   : > { %2119 = vmatpush1.bf16.msra.mxu1 %v9684_v62  ;;  %2255 = vmatpush1.bf16.msra.mxu0 %v9662_v63  ;;  %v701_v62 = vld [vmem:[%s16474_s1 + $0x2c8] sm:$0xff]  ;;  %v9757_v34 = vcombine.high %v717_v18, %v721_v19  ;;  %v722_v54 = vld [vmem:[%s16474_s1 + $0x370] sm:$0xff] }
  0xb0   : > { %2120 = vmatprep.subr.bf16.mxu1 %v9693_v9  ;;  %2256 = vmatprep.subr.bf16.mxu0 %v9671_v3  ;;  %v705_v63 = vld [vmem:[%s16474_s1 + $0x2e8] sm:$0xff] }
  0xb1   : > { %2030 = vmatprep.mubr.bf16.mxu1 %v12441_v5  ;;  %v709_v9 = vld [vmem:[%s16474_s1 + $0x308] sm:$0xff]  ;;  %v9741_v11 = vcombine.high %v701_v62, %v705_v63 }
  0xb2   : > { %2082 = vmatmul.mubr.bf16.gmra.mrb[4].mxu0 %v12445_v7  ;;  %v713_v3 = vld [vmem:[%s16474_s1 + $0x328] sm:$0xff] }
  0xb3   : > { %2121 = vmatpush1.bf16.msra.mxu1 %v9692_v8  ;;  %2257 = vmatpush1.bf16.msra.mxu0 %v9670_v10  ;;  %v686_v8 = vld [vmem:[%s16474_s1 + $0x250] sm:$0xff]  ;;  %v9748_v32 = vcombine.low %v709_v9, %v713_v3  ;;  %v741_v49 = vld [vmem:[%s16474_s1 + $0x408] sm:$0xff] }
  0xb4   : > { %2122 = vmatprep.subr.bf16.mxu1 %v9701_v13  ;;  %2258 = vmatprep.subr.bf16.mxu0 %v9679_v16  ;;  %v690_v10 = vld [vmem:[%s16474_s1 + $0x270] sm:$0xff]  ;;  %v9740_v13 = vcombine.low %v701_v62, %v705_v63  ;;  %v9718_v16 = vcombine.low %v678_v2, %v682_v20  ;;  %v745_v50 = vld [vmem:[%s16474_s1 + $0x428] sm:$0xff]  ;;  %v9759_v20 = vcombine.high %v718_v53, %v722_v54 }
  0xb5   : > { %9876 = vmatprep.mubr.msk.bf16.mxu0 %vm567_vm4, %v12464_v24  ;;  %v9727_v30 = vcombine.high %v686_v8, %v690_v10  ;;  %v9726_v33 = vcombine.low %v686_v8, %v690_v10  ;;  %v749_v62 = vld [vmem:[%s16474_s1 + $0x448] sm:$0xff]  ;;  %v9781_v2 = vcombine.high %v741_v49, %v745_v50  ;;  %v734_v10 = vld [vmem:[%s16474_s1 + $0x3d0] sm:$0xff] }
  0xb6   : > { %2031 = vmatmul.mubr.bf16.gmra.mrb[12].mxu1 %v12468_v25  ;;  %v753_v63 = vld [vmem:[%s16474_s1 + $0x468] sm:$0xff] }
  0xb7   : > { %2123 = vmatpush1.bf16.msra.mxu1 %v9700_v26  ;;  %2259 = vmatpush1.bf16.msra.mxu0 %v9678_v29  ;;  %v698_v26 = vld [vmem:[%s16474_s1 + $0x2b0] sm:$0xff]  ;;  %v9749_v29 = vcombine.high %v709_v9, %v713_v3  ;;  %v761_v9 = vld [vmem:[%s16474_s1 + $0x4a8] sm:$0xff]  ;;  %v9758_v3 = vcombine.low %v718_v53, %v722_v54  ;;  %v9789_v8 = vcombine.high %v749_v62, %v753_v63 }
  0xb8   : > { %2142 = vmatprep.mubr.bf16.mxu1 %v12334_v15  ;;  %2124 = vmatprep.subr.bf16.mxu1 %v9709_v35  ;;  %v9735_v35 = vcombine.high %v694_v23, %v698_v26  ;;  %v9734_v39 = vcombine.low %v694_v23, %v698_v26  ;;  %v742_v26 = vld [vmem:[%s16474_s1 + $0x410] sm:$0xff] }
  0xb9   : > { %2260 = vmatprep.subr.bf16.mxu0 %v9687_v44  ;;  %v702_v44 = vld [vmem:[%s16474_s1 + $0x2d0] sm:$0xff] }
  0xba   : > { %2092 = vmatmul.mubr.bf16.gmra.mrb[8].mxu0 %v12487_v46  ;;  %v770_v53 = vld [vmem:[%s16474_s1 + $0x4f0] sm:$0xff] }
  0xbb   : > { %2125 = vmatpush1.bf16.msra.mxu1 %v9708_v58  ;;  %2261 = vmatpush1.bf16.msra.mxu0 %v9686_v38  ;;  %v706_v58 = vld [vmem:[%s16474_s1 + $0x2f0] sm:$0xff]  ;;  %v9756_v38 = vcombine.low %v717_v18, %v721_v19  ;;  %v769_v18 = vld [vmem:[%s16474_s1 + $0x4e8] sm:$0xff] }
  0xbc   : > { %2126 = vmatprep.subr.bf16.mxu1 %v9717_v43  ;;  %2262 = vmatprep.subr.bf16.mxu0 %v9695_v36  ;;  %v714_v43 = vld [vmem:[%s16474_s1 + $0x330] sm:$0xff]  ;;  %v9765_v36 = vcombine.high %v725_v27, %v729_v31  ;;  %v9742_v48 = vcombine.low %v702_v44, %v706_v58 }
  0xbd   : > { %9877 = vmatprep.mubr.msk.bf16.mxu0 %vm567_vm4, %v12436_v4 }
  0xbf   : > { %2127 = vmatpush1.bf16.msra.mxu1 %v9716_v45  ;;  %2263 = vmatpush1.bf16.msra.mxu0 %v9694_v47  ;;  %v9743_v45 = vcombine.high %v702_v44, %v706_v58  ;;  %v9764_v47 = vcombine.low %v725_v27, %v729_v31  ;;  %v773_v31 = vld [vmem:[%s16474_s1 + $0x508] sm:$0xff]  ;;  %v754_v44 = vld [vmem:[%s16474_s1 + $0x470] sm:$0xff] }
  0xc0   : > { %2128 = vmatprep.subr.bf16.mxu1 %v9725_v51  ;;  %2264 = vmatprep.subr.bf16.mxu0 %v9703_v52  ;;  %v9773_v51 = vcombine.high %v733_v40, %v737_v17  ;;  %v9751_v52 = vcombine.high %v710_v42, %v714_v43 }
  0xc2   : > { %2102 = vmatmul.mubr.bf16.gmra.mrb[12].mxu0 %v12518_v55 }
  0xc3   : > { %2129 = vmatpush1.bf16.msra.mxu1 %v9724_v56  ;;  %2265 = vmatpush1.bf16.msra.mxu0 %v9702_v57  ;;  %v9772_v56 = vcombine.low %v733_v40, %v737_v17  ;;  %v9750_v57 = vcombine.low %v710_v42, %v714_v43  ;;  %v785_v40 = vld [vmem:[%s16474_s1 + $0x568] sm:$0xff]  ;;  %v758_v42 = vld [vmem:[%s16474_s1 + $0x490] sm:$0xff] }
  0xc4   : > { %2284 = vmatprep.mubr.bf16.mxu0 %v12334_v15  ;;  %2130 = vmatprep.subr.bf16.mxu1 %v9733_v21  ;;  %v726_v21 = vld [vmem:[%s16474_s1 + $0x390] sm:$0xff] }
  0xc5   : > { %2266 = vmatprep.subr.bf16.mxu0 %v9711_v6  ;;  %v730_v6 = vld [vmem:[%s16474_s1 + $0x3b0] sm:$0xff] }
  0xc6   : > { %v9766_v19 = vcombine.low %v726_v21, %v730_v6  ;;  %v762_v43 = vld [vmem:[%s16474_s1 + $0x4b0] sm:$0xff] }
  0xc7   : > { %2131 = vmatpush1.bf16.msra.mxu1 %v9732_v0  ;;  %2267 = vmatpush1.bf16.msra.mxu0 %v9710_v1  ;;  %v9780_v0 = vcombine.low %v741_v49, %v745_v50  ;;  %v757_v1 = vld [vmem:[%s16474_s1 + $0x488] sm:$0xff]  ;;  %v9799_v54 = vcombine.high %v758_v42, %v762_v43 }
  0xc8   : > { %2132 = vmatprep.subr.bf16.mxu1 %v9741_v11  ;;  %2268 = vmatprep.subr.bf16.mxu0 %v9719_v12  ;;  %v738_v11 = vld [vmem:[%s16474_s1 + $0x3f0] sm:$0xff]  ;;  %v9767_v12 = vcombine.high %v726_v21, %v730_v6  ;;  %v9797_v23 = vcombine.high %v757_v1, %v761_v9  ;;  %v789_v50 = vld [vmem:[%s16474_s1 + $0x588] sm:$0xff] }
  0xcb   : > { %2133 = vmatpush1.bf16.msra.mxu1 %v9740_v13  ;;  %2269 = vmatpush1.bf16.msra.mxu0 %v9718_v16  ;;  %v9788_v13 = vcombine.low %v749_v62, %v753_v63  ;;  %v765_v16 = vld [vmem:[%s16474_s1 + $0x4c8] sm:$0xff]  ;;  %v9798_v63 = vcombine.low %v758_v42, %v762_v43  ;;  %v806_v43 = vld [vmem:[%s16474_s1 + $0x610] sm:$0xff] }
  0xcc   : > { %2134 = vmatprep.subr.bf16.mxu1 %v9749_v29  ;;  %2270 = vmatprep.subr.bf16.mxu0 %v9727_v30  ;;  %v746_v29 = vld [vmem:[%s16474_s1 + $0x430] sm:$0xff]  ;;  %v9775_v30 = vcombine.high %v734_v10, %v738_v11  ;;  %v9805_v27 = vcombine.high %v765_v16, %v769_v18  ;;  %v801_v62 = vld [vmem:[%s16474_s1 + $0x5e8] sm:$0xff] }
  0xcd   : > { %v9783_v58 = vcombine.high %v742_v26, %v746_v29  ;;  %v9782_v17 = vcombine.low %v742_v26, %v746_v29  ;;  %v794_v26 = vld [vmem:[%s16474_s1 + $0x5b0] sm:$0xff] }
  0xcf   : > { %2135 = vmatpush1.bf16.msra.mxu1 %v9748_v32  ;;  %2271 = vmatpush1.bf16.msra.mxu0 %v9726_v33  ;;  %v9796_v32 = vcombine.low %v757_v1, %v761_v9  ;;  %v9774_v33 = vcombine.low %v734_v10, %v738_v11  ;;  %v782_v10 = vld [vmem:[%s16474_s1 + $0x550] sm:$0xff] }
  0xd0   : > { %2136 = vmatprep.subr.bf16.mxu1 %v9757_v34  ;;  %2272 = vmatprep.subr.bf16.mxu0 %v9735_v35  ;;  %v777_v34 = vld [vmem:[%s16474_s1 + $0x528] sm:$0xff]  ;;  %v750_v35 = vld [vmem:[%s16474_s1 + $0x450] sm:$0xff] }
  0xd1   : > { %v786_v11 = vld [vmem:[%s16474_s1 + $0x570] sm:$0xff] }
  0xd3   : > { %2137 = vmatpush1.bf16.msra.mxu1 %v9756_v38  ;;  %2273 = vmatpush1.bf16.msra.mxu0 %v9734_v39  ;;  %v9804_v38 = vcombine.low %v765_v16, %v769_v18  ;;  %v781_v39 = vld [vmem:[%s16474_s1 + $0x548] sm:$0xff] }
  0xd4   : > { %2138 = vmatprep.subr.bf16.mxu1 %v9765_v36  ;;  %2274 = vmatprep.subr.bf16.mxu0 %v9743_v45  ;;  %v9813_v36 = vcombine.high %v773_v31, %v777_v34  ;;  %v9791_v45 = vcombine.high %v750_v35, %v754_v44  ;;  %v9821_v49 = vcombine.high %v781_v39, %v785_v40  ;;  %v813_v16 = vld [vmem:[%s16474_s1 + $0x648] sm:$0xff] }
  0xd5   : > { %v817_v18 = vld [vmem:[%s16474_s1 + $0x668] sm:$0xff] }
  0xd7   : > { %2139 = vmatpush1.bf16.msra.mxu1 %v9764_v47  ;;  %2275 = vmatpush1.bf16.msra.mxu0 %v9742_v48  ;;  %v9812_v47 = vcombine.low %v773_v31, %v777_v34  ;;  %v9790_v48 = vcombine.low %v750_v35, %v754_v44  ;;  %v9822_v31 = vcombine.low %v782_v10, %v786_v11  ;;  %v798_v35 = vld [vmem:[%s16474_s1 + $0x5d0] sm:$0xff] }
  0xd8   : > { %2140 = vmatprep.subr.bf16.mxu1 %v9773_v51  ;;  %2276 = vmatprep.subr.bf16.mxu0 %v9751_v52  ;;  %v793_v51 = vld [vmem:[%s16474_s1 + $0x5a8] sm:$0xff]  ;;  %v766_v52 = vld [vmem:[%s16474_s1 + $0x4d0] sm:$0xff]  ;;  %v9853_v34 = vcombine.high %v813_v16, %v817_v18 }
  0xd9   : > { %v9829_v21 = vcombine.high %v789_v50, %v793_v51  ;;  %v9807_v6 = vcombine.high %v766_v52, %v770_v53  ;;  %v9806_v1 = vcombine.low %v766_v52, %v770_v53  ;;  %v814_v52 = vld [vmem:[%s16474_s1 + $0x650] sm:$0xff] }
  0xda   : > { %v818_v53 = vld [vmem:[%s16474_s1 + $0x670] sm:$0xff] }
  0xdb   : > { %2141 = vmatpush1.bf16.msra.mxu1 %v9772_v56  ;;  %2277 = vmatpush1.bf16.msra.mxu0 %v9750_v57  ;;  %v9820_v56 = vcombine.low %v781_v39, %v785_v40  ;;  %v797_v57 = vld [vmem:[%s16474_s1 + $0x5c8] sm:$0xff] }
  0xdc   : > { %2181 = vmatprep.subr.bf16.mxu1 %v9781_v2  ;;  %2278 = vmatprep.subr.bf16.mxu0 %v9759_v20  ;;  %v774_v2 = vld [vmem:[%s16474_s1 + $0x510] sm:$0xff]  ;;  %v9837_v9 = vcombine.high %v797_v57, %v801_v62  ;;  %v829_v39 = vld [vmem:[%s16474_s1 + $0x6c8] sm:$0xff] }
  0xdd   : > { %v778_v20 = vld [vmem:[%s16474_s1 + $0x530] sm:$0xff]  ;;  %v833_v40 = vld [vmem:[%s16474_s1 + $0x6e8] sm:$0xff] }
  0xde   : > { %2143 = vmatmul.mubr.bf16.vlgmr.msra.gmra.mrb[16].mxu1 %v12350_v28 }
  0xdf   : > { %2152 = vmatprep.mubr.bf16.mxu1 %v12339_v22  ;;  %2182 = vmatpush1.bf16.msra.mxu1 %v9780_v0  ;;  %v9828_v0 = vcombine.low %v789_v50, %v793_v51  ;;  %v9869_v51 = vcombine.high %v829_v39, %v833_v40 }
  0xe0   : > { %2279 = vmatpush1.bf16.msra.mxu0 %v9758_v3  ;;  %2183 = vmatprep.subr.bf16.mxu1 %v9789_v8  ;;  %v805_v3 = vld [vmem:[%s16474_s1 + $0x608] sm:$0xff] }
  0xe1   : > { %2280 = vmatprep.subr.bf16.mxu0 %v9767_v12  ;;  %v809_v8 = vld [vmem:[%s16474_s1 + $0x628] sm:$0xff]  ;;  %v9815_v12 = vcombine.high %v774_v2, %v778_v20 }
  0xe2   : > { %v9845_v29 = vcombine.high %v805_v3, %v809_v8 }
  0xe3   : > { %2184 = vmatpush1.bf16.msra.mxu1 %v9788_v13  ;;  %v9836_v13 = vcombine.low %v797_v57, %v801_v62  ;;  %v623_v57 = vld [vmem:[%s16474_s1 + $0x58] sm:$0xff] }
  0xe4   : > { %2281 = vmatpush1.bf16.msra.mxu0 %v9766_v19  ;;  %2185 = vmatprep.subr.bf16.mxu1 %v9797_v23  ;;  %v9814_v19 = vcombine.low %v774_v2, %v778_v20  ;;  %v790_v23 = vld [vmem:[%s16474_s1 + $0x590] sm:$0xff]  ;;  %v627_v62 = vld [vmem:[%s16474_s1 + $0x78] sm:$0xff] }
  0xe5   : > { %2282 = vmatprep.subr.bf16.mxu0 %v9775_v30  ;;  %v9823_v30 = vcombine.high %v782_v10, %v786_v11  ;;  %v9831_v44 = vcombine.high %v790_v23, %v794_v26  ;;  %v822_v20 = vld [vmem:[%s16474_s1 + $0x690] sm:$0xff] }
  0xe6   : > { %2153 = vmatmul.mubr.bf16.gmra.mrb[20].mxu1 %v12370_v37  ;;  %v830_v10 = vld [vmem:[%s16474_s1 + $0x6d0] sm:$0xff] }
  0xe7   : > { %2162 = vmatprep.mubr.bf16.mxu1 %v12379_v41  ;;  %2186 = vmatpush1.bf16.msra.mxu1 %v9796_v32  ;;  %v9844_v32 = vcombine.low %v805_v3, %v809_v8  ;;  %v9854_v3 = vcombine.low %v814_v52, %v818_v53  ;;  %v9665_v8 = vcombine.high %v623_v57, %v627_v62  ;;  %v834_v11 = vld [vmem:[%s16474_s1 + $0x6f0] sm:$0xff] }
  0xe8   : > { %2283 = vmatpush1.bf16.msra.mxu0 %v9774_v33  ;;  %2187 = vmatprep.subr.bf16.mxu1 %v9805_v27  ;;  %v821_v33 = vld [vmem:[%s16474_s1 + $0x688] sm:$0xff] }
  0xe9   : > { %2323 = vmatprep.subr.bf16.mxu0 %v9783_v58  ;;  %v825_v27 = vld [vmem:[%s16474_s1 + $0x6a8] sm:$0xff]  ;;  %v802_v58 = vld [vmem:[%s16474_s1 + $0x5f0] sm:$0xff] }
  0xea   : > { %v9861_v42 = vcombine.high %v821_v33, %v825_v27  ;;  %v9838_v50 = vcombine.low %v798_v35, %v802_v58 }
  0xeb   : > { %2285 = vmatmul.mubr.bf16.vlgmr.msra.gmra.mrb[16].mxu0 %v12350_v28  ;;  %2188 = vmatpush1.bf16.msra.mxu1 %v9804_v38  ;;  %v9852_v38 = vcombine.low %v813_v16, %v817_v18  ;;  %v639_v16 = vld [vmem:[%s16474_s1 + $0xd8] sm:$0xff] }
  0xec   : > { %2294 = vmatprep.mubr.bf16.mxu0 %v12339_v22  ;;  %2324 = vmatpush1.bf16.msra.mxu0 %v9782_v17  ;;  %v9830_v17 = vcombine.low %v790_v23, %v794_v26  ;;  %v643_v18 = vld [vmem:[%s16474_s1 + $0xf8] sm:$0xff]  ;;  %v9871_v26 = vcombine.high %v830_v10, %v834_v11 }
  0xed   : > { %2189 = vmatprep.subr.bf16.mxu1 %v9813_v36  ;;  %2325 = vmatprep.subr.bf16.mxu0 %v9791_v45  ;;  %v810_v36 = vld [vmem:[%s16474_s1 + $0x630] sm:$0xff]  ;;  %v9839_v45 = vcombine.high %v798_v35, %v802_v58  ;;  %v659_v35 = vld [vmem:[%s16474_s1 + $0x178] sm:$0xff] }
  0xee   : > { %2163 = vmatmul.mubr.bf16.gmra.mrb[24].mxu1 %v12415_v61 }
  0xef   : > { %2172 = vmatprep.mubr.bf16.mxu1 %v12441_v5  ;;  %2190 = vmatpush1.bf16.msra.mxu1 %v9812_v47  ;;  %v9860_v47 = vcombine.low %v821_v33, %v825_v27  ;;  %v9870_v33 = vcombine.low %v830_v10, %v834_v11  ;;  %v9681_v27 = vcombine.high %v639_v16, %v643_v18 }
  0xf0   : > { %2326 = vmatpush1.bf16.msra.mxu0 %v9790_v48  ;;  %2191 = vmatprep.subr.bf16.mxu1 %v9821_v49  ;;  %v615_v48 = vld [vmem:[%s16474_s1 + $0x18] sm:$0xff] }
  0xf1   : > { %2327 = vmatprep.subr.bf16.mxu0 %v9799_v54  ;;  %v619_v49 = vld [vmem:[%s16474_s1 + $0x38] sm:$0xff]  ;;  %v9847_v54 = vcombine.high %v806_v43, %v810_v36 }
  0xf2   : > { %v9657_v2 = vcombine.high %v615_v48, %v619_v49 }
  0xf3   : > { %2295 = vmatmul.mubr.bf16.gmra.mrb[20].mxu0 %v12370_v37  ;;  %2192 = vmatpush1.bf16.msra.mxu1 %v9820_v56  ;;  %v9868_v56 = vcombine.low %v829_v39, %v833_v40  ;;  %v667_v39 = vld [vmem:[%s16474_s1 + $0x1b8] sm:$0xff] }
  0xf4   : > { %2304 = vmatprep.mubr.bf16.mxu0 %v12379_v41  ;;  %2328 = vmatpush1.bf16.msra.mxu0 %v9798_v63  ;;  %v9846_v63 = vcombine.low %v806_v43, %v810_v36  ;;  %v675_v43 = vld [vmem:[%s16474_s1 + $0x1f8] sm:$0xff] }
  0xf5   : > { %2193 = vmatprep.subr.bf16.mxu1 %v9829_v21  ;;  %2329 = vmatprep.subr.bf16.mxu0 %v9807_v6  ;;  %v826_v21 = vld [vmem:[%s16474_s1 + $0x6b0] sm:$0xff]  ;;  %v9855_v6 = vcombine.high %v814_v52, %v818_v53  ;;  %v691_v52 = vld [vmem:[%s16474_s1 + $0x278] sm:$0xff] }
  0xf6   : > { %2173 = vmatmul.mubr.bf16.gmra.mrb[28].mxu1 %v12468_v25 }
  0xf7   : > { %2194 = vmatpush1.bf16.msra.mxu1 %v9828_v0  ;;  %9878 = vmatprep.mubr.msk.bf16.mxu1 %vm567_vm4, %v12258_v14  ;;  %v9656_v0 = vcombine.low %v615_v48, %v619_v49  ;;  %v683_v48 = vld [vmem:[%s16474_s1 + $0x238] sm:$0xff] }
  0xf8   : > { %2330 = vmatpush1.bf16.msra.mxu0 %v9806_v1  ;;  %2195 = vmatprep.subr.bf16.mxu1 %v9837_v9  ;;  %v631_v1 = vld [vmem:[%s16474_s1 + $0x98] sm:$0xff] }
  0xf9   : > { %2331 = vmatprep.subr.bf16.mxu0 %v9815_v12  ;;  %v635_v9 = vld [vmem:[%s16474_s1 + $0xb8] sm:$0xff]  ;;  %v9863_v12 = vcombine.high %v822_v20, %v826_v21 }
  0xfa   : > { %v9673_v23 = vcombine.high %v631_v1, %v635_v9 }
  0xfb   : > { %2305 = vmatmul.mubr.bf16.gmra.mrb[24].mxu0 %v12415_v61  ;;  %2196 = vmatpush1.bf16.msra.mxu1 %v9836_v13  ;;  %v9664_v13 = vcombine.low %v623_v57, %v627_v62 }
  0xfc   : > { %2314 = vmatprep.mubr.bf16.mxu0 %v12441_v5  ;;  %2332 = vmatpush1.bf16.msra.mxu0 %v9814_v19  ;;  %v9862_v19 = vcombine.low %v822_v20, %v826_v21 }
  0xfd   : > { %2197 = vmatprep.subr.bf16.mxu1 %v9845_v29  ;;  %2333 = vmatprep.subr.bf16.mxu0 %v9823_v30  ;;  %v9672_v29 = vcombine.low %v631_v1, %v635_v9  ;;  %v647_v30 = vld [vmem:[%s16474_s1 + $0x118] sm:$0xff] }
  0xff   : > { %2198 = vmatpush1.bf16.msra.mxu1 %v9844_v32  ;;  %v651_v32 = vld [vmem:[%s16474_s1 + $0x138] sm:$0xff] }
 0x100   : > { %2334 = vmatpush1.bf16.msra.mxu0 %v9822_v31  ;;  %2199 = vmatprep.subr.bf16.mxu1 %v9853_v34  ;;  %v9680_v31 = vcombine.low %v639_v16, %v643_v18  ;;  %v655_v34 = vld [vmem:[%s16474_s1 + $0x158] sm:$0xff]  ;;  %v9688_v58 = vcombine.low %v647_v30, %v651_v32 }
 0x101   : > { %2335 = vmatprep.subr.bf16.mxu0 %v9831_v44  ;;  %v9689_v44 = vcombine.high %v647_v30, %v651_v32  ;;  %v9697_v40 = vcombine.high %v655_v34, %v659_v35  ;;  %v731_v16 = vld [vmem:[%s16474_s1 + $0x3b8] sm:$0xff] }
 0x102   : > { %v743_v30 = vld [vmem:[%s16474_s1 + $0x418] sm:$0xff] }
 0x103   : > { %2315 = vmatmul.mubr.bf16.gmra.mrb[28].mxu0 %v12468_v25  ;;  %2200 = vmatpush1.bf16.msra.mxu1 %v9852_v38  ;;  %v663_v38 = vld [vmem:[%s16474_s1 + $0x198] sm:$0xff] }
 0x104   : > { %2336 = vmatpush1.bf16.msra.mxu0 %v9830_v17  ;;  %2201 = vmatprep.subr.bf16.mxu1 %v9861_v42  ;;  %v9696_v17 = vcombine.low %v655_v34, %v659_v35  ;;  %v671_v42 = vld [vmem:[%s16474_s1 + $0x1d8] sm:$0xff]  ;;  %v9705_v36 = vcombine.high %v663_v38, %v667_v39 }
 0x105   : > { %2337 = vmatprep.subr.bf16.mxu0 %v9839_v45  ;;  %9882 = vmatprep.mubr.msk.bf16.mxu0 %vm567_vm4, %v12258_v14  ;;  %v9704_v45 = vcombine.low %v663_v38, %v667_v39  ;;  %v9713_v49 = vcombine.high %v671_v42, %v675_v43  ;;  %v747_v32 = vld [vmem:[%s16474_s1 + $0x438] sm:$0xff] }
 0x106   : > { %v755_v34 = vld [vmem:[%s16474_s1 + $0x478] sm:$0xff]  ;;  %v9785_v35 = vcombine.high %v743_v30, %v747_v32 }
 0x107   : > { %2202 = vmatpush1.bf16.msra.mxu1 %v9860_v47  ;;  %v679_v47 = vld [vmem:[%s16474_s1 + $0x218] sm:$0xff] }
 0x108   : > { %2338 = vmatpush1.bf16.msra.mxu0 %v9838_v50  ;;  %2203 = vmatprep.subr.bf16.mxu1 %v9869_v51  ;;  %v9712_v50 = vcombine.low %v671_v42, %v675_v43  ;;  %v687_v51 = vld [vmem:[%s16474_s1 + $0x258] sm:$0xff]  ;;  %v9721_v53 = vcombine.high %v679_v47, %v683_v48 }
 0x109   : > { %2339 = vmatprep.subr.bf16.mxu0 %v9847_v54  ;;  %v9720_v54 = vcombine.low %v679_v47, %v683_v48  ;;  %v9729_v57 = vcombine.high %v687_v51, %v691_v52  ;;  %v9728_v62 = vcombine.low %v687_v51, %v691_v52  ;;  %v763_v38 = vld [vmem:[%s16474_s1 + $0x4b8] sm:$0xff] }
 0x10a   : > { %v771_v42 = vld [vmem:[%s16474_s1 + $0x4f8] sm:$0xff] }
 0x10b   : > { %2204 = vmatpush1.bf16.msra.mxu1 %v9868_v56  ;;  %v695_v56 = vld [vmem:[%s16474_s1 + $0x298] sm:$0xff] }
 0x10c   : > { %2340 = vmatpush1.bf16.msra.mxu0 %v9846_v63  ;;  %2394 = vmatprep.subr.bf16.mxu1 %v9657_v2  ;;  %v703_v63 = vld [vmem:[%s16474_s1 + $0x2d8] sm:$0xff] }
 0x10d   : > { %2341 = vmatprep.subr.bf16.mxu0 %v9855_v6  ;;  %v707_v2 = vld [vmem:[%s16474_s1 + $0x2f8] sm:$0xff] }
 0x10e   : > { %2214 = vmatmul.mubr.bf16.vlgmr.msra.gmra.mrb[16].mxu1 %v12405_v59  ;;  %v711_v6 = vld [vmem:[%s16474_s1 + $0x318] sm:$0xff]  ;;  %v9745_v1 = vcombine.high %v703_v63, %v707_v2  ;;  %v9744_v9 = vcombine.low %v703_v63, %v707_v2 }
 0x10f   : > { %2395 = vmatpush1.bf16.msra.mxu1 %v9656_v0  ;;  %9879 = vmatprep.mubr.msk.bf16.mxu1 %vm567_vm4, %v12411_v60  ;;  %v715_v0 = vld [vmem:[%s16474_s1 + $0x338] sm:$0xff] }
 0x110   : > { %2342 = vmatpush1.bf16.msra.mxu0 %v9854_v3  ;;  %2396 = vmatprep.subr.bf16.mxu1 %v9665_v8  ;;  %v719_v3 = vld [vmem:[%s16474_s1 + $0x358] sm:$0xff]  ;;  %v9753_v10 = vcombine.high %v711_v6, %v715_v0  ;;  %v9752_v11 = vcombine.low %v711_v6, %v715_v0 }
 0x111   : > { %2343 = vmatprep.subr.bf16.mxu0 %v9863_v12  ;;  %v723_v8 = vld [vmem:[%s16474_s1 + $0x378] sm:$0xff] }
 0x112   : > { %v727_v12 = vld [vmem:[%s16474_s1 + $0x398] sm:$0xff]  ;;  %v9760_v18 = vcombine.low %v719_v3, %v723_v8 }
 0x113   : > { %2397 = vmatpush1.bf16.msra.mxu1 %v9664_v13  ;;  %v9761_v13 = vcombine.high %v719_v3, %v723_v8  ;;  %v2538_v3 = vlaneseq }
 0x114   : > { %2344 = vmatpush1.bf16.msra.mxu0 %v9862_v19  ;;  %2398 = vmatprep.subr.bf16.mxu1 %v9673_v23  ;;  %v735_v19 = vld [vmem:[%s16474_s1 + $0x3d8] sm:$0xff] }
 0x115   : > { %2345 = vmatprep.subr.bf16.mxu0 %v9871_v26  ;;  %v739_v23 = vld [vmem:[%s16474_s1 + $0x3f8] sm:$0xff]  ;;  %v9769_v26 = vcombine.high %v727_v12, %v731_v16 }
 0x116   : > { %2224 = vmatmul.mubr.bf16.gmra.mrb[20].mxu1 %v12445_v7 }
 0x117   : > { %2399 = vmatpush1.bf16.msra.mxu1 %v9672_v29  ;;  %9880 = vmatprep.mubr.msk.bf16.mxu1 %vm567_vm4, %v12464_v24  ;;  %v9768_v29 = vcombine.low %v727_v12, %v731_v16 }
 0x118   : > { %2346 = vmatpush1.bf16.msra.mxu0 %v9870_v33  ;;  %2400 = vmatprep.subr.bf16.mxu1 %v9681_v27  ;;  %v9777_v33 = vcombine.high %v735_v19, %v739_v23  ;;  %v9776_v27 = vcombine.low %v735_v19, %v739_v23  ;;  %v12960_v23 = vshrl.u32 %v2538_v3, 7 }
 0x11b   : > { %2356 = vmatmul.mubr.bf16.vlgmr.msra.gmra.mrb[16].mxu0 %v12405_v59  ;;  %2401 = vmatpush1.bf16.msra.mxu1 %v9680_v31  ;;  %v751_v31 = vld [vmem:[%s16474_s1 + $0x458] sm:$0xff] }
 0x11c   : > { %2402 = vmatprep.subr.bf16.mxu1 %v9689_v44  ;;  %9883 = vmatprep.mubr.msk.bf16.mxu0 %vm567_vm4, %v12411_v60  ;;  %v9784_v44 = vcombine.low %v743_v30, %v747_v32  ;;  %v9793_v39 = vcombine.high %v751_v31, %v755_v34  ;;  %v12968_v30 = vld [vmem:[%s16475_s2] ss:$2 sm:$0xff]  ;;  %v12971_v32 = vsub.s32 1, %v12960_v23 }
 0x11e   : > { %2234 = vmatmul.mubr.bf16.gmra.mrb[24].mxu1 %v12487_v46 }
 0x11f   : > { %2403 = vmatpush1.bf16.msra.mxu1 %v9688_v58  ;;  %9881 = vmatprep.mubr.msk.bf16.mxu1 %vm567_vm4, %v12436_v4  ;;  %v759_v58 = vld [vmem:[%s16474_s1 + $0x498] sm:$0xff] }
 0x120   : > { %2404 = vmatprep.subr.bf16.mxu1 %v9697_v40  ;;  %v9792_v40 = vcombine.low %v751_v31, %v755_v34  ;;  %v9801_v43 = vcombine.high %v759_v58, %v763_v38  ;;  %v12976_v31 = vld [vmem:[%s16475_s2 + $0x1] ss:$2 sm:$0xff] }
 0x123   : > { %2366 = vmatmul.mubr.bf16.gmra.mrb[20].mxu0 %v12445_v7  ;;  %2405 = vmatpush1.bf16.msra.mxu1 %v9696_v17  ;;  %v767_v17 = vld [vmem:[%s16474_s1 + $0x4d8] sm:$0xff] }
 0x124   : > { %2406 = vmatprep.subr.bf16.mxu1 %v9705_v36  ;;  %9884 = vmatprep.mubr.msk.bf16.mxu0 %vm567_vm4, %v12464_v24  ;;  %v9800_v36 = vcombine.low %v759_v58, %v763_v38  ;;  %v9808_v47 = vcombine.low %v767_v17, %v771_v42  ;;  %v12984_v38 = vrot.slane %v12968_v30, %v12971_v32 }
 0x126   : > { %2244 = vmatmul.mubr.bf16.gmra.mrb[28].mxu1 %v12518_v55 }
 0x127   : > { %2407 = vmatpush1.bf16.msra.mxu1 %v9704_v45  ;;  %2426 = vmatprep.mubr.bf16.mxu1 %v12334_v15  ;;  %v699_v15 = vld [vmem:[%s16474_s1 + $0x2b8] sm:$0xff]  ;;  %v9809_v45 = vcombine.high %v767_v17, %v771_v42 }
 0x128   : > { %2408 = vmatprep.subr.bf16.mxu1 %v9713_v49  ;;  %v9737_v20 = vcombine.high %v695_v56, %v699_v15  ;;  %v9736_v21 = vcombine.low %v695_v56, %v699_v15  ;;  %v783_v49 = vld [vmem:[%s16474_s1 + $0x558] sm:$0xff] }
 0x129   : > { %v799_v56 = vld [vmem:[%s16474_s1 + $0x5d8] sm:$0xff] }
 0x12a   : > { %v803_v15 = vld [vmem:[%s16474_s1 + $0x5f8] sm:$0xff] }
 0x12b   : > { %2376 = vmatmul.mubr.bf16.gmra.mrb[24].mxu0 %v12487_v46  ;;  %2409 = vmatpush1.bf16.msra.mxu1 %v9712_v50  ;;  %v787_v50 = vld [vmem:[%s16474_s1 + $0x578] sm:$0xff]  ;;  %v9840_v63 = vcombine.low %v799_v56, %v803_v15 }
 0x12c   : > { %2410 = vmatprep.subr.bf16.mxu1 %v9721_v53  ;;  %9885 = vmatprep.mubr.msk.bf16.mxu0 %vm567_vm4, %v12436_v4  ;;  %v9825_v52 = vcombine.high %v783_v49, %v787_v50  ;;  %v9824_v53 = vcombine.low %v783_v49, %v787_v50 }
 0x12f   : > { %2411 = vmatpush1.bf16.msra.mxu1 %v9720_v54 }
 0x130   : > { %2412 = vmatprep.subr.bf16.mxu1 %v9729_v57 }
 0x133   : > { %2386 = vmatmul.mubr.bf16.gmra.mrb[28].mxu0 %v12518_v55  ;;  %2413 = vmatpush1.bf16.msra.mxu1 %v9728_v62  ;;  %v9841_v62 = vcombine.high %v799_v56, %v803_v15 }
 0x134   : > { %2414 = vmatprep.subr.bf16.mxu1 %v9737_v20  ;;  %v815_v20 = vld [vmem:[%s16474_s1 + $0x658] sm:$0xff] }
 0x137   : > { %2415 = vmatpush1.bf16.msra.mxu1 %v9736_v21  ;;  %v819_v21 = vld [vmem:[%s16474_s1 + $0x678] sm:$0xff] }
 0x138   : > { %2416 = vmatprep.subr.bf16.mxu1 %v9745_v1  ;;  %v9857_v0 = vcombine.high %v815_v20, %v819_v21  ;;  %v9856_v1 = vcombine.low %v815_v20, %v819_v21 }
 0x13b   : > { %2417 = vmatpush1.bf16.msra.mxu1 %v9744_v9 }
 0x13c   : > { %2418 = vmatprep.subr.bf16.mxu1 %v9753_v10  ;;  %v831_v10 = vld [vmem:[%s16474_s1 + $0x6d8] sm:$0xff] }
 0x13f   : > { %2419 = vmatpush1.bf16.msra.mxu1 %v9752_v11  ;;  %v835_v11 = vld [vmem:[%s16474_s1 + $0x6f8] sm:$0xff] }
 0x140   : > { %2420 = vmatprep.subr.bf16.mxu1 %v9761_v13  ;;  %v9873_v19 = vcombine.high %v831_v10, %v835_v11 }
 0x143   : > { %2421 = vmatpush1.bf16.msra.mxu1 %v9760_v18 }
 0x144   : > { %2422 = vmatprep.subr.bf16.mxu1 %v9769_v26  ;;  %v9872_v26 = vcombine.low %v831_v10, %v835_v11 }
 0x147   : > { %2423 = vmatpush1.bf16.msra.mxu1 %v9768_v29  ;;  %v12963_v29 = vsub.s32 0, %v12960_v23 }
 0x148   : > { %2424 = vmatprep.subr.bf16.mxu1 %v9777_v33 }
 0x14b   : > { %2425 = vmatpush1.bf16.msra.mxu1 %v9776_v27 }
 0x14c   : > { %2465 = vmatprep.subr.bf16.mxu1 %v9785_v35  ;;  %v12980_v35 = vrot.slane %v12968_v30, %v12963_v29 }
 0x14e   : > { %2427 = vmatmul.mubr.bf16.vlgmr.msra.gmra.mrb[32].mxu1 %v12350_v28  ;;  %v775_v28 = vld [vmem:[%s16474_s1 + $0x518] sm:$0xff] }
 0x14f   : > { %2436 = vmatprep.mubr.bf16.mxu1 %v12339_v22  ;;  %2466 = vmatpush1.bf16.msra.mxu1 %v9784_v44  ;;  %v779_v22 = vld [vmem:[%s16474_s1 + $0x538] sm:$0xff] }
 0x150   : > { %2467 = vmatprep.subr.bf16.mxu1 %v9793_v39  ;;  %v9817_v48 = vcombine.high %v775_v28, %v779_v22  ;;  %v9816_v51 = vcombine.low %v775_v28, %v779_v22 }
 0x153   : > { %2468 = vmatpush1.bf16.msra.mxu1 %v9792_v40  ;;  %v12988_v40 = vrot.slane %v12976_v31, %v12963_v29 }
 0x154   : > { %2469 = vmatprep.subr.bf16.mxu1 %v9801_v43  ;;  %v12993_v43 = vrot.slane %v12976_v31, %v12971_v32 }
 0x156   : > { %2437 = vmatmul.mubr.bf16.gmra.mrb[36].mxu1 %v12370_v37  ;;  %v791_v37 = vld [vmem:[%s16474_s1 + $0x598] sm:$0xff] }
 0x157   : > { %2446 = vmatprep.mubr.bf16.mxu1 %v12379_v41  ;;  %2470 = vmatpush1.bf16.msra.mxu1 %v9800_v36  ;;  %v795_v41 = vld [vmem:[%s16474_s1 + $0x5b8] sm:$0xff] }
 0x158   : > { %2471 = vmatprep.subr.bf16.mxu1 %v9809_v45  ;;  %v9833_v54 = vcombine.high %v791_v37, %v795_v41  ;;  %v9832_v57 = vcombine.low %v791_v37, %v795_v41 }
 0x15b   : > { %2472 = vmatpush1.bf16.msra.mxu1 %v9808_v47 }
 0x15c   : > { %2473 = vmatprep.subr.bf16.mxu1 %v9817_v48 }
 0x15e   : > { %2447 = vmatmul.mubr.bf16.gmra.mrb[40].mxu1 %v12415_v61  ;;  %v807_v61 = vld [vmem:[%s16474_s1 + $0x618] sm:$0xff] }
 0x15f   : > { %2456 = vmatprep.mubr.bf16.mxu1 %v12441_v5  ;;  %2474 = vmatpush1.bf16.msra.mxu1 %v9816_v51  ;;  %v811_v5 = vld [vmem:[%s16474_s1 + $0x638] sm:$0xff] }
 0x160   : > { %2475 = vmatprep.subr.bf16.mxu1 %v9825_v52  ;;  %v9849_v2 = vcombine.high %v807_v61, %v811_v5  ;;  %v9848_v6 = vcombine.low %v807_v61, %v811_v5 }
 0x163   : > { %2476 = vmatpush1.bf16.msra.mxu1 %v9824_v53 }
 0x164   : > { %2477 = vmatprep.subr.bf16.mxu1 %v9833_v54 }
 0x166   : > { %2457 = vmatmul.mubr.bf16.gmra.mrb[44].mxu1 %v12468_v25  ;;  %v823_v25 = vld [vmem:[%s16474_s1 + $0x698] sm:$0xff] }
 0x167   : > { %2478 = vmatpush1.bf16.msra.mxu1 %v9832_v57  ;;  %9886 = vmatprep.mubr.msk.bf16.mxu1 %vm567_vm4, %v12258_v14  ;;  %v827_v14 = vld [vmem:[%s16474_s1 + $0x6b8] sm:$0xff] }
 0x168   : > { %2479 = vmatprep.subr.bf16.mxu1 %v9841_v62  ;;  %v9865_v9 = vcombine.high %v823_v25, %v827_v14  ;;  %v9864_v16 = vcombine.low %v823_v25, %v827_v14 }
 0x16b   : > { %2480 = vmatpush1.bf16.msra.mxu1 %v9840_v63 }
 0x16c   : > { %2481 = vmatprep.subr.bf16.mxu1 %v9849_v2 }
 0x16f   : > { %2482 = vmatpush1.bf16.msra.mxu1 %v9848_v6 }
 0x170   : > { %2483 = vmatprep.subr.bf16.mxu1 %v9857_v0 }
 0x171   : > { %v2002_v8 = vpop.f32.mrb[0].mxu1 }
 0x172   : > { %v2004_v12 = vpop.f32.mrb[1].mxu1 }
 0x173   : > { %2484 = vmatpush1.bf16.msra.mxu1 %v9856_v1  ;;  %v2006_v13 = vpop.f32.mrb[2].mxu1 }
 0x174   : > { %v2008_v18 = vpop.f32.mrb[3].mxu1  ;;  %2485 = vmatprep.subr.bf16.mxu1 %v9865_v9 }
 0x177   : > { %2486 = vmatpush1.bf16.msra.mxu1 %v9864_v16 }
 0x178   : > { %2487 = vmatprep.subr.bf16.mxu1 %v9873_v19 }
 0x179   : > { %v2012_v33 = vpop.f32.mrb[4].mxu1 }
 0x17a   : > { %v2014_v27 = vpop.f32.mrb[5].mxu1 }
 0x17b   : > { %2488 = vmatpush1.bf16.msra.mxu1 %v9872_v26  ;;  %v2016_v34 = vpop.f32.mrb[6].mxu1 }
 0x17c   : > { %v2018_v44 = vpop.f32.mrb[7].mxu1 }
 0x17d   : > { %v2073_v58 = vpop.f32.mrb[0].mxu0 }
 0x17e   : > { %v2074_v39 = vadd.f32 %v2073_v58, %v2002_v8  ;;  %2498 = vmatmul.mubr.bf16.vlgmr.msra.gmra.mrb[32].mxu1 %v12405_v59  ;;  %v2075_v17 = vpop.f32.mrb[1].mxu0 }
 0x17f   : > { %v2076_v42 = vadd.f32 %v2075_v17, %v2004_v12  ;;  %v2077_v36 = vpop.f32.mrb[2].mxu0  ;;  %9887 = vmatprep.mubr.msk.bf16.mxu1 %vm567_vm4, %v12411_v60 }
 0x180   : > { %v2578_v28 = vmul.f32 %v12980_v35, %v2074_v39  ;;  %v2078_v22 = vadd.f32 %v2077_v36, %v2006_v13  ;;  %v2079_v45 = vpop.f32.mrb[3].mxu0 }
 0x181   : > { %v2579_v47 = vmul.f32 %v12984_v38, %v2076_v42  ;;  %v2080_v48 = vadd.f32 %v2079_v45, %v2008_v18  ;;  %v2022_v49 = vpop.f32.mrb[8].mxu1 }
 0x182   : > { %v2677_v59 = vadd.f32 %v12988_v40, %v2578_v28  ;;  %v2586_v50 = vmul.f32 %v12980_v35, %v2078_v22  ;;  %v2024_v51 = vpop.f32.mrb[9].mxu1 }
 0x183   : > { %v2678_v52 = vadd.f32 %v12993_v43, %v2579_v47  ;;  %v2587_v37 = vmul.f32 %v12984_v38, %v2080_v48  ;;  %v13003_v41 = vpop.f32.mrb[10].mxu1 }
 0x184   : > { %v13005_v60 = vmax.f32 %v2677_v59, 0.0  ;;  %v2685_v53 = vadd.f32 %v12988_v40, %v2586_v50  ;;  %v13008_v54 = vpop.f32.mrb[11].mxu1 }
 0x185   : > { %v13010_v56 = vmax.f32 %v2678_v52, 0.0  ;;  %v2686_v15 = vadd.f32 %v12993_v43, %v2587_v37  ;;  %v2083_v57 = vpop.f32.mrb[4].mxu0 }
 0x186   : > { %v2846_v62 = vrot.slane %v13005_v60, 1  ;;  %v3063_v61 = vrot.slane %v13005_v60, 2  ;;  %v13015_v5 = vmax.f32 %v2685_v53, 0.0  ;;  %v2084_v63 = vadd.f32 %v2083_v57, %v2012_v33  ;;  %2508 = vmatmul.mubr.bf16.gmra.mrb[36].mxu1 %v12445_v7  ;;  %v2085_v2 = vpop.f32.mrb[5].mxu0 }
 0x187   : > { %v13018_v20 = vmax.f32 %v2686_v15, 0.0  ;;  %v2086_v21 = vadd.f32 %v2085_v2, %v2014_v27  ;;  %9888 = vmatprep.mubr.msk.bf16.mxu1 %vm567_vm4, %v12464_v24  ;;  %v2087_v6 = vpop.f32.mrb[6].mxu0  ;;  %v2849_v0 = vrot.slane %v13010_v56, 1  ;;  %v3066_v25 = vrot.slane %v13010_v56, 2 }
 0x188   : > { %v2847_v14 = vrot.slane %v13015_v5, 1  ;;  %v3064_v1 = vrot.slane %v13015_v5, 2  ;;  %v2594_v9 = vmul.f32 %v12980_v35, %v2084_v63  ;;  %v2088_v3 = vadd.f32 %v2087_v6, %v2016_v34  ;;  %v2089_v7 = vpop.f32.mrb[7].mxu0 }
 0x189   : > { %v2595_v8 = vmul.f32 %v12984_v38, %v2086_v21  ;;  %v2090_v10 = vadd.f32 %v2089_v7, %v2018_v44  ;;  %v13028_v11 = vpop.f32.mrb[12].mxu1  ;;  %v2850_v24 = vrot.slane %v13018_v20, 1  ;;  %v3067_v12 = vrot.slane %v13018_v20, 2 }
 0x18a   : > { %v2693_v13 = vadd.f32 %v12988_v40, %v2594_v9  ;;  %v2602_v16 = vmul.f32 %v12980_v35, %v2088_v3  ;;  %v13034_v18 = vpop.f32.mrb[13].mxu1  ;;  %v3283_v19 = vrot.slane %v13010_v56, 3  ;;  %v3284_v26 = vrot.slane %v13018_v20, 3 }
 0x18b   : > { %v2694_v33 = vadd.f32 %v12993_v43, %v2595_v8  ;;  %v2603_v27 = vmul.f32 %v12984_v38, %v2090_v10  ;;  %v2851_v34 = vsel %vm495_vm5, %v2849_v0, %v2850_v24  ;;  %v3068_v44 = vsel %vm527_vm6, %v3066_v25, %v3067_v12  ;;  %v2036_v58 = vpop.f32.mrb[14].mxu1 }
 0x18c   : > { %v13042_v39 = vmax.f32 %v2693_v13, 0.0  ;;  %v2701_v17 = vadd.f32 %v12988_v40, %v2602_v16  ;;  %v3007_v42 = vmax.f32 %v13010_v56, %v2851_v34  ;;  %v3285_v36 = vsel %vm559_vm3, %v3283_v19, %v3284_v26  ;;  %v2037_v28 = vpop.f32.mrb[15].mxu1 }
 0x18d   : > { %v13047_v22 = vmax.f32 %v2694_v33, 0.0  ;;  %v2702_v45 = vadd.f32 %v12993_v43, %v2603_v27  ;;  %v2093_v47 = vpop.f32.mrb[8].mxu0  ;;  %v3500_v48 = vrot.slane %v13010_v56, 4  ;;  %v3501_v59 = vrot.slane %v13018_v20, 4 }
 0x18e   : > { %v2870_v50 = vrot.slane %v13042_v39, 1  ;;  %v3087_v52 = vrot.slane %v13042_v39, 2  ;;  %2518 = vmatmul.mubr.bf16.gmra.mrb[40].mxu1 %v12487_v46  ;;  %v13055_v37 = vmax.f32 %v2701_v17, 0.0  ;;  %v2094_v53 = vadd.f32 %v2093_v47, %v2022_v49  ;;  %v2095_v15 = vpop.f32.mrb[9].mxu0 }
 0x18f   : > { %v13057_v57 = vmax.f32 %v2702_v45, 0.0  ;;  %v2096_v63 = vadd.f32 %v2095_v15, %v2024_v51  ;;  %9889 = vmatprep.mubr.msk.bf16.mxu1 %vm567_vm4, %v12436_v4  ;;  %v2097_v2 = vpop.f32.mrb[10].mxu0  ;;  %v2872_v56 = vrot.slane %v13047_v22, 1  ;;  %v3089_v21 = vrot.slane %v13047_v22, 2 }
 0x190   : > { %v2886_v6 = vrot.slane %v13055_v37, 1  ;;  %v3103_v0 = vrot.slane %v13055_v37, 2  ;;  %v2610_v46 = vmul.f32 %v12980_v35, %v2094_v53  ;;  %v2098_v49 = vadd.f32 %v2097_v2, %v13003_v41  ;;  %v2099_v25 = vpop.f32.mrb[11].mxu0 }
 0x191   : > { %v2611_v9 = vmul.f32 %v12984_v38, %v2096_v63  ;;  %v2100_v51 = vadd.f32 %v2099_v25, %v13008_v54  ;;  %v2873_v4 = vsel %vm495_vm5, %v2850_v24, %v2872_v56  ;;  %v3090_v3 = vsel %vm527_vm6, %v3067_v12, %v3089_v21 }
 0x192   : > { %v2709_v7 = vadd.f32 %v12988_v40, %v2610_v46  ;;  %v2618_v8 = vmul.f32 %v12980_v35, %v2098_v49  ;;  %v3015_v10 = vmax.f32 %v13018_v20, %v2873_v4  ;;  %v3224_v41 = vmax.f32 %v3007_v42, %v3068_v44 }
 0x193   : > { %v2710_v13 = vadd.f32 %v12993_v43, %v2611_v9  ;;  %v2619_v16 = vmul.f32 %v12984_v38, %v2100_v51  ;;  %v3306_v54 = vrot.slane %v13047_v22, 3  ;;  %v3502_v19 = vsel %vm3496_vm7, %v3500_v48, %v3501_v59 }
 0x194   : > { %v13082_v24 = vmax.f32 %v2709_v7, 0.0  ;;  %v2717_v33 = vadd.f32 %v12988_v40, %v2618_v8  ;;  %v3232_v12 = vmax.f32 %v3015_v10, %v3090_v3  ;;  %v3441_v27 = vmax.f32 %v3224_v41, %v3285_v36 }
 0x195   : > { %v13085_v34 = vmax.f32 %v2710_v13, 0.0  ;;  %v2718_v58 = vadd.f32 %v12993_v43, %v2619_v16  ;;  %v2103_v20 = vpop.f32.mrb[12].mxu0  ;;  %v3307_v44 = vsel %vm559_vm3, %v3284_v26, %v3306_v54  ;;  %v3523_v17 = vrot.slane %v13047_v22, 4 }
 0x196   : > { %v2902_v42 = vrot.slane %v13082_v24, 1  ;;  %v3119_v28 = vrot.slane %v13082_v24, 2  ;;  %2528 = vmatmul.mubr.bf16.gmra.mrb[44].mxu1 %v12518_v55  ;;  %v13095_v45 = vmax.f32 %v2717_v33, 0.0  ;;  %v2104_v36 = vadd.f32 %v2103_v20, %v13028_v11  ;;  %v2105_v47 = vpop.f32.mrb[13].mxu0 }
 0x197   : > { %v13098_v48 = vmax.f32 %v2718_v58, 0.0  ;;  %v2106_v53 = vadd.f32 %v2105_v47, %v13034_v18  ;;  %v3449_v15 = vmax.f32 %v3232_v12, %v3307_v44  ;;  %v3524_v26 = vsel %vm3496_vm7, %v3501_v59, %v3523_v17  ;;  %v2107_v63 = vpop.f32.mrb[14].mxu0 }
 0x198   : > { %v2918_v2 = vrot.slane %v13095_v45, 1  ;;  %v3135_v46 = vrot.slane %v13095_v45, 2  ;;  %v2626_v55 = vmul.f32 %v12980_v35, %v2104_v36  ;;  %v3658_v49 = vmax.f32 %v3441_v27, %v3502_v19  ;;  %v2108_v25 = vpop.f32.mrb[15].mxu0 }
 0x199   : > { %v2627_v11 = vmul.f32 %v12984_v38, %v2106_v53  ;;  %v3666_v9 = vmax.f32 %v3449_v15, %v3524_v26  ;;  %v2848_v18 = vsel %vm495_vm5, %v2846_v62, %v2847_v14  ;;  %v2871_v59 = vsel %vm495_vm5, %v2847_v14, %v2870_v50 }
 0x19a   : > { %v2725_v51 = vadd.f32 %v12988_v40, %v2626_v55  ;;  %v3006_v35 = vmax.f32 %v13005_v60, %v2848_v18  ;;  %v3014_v4 = vmax.f32 %v13015_v5, %v2871_v59  ;;  %v3065_v38 = vsel %vm527_vm6, %v3063_v61, %v3064_v1 }
 0x19b   : > { %v2726_v62 = vadd.f32 %v12993_v43, %v2627_v11  ;;  %v10776_v3 = vpack.c.bf16 %v3666_v9, %v3658_v49  ;;  %v3088_v14 = vsel %vm527_vm6, %v3064_v1, %v3087_v52  ;;  %v3280_v40 = vrot.slane %v13005_v60, 3 }
 0x19c   : > { %v13133_v7 = vmax.f32 %v2725_v51, 0.0  ;;  %v3223_v8 = vmax.f32 %v3006_v35, %v3065_v38  ;;  %v3231_v10 = vmax.f32 %v3014_v4, %v3088_v14  ;;  %v3281_v41 = vrot.slane %v13015_v5, 3 }
 0x19d   : > { %v13136_v13 = vmax.f32 %v2726_v62, 0.0  ;;  %10777 = vmatprep.subr.bf16.mxu1 %v10776_v3  ;;  %v3304_v43 = vrot.slane %v13042_v39, 3  ;;  %v3497_v61 = vrot.slane %v13005_v60, 4  ;;  %v3498_v16 = vrot.slane %v13015_v5, 4 }
 0x19e   : > { %v2934_v19 = vrot.slane %v13133_v7, 1  ;;  %v3151_v1 = vrot.slane %v13133_v7, 2  ;;  %v3282_v33 = vsel %vm559_vm3, %v3280_v40, %v3281_v41  ;;  %v3521_v12 = vrot.slane %v13042_v39, 4 }
 0x19f   : > { %v3305_v27 = vsel %vm559_vm3, %v3281_v41, %v3304_v43  ;;  %v3440_v58 = vmax.f32 %v3223_v8, %v3282_v33  ;;  %v3499_v20 = vsel %vm3496_vm7, %v3497_v61, %v3498_v16  ;;  %v2888_v44 = vrot.slane %v13057_v57, 1 }
 0x1a0   : > { %v13151_v60 = vmax.f32 %v13133_v7, %v2934_v19  ;;  %v3448_v5 = vmax.f32 %v3231_v10, %v3305_v27  ;;  %v3522_v36 = vsel %vm3496_vm7, %v3498_v16, %v3521_v12  ;;  %v2904_v47 = vrot.slane %v13085_v34, 1 }
 0x1a1   : > { %v3657_v53 = vmax.f32 %v3440_v58, %v3499_v20  ;;  %v2889_v15 = vsel %vm495_vm5, %v2872_v56, %v2888_v44  ;;  %v3105_v26 = vrot.slane %v13057_v57, 2  ;;  %v3121_v63 = vrot.slane %v13085_v34, 2 }
 0x1a2   : > { %v3665_v55 = vmax.f32 %v3448_v5, %v3522_v36  ;;  %v2905_v49 = vsel %vm495_vm5, %v2888_v44, %v2904_v47  ;;  %v3023_v25 = vmax.f32 %v13047_v22, %v2889_v15  ;;  %v3322_v11 = vrot.slane %v13057_v57, 3 }
 0x1a3   : > { %v3031_v9 = vmax.f32 %v13057_v57, %v2905_v49  ;;  %v3106_v18 = vsel %vm527_vm6, %v3089_v21, %v3105_v26  ;;  %v3122_v59 = vsel %vm527_vm6, %v3105_v26, %v3121_v63  ;;  %v3338_v56 = vrot.slane %v13085_v34, 3 }
 0x1a4   : > { %v10778_v51 = vpack.c.bf16 %v3665_v55, %v3657_v53  ;;  %v3240_v35 = vmax.f32 %v3023_v25, %v3106_v18  ;;  %v3323_v4 = vsel %vm559_vm3, %v3306_v54, %v3322_v11  ;;  %v3539_v38 = vrot.slane %v13057_v57, 4 }
 0x1a5   : > { %v3248_v62 = vmax.f32 %v3031_v9, %v3122_v59  ;;  %v3339_v3 = vsel %vm559_vm3, %v3322_v11, %v3338_v56  ;;  %v3555_v14 = vrot.slane %v13085_v34, 4  ;;  %v2887_v21 = vsel %vm495_vm5, %v2870_v50, %v2886_v6 }
 0x1a6   : > { %10779 = vmatpush1.bf16.msra.mxu1 %v10778_v51  ;;  %v3457_v40 = vmax.f32 %v3240_v35, %v3323_v4  ;;  %v3540_v8 = vsel %vm3496_vm7, %v3523_v17, %v3539_v38  ;;  %v2903_v57 = vsel %vm495_vm5, %v2886_v6, %v2902_v42  ;;  %v3022_v54 = vmax.f32 %v13042_v39, %v2887_v21 }
 0x1a7   : > { %v3465_v10 = vmax.f32 %v3248_v62, %v3339_v3  ;;  %v3556_v41 = vsel %vm3496_vm7, %v3539_v38, %v3555_v14  ;;  %v3030_v61 = vmax.f32 %v13055_v37, %v2903_v57  ;;  %v3104_v22 = vsel %vm527_vm6, %v3087_v52, %v3103_v0 }
 0x1a8   : > { %v3674_v50 = vmax.f32 %v3457_v40, %v3540_v8  ;;  %v3120_v6 = vsel %vm527_vm6, %v3103_v0, %v3119_v28  ;;  %v3239_v17 = vmax.f32 %v3022_v54, %v3104_v22  ;;  %v3320_v16 = vrot.slane %v13055_v37, 3 }
 0x1a9   : > { %v3682_v33 = vmax.f32 %v3465_v10, %v3556_v41  ;;  %v3247_v27 = vmax.f32 %v3030_v61, %v3120_v6  ;;  %v3336_v58 = vrot.slane %v13082_v24, 3  ;;  %v3537_v20 = vrot.slane %v13055_v37, 4 }
 0x1aa   : > { %v3321_v39 = vsel %vm559_vm3, %v3304_v43, %v3320_v16  ;;  %v3553_v52 = vrot.slane %v13082_v24, 4  ;;  %v2920_v44 = vrot.slane %v13098_v48, 1  ;;  %v2936_v5 = vrot.slane %v13136_v13, 1 }
 0x1ab   : > { %v10780_v36 = vpack.c.bf16 %v3682_v33, %v3674_v50  ;;  %v3337_v0 = vsel %vm559_vm3, %v3320_v16, %v3336_v58  ;;  %v3456_v53 = vmax.f32 %v3239_v17, %v3321_v39  ;;  %v3538_v15 = vsel %vm3496_vm7, %v3521_v12, %v3537_v20 }
 0x1ac   : > { %v3464_v26 = vmax.f32 %v3247_v27, %v3337_v0  ;;  %v3554_v55 = vsel %vm3496_vm7, %v3537_v20, %v3553_v52  ;;  %v2921_v49 = vsel %vm495_vm5, %v2904_v47, %v2920_v44  ;;  %v2937_v37 = vsel %vm495_vm5, %v2920_v44, %v2936_v5 }
 0x1ad   : > { %10781 = vmatprep.subr.bf16.mxu1 %v10780_v36  ;;  %v3673_v43 = vmax.f32 %v3456_v53, %v3538_v15  ;;  %v3039_v25 = vmax.f32 %v13085_v34, %v2921_v49  ;;  %v3047_v11 = vmax.f32 %v13098_v48, %v2937_v37  ;;  %v3137_v9 = vrot.slane %v13098_v48, 2 }
 0x1ae   : > { %v3681_v18 = vmax.f32 %v3464_v26, %v3554_v55  ;;  %v3153_v59 = vrot.slane %v13136_v13, 2  ;;  %v3354_v12 = vrot.slane %v13098_v48, 3  ;;  %v3370_v51 = vrot.slane %v13136_v13, 3 }
 0x1af   : > { %v3138_v35 = vsel %vm527_vm6, %v3121_v63, %v3137_v9  ;;  %v3571_v47 = vrot.slane %v13098_v48, 4  ;;  %v3587_v4 = vrot.slane %v13136_v13, 4  ;;  %v2919_v34 = vsel %vm495_vm5, %v2902_v42, %v2918_v2 }
 0x1b0   : > { %v10782_v38 = vpack.c.bf16 %v3681_v18, %v3673_v43  ;;  %v3154_v62 = vsel %vm527_vm6, %v3137_v9, %v3153_v59  ;;  %v3256_v3 = vmax.f32 %v3039_v25, %v3138_v35  ;;  %v3355_v21 = vsel %vm559_vm3, %v3338_v56, %v3354_v12 }
 0x1b1   : > { %v3264_v40 = vmax.f32 %v3047_v11, %v3154_v62  ;;  %v3371_v8 = vsel %vm559_vm3, %v3354_v12, %v3370_v51  ;;  %v3572_v63 = vsel %vm3496_vm7, %v3555_v14, %v3571_v47  ;;  %v3588_v48 = vsel %vm3496_vm7, %v3571_v47, %v3587_v4 }
 0x1b2   : > { %10783 = vmatpush1.bf16.msra.mxu1 %v10782_v38  ;;  %v3473_v57 = vmax.f32 %v3256_v3, %v3355_v21  ;;  %v2935_v42 = vsel %vm495_vm5, %v2918_v2, %v2934_v19  ;;  %v3038_v54 = vmax.f32 %v13082_v24, %v2919_v34  ;;  %v3136_v56 = vsel %vm527_vm6, %v3119_v28, %v3135_v46 }
 0x1b3   : > { %v3481_v10 = vmax.f32 %v3264_v40, %v3371_v8  ;;  %v3046_v14 = vmax.f32 %v13095_v45, %v2935_v42  ;;  %v3152_v41 = vsel %vm527_vm6, %v3135_v46, %v3151_v1  ;;  %v3352_v61 = vrot.slane %v13095_v45, 3 }
 0x1b4   : > { %v3690_v2 = vmax.f32 %v3473_v57, %v3572_v63  ;;  %v3255_v19 = vmax.f32 %v3038_v54, %v3136_v56  ;;  %v3368_v22 = vrot.slane %v13133_v7, 3  ;;  %v3569_v50 = vrot.slane %v13095_v45, 4 }
 0x1b5   : > { %v3698_v24 = vmax.f32 %v3481_v10, %v3588_v48  ;;  %v3263_v6 = vmax.f32 %v3046_v14, %v3152_v41  ;;  %v3353_v28 = vsel %vm559_vm3, %v3336_v58, %v3352_v61  ;;  %v3585_v17 = vrot.slane %v13133_v7, 4  ;;  %v13266_v7 = vld [vmem:[%s16476_s3] sm:$0xff] }
 0x1b6   : > { %v3369_v16 = vsel %vm559_vm3, %v3352_v61, %v3368_v22  ;;  %v3472_v33 = vmax.f32 %v3255_v19, %v3353_v28  ;;  %v3570_v27 = vsel %vm3496_vm7, %v3553_v52, %v3569_v50  ;;  %v3055_v46 = vmax.f32 %v13136_v13, %v2936_v5 }
 0x1b7   : > { %v10784_v20 = vpack.c.bf16 %v3698_v24, %v3690_v2  ;;  %v3480_v39 = vmax.f32 %v3263_v6, %v3369_v16  ;;  %v3586_v44 = vsel %vm3496_vm7, %v3569_v50, %v3585_v17  ;;  %v3271_v45 = vmax.f32 %v13151_v60, %v3151_v1  ;;  %v13275_v1 = vld [vmem:[%s16476_s3 + $0x8] sm:$0x7] }
 0x1b8   : > { %v3689_v36 = vmax.f32 %v3472_v33, %v3570_v27  ;;  %v3272_v0 = vmax.f32 %v3055_v46, %v3153_v59  ;;  %v16492_v15 = vmov 0.0   ;;  %v13281_v60 = vsub.s32 2, %v12960_v23 }
 0x1b9   : > { %10785 = vmatprep.subr.bf16.mxu1 %v10784_v20  ;;  %v3697_v58 = vmax.f32 %v3480_v39, %v3586_v44  ;;  %v3488_v53 = vmax.f32 %v3271_v45, %v3368_v22  ;;  %3811 = vmatprep.mubr.f32.mxu1 %v16492_v15  ;;  %v2552_v55 = vsub.s32 3, %v12960_v23  ;;  %v2556_v9 = vsub.s32 4, %v12960_v23 }
 0x1ba   : > { %v3489_v26 = vmax.f32 %v3272_v0, %v3370_v51  ;;  %v13286_v49 = vrot.slane %v12968_v30, %v13281_v60  ;;  %v13293_v43 = vrot.slane %v12976_v31, %v13281_v60  ;;  %v2560_v12 = vsub.s32 5, %v12960_v23 }
 0x1bb   : > { %v10786_v52 = vpack.c.bf16 %v3697_v58, %v3689_v36  ;;  %v3705_v5 = vmax.f32 %v3488_v53, %v3585_v17  ;;  %v13289_v37 = vrot.slane %v12968_v30, %v2552_v55  ;;  %v13296_v11 = vrot.slane %v12976_v31, %v2552_v55 }
 0x1bc   : > { %v3706_v13 = vmax.f32 %v3489_v26, %v3587_v4  ;;  %v13307_v3 = vrot.slane %v12968_v30, %v2556_v9  ;;  %v13313_v8 = vrot.slane %v12976_v31, %v2556_v9  ;;  %v13316_v63 = vrot.slane %v12968_v30, %v2560_v12 }
 0x1bd   : > { %10787 = vmatpush1.bf16.msra.mxu1 %v10786_v52  ;;  %v13322_v42 = vrot.slane %v12976_v31, %v2560_v12 }
 0x1be   : > { %9891 = vmatprep.subr.msk.mxu1 %vm3722_vm8, %v3706_v13 }
 0x1c1   : > { %9892 = vmatpush1.msk.msra.mxu1 %vm3722_vm8, %v3705_v5 }
 0x1c2   : > { %9893 = vmatmul.mubr.msk.f32.vlgmr.msra.gmra.mrb[48].mxu1 %vm3715_vm9, %v13266_v7 }
 0x1c3   : > { %3817 = vmatprep.mubr.f32.mxu1 %v16492_v15 }
 0x1c6   : > { %9894 = vmatmul.mubr.msk.f32.gmra.mrb[50].mxu1 %vm3715_vm9, %v13275_v1 }
 0x1c7   : > { %3888 = vmatprep.mubr.f32.mxu1 %v16492_v15 }
 0x1e1   : > { %v2215_v25 = vpop.f32.mrb[16].mxu1 }
 0x1e2   : > { %v2580_v18 = vmul.f32 %v13286_v49, %v2215_v25  ;;  %v2217_v59 = vpop.f32.mrb[17].mxu1 }
 0x1e3   : > { %v2581_v51 = vmul.f32 %v13289_v37, %v2217_v59  ;;  %v2219_v35 = vpop.f32.mrb[18].mxu1 }
 0x1e4   : > { %v2679_v47 = vadd.f32 %v13293_v43, %v2580_v18  ;;  %v2588_v4 = vmul.f32 %v13286_v49, %v2219_v35  ;;  %v2221_v34 = vpop.f32.mrb[19].mxu1 }
 0x1e5   : > { %v2680_v38 = vadd.f32 %v13296_v11, %v2581_v51  ;;  %v2589_v62 = vmul.f32 %v13289_v37, %v2221_v34 }
 0x1e6   : > { %v13309_v21 = vmax.f32 %v2679_v47, 0.0  ;;  %v2687_v40 = vadd.f32 %v13293_v43, %v2588_v4 }
 0x1e7   : > { %v13318_v48 = vmax.f32 %v2680_v38, 0.0  ;;  %v2688_v57 = vadd.f32 %v13296_v11, %v2589_v62 }
 0x1e8   : > { %v2852_v56 = vrot.slane %v13309_v21, 1  ;;  %v3069_v10 = vrot.slane %v13309_v21, 2  ;;  %v13328_v41 = vmax.f32 %v2687_v40, 0.0 }
 0x1e9   : > { %v2855_v30 = vrot.slane %v13318_v48, 1  ;;  %v13331_v61 = vmax.f32 %v2688_v57, 0.0  ;;  %v2225_v2 = vpop.f32.mrb[20].mxu1  ;;  %v3072_v19 = vrot.slane %v13318_v48, 2  ;;  %v3289_v31 = vrot.slane %v13318_v48, 3 }
 0x1ea   : > { %v2853_v22 = vrot.slane %v13328_v41, 1  ;;  %v3070_v50 = vrot.slane %v13328_v41, 2  ;;  %v3287_v24 = vrot.slane %v13328_v41, 3  ;;  %v2596_v6 = vmul.f32 %v13286_v49, %v2225_v2  ;;  %v2227_v28 = vpop.f32.mrb[21].mxu1 }
 0x1eb   : > { %v2856_v17 = vrot.slane %v13331_v61, 1  ;;  %v2597_v16 = vmul.f32 %v13289_v37, %v2227_v28  ;;  %v2229_v33 = vpop.f32.mrb[22].mxu1  ;;  %v3073_v27 = vrot.slane %v13331_v61, 2  ;;  %v3290_v46 = vrot.slane %v13331_v61, 3 }
 0x1ec   : > { %v2695_v20 = vadd.f32 %v13293_v43, %v2596_v6  ;;  %v2604_v39 = vmul.f32 %v13286_v49, %v2229_v33  ;;  %v2231_v44 = vpop.f32.mrb[23].mxu1  ;;  %v3506_v45 = vrot.slane %v13318_v48, 4  ;;  %v3507_v36 = vrot.slane %v13331_v61, 4 }
 0x1ed   : > { %v2696_v0 = vadd.f32 %v13296_v11, %v2597_v16  ;;  %v2605_v58 = vmul.f32 %v13289_v37, %v2231_v44  ;;  %v13352_v53 = vsel %vm495_vm5, %v2855_v30, %v2856_v17  ;;  %v13357_v26 = vsel %vm527_vm6, %v3072_v19, %v3073_v27 }
 0x1ee   : > { %v13359_v52 = vmax.f32 %v2695_v20, 0.0  ;;  %v2703_v13 = vadd.f32 %v13293_v43, %v2604_v39  ;;  %v2357_v5 = vpop.f32.mrb[16].mxu0  ;;  %v3009_v55 = vmax.f32 %v13318_v48, %v13352_v53  ;;  %v13367_v25 = vsel %vm559_vm3, %v3289_v31, %v3290_v46 }
 0x1ef   : > { %v13369_v9 = vmax.f32 %v2696_v0, 0.0  ;;  %v2704_v18 = vadd.f32 %v13296_v11, %v2605_v58  ;;  %v2582_v59 = vmul.f32 %v13307_v3, %v2357_v5  ;;  %v2359_v12 = vpop.f32.mrb[17].mxu0  ;;  %v13376_v51 = vsel %vm3496_vm7, %v3506_v45, %v3507_v36 }
 0x1f0   : > { %v2874_v35 = vrot.slane %v13359_v52, 1  ;;  %v3091_v47 = vrot.slane %v13359_v52, 2  ;;  %v13381_v34 = vmax.f32 %v2703_v13, 0.0  ;;  %v2361_v38 = vpop.f32.mrb[18].mxu0  ;;  %v2583_v30 = vmul.f32 %v13316_v63, %v2359_v12 }
 0x1f1   : > { %v16494_v62 = vrot.slane %v13369_v9, 1  ;;  %v13384_v40 = vmax.f32 %v2704_v18, 0.0  ;;  %v2681_v57 = vadd.f32 %v13313_v8, %v2582_v59  ;;  %v2363_v2 = vpop.f32.mrb[19].mxu0  ;;  %v2235_v19 = vpop.f32.mrb[24].mxu1  ;;  %v2590_v16 = vmul.f32 %v13307_v3, %v2361_v38 }
 0x1f2   : > { %v2237_v33 = vpop.f32.mrb[25].mxu1  ;;  %v2682_v44 = vadd.f32 %v13322_v42, %v2583_v30  ;;  %v2591_v45 = vmul.f32 %v13316_v63, %v2363_v2  ;;  %v2612_v13 = vmul.f32 %v13286_v49, %v2235_v19  ;;  %v3527_v20 = vrot.slane %v13369_v9, 4 }
 0x1f3   : > { %v13393_v39 = vmax.f32 %v2681_v57, 0.0  ;;  %v2239_v0 = vpop.f32.mrb[26].mxu1  ;;  %v2689_v58 = vadd.f32 %v13313_v8, %v2590_v16  ;;  %v2613_v5 = vmul.f32 %v13289_v37, %v2237_v33 }
 0x1f4   : > { %v2620_v18 = vmul.f32 %v13286_v49, %v2239_v0  ;;  %v2241_v59 = vpop.f32.mrb[27].mxu1  ;;  %v13404_v54 = vmax.f32 %v2682_v44, 0.0  ;;  %v2690_v2 = vadd.f32 %v13322_v42, %v2591_v45  ;;  %v2711_v16 = vadd.f32 %v13293_v43, %v2612_v13 }
 0x1f5   : > { %v13406_v30 = vmax.f32 %v2689_v58, 0.0  ;;  %v2712_v19 = vadd.f32 %v13296_v11, %v2613_v5  ;;  %v2621_v12 = vmul.f32 %v13289_v37, %v2241_v59 }
 0x1f6   : > { %v2367_v33 = vpop.f32.mrb[20].mxu0  ;;  %v2719_v15 = vadd.f32 %v13293_v43, %v2620_v18  ;;  %v13418_v28 = vmax.f32 %v2690_v2, 0.0  ;;  %v13420_v5 = vmax.f32 %v2711_v16, 0.0 }
 0x1f7   : > { %v2598_v38 = vmul.f32 %v13307_v3, %v2367_v33  ;;  %v2369_v57 = vpop.f32.mrb[21].mxu0  ;;  %v13422_v6 = vmax.f32 %v2712_v19, 0.0  ;;  %v2720_v18 = vadd.f32 %v13296_v11, %v2621_v12 }
 0x1f8   : > { %v2371_v13 = vpop.f32.mrb[22].mxu0  ;;  %v13424_v0 = vmax.f32 %v2719_v15, 0.0  ;;  %v2599_v58 = vmul.f32 %v13316_v63, %v2369_v57 }
 0x1f9   : > { %v2373_v59 = vpop.f32.mrb[23].mxu0  ;;  %v2245_v33 = vpop.f32.mrb[28].mxu1  ;;  %v2697_v44 = vadd.f32 %v13313_v8, %v2598_v38  ;;  %v2606_v2 = vmul.f32 %v13307_v3, %v2371_v13  ;;  %v13438_v14 = vmax.f32 %v2720_v18, 0.0 }
 0x1fa   : > { %v2247_v45 = vpop.f32.mrb[29].mxu1  ;;  %v2698_v16 = vadd.f32 %v13322_v42, %v2599_v58  ;;  %v2607_v15 = vmul.f32 %v13316_v63, %v2373_v59 }
 0x1fb   : > { %v2249_v12 = vpop.f32.mrb[30].mxu1  ;;  %v13440_v13 = vmax.f32 %v2697_v44, 0.0  ;;  %v2705_v19 = vadd.f32 %v13313_v8, %v2606_v2  ;;  %v2629_v4 = vmul.f32 %v13289_v37, %v2247_v45  ;;  %v2877_v44 = vsel %vm495_vm5, %v2856_v17, %v16494_v62 }
 0x1fc   : > { %v2250_v57 = vpop.f32.mrb[31].mxu1  ;;  %v2628_v12 = vmul.f32 %v13286_v49, %v2245_v33  ;;  %v13456_v59 = vmax.f32 %v2698_v16, 0.0  ;;  %v2706_v49 = vadd.f32 %v13322_v42, %v2607_v15  ;;  %v3017_v2 = vmax.f32 %v13331_v61, %v2877_v44 }
 0x1fd   : > { %v13458_v38 = vmax.f32 %v2705_v19, 0.0  ;;  %v2728_v45 = vadd.f32 %v13296_v11, %v2629_v4  ;;  %v3093_v44 = vrot.slane %v13369_v9, 2  ;;  %v2854_v15 = vsel %vm495_vm5, %v2852_v56, %v2853_v22 }
 0x1fe   : > { %v2377_v31 = vpop.f32.mrb[24].mxu0  ;;  %v2727_v37 = vadd.f32 %v13293_v43, %v2628_v12  ;;  %v13470_v62 = vmax.f32 %v2706_v49, 0.0  ;;  %v3310_v49 = vrot.slane %v13369_v9, 3  ;;  %v3071_v61 = vsel %vm527_vm6, %v3069_v10, %v3070_v50 }
 0x1ff   : > { %v2379_v57 = vpop.f32.mrb[25].mxu0  ;;  %v2614_v18 = vmul.f32 %v13307_v3, %v2377_v31  ;;  %v13474_v11 = vmax.f32 %v2728_v45, 0.0  ;;  %v3094_v48 = vsel %vm527_vm6, %v3073_v27, %v3093_v44  ;;  %v16507_v10 = vrot.slane %v13359_v52, 3 }
 0x200   : > { %v2381_v33 = vpop.f32.mrb[26].mxu0  ;;  %v2615_v58 = vmul.f32 %v13316_v63, %v2379_v57  ;;  %v13472_v43 = vmax.f32 %v2727_v37, 0.0  ;;  %v3226_v57 = vmax.f32 %v3009_v55, %v13357_v26  ;;  %v3311_v53 = vsel %vm559_vm3, %v3290_v46, %v3310_v49 }
 0x201   : > { %v2383_v16 = vpop.f32.mrb[27].mxu0  ;;  %v2713_v4 = vadd.f32 %v13313_v8, %v2614_v18  ;;  %v3525_v17 = vrot.slane %v13359_v52, 4 }
 0x202   : > { %v2714_v31 = vadd.f32 %v13322_v42, %v2615_v58  ;;  %v2938_v37 = vrot.slane %v13472_v43, 1 }
 0x203   : > { %v13489_v58 = vmax.f32 %v2713_v4, 0.0  ;;  %v3234_v4 = vmax.f32 %v3017_v2, %v3094_v48  ;;  %v3528_v2 = vsel %vm3496_vm7, %v3507_v36, %v3527_v20  ;;  %v3092_v36 = vsel %vm527_vm6, %v3070_v50, %v3091_v47 }
 0x204   : > { %v13491_v19 = vmax.f32 %v2714_v31, 0.0  ;;  %v13506_v55 = vmax.f32 %v13472_v43, %v2938_v37  ;;  %v3443_v31 = vmax.f32 %v3226_v57, %v13367_v25  ;;  %v2622_v57 = vmul.f32 %v13307_v3, %v2381_v33 }
 0x205   : > { %v3451_v18 = vmax.f32 %v3234_v4, %v3311_v53  ;;  %v3008_v33 = vmax.f32 %v13309_v21, %v2854_v15  ;;  %v3503_v50 = vrot.slane %v13309_v21, 4 }
 0x206   : > { %v2387_v26 = vpop.f32.mrb[28].mxu0  ;;  %v2912_v46 = vrot.slane %v13491_v19, 1  ;;  %v3660_v25 = vmax.f32 %v3443_v31, %v13376_v51  ;;  %v2721_v56 = vadd.f32 %v13313_v8, %v2622_v57  ;;  %v3309_v31 = vsel %vm559_vm3, %v3287_v24, %v16507_v10 }
 0x207   : > { %v2389_v12 = vpop.f32.mrb[29].mxu0  ;;  %v3668_v51 = vmax.f32 %v3451_v18, %v3528_v2  ;;  %v3504_v18 = vrot.slane %v13328_v41, 4  ;;  %v3225_v57 = vmax.f32 %v3008_v33, %v3071_v61  ;;  %v2630_v27 = vmul.f32 %v13307_v3, %v2387_v26 }
 0x208   : > { %v2391_v45 = vpop.f32.mrb[30].mxu0  ;;  %v13556_v15 = vmax.f32 %v2721_v56, 0.0  ;;  %v16508_v3 = vrot.slane %v13384_v40, 1  ;;  %v16509_v26 = vrot.slane %v13369_v9, 1  ;;  %v16510_v10 = vrot.slane %v13422_v6, 1 }
 0x209   : > { %v2392_v48 = vpop.f32.mrb[31].mxu0  ;;  %v2875_v45 = vsel %vm495_vm5, %v2853_v22, %v2874_v35  ;;  %v16506_v22 = vrot.slane %v13309_v21, 3  ;;  %v10788_v2 = vpack.c.bf16 %v3668_v51, %v3660_v25  ;;  %v3526_v61 = vsel %vm3496_vm7, %v3504_v18, %v3525_v17 }
 0x20a   : > { %v3016_v53 = vmax.f32 %v13328_v41, %v2875_v45  ;;  %v3505_v45 = vsel %vm3496_vm7, %v3503_v50, %v3504_v18  ;;  %v3143_v21 = vrot.slane %v13556_v15, 2  ;;  %v3360_v41 = vrot.slane %v13556_v15, 3 }
 0x20b   : > { %v3288_v4 = vsel %vm559_vm3, %v16506_v22, %v3287_v24  ;;  %v2623_v22 = vmul.f32 %v13316_v63, %v2383_v16  ;;  %10789 = vmatprep.subr.bf16.mxu1 %v10788_v2  ;;  %v2926_v24 = vrot.slane %v13556_v15, 1  ;;  %v2729_v56 = vadd.f32 %v13313_v8, %v2630_v27 }
 0x20c   : > { %v3233_v48 = vmax.f32 %v3016_v53, %v3092_v36  ;;  %v3442_v25 = vmax.f32 %v3225_v57, %v3288_v4  ;;  %v2631_v16 = vmul.f32 %v13316_v63, %v2389_v12  ;;  %v2893_v53 = vsel %vm495_vm5, %v16509_v26, %v16508_v3 }
 0x20d   : > { %v2722_v36 = vadd.f32 %v13322_v42, %v2623_v22  ;;  %v16511_v4 = vmov %v16508_v3  ;;  %v13581_v2 = vmax.f32 %v2729_v56, 0.0  ;;  %v3025_v8 = vmax.f32 %v13369_v9, %v2893_v53 }
 0x20e   : > { %v3450_v51 = vmax.f32 %v3233_v48, %v3309_v31  ;;  %v3659_v33 = vmax.f32 %v3442_v25, %v3505_v45  ;;  %v2909_v31 = vsel %vm495_vm5, %v16511_v4, %v16510_v10  ;;  %v2730_v63 = vadd.f32 %v13322_v42, %v2631_v16 }
 0x20f   : > { %v13579_v18 = vmax.f32 %v2722_v36, 0.0  ;;  %v3033_v12 = vmax.f32 %v13384_v40, %v2909_v31  ;;  %v3109_v27 = vrot.slane %v13384_v40, 2  ;;  %v3125_v57 = vrot.slane %v13422_v6, 2 }
 0x210   : > { %v3667_v50 = vmax.f32 %v3450_v51, %v3526_v61  ;;  %v2942_v22 = vrot.slane %v13581_v2, 1  ;;  %v3159_v25 = vrot.slane %v13581_v2, 2  ;;  %v13592_v61 = vmax.f32 %v2730_v63, 0.0 }
 0x211   : > { %v2928_v45 = vrot.slane %v13579_v18, 1  ;;  %v3110_v42 = vsel %vm527_vm6, %v3093_v44, %v3109_v27  ;;  %v3126_v36 = vsel %vm527_vm6, %v3109_v27, %v3125_v57  ;;  %v3326_v3 = vrot.slane %v13384_v40, 3 }
 0x212   : > { %v10790_v48 = vpack.c.bf16 %v3667_v50, %v3659_v33  ;;  %v13601_v56 = vmax.f32 %v13581_v2, %v2942_v22  ;;  %v3242_v33 = vmax.f32 %v3025_v8, %v3110_v42  ;;  %v3250_v16 = vmax.f32 %v3033_v12, %v3126_v36 }
 0x213   : > { %v2944_v26 = vrot.slane %v13592_v61, 1  ;;  %v3342_v53 = vrot.slane %v13422_v6, 3  ;;  %v3543_v10 = vrot.slane %v13384_v40, 4  ;;  %v3559_v44 = vrot.slane %v13422_v6, 4 }
 0x214   : > { %10791 = vmatpush1.bf16.msra.mxu1 %v10790_v48  ;;  %v3327_v4 = vsel %vm559_vm3, %v3310_v49, %v3326_v3  ;;  %v16512_v31 = vrot.slane %v13381_v34, 1  ;;  %v16513_v8 = vrot.slane %v13420_v5, 1  ;;  %v16515_v40 = vrot.slane %v13381_v34, 2 }
 0x215   : > { %v3343_v49 = vsel %vm559_vm3, %v3326_v3, %v3342_v53  ;;  %v3459_v48 = vmax.f32 %v3242_v33, %v3327_v4  ;;  %v3544_v42 = vsel %vm3496_vm7, %v3527_v20, %v3543_v10  ;;  %v16518_v33 = vrot.slane %v13381_v34, 3 }
 0x216   : > { %v2891_v50 = vsel %vm495_vm5, %v2874_v35, %v16512_v31  ;;  %v16514_v63 = vmov %v16512_v31  ;;  %v3108_v27 = vsel %vm527_vm6, %v3091_v47, %v16515_v40  ;;  %v3560_v35 = vsel %vm3496_vm7, %v3543_v10, %v3559_v44 }
 0x217   : > { %v2907_v12 = vsel %vm495_vm5, %v16514_v63, %v16513_v8  ;;  %v3467_v36 = vmax.f32 %v3250_v16, %v3343_v49  ;;  %v3024_v31 = vmax.f32 %v13359_v52, %v2891_v50  ;;  %v16516_v63 = vrot.slane %v13420_v5, 2 }
 0x218   : > { %v3032_v8 = vmax.f32 %v13381_v34, %v2907_v12  ;;  %v16517_v51 = vmov %v16515_v40  ;;  %v3676_v40 = vmax.f32 %v3459_v48, %v3544_v42  ;;  %v16519_v9 = vrot.slane %v13359_v52, 3 }
 0x219   : > { %v3124_v47 = vsel %vm527_vm6, %v16517_v51, %v16516_v63  ;;  %v16520_v3 = vrot.slane %v13420_v5, 3  ;;  %v16521_v16 = vmov %v16518_v33  ;;  %v3541_v4 = vrot.slane %v13381_v34, 4 }
 0x21a   : > { %v3325_v20 = vsel %vm559_vm3, %v16519_v9, %v16518_v33  ;;  %v3684_v50 = vmax.f32 %v3467_v36, %v3560_v35  ;;  %v3241_v12 = vmax.f32 %v3024_v31, %v3108_v27  ;;  %v3249_v49 = vmax.f32 %v3032_v8, %v3124_v47 }
 0x21b   : > { %v3341_v10 = vsel %vm559_vm3, %v16521_v16, %v16520_v3  ;;  %v3557_v51 = vrot.slane %v13420_v5, 4  ;;  %v3542_v48 = vsel %vm3496_vm7, %v3525_v17, %v3541_v4  ;;  %v16522_v42 = vrot.slane %v13438_v14, 1 }
 0x21c   : > { %v16523_v52 = vrot.slane %v13422_v6, 1  ;;  %v16524_v33 = vrot.slane %v13474_v11, 1  ;;  %v3141_v34 = vrot.slane %v13438_v14, 2  ;;  %v10792_v27 = vpack.c.bf16 %v3684_v50, %v3676_v40 }
 0x21d   : > { %v16525_v9 = vmov %v16522_v42  ;;  %v3458_v35 = vmax.f32 %v3241_v12, %v3325_v20  ;;  %v3466_v36 = vmax.f32 %v3249_v49, %v3341_v10  ;;  %v3558_v31 = vsel %vm3496_vm7, %v3541_v4, %v3557_v51 }
 0x21e   : > { %v2925_v63 = vsel %vm495_vm5, %v16523_v52, %v16522_v42  ;;  %v2941_v3 = vsel %vm495_vm5, %v16525_v9, %v16524_v33  ;;  %v3142_v47 = vsel %vm527_vm6, %v3125_v57, %v3141_v34  ;;  %v3157_v16 = vrot.slane %v13474_v11, 2  ;;  %10793 = vmatprep.subr.bf16.mxu1 %v10792_v27 }
 0x21f   : > { %v3041_v17 = vmax.f32 %v13422_v6, %v2925_v63  ;;  %v3049_v8 = vmax.f32 %v13438_v14, %v2941_v3  ;;  %v3675_v42 = vmax.f32 %v3458_v35, %v3542_v48  ;;  %v3683_v52 = vmax.f32 %v3466_v36, %v3558_v31 }
 0x220   : > { %v3358_v33 = vrot.slane %v13438_v14, 3  ;;  %v3374_v9 = vrot.slane %v13474_v11, 3  ;;  %v3158_v40 = vsel %vm527_vm6, %v3141_v34, %v3157_v16  ;;  %v3575_v10 = vrot.slane %v13438_v14, 4 }
 0x221   : > { %v3258_v20 = vmax.f32 %v3041_v17, %v3142_v47  ;;  %v3591_v6 = vrot.slane %v13474_v11, 4  ;;  %v10794_v4 = vpack.c.bf16 %v3683_v52, %v3675_v42  ;;  %v3266_v50 = vmax.f32 %v3049_v8, %v3158_v40 }
 0x222   : > { %v3359_v57 = vsel %vm559_vm3, %v3342_v53, %v3358_v33  ;;  %v3375_v12 = vsel %vm559_vm3, %v3358_v33, %v3374_v9  ;;  %v3576_v48 = vsel %vm3496_vm7, %v3559_v44, %v3575_v10  ;;  %v16526_v3 = vrot.slane %v13424_v0, 1 }
 0x223   : > { %v3475_v49 = vmax.f32 %v3258_v20, %v3359_v57  ;;  %v3592_v63 = vsel %vm3496_vm7, %v3575_v10, %v3591_v6  ;;  %v16527_v34 = vrot.slane %v13420_v5, 1  ;;  %10795 = vmatpush1.bf16.msra.mxu1 %v10794_v4  ;;  %v3483_v14 = vmax.f32 %v3266_v50, %v3375_v12 }
 0x224   : > { %v16528_v35 = vmov %v16526_v3  ;;  %v16529_v44 = vrot.slane %v13424_v0, 2  ;;  %v16530_v31 = vrot.slane %v13420_v5, 2  ;;  %v16531_v42 = vrot.slane %v13472_v43, 2 }
 0x225   : > { %v2923_v27 = vsel %vm495_vm5, %v16527_v34, %v16526_v3  ;;  %v2939_v53 = vsel %vm495_vm5, %v16528_v35, %v2938_v37  ;;  %v3692_v8 = vmax.f32 %v3475_v49, %v3576_v48  ;;  %v16533_v40 = vrot.slane %v13424_v0, 3 }
 0x226   : > { %v3040_v36 = vmax.f32 %v13420_v5, %v2923_v27  ;;  %v3140_v17 = vsel %vm527_vm6, %v16530_v31, %v16529_v44  ;;  %v3048_v47 = vmax.f32 %v13424_v0, %v2939_v53  ;;  %v16532_v52 = vmov %v16529_v44 }
 0x227   : > { %v3156_v33 = vsel %vm527_vm6, %v16532_v52, %v16531_v42  ;;  %v16534_v37 = vrot.slane %v13420_v5, 3  ;;  %v3700_v10 = vmax.f32 %v3483_v14, %v3592_v63  ;;  %v16535_v50 = vrot.slane %v13472_v43, 3 }
 0x228   : > { %v3257_v4 = vmax.f32 %v3040_v36, %v3140_v17  ;;  %v16536_v57 = vmov %v16533_v40  ;;  %v3573_v49 = vrot.slane %v13424_v0, 4  ;;  %v3265_v48 = vmax.f32 %v3048_v47, %v3156_v33 }
 0x229   : > { %v3357_v20 = vsel %vm559_vm3, %v16534_v37, %v16533_v40  ;;  %v3373_v12 = vsel %vm559_vm3, %v16536_v57, %v16535_v50  ;;  %v3589_v3 = vrot.slane %v13472_v43, 4  ;;  %v16537_v34 = vrot.slane %v13474_v11, 1 }
 0x22a   : > { %v16538_v5 = vmov %v16531_v42  ;;  %v10796_v14 = vpack.c.bf16 %v3700_v10, %v3692_v8  ;;  %v3474_v35 = vmax.f32 %v3257_v4, %v3357_v20  ;;  %v3574_v53 = vsel %vm3496_vm7, %v3557_v51, %v3573_v49 }
 0x22b   : > { %v3057_v27 = vmax.f32 %v13474_v11, %v16537_v34  ;;  %v3273_v63 = vmax.f32 %v13506_v55, %v16538_v5  ;;  %v16539_v36 = vrot.slane %v13418_v28, 1  ;;  %v16540_v44 = vrot.slane %v13404_v54, 1 }
 0x22c   : > { %v3482_v31 = vmax.f32 %v3265_v48, %v3373_v12  ;;  %v3590_v17 = vsel %vm3496_vm7, %v3573_v49, %v3589_v3  ;;  %v16541_v11 = vmov %v16535_v50  ;;  %10797 = vmatprep.subr.bf16.mxu1 %v10796_v14  ;;  %v3691_v52 = vmax.f32 %v3474_v35, %v3574_v53 }
 0x22d   : > { %v2863_v0 = vsel %vm495_vm5, %v16540_v44, %v16539_v36  ;;  %v3274_v47 = vmax.f32 %v3057_v27, %v3157_v16  ;;  %v3490_v42 = vmax.f32 %v3273_v63, %v16541_v11  ;;  %v16542_v55 = vrot.slane %v13456_v59, 1 }
 0x22e   : > { %v16543_v8 = vmov %v16539_v36  ;;  %v3011_v33 = vmax.f32 %v13404_v54, %v2863_v0  ;;  %v3078_v40 = vrot.slane %v13404_v54, 2  ;;  %v3699_v37 = vmax.f32 %v3482_v31, %v3590_v17 }
 0x22f   : > { %v2881_v51 = vsel %vm495_vm5, %v16543_v8, %v16542_v55  ;;  %v3491_v20 = vmax.f32 %v3274_v47, %v3374_v9  ;;  %v3707_v10 = vmax.f32 %v3490_v42, %v3589_v3  ;;  %v3079_v43 = vrot.slane %v13418_v28, 2 }
 0x230   : > { %v3019_v16 = vmax.f32 %v13418_v28, %v2881_v51  ;;  %v3097_v4 = vrot.slane %v13456_v59, 2  ;;  %v3295_v50 = vrot.slane %v13404_v54, 3  ;;  %v3296_v57 = vrot.slane %v13418_v28, 3 }
 0x231   : > { %v10798_v12 = vpack.c.bf16 %v3699_v37, %v3691_v52  ;;  %v3708_v49 = vmax.f32 %v3491_v20, %v3591_v6  ;;  %v3314_v48 = vrot.slane %v13456_v59, 3  ;;  %v3512_v34 = vrot.slane %v13404_v54, 4 }
 0x232   : > { %v3080_v27 = vsel %vm527_vm6, %v3078_v40, %v3079_v43  ;;  %v3098_v9 = vsel %vm527_vm6, %v3079_v43, %v3097_v4  ;;  %v3297_v3 = vsel %vm559_vm3, %v3295_v50, %v3296_v57  ;;  %v3513_v5 = vrot.slane %v13418_v28, 4 }
 0x233   : > { %10799 = vmatpush1.bf16.msra.mxu1 %v10798_v12  ;;  %v3228_v63 = vmax.f32 %v3011_v33, %v3080_v27  ;;  %v3236_v14 = vmax.f32 %v3019_v16, %v3098_v9  ;;  %v3315_v35 = vsel %vm559_vm3, %v3296_v57, %v3314_v48  ;;  %v3531_v53 = vrot.slane %v13456_v59, 4 }
 0x234   : > { %9895 = vmatprep.subr.msk.mxu1 %vm3722_vm8, %v3708_v49  ;;  %v3514_v6 = vsel %vm3496_vm7, %v3512_v34, %v3513_v5  ;;  %v16544_v54 = vrot.slane %v13406_v30, 1  ;;  %v16545_v36 = vrot.slane %v13393_v39, 1  ;;  %v16546_v0 = vrot.slane %v13440_v13, 1 }
 0x235   : > { %v16548_v17 = vrot.slane %v13406_v30, 2  ;;  %v16549_v47 = vrot.slane %v13393_v39, 2  ;;  %v3445_v42 = vmax.f32 %v3228_v63, %v3297_v3  ;;  %v3453_v52 = vmax.f32 %v3236_v14, %v3315_v35 }
 0x236   : > { %v2860_v44 = vsel %vm495_vm5, %v16545_v36, %v16544_v54  ;;  %v16547_v28 = vmov %v16544_v54  ;;  %v3532_v55 = vsel %vm3496_vm7, %v3513_v5, %v3531_v53  ;;  %v16550_v33 = vrot.slane %v13440_v13, 2 }
 0x237   : > { %v2879_v31 = vsel %vm495_vm5, %v16547_v28, %v16546_v0  ;;  %v3077_v11 = vsel %vm527_vm6, %v16549_v47, %v16548_v17  ;;  %v3010_v8 = vmax.f32 %v13393_v39, %v2860_v44  ;;  %v16551_v40 = vmov %v16548_v17  ;;  %9896 = vmatpush1.msk.msra.mxu1 %vm3722_vm8, %v3707_v10 }
 0x238   : > { %v3018_v51 = vmax.f32 %v13406_v30, %v2879_v31  ;;  %v3096_v37 = vsel %vm527_vm6, %v16551_v40, %v16550_v33  ;;  %v16552_v20 = vrot.slane %v13406_v30, 3  ;;  %v16553_v16 = vrot.slane %v13393_v39, 3  ;;  %9897 = vmatmul.mubr.msk.f32.vlgmr.msra.gmra.mrb[52].mxu1 %vm3715_vm9, %v13266_v7 }
 0x239   : > { %v16554_v50 = vrot.slane %v13440_v13, 3  ;;  %v3662_v49 = vmax.f32 %v3445_v42, %v3514_v6  ;;  %v3670_v34 = vmax.f32 %v3453_v52, %v3532_v55  ;;  %v3227_v27 = vmax.f32 %v3010_v8, %v3077_v11 }
 0x23a   : > { %v3294_v43 = vsel %vm559_vm3, %v16553_v16, %v16552_v20  ;;  %v16555_v57 = vmov %v16552_v20  ;;  %v3509_v9 = vrot.slane %v13393_v39, 4  ;;  %v3235_v3 = vmax.f32 %v3018_v51, %v3096_v37 }
 0x23b   : > { %v3313_v12 = vsel %vm559_vm3, %v16555_v57, %v16554_v50  ;;  %v3510_v5 = vrot.slane %v13406_v30, 4  ;;  %v3529_v63 = vrot.slane %v13440_v13, 4  ;;  %v16556_v14 = vrot.slane %v13470_v62, 1 }
 0x23c   : > { %v16557_v35 = vrot.slane %v13456_v59, 1  ;;  %v10800_v10 = vpack.c.bf16 %v3670_v34, %v3662_v49  ;;  %v3444_v6 = vmax.f32 %v3227_v27, %v3294_v43  ;;  %v16559_v0 = vmov 0.0  }
 0x23d   : > { %v16558_v39 = vmov %v16556_v14  ;;  %3894 = vmatprep.mubr.f32.mxu1 %v16559_v0  ;;  %v3452_v30 = vmax.f32 %v3235_v3, %v3313_v12  ;;  %v3511_v28 = vsel %vm3496_vm7, %v3509_v9, %v3510_v5  ;;  %v3530_v31 = vsel %vm3496_vm7, %v3510_v5, %v3529_v63 }
 0x23e   : > { %v2897_v54 = vsel %vm495_vm5, %v16557_v35, %v16556_v14  ;;  %v2913_v36 = vsel %vm495_vm5, %v16558_v39, %v2912_v46  ;;  %10801 = vmatprep.subr.bf16.mxu1 %v10800_v10  ;;  %v3661_v47 = vmax.f32 %v3444_v6, %v3511_v28  ;;  %v3113_v11 = vrot.slane %v13470_v62, 2  ;;  %9898 = vmatmul.mubr.msk.f32.gmra.mrb[54].mxu1 %vm3715_vm9, %v13275_v1 }
 0x23f   : > { %v3027_v44 = vmax.f32 %v13456_v59, %v2897_v54  ;;  %v3035_v17 = vmax.f32 %v13470_v62, %v2913_v36  ;;  %v3129_v42 = vrot.slane %v13491_v19, 2  ;;  %v3330_v52 = vrot.slane %v13470_v62, 3  ;;  %3965 = vmatprep.mubr.f32.mxu1 %v16559_v0 }
 0x240   : > { %v3669_v55 = vmax.f32 %v3452_v30, %v3530_v31  ;;  %v3346_v59 = vrot.slane %v13491_v19, 3  ;;  %v3547_v8 = vrot.slane %v13470_v62, 4  ;;  %v3563_v51 = vrot.slane %v13491_v19, 4 }
 0x241   : > { %v3114_v33 = vsel %vm527_vm6, %v3097_v4, %v3113_v11  ;;  %v3130_v40 = vsel %vm527_vm6, %v3113_v11, %v3129_v42  ;;  %v3331_v37 = vsel %vm559_vm3, %v3314_v48, %v3330_v52  ;;  %v16560_v20 = vrot.slane %v13458_v38, 1 }
 0x242   : > { %v16561_v16 = vrot.slane %v13440_v13, 1  ;;  %v10802_v62 = vpack.c.bf16 %v3669_v55, %v3661_v47  ;;  %v3244_v50 = vmax.f32 %v3027_v44, %v3114_v33  ;;  %v3252_v57 = vmax.f32 %v3035_v17, %v3130_v40 }
 0x243   : > { %v3347_v12 = vsel %vm559_vm3, %v3330_v52, %v3346_v59  ;;  %v3548_v1 = vsel %vm3496_vm7, %v3531_v53, %v3547_v8  ;;  %v3564_v4 = vsel %vm3496_vm7, %v3547_v8, %v3563_v51  ;;  %v16562_v49 = vrot.slane %v13489_v58, 1 }
 0x244   : > { %v2895_v43 = vsel %vm495_vm5, %v16561_v16, %v16560_v20  ;;  %v16563_v48 = vmov %v16560_v20  ;;  %10803 = vmatpush1.bf16.msra.mxu1 %v10802_v62  ;;  %v3461_v9 = vmax.f32 %v3244_v50, %v3331_v37  ;;  %v3469_v3 = vmax.f32 %v3252_v57, %v3347_v12 }
 0x245   : > { %v2911_v34 = vsel %vm495_vm5, %v16563_v48, %v16562_v49  ;;  %v3026_v27 = vmax.f32 %v13440_v13, %v2895_v43  ;;  %v16564_v14 = vrot.slane %v13458_v38, 2  ;;  %v16565_v35 = vrot.slane %v13440_v13, 2 }
 0x246   : > { %v3034_v5 = vmax.f32 %v13458_v38, %v2911_v34  ;;  %v16566_v54 = vrot.slane %v13489_v58, 2  ;;  %v16568_v36 = vrot.slane %v13458_v38, 3  ;;  %v16569_v44 = vrot.slane %v13440_v13, 3 }
 0x247   : > { %v3112_v53 = vsel %vm527_vm6, %v16565_v35, %v16564_v14  ;;  %v16567_v10 = vmov %v16564_v14  ;;  %v16570_v28 = vrot.slane %v13489_v58, 3  ;;  %v3678_v47 = vmax.f32 %v3461_v9, %v3548_v1 }
 0x248   : > { %v3128_v6 = vsel %vm527_vm6, %v16567_v10, %v16566_v54  ;;  %v3243_v39 = vmax.f32 %v3026_v27, %v3112_v53  ;;  %v3329_v30 = vsel %vm559_vm3, %v16569_v44, %v16568_v36  ;;  %v16571_v31 = vmov %v16568_v36 }
 0x249   : > { %v3345_v17 = vsel %vm559_vm3, %v16571_v31, %v16570_v28  ;;  %v3686_v11 = vmax.f32 %v3469_v3, %v3564_v4  ;;  %v3251_v52 = vmax.f32 %v3034_v5, %v3128_v6  ;;  %v3545_v55 = vrot.slane %v13458_v38, 4 }
 0x24a   : > { %v3460_v8 = vmax.f32 %v3243_v39, %v3329_v30  ;;  %v3561_v33 = vrot.slane %v13489_v58, 4  ;;  %v2929_v13 = vsel %vm495_vm5, %v2912_v46, %v2928_v45  ;;  %v2945_v40 = vsel %vm495_vm5, %v2928_v45, %v2944_v26 }
 0x24b   : > { %v10804_v37 = vpack.c.bf16 %v3686_v11, %v3678_v47  ;;  %v3468_v20 = vmax.f32 %v3251_v52, %v3345_v17  ;;  %v3546_v16 = vsel %vm3496_vm7, %v3529_v63, %v3545_v55  ;;  %v3043_v38 = vmax.f32 %v13491_v19, %v2929_v13 }
 0x24c   : > { %v3562_v43 = vsel %vm3496_vm7, %v3545_v55, %v3561_v33  ;;  %v3677_v62 = vmax.f32 %v3460_v8, %v3546_v16  ;;  %v3051_v50 = vmax.f32 %v13579_v18, %v2945_v40  ;;  %v3145_v57 = vrot.slane %v13579_v18, 2 }
 0x24d   : > { %10805 = vmatprep.subr.bf16.mxu1 %v10804_v37  ;;  %v3685_v46 = vmax.f32 %v3468_v20, %v3562_v43  ;;  %v3161_v12 = vrot.slane %v13592_v61, 2  ;;  %v3362_v1 = vrot.slane %v13579_v18, 3  ;;  %v3378_v45 = vrot.slane %v13592_v61, 3 }
 0x24e   : > { %v3146_v4 = vsel %vm527_vm6, %v3129_v42, %v3145_v57  ;;  %v3579_v63 = vrot.slane %v13579_v18, 4  ;;  %v3595_v19 = vrot.slane %v13592_v61, 4  ;;  %v2927_v48 = vsel %vm495_vm5, %v16562_v49, %v2926_v24 }
 0x24f   : > { %v10806_v34 = vpack.c.bf16 %v3685_v46, %v3677_v62  ;;  %v3162_v27 = vsel %vm527_vm6, %v3145_v57, %v3161_v12  ;;  %v3260_v9 = vmax.f32 %v3043_v38, %v3146_v4  ;;  %v3363_v3 = vsel %vm559_vm3, %v3346_v59, %v3362_v1 }
 0x250   : > { %v3268_v5 = vmax.f32 %v3051_v50, %v3162_v27  ;;  %v3379_v14 = vsel %vm559_vm3, %v3362_v1, %v3378_v45  ;;  %v3580_v42 = vsel %vm3496_vm7, %v3563_v51, %v3579_v63  ;;  %v3596_v18 = vsel %vm3496_vm7, %v3579_v63, %v3595_v19  ;;  %v11842_v50 = vld [vmem:[%s16475_s2 + $0x1] ss:$2 sm:$0xff] }
 0x251   : > { %10807 = vmatpush1.bf16.msra.mxu1 %v10806_v34  ;;  %v3477_v35 = vmax.f32 %v3260_v9, %v3363_v3  ;;  %v2943_v53 = vsel %vm495_vm5, %v2926_v24, %v2942_v22  ;;  %v3042_v54 = vmax.f32 %v13489_v58, %v2927_v48  ;;  %v16572_v59 = vrot.slane %v13489_v58, 2 }
 0x252   : > { %v3485_v6 = vmax.f32 %v3268_v5, %v3379_v14  ;;  %v3050_v51 = vmax.f32 %v13556_v15, %v2943_v53  ;;  %v3160_v39 = vsel %vm527_vm6, %v3143_v21, %v3159_v25  ;;  %v16573_v24 = vmov %v16570_v28 }
 0x253   : > { %v3144_v10 = vsel %vm527_vm6, %v16572_v59, %v3143_v21  ;;  %v3361_v22 = vsel %vm559_vm3, %v16573_v24, %v3360_v41  ;;  %v3694_v36 = vmax.f32 %v3477_v35, %v3580_v42  ;;  %v16574_v30 = vrot.slane %v13581_v2, 3 }
 0x254   : > { %v3259_v44 = vmax.f32 %v3042_v54, %v3144_v10  ;;  %v3577_v31 = vrot.slane %v13556_v15, 4  ;;  %v3702_v17 = vmax.f32 %v3485_v6, %v3596_v18  ;;  %v3267_v47 = vmax.f32 %v3050_v51, %v3160_v39  ;;  %v13964_v51 = vld [vmem:[%s16476_s3 + $0x8] sm:$0x7] }
 0x255   : > { %v3377_v28 = vsel %vm559_vm3, %v3360_v41, %v16574_v30  ;;  %v3593_v21 = vrot.slane %v13581_v2, 4  ;;  %v3059_v58 = vmax.f32 %v13592_v61, %v2944_v26  ;;  %v3275_v55 = vmax.f32 %v13601_v56, %v3159_v25  ;;  %v11841_v61 = vld [vmem:[%s16475_s2] ss:$2 sm:$0xff] }
 0x256   : > { %v3476_v11 = vmax.f32 %v3259_v44, %v3361_v22  ;;  %v3578_v52 = vsel %vm3496_vm7, %v3561_v33, %v3577_v31  ;;  %v2568_v8 = vsub.s32 7, %v12960_v23  ;;  %v10808_v41 = vpack.c.bf16 %v3702_v17, %v3694_v36 }
 0x257   : > { %v3484_v13 = vmax.f32 %v3267_v47, %v3377_v28  ;;  %v3594_v15 = vsel %vm3496_vm7, %v3577_v31, %v3593_v21  ;;  %v3276_v40 = vmax.f32 %v3059_v58, %v3161_v12  ;;  %v16575_v26 = vsub.s32 6, %v12960_v23  ;;  %v2499_v12 = vpop.f32.mrb[32].mxu1 }
 0x258   : > { %v3693_v37 = vmax.f32 %v3476_v11, %v3578_v52  ;;  %10809 = vmatprep.subr.bf16.mxu1 %v10808_v41  ;;  %v16576_v56 = vmov %v16574_v30  ;;  %v13928_v43 = vrot.slane %v11841_v61, %v2568_v8  ;;  %v13937_v1 = vrot.slane %v11842_v50, %v2568_v8 }
 0x259   : > { %v3701_v20 = vmax.f32 %v3484_v13, %v3594_v15  ;;  %v3493_v16 = vmax.f32 %v3276_v40, %v3378_v45  ;;  %v13924_v33 = vrot.slane %v11841_v61, %v16575_v26  ;;  %v3492_v38 = vmax.f32 %v3275_v55, %v16576_v56  ;;  %v2501_v45 = vpop.f32.mrb[33].mxu1 }
 0x25a   : > { %v16577_v57 = vmov %v16575_v26  ;;  %v2585_v63 = vmul.f32 %v13928_v43, %v2501_v45 }
 0x25b   : > { %v10810_v25 = vpack.c.bf16 %v3701_v20, %v3693_v37  ;;  %v3710_v62 = vmax.f32 %v3493_v16, %v3595_v19  ;;  %v13935_v46 = vrot.slane %v11842_v50, %v16577_v57  ;;  %v2584_v2 = vmul.f32 %v13924_v33, %v2499_v12  ;;  %v2503_v19 = vpop.f32.mrb[34].mxu1 }
 0x25c   : > { %v3709_v4 = vmax.f32 %v3492_v38, %v3593_v21  ;;  %v2592_v48 = vmul.f32 %v13924_v33, %v2503_v19  ;;  %v2505_v23 = vpop.f32.mrb[35].mxu1  ;;  %v2684_v34 = vadd.f32 %v13937_v1, %v2585_v63 }
 0x25d   : > { %10811 = vmatpush1.bf16.msra.mxu1 %v10810_v25  ;;  %v2683_v49 = vadd.f32 %v13935_v46, %v2584_v2  ;;  %v2593_v27 = vmul.f32 %v13928_v43, %v2505_v23 }
 0x25e   : > { %9899 = vmatprep.subr.msk.mxu1 %vm3722_vm8, %v3710_v62  ;;  %v2691_v3 = vadd.f32 %v13935_v46, %v2592_v48  ;;  %v2740_v5 = vmax.f32 %v2684_v34, 0.0 }
 0x25f   : > { %v13949_v9 = vmax.f32 %v2683_v49, 0.0  ;;  %v2692_v14 = vadd.f32 %v13937_v1, %v2593_v27 }
 0x260   : > { %v13957_v53 = vmax.f32 %v2691_v3, 0.0  ;;  %v2867_v54 = vrot.slane %v2740_v5, 1  ;;  %v3084_v10 = vrot.slane %v2740_v5, 2  ;;  %v3301_v6 = vrot.slane %v2740_v5, 3 }
 0x261   : > { %9900 = vmatpush1.msk.msra.mxu1 %vm3722_vm8, %v3709_v4  ;;  %v2864_v42 = vrot.slane %v13949_v9, 1  ;;  %v3081_v18 = vrot.slane %v13949_v9, 2  ;;  %v3298_v35 = vrot.slane %v13949_v9, 3  ;;  %v13959_v59 = vmax.f32 %v2692_v14, 0.0 }
 0x262   : > { %9901 = vmatmul.mubr.msk.f32.vlgmr.msra.gmra.mrb[56].mxu1 %vm3715_vm9, %v13266_v7  ;;  %v2509_v7 = vpop.f32.mrb[36].mxu1  ;;  %v2865_v39 = vrot.slane %v13957_v53, 1  ;;  %v3082_v24 = vrot.slane %v13957_v53, 2  ;;  %v3299_v22 = vrot.slane %v13957_v53, 3  ;;  %v3518_v52 = vrot.slane %v2740_v5, 4 }
 0x263   : > { %3971 = vmatprep.mubr.f32.mxu1 %v16559_v0  ;;  %v2600_v36 = vmul.f32 %v13924_v33, %v2509_v7  ;;  %v2511_v44 = vpop.f32.mrb[37].mxu1  ;;  %v2868_v30 = vrot.slane %v13959_v59, 1  ;;  %v3085_v17 = vrot.slane %v13959_v59, 2  ;;  %v3302_v47 = vrot.slane %v13959_v59, 3 }
 0x264   : > { %v2601_v28 = vmul.f32 %v13928_v43, %v2511_v44  ;;  %v2513_v31 = vpop.f32.mrb[38].mxu1  ;;  %v3519_v55 = vrot.slane %v13959_v59, 4  ;;  %v13995_v56 = vsel %vm495_vm5, %v2864_v42, %v2865_v39 }
 0x265   : > { %v2699_v21 = vadd.f32 %v13935_v46, %v2600_v36  ;;  %v2608_v58 = vmul.f32 %v13924_v33, %v2513_v31  ;;  %v2515_v11 = vpop.f32.mrb[39].mxu1  ;;  %v2869_v13 = vsel %vm495_vm5, %v2867_v54, %v2868_v30  ;;  %v3086_v15 = vsel %vm527_vm6, %v3084_v10, %v3085_v17 }
 0x266   : > { %9902 = vmatmul.mubr.msk.f32.gmra.mrb[58].mxu1 %vm3715_vm9, %v13964_v51  ;;  %v2700_v8 = vadd.f32 %v13937_v1, %v2601_v28  ;;  %v2609_v41 = vmul.f32 %v13928_v43, %v2515_v11  ;;  %v3013_v20 = vmax.f32 %v2740_v5, %v2869_v13  ;;  %v3303_v16 = vsel %vm559_vm3, %v3301_v6, %v3302_v47  ;;  %v2519_v45 = vpop.f32.mrb[40].mxu1 }
 0x267   : > { %4042 = vmatprep.mubr.f32.mxu1 %v16559_v0  ;;  %v13984_v40 = vmax.f32 %v2699_v21, 0.0  ;;  %v2707_v37 = vadd.f32 %v13935_v46, %v2608_v58  ;;  %v3520_v25 = vsel %vm3496_vm7, %v3518_v52, %v3519_v55  ;;  %v2616_v23 = vmul.f32 %v13924_v33, %v2519_v45  ;;  %v2521_v34 = vpop.f32.mrb[41].mxu1 }
 0x268   : > { %v13988_v61 = vmax.f32 %v2700_v8, 0.0  ;;  %v2708_v26 = vadd.f32 %v13937_v1, %v2609_v41  ;;  %v3230_v63 = vmax.f32 %v3013_v20, %v3086_v15  ;;  %v2617_v3 = vmul.f32 %v13928_v43, %v2521_v34  ;;  %v2523_v5 = vpop.f32.mrb[42].mxu1 }
 0x269   : > { %v2882_v38 = vrot.slane %v13984_v40, 1  ;;  %v3099_v62 = vrot.slane %v13984_v40, 2  ;;  %v3316_v50 = vrot.slane %v13984_v40, 3  ;;  %v14000_v57 = vmax.f32 %v2707_v37, 0.0  ;;  %v2525_v10 = vpop.f32.mrb[43].mxu1 }
 0x26a   : > { %v2884_v12 = vrot.slane %v13988_v61, 1  ;;  %v14003_v2 = vmax.f32 %v2708_v26, 0.0  ;;  %v3101_v4 = vrot.slane %v13988_v61, 2  ;;  %v2715_v54 = vadd.f32 %v13935_v46, %v2616_v23  ;;  %v2529_v26 = vpop.f32.mrb[44].mxu1 }
 0x26b   : > { %v2898_v19 = vrot.slane %v14000_v57, 1  ;;  %v3115_v49 = vrot.slane %v14000_v57, 2  ;;  %v3332_v48 = vrot.slane %v14000_v57, 3  ;;  %v2624_v7 = vmul.f32 %v13924_v33, %v2523_v5 }
 0x26c   : > { %v2900_v27 = vrot.slane %v14003_v2, 1  ;;  %v2885_v14 = vsel %vm495_vm5, %v2868_v30, %v2884_v12  ;;  %v3102_v42 = vsel %vm527_vm6, %v3085_v17, %v3101_v4  ;;  %v3318_v36 = vrot.slane %v13988_v61, 3 }
 0x26d   : > { %v3021_v6 = vmax.f32 %v13959_v59, %v2885_v14  ;;  %v2716_v44 = vadd.f32 %v13937_v1, %v2617_v3  ;;  %v2625_v28 = vmul.f32 %v13928_v43, %v2525_v10  ;;  %v3447_v31 = vmax.f32 %v3230_v63, %v3303_v16  ;;  %v2531_v3 = vpop.f32.mrb[45].mxu1 }
 0x26e   : > { %v3535_v30 = vrot.slane %v13988_v61, 4  ;;  %v14025_v21 = vmax.f32 %v2715_v54, 0.0  ;;  %v2723_v17 = vadd.f32 %v13935_v46, %v2624_v7  ;;  %v3319_v11 = vsel %vm559_vm3, %v3302_v47, %v3318_v36 }
 0x26f   : > { %v3238_v58 = vmax.f32 %v3021_v6, %v3102_v42  ;;  %v14031_v52 = vmax.f32 %v2716_v44, 0.0  ;;  %v2724_v59 = vadd.f32 %v13937_v1, %v2625_v28  ;;  %v3664_v41 = vmax.f32 %v3447_v31, %v3520_v25  ;;  %v2533_v42 = vpop.f32.mrb[46].mxu1 }
 0x270   : > { %v3536_v8 = vsel %vm3496_vm7, %v3519_v55, %v3535_v30  ;;  %v2914_v13 = vrot.slane %v14025_v21, 1  ;;  %v3131_v15 = vrot.slane %v14025_v21, 2  ;;  %v3348_v37 = vrot.slane %v14025_v21, 3  ;;  %v2534_v10 = vpop.f32.mrb[47].mxu1 }
 0x271   : > { %v14040_v20 = vmax.f32 %v2723_v17, 0.0  ;;  %v2916_v16 = vrot.slane %v14031_v52, 1  ;;  %v14043_v47 = vmax.f32 %v2724_v59, 0.0  ;;  %v3455_v45 = vmax.f32 %v3238_v58, %v3319_v11 }
 0x272   : > { %v2883_v55 = vsel %vm495_vm5, %v2865_v39, %v2882_v38  ;;  %v2632_v34 = vmul.f32 %v13924_v33, %v2529_v26  ;;  %v2633_v14 = vmul.f32 %v13928_v43, %v2531_v3  ;;  %v3012_v7 = vmax.f32 %v13949_v9, %v13995_v56 }
 0x273   : > { %v2930_v25 = vrot.slane %v14040_v20, 1  ;;  %v3147_v63 = vrot.slane %v14040_v20, 2  ;;  %v3364_v23 = vrot.slane %v14040_v20, 3  ;;  %v2932_v5 = vrot.slane %v14043_v47, 1 }
 0x274   : > { %v3672_v54 = vmax.f32 %v3455_v45, %v3536_v8  ;;  %v2731_v39 = vadd.f32 %v13935_v46, %v2632_v34  ;;  %v3020_v6 = vmax.f32 %v13957_v53, %v2883_v55  ;;  %v3083_v33 = vsel %vm527_vm6, %v3081_v18, %v3082_v24 }
 0x275   : > { %v3100_v43 = vsel %vm527_vm6, %v3082_v24, %v3099_v62  ;;  %v2732_v44 = vadd.f32 %v13937_v1, %v2633_v14  ;;  %v3229_v28 = vmax.f32 %v3012_v7, %v3083_v33  ;;  %v3300_v46 = vsel %vm559_vm3, %v3298_v35, %v3299_v22 }
 0x276   : > { %v10812_v56 = vpack.c.bf16 %v3672_v54, %v3664_v41  ;;  %v14076_v31 = vmax.f32 %v2731_v39, 0.0  ;;  %v3237_v17 = vmax.f32 %v3020_v6, %v3100_v43  ;;  %v3317_v18 = vsel %vm559_vm3, %v3299_v22, %v3316_v50 }
 0x277   : > { %v3515_v24 = vrot.slane %v13949_v9, 4  ;;  %v14084_v1 = vmax.f32 %v2732_v44, 0.0  ;;  %v3446_v58 = vmax.f32 %v3229_v28, %v3300_v46  ;;  %v3516_v11 = vrot.slane %v13957_v53, 4 }
 0x278   : > { %10813 = vmatprep.subr.bf16.mxu1 %v10812_v56  ;;  %v3533_v59 = vrot.slane %v13984_v40, 4  ;;  %v2946_v35 = vrot.slane %v14076_v31, 1  ;;  %v3163_v8 = vrot.slane %v14076_v31, 2  ;;  %v3380_v41 = vrot.slane %v14076_v31, 3 }
 0x279   : > { %v3454_v26 = vmax.f32 %v3237_v17, %v3317_v18  ;;  %v2948_v45 = vrot.slane %v14084_v1, 1  ;;  %v3517_v22 = vsel %vm3496_vm7, %v3515_v24, %v3516_v11  ;;  %v2901_v53 = vsel %vm495_vm5, %v2884_v12, %v2900_v27 }
 0x27a   : > { %v3534_v9 = vsel %vm3496_vm7, %v3516_v11, %v3533_v59  ;;  %v14102_v55 = vmax.f32 %v14076_v31, %v2946_v35  ;;  %v3663_v34 = vmax.f32 %v3446_v58, %v3517_v22  ;;  %v2917_v14 = vsel %vm495_vm5, %v2900_v27, %v2916_v16 }
 0x27b   : > { %v3671_v3 = vmax.f32 %v3454_v26, %v3534_v9  ;;  %v3029_v42 = vmax.f32 %v13988_v61, %v2901_v53  ;;  %v3037_v54 = vmax.f32 %v14003_v2, %v2917_v14  ;;  %v3117_v7 = vrot.slane %v14003_v2, 2 }
 0x27c   : > { %v3133_v12 = vrot.slane %v14031_v52, 2  ;;  %v3334_v10 = vrot.slane %v14003_v2, 3  ;;  %v3350_v6 = vrot.slane %v14031_v52, 3  ;;  %v3551_v33 = vrot.slane %v14003_v2, 4 }
 0x27d   : > { %v10814_v39 = vpack.c.bf16 %v3671_v3, %v3663_v34  ;;  %v3118_v43 = vsel %vm527_vm6, %v3101_v4, %v3117_v7  ;;  %v3567_v44 = vrot.slane %v14031_v52, 4  ;;  %v2899_v56 = vsel %vm495_vm5, %v2882_v38, %v2898_v19 }
 0x27e   : > { %v3134_v27 = vsel %vm527_vm6, %v3117_v7, %v3133_v12  ;;  %v3246_v28 = vmax.f32 %v3029_v42, %v3118_v43  ;;  %v3335_v2 = vsel %vm559_vm3, %v3318_v36, %v3334_v10  ;;  %v3351_v17 = vsel %vm559_vm3, %v3334_v10, %v3350_v6 }
 0x27f   : > { %10815 = vmatpush1.bf16.msra.mxu1 %v10814_v39  ;;  %v3254_v46 = vmax.f32 %v3037_v54, %v3134_v27  ;;  %v3552_v4 = vsel %vm3496_vm7, %v3535_v30, %v3551_v33  ;;  %v3568_v18 = vsel %vm3496_vm7, %v3551_v33, %v3567_v44  ;;  %v2915_v38 = vsel %vm495_vm5, %v2898_v19, %v2914_v13 }
 0x280   : > { %v3028_v24 = vmax.f32 %v13984_v40, %v2899_v56  ;;  %v3463_v58 = vmax.f32 %v3246_v28, %v3335_v2  ;;  %v3036_v36 = vmax.f32 %v14000_v57, %v2915_v38  ;;  %v3116_v61 = vsel %vm527_vm6, %v3099_v62, %v3115_v49 }
 0x281   : > { %v3471_v11 = vmax.f32 %v3254_v46, %v3351_v17  ;;  %v3132_v30 = vsel %vm527_vm6, %v3115_v49, %v3131_v15  ;;  %v3333_v19 = vsel %vm559_vm3, %v3316_v50, %v3332_v48  ;;  %v3349_v22 = vsel %vm559_vm3, %v3332_v48, %v3348_v37 }
 0x282   : > { %v3245_v26 = vmax.f32 %v3028_v24, %v3116_v61  ;;  %v3680_v62 = vmax.f32 %v3463_v58, %v3552_v4  ;;  %v3253_v53 = vmax.f32 %v3036_v36, %v3132_v30  ;;  %v3549_v34 = vrot.slane %v14000_v57, 4 }
 0x283   : > { %v3688_v9 = vmax.f32 %v3471_v11, %v3568_v18  ;;  %v3565_v49 = vrot.slane %v14025_v21, 4  ;;  %v2933_v40 = vsel %vm495_vm5, %v2916_v16, %v2932_v5  ;;  %v2949_v50 = vsel %vm495_vm5, %v2932_v5, %v2948_v45 }
 0x284   : > { %v3462_v3 = vmax.f32 %v3245_v26, %v3333_v19  ;;  %v3470_v14 = vmax.f32 %v3253_v53, %v3349_v22  ;;  %v3550_v42 = vsel %vm3496_vm7, %v3533_v59, %v3549_v34  ;;  %v3045_v57 = vmax.f32 %v14031_v52, %v2933_v40 }
 0x285   : > { %v10816_v48 = vpack.c.bf16 %v3688_v9, %v3680_v62  ;;  %v3566_v54 = vsel %vm3496_vm7, %v3549_v34, %v3565_v49  ;;  %v3053_v39 = vmax.f32 %v14043_v47, %v2949_v50  ;;  %v3149_v10 = vrot.slane %v14043_v47, 2 }
 0x286   : > { %v3679_v7 = vmax.f32 %v3462_v3, %v3550_v42  ;;  %v3687_v16 = vmax.f32 %v3470_v14, %v3566_v54  ;;  %v3165_v33 = vrot.slane %v14084_v1, 2  ;;  %v3366_v43 = vrot.slane %v14043_v47, 3  ;;  %v11153_v14 = vld [vmem:[%s16477_s4 + $0x4] ss:$12 sps:$4 sm:$0xff]   ;;  %v11156_v42 = vld [vmem:[%s16477_s4 + $0x1c] ss:$12 sps:$4 sm:$0xff]  }
 0x287   : > { %10817 = vmatprep.subr.bf16.mxu1 %v10816_v48  ;;  %v3382_v5 = vrot.slane %v14084_v1, 3  ;;  %v3150_v27 = vsel %vm527_vm6, %v3133_v12, %v3149_v10  ;;  %v3583_v59 = vrot.slane %v14043_v47, 4  ;;  %v3599_v52 = vrot.slane %v14084_v1, 4  ;;  %7733 = vmatprep.subr.bf16.mxu0 %v11153_v14  ;;  %v11159_v54 = vld [vmem:[%s16477_s4 + $0x34] ss:$12 sps:$4 sm:$0xff]  }
 0x288   : > { %v2931_v56 = vsel %vm495_vm5, %v2914_v13, %v2930_v25  ;;  %v10818_v28 = vpack.c.bf16 %v3687_v16, %v3679_v7  ;;  %v3166_v46 = vsel %vm527_vm6, %v3149_v10, %v3165_v33  ;;  %v3262_v2 = vmax.f32 %v3045_v57, %v3150_v27  ;;  %v11154_v57 = vld [vmem:[%s16477_s4 + $0x18] ss:$12 sps:$4 sm:$0xff]   ;;  %v11178_v7 = vld [vmem:[%s16477_s4 + $0xc8] ss:$12 sps:$4 sm:$0xff]   ;;  %v11157_v10 = vld [vmem:[%s16477_s4 + $0x30] ss:$12 sps:$4 sm:$0xff]  }
 0x289   : > { %v3367_v17 = vsel %vm559_vm3, %v3350_v6, %v3366_v43  ;;  %v3270_v4 = vmax.f32 %v3053_v39, %v3166_v46  ;;  %v3383_v18 = vsel %vm559_vm3, %v3366_v43, %v3382_v5  ;;  %v3584_v12 = vsel %vm3496_vm7, %v3567_v44, %v3583_v59  ;;  %v11179_v39 = vld [vmem:[%s16477_s4 + $0x8] ss:$12 sps:$4 sm:$0xff]   ;;  %v11162_v16 = vld [vmem:[%s16477_s4 + $0x4c] ss:$12 sps:$4 sm:$0xff]   ;;  %v11165_v43 = vld [vmem:[%s16477_s4 + $0x64] ss:$12 sps:$4 sm:$0xff]  }
 0x28a   : > { %v3600_v47 = vsel %vm3496_vm7, %v3583_v59, %v3599_v52  ;;  %10819 = vmatpush1.bf16.msra.mxu1 %v10818_v28  ;;  %v3479_v38 = vmax.f32 %v3262_v2, %v3367_v17  ;;  %v2947_v13 = vsel %vm495_vm5, %v2930_v25, %v2946_v35  ;;  %v3044_v24 = vmax.f32 %v14025_v21, %v2931_v56  ;;  %v11168_v27 = vld [vmem:[%s16477_s4 + $0x7c] ss:$12 sps:$4 sm:$0xff]   ;;  %v11166_v59 = vld [vmem:[%s16477_s4 + $0x78] ss:$12 sps:$4 sm:$0xff]   ;;  %v11175_v17 = vld [vmem:[%s16477_s4 + $0xc0] ss:$12 sps:$4 sm:$0xff]  }
 0x28b   : > { %v3148_v6 = vsel %vm527_vm6, %v3131_v15, %v3147_v63  ;;  %v3487_v58 = vmax.f32 %v3270_v4, %v3383_v18  ;;  %v3052_v44 = vmax.f32 %v14040_v20, %v2947_v13  ;;  %v3164_v11 = vsel %vm527_vm6, %v3147_v63, %v3163_v8  ;;  %v11169_v56 = vld [vmem:[%s16477_s4 + $0x90] ss:$12 sps:$4 sm:$0xff]   ;;  %v11174_v28 = vld [vmem:[%s16477_s4 + $0xac] ss:$12 sps:$4 sm:$0xff]   ;;  %v11172_v46 = vld [vmem:[%s16477_s4 + $0xa8] ss:$12 sps:$4 sm:$0xff]  }
 0x28c   : > { %v3365_v25 = vsel %vm559_vm3, %v3348_v37, %v3364_v23  ;;  %v3696_v35 = vmax.f32 %v3479_v38, %v3584_v12  ;;  %v3261_v36 = vmax.f32 %v3044_v24, %v3148_v6  ;;  %v3381_v15 = vsel %vm559_vm3, %v3364_v23, %v3380_v41  ;;  %v11177_v2 = vld [vmem:[%s16477_s4 + $0xc4] ss:$12 sps:$4 sm:$0xff]   ;;  %v11182_v18 = vld [vmem:[%s16477_s4 + $0xdc] ss:$12 sps:$4 sm:$0xff]   ;;  %v11183_v12 = vld [vmem:[%s16477_s4 + $0xe0] ss:$12 sps:$4 sm:$0xff]  }
 0x28d   : > { %v3581_v61 = vrot.slane %v14040_v20, 4  ;;  %v3704_v30 = vmax.f32 %v3487_v58, %v3600_v47  ;;  %v3269_v26 = vmax.f32 %v3052_v44, %v3164_v11  ;;  %v3597_v63 = vrot.slane %v14076_v31, 4  ;;  %v11180_v4 = vld [vmem:[%s16477_s4 + $0xd8] ss:$12 sps:$4 sm:$0xff]   ;;  %v11184_v47 = vld [vmem:[%s16477_s4 + $0x20] ss:$12 sps:$4 sm:$0xff]  }
 0x28e   : > { %v3061_v21 = vmax.f32 %v14084_v1, %v2948_v45  ;;  %v3478_v19 = vmax.f32 %v3261_v36, %v3365_v25  ;;  %v3277_v22 = vmax.f32 %v14102_v55, %v3163_v8  ;;  %v11844_v8 = vld [vmem:[%s16476_s3] sm:$0xff]  ;;  %v11185_v38 = vld [vmem:[%s16477_s4 + $0xf0] ss:$12 sps:$4 sm:$0xff]   ;;  %v11190_v58 = vld [vmem:[%s16477_s4 + $0x108] ss:$12 sps:$4 sm:$0xff]  }
 0x28f   : > { %v3582_v37 = vsel %vm3496_vm7, %v3565_v49, %v3581_v61  ;;  %v10820_v62 = vpack.c.bf16 %v3704_v30, %v3696_v35  ;;  %v3486_v9 = vmax.f32 %v3269_v26, %v3381_v15  ;;  %v3598_v23 = vsel %vm3496_vm7, %v3581_v61, %v3597_v63  ;;  %v11187_v13 = vld [vmem:[%s16477_s4 + $0xf4] ss:$12 sps:$4 sm:$0xff]   ;;  %v11188_v24 = vld [vmem:[%s16477_s4 + $0xf8] ss:$12 sps:$4 sm:$0xff]   ;;  %v11193_v11 = vld [vmem:[%s16477_s4 + $0x110] ss:$12 sps:$4 sm:$0xff]  }
 0x290   : > { %v3278_v20 = vmax.f32 %v3061_v21, %v3165_v33  ;;  %v3695_v53 = vmax.f32 %v3478_v19, %v3582_v37  ;;  %v3494_v1 = vmax.f32 %v3277_v22, %v3380_v41  ;;  %v11160_v33 = vld [vmem:[%s16477_s4 + $0x48] ss:$12 sps:$4 sm:$0xff]   ;;  %v11189_v6 = vld [vmem:[%s16477_s4 + $0x38] ss:$12 sps:$4 sm:$0xff]   ;;  %v11194_v25 = vld [vmem:[%s16477_s4 + $0x50] ss:$12 sps:$4 sm:$0xff]  }
 0x291   : > { %10821 = vmatprep.subr.bf16.mxu1 %v10820_v62  ;;  %v3703_v34 = vmax.f32 %v3486_v9, %v3598_v23  ;;  %v11192_v44 = vld [vmem:[%s16477_s4 + $0x10c] ss:$12 sps:$4 sm:$0xff]   ;;  %v11197_v36 = vld [vmem:[%s16477_s4 + $0x124] ss:$12 sps:$4 sm:$0xff]   ;;  %v11198_v15 = vld [vmem:[%s16477_s4 + $0x128] ss:$12 sps:$4 sm:$0xff]  }
 0x292   : > { %v3495_v3 = vmax.f32 %v3278_v20, %v3382_v5  ;;  %v3711_v49 = vmax.f32 %v3494_v1, %v3597_v63  ;;  %v11163_v5 = vld [vmem:[%s16477_s4 + $0x60] ss:$12 sps:$4 sm:$0xff]   ;;  %v11199_v30 = vld [vmem:[%s16477_s4 + $0x68] ss:$12 sps:$4 sm:$0xff]   ;;  %v11200_v19 = vld [vmem:[%s16477_s4 + $0x138] ss:$12 sps:$4 sm:$0xff]  }
 0x293   : > { %v10822_v40 = vpack.c.bf16 %v3703_v34, %v3695_v53  ;;  %v11195_v35 = vld [vmem:[%s16477_s4 + $0x120] ss:$12 sps:$4 sm:$0xff]   ;;  %v11202_v21 = vld [vmem:[%s16477_s4 + $0x13c] ss:$12 sps:$4 sm:$0xff]   ;;  %v11208_v34 = vld [vmem:[%s16477_s4 + $0x158] ss:$12 sps:$4 sm:$0xff]  }
 0x294   : > { %v3712_v45 = vmax.f32 %v3495_v3, %v3599_v52  ;;  %v11171_v52 = vld [vmem:[%s16477_s4 + $0x94] ss:$12 sps:$4 sm:$0xff]   ;;  %v11205_v20 = vld [vmem:[%s16477_s4 + $0x150] ss:$12 sps:$4 sm:$0xff]   ;;  %v11209_v3 = vld [vmem:[%s16477_s4 + $0x98] ss:$12 sps:$4 sm:$0xff]  }
 0x295   : > { %10823 = vmatpush1.bf16.msra.mxu1 %v10822_v40  ;;  %v14240_v55 = vpop.f32.mrb[48].mxu1  ;;  %v11203_v37 = vld [vmem:[%s16477_s4 + $0x140] ss:$12 sps:$4 sm:$0xff]   ;;  %v11210_v40 = vld [vmem:[%s16477_s4 + $0x168] ss:$12 sps:$4 sm:$0xff]  }
 0x296   : > { %9903 = vmatprep.subr.msk.mxu1 %vm3722_vm8, %v3712_v45  ;;  %v14244_v31 = vpop.f32.mrb[49].mxu1  ;;  %v11204_v62 = vld [vmem:[%s16477_s4 + $0x80] ss:$12 sps:$4 sm:$0xff]   ;;  %v11213_v45 = vld [vmem:[%s16477_s4 + $0x170] ss:$12 sps:$4 sm:$0xff]  }
 0x297   : > { %v11207_v53 = vld [vmem:[%s16477_s4 + $0x154] ss:$12 sps:$4 sm:$0xff]   ;;  %v11212_v1 = vld [vmem:[%s16477_s4 + $0x16c] ss:$12 sps:$4 sm:$0xff]  }
 0x299   : > { %9904 = vmatpush1.msk.msra.mxu1 %vm3722_vm8, %v3711_v49  ;;  %v14246_v41 = vpop.f32.mrb[50].mxu1  ;;  %v11214_v49 = vld [vmem:[%s16477_s4 + $0xb0] ss:$12 sps:$4 sm:$0xff]  }
 0x29a   : > { %9905 = vmatmul.mubr.msk.f32.vlgmr.msra.gmra.mrb[60].mxu1 %vm3715_vm9, %v11844_v8  ;;  %v14250_v50 = vpack.i.bf16 %v14246_v41, %v14240_v55  ;;  %v14252_v48 = vpop.f32.mrb[51].mxu1  ;;  %10450 = vmatprep.subr.bf16.mxu1 %v11178_v7  ;;  %v11217_v8 = vld [vmem:[%s16477_s4 + $0x184] ss:$12 sps:$4 sm:$0xff]  }
 0x29b   : > { %4048 = vmatprep.mubr.f32.mxu1 %v16559_v0  ;;  %10451 = vmatpush3.bf16.msra.mxu1 %v11179_v39 }
 0x29c   : > { %10992 = vrot.lane.b32.xlu0 %v14250_v50, %s11911_s15  ;;  %10997 = vrot.lane.b32.xlu1 %v14250_v50, %s11912_s20 }
 0x29d   : > { %10452 = vmatprep.subr.bf16.mxu1 %v11183_v12 }
 0x29e   : > { %9906 = vmatmul.mubr.msk.f32.gmra.mrb[62].mxu1 %vm3715_vm9, %v13964_v51  ;;  %v11151_v51 = vld [vmem:[%s16477_s4] ss:$12 sps:$4 sm:$0xff]  }
 0x29f   : > { %7734 = vmatpush1.bf16.msra.mxu0 %v11151_v51  ;;  %10453 = vmatpush3.bf16.msra.mxu1 %v11184_v47 }
 0x2a0   : > { %11002 = vrot.lane.b32.xlu0 %v14250_v50, %s16495_s21  ;;  %7735 = vmatprep.subr.bf16.mxu0 %v11156_v42 }
 0x2a1   : > { %10454 = vmatprep.subr.bf16.mxu1 %v11188_v24 }
 0x2a3   : > { %7736 = vmatpush1.bf16.msra.mxu0 %v11154_v57  ;;  %10455 = vmatpush3.bf16.msra.mxu1 %v11189_v6 }
 0x2a4   : > { %7737 = vmatprep.subr.bf16.mxu0 %v11159_v54  ;;  %10456 = vmatprep.subr.bf16.mxu1 %v11193_v11 }
 0x2a7   : > { %7738 = vmatpush1.bf16.msra.mxu0 %v11157_v10  ;;  %10457 = vmatpush3.bf16.msra.mxu1 %v11194_v25 }
 0x2a8   : > { %7739 = vmatprep.subr.bf16.mxu0 %v11162_v16  ;;  %10458 = vmatprep.subr.bf16.mxu1 %v11198_v15 }
 0x2ab   : > { %7740 = vmatpush1.bf16.msra.mxu0 %v11160_v33  ;;  %10459 = vmatpush3.bf16.msra.mxu1 %v11199_v30 }
 0x2ac   : > { %7741 = vmatprep.subr.bf16.mxu0 %v11165_v43  ;;  %10460 = vmatprep.subr.bf16.mxu1 %v11203_v37 }
 0x2af   : > { %7742 = vmatpush1.bf16.msra.mxu0 %v11163_v5  ;;  %10461 = vmatpush3.bf16.msra.mxu1 %v11204_v62 }
 0x2b0   : > { %7743 = vmatprep.subr.bf16.mxu0 %v11168_v27  ;;  %10462 = vmatprep.subr.bf16.mxu1 %v11208_v34 }
 0x2b3   : > { %7744 = vmatpush1.bf16.msra.mxu0 %v11166_v59  ;;  %10463 = vmatpush3.bf16.msra.mxu1 %v11209_v3 }
 0x2b4   : > { %7745 = vmatprep.subr.bf16.mxu0 %v11171_v52  ;;  %10464 = vmatprep.subr.bf16.mxu1 %v11213_v45 }
 0x2b7   : > { %7746 = vmatpush1.bf16.msra.mxu0 %v11169_v56  ;;  %10465 = vmatpush3.bf16.msra.mxu1 %v11214_v49 }
 0x2b8   : > { %7747 = vmatprep.subr.bf16.mxu0 %v11174_v28 }
 0x2bb   : > { %7748 = vmatpush1.bf16.msra.mxu0 %v11172_v46 }
 0x2bc   : > { %7749 = vmatprep.subr.bf16.mxu0 %v11177_v2 }
 0x2bf   : > { %7750 = vmatpush1.bf16.msra.mxu0 %v11175_v17 }
 0x2c0   : > { %7751 = vmatprep.subr.bf16.mxu0 %v11182_v18 }
 0x2c3   : > { %7752 = vmatpush1.bf16.msra.mxu0 %v11180_v4 }
 0x2c4   : > { %7753 = vmatprep.subr.bf16.mxu0 %v11187_v13 }
 0x2c7   : > { %7754 = vmatpush1.bf16.msra.mxu0 %v11185_v38 }
 0x2c8   : > { %7755 = vmatprep.subr.bf16.mxu0 %v11192_v44 }
 0x2cb   : > { %7756 = vmatpush1.bf16.msra.mxu0 %v11190_v58 }
 0x2cc   : > { %7757 = vmatprep.subr.bf16.mxu0 %v11197_v36 }
 0x2cf   : > { %7758 = vmatpush1.bf16.msra.mxu0 %v11195_v35 }
 0x2d0   : > { %7759 = vmatprep.subr.bf16.mxu0 %v11202_v21 }
 0x2d3   : > { %7760 = vmatpush1.bf16.msra.mxu0 %v11200_v19 }
 0x2d4   : > { %7761 = vmatprep.subr.bf16.mxu0 %v11207_v53 }
 0x2d7   : > { %7762 = vmatpush1.bf16.msra.mxu0 %v11205_v20 }
 0x2d8   : > { %7763 = vmatprep.subr.bf16.mxu0 %v11212_v1 }
 0x2db   : > { %7764 = vmatpush1.bf16.msra.mxu0 %v11210_v40 }
 0x2dc   : > { %7776 = vmatprep.subr.bf16.mxu0 %v11217_v8 }
 0x30b   : > { %v14365_v61 = vpop.f32.mrb[52].mxu1 }
 0x30c   : > { %v14370_v26 = vpop.f32.mrb[53].mxu1  ;;  %v11011_v63 = vpack.i.bf16 %v14365_v61, %v14244_v31 }
 0x30e   : > { %11012 = vrot.lane.b32.xlu1 %v11011_v63, %s11912_s20  ;;  %11007 = vrot.lane.b32.xlu0 %v11011_v63, %s11911_s15  ;;  %v10993_v59 = vpop.permute.xlu0 %10992  ;;  %v10998_v52 = vpop.permute.xlu1 %10997 }
 0x30f   : > { %v10994_v13 = vunpack.i.l.bf16 %v10993_v59  ;;  %v10995_v24 = vunpack.i.h.bf16 %v10993_v59  ;;  %v11000_v58 = vunpack.i.h.bf16 %v10998_v52  ;;  %v10999_v35 = vunpack.i.l.bf16 %v10998_v52 }
 0x311   : > { %v14385_v22 = vpop.f32.mrb[54].mxu1 }
 0x312   : > { %v14390_v9 = vpop.f32.mrb[55].mxu1  ;;  %v11031_v23 = vpack.i.bf16 %v14385_v22, %v14252_v48  ;;  %11022 = vrot.lane.b32.xlu1 %v11011_v63, %s16497_s23  ;;  %11017 = vrot.lane.b32.xlu0 %v11011_v63, %s16578_s22  ;;  %v11003_v56 = vpop.permute.xlu0 %11002 }
 0x313   : > { %v11005_v36 = vunpack.i.h.bf16 %v11003_v56  ;;  %v11004_v15 = vunpack.i.l.bf16 %v11003_v56 }
 0x316   : > { %11032 = vrot.lane.b32.xlu0 %v11031_v23, %s11912_s20  ;;  %11027 = vrot.lane.b32.xlu1 %v11031_v23, %s11911_s15 }
 0x31a   : > { %11042 = vrot.lane.b32.xlu0 %v11031_v23, %s16497_s23  ;;  %11037 = vrot.lane.b32.xlu1 %v11031_v23, %s16578_s22 }
 0x31e   : > { %11047 = vrot.lane.b32.xlu1 %v14250_v50, %s16497_s23  ;;  %v11218_v50 = vld [vmem:[%s16477_s4 + $0x248] ss:$12 sps:$4 sm:$0xff]   ;;  %s16579_s23 = smov 64  }
 0x31f   : > { %10472 = vmatprep.subr.bf16.mxu1 %v11218_v50 }
 0x335   : > { %v14432_v51 = vpop.f32.mrb[56].mxu1 }
 0x336   : > { %v14434_v14 = vpop.f32.mrb[57].mxu1  ;;  %v11051_v42 = vpack.i.bf16 %v14432_v51, %v14370_v26 }
 0x338   : > { %11052 = vrot.lane.b32.xlu0 %v11051_v42, %s11911_s15 }
 0x339   : > { %v14439_v57 = vpop.f32.mrb[58].mxu1 }
 0x33a   : > { %v11071_v54 = vpack.i.bf16 %v14439_v57, %v14390_v9  ;;  %v14443_v7 = vpop.f32.mrb[59].mxu1 }
 0x33c   : > { %11057 = vrot.lane.b32.xlu0 %v11051_v42, %s11912_s20  ;;  %11072 = vrot.lane.b32.xlu1 %v11071_v54, %s11911_s15 }
 0x340   : > { %11062 = vrot.lane.b32.xlu0 %v11051_v42, %s16578_s22  ;;  %11077 = vrot.lane.b32.xlu1 %v11071_v54, %s11912_s20 }
 0x344   : > { %11067 = vrot.lane.b32.xlu0 %v11051_v42, %s16579_s23  ;;  %11082 = vrot.lane.b32.xlu1 %v11071_v54, %s16578_s22 }
 0x348   : > { %11087 = vrot.lane.b32.xlu1 %v11071_v54, %s16579_s23 }
 0x36d   : > { %v14452_v39 = vpop.f32.mrb[60].mxu1 }
 0x36e   : > { %v11091_v10 = vpack.i.bf16 %v14452_v39, %v14434_v14  ;;  %v4046_v16 = vpop.f32.mrb[61].mxu1 }
 0x370   : > { %11092 = vrot.lane.b32.xlu0 %v11091_v10, %s11911_s15 }
 0x371   : > { %v14457_v33 = vpop.f32.mrb[62].mxu1 }
 0x372   : > { %v11111_v43 = vpack.i.bf16 %v14457_v33, %v14443_v7  ;;  %v4052_v5 = vpop.f32.mrb[63].mxu1 }
 0x373   : > { %v11136_v27 = vpack.i.bf16 %v4052_v5, %v4046_v16 }
 0x374   : > { %11097 = vrot.lane.b32.xlu0 %v11091_v10, %s11912_s20  ;;  %11112 = vrot.lane.b32.xlu1 %v11111_v43, %s11911_s15  ;;  %s11851_s15 = scalar_lea.vmem %s11850_s24, 32 }
 0x378   : > { %11102 = vrot.lane.b32.xlu0 %v11091_v10, %s16578_s22  ;;  %11117 = vrot.lane.b32.xlu1 %v11111_v43, %s11912_s20 }
 0x37c   : > { %11107 = vrot.lane.b32.xlu0 %v11091_v10, %s16579_s23  ;;  %11122 = vrot.lane.b32.xlu1 %v11111_v43, %s16578_s22 }
 0x380   : > { %11127 = vrot.lane.b32.xlu1 %v11111_v43, %s16579_s23  ;;  %11132 = vrot.lane.b32.xlu0 %v11136_v27, %s16578_s22  ;;  %v14469_v28 = vpop.permute.xlu1 %11012  ;;  %v14471_v46 = vpop.permute.xlu0 %11007  ;;  %s431_s22 = sand.u32 1, %s11899_s26  }
 0x381   : > { %v11010_v2 = vunpack.i.h.bf16 %v14471_v46  ;;  %v11009_v17 = vunpack.i.l.bf16 %v14471_v46  ;;  %v11015_v18 = vunpack.i.h.bf16 %v14469_v28  ;;  %v11014_v12 = vunpack.i.l.bf16 %v14469_v28  ;;  %v11247_v46 = vld [vmem:[%s16477_s4 + $0x214] ss:$12 sps:$4 sm:$0xff]   ;;  %v11249_v28 = vld [vmem:[%s16477_s4 + $0x218] ss:$12 sps:$4 sm:$0xff]   ;;  %s9577_s21 = scalar_lea.sflag [#allocation3], %s431_s22 }
 0x383   : > { %v4099_v4 = vsel %vm4097_vm10, %v11009_v17, %v11010_v2  ;;  %v4098_v44 = vsel %vm4097_vm10, %v10994_v13, %v11009_v17  ;;  %v4168_v30 = vsel %vm4166_vm11, %v11014_v12, %v11015_v18  ;;  %v4167_v23 = vsel %vm4166_vm11, %v10999_v35, %v11014_v12 }
 0x384   : > { %11137 = vrot.lane.b32.xlu1 %v11136_v27, %s16579_s23  ;;  %v14481_v47 = vpop.permute.xlu1 %11022  ;;  %v14483_v38 = vpop.permute.xlu0 %11017  ;;  %v4125_v6 = vmax.f32 %v14244_v31, %v4099_v4  ;;  %v4124_v20 = vmax.f32 %v14240_v55, %v4098_v44 }
 0x385   : > { %v11020_v11 = vunpack.i.h.bf16 %v14483_v38  ;;  %v11019_v25 = vunpack.i.l.bf16 %v14483_v38  ;;  %v11025_v53 = vunpack.i.h.bf16 %v14481_v47  ;;  %v11024_v3 = vunpack.i.l.bf16 %v14481_v47 }
 0x386   : > { %v4194_v34 = vmax.f32 %v4125_v6, %v4168_v30  ;;  %v4193_v27 = vmax.f32 %v4124_v20, %v4167_v23  ;;  %v11215_v20 = vld [vmem:[%s16477_s4 + $0x180] ss:$12 sps:$4 sm:$0xff]  }
 0x387   : > { %v4243_v40 = vsel %vm4241_vm12, %v11019_v25, %v11020_v11  ;;  %v4317_v13 = vsel %vm567_vm4, %v11024_v3, %v11025_v53 }
 0x388   : > { %v14492_v63 = vpop.permute.xlu0 %11032  ;;  %v14494_v21 = vpop.permute.xlu1 %11027  ;;  %v4271_v59 = vmax.f32 %v4194_v34, %v4243_v40  ;;  %v11219_v34 = vld [vmem:[%s16477_s4 + $0x188] ss:$12 sps:$4 sm:$0xff]  }
 0x389   : > { %v11035_v31 = vunpack.i.h.bf16 %v14492_v63  ;;  %v11034_v19 = vunpack.i.l.bf16 %v14492_v63  ;;  %v11030_v37 = vunpack.i.h.bf16 %v14494_v21  ;;  %v11029_v62 = vunpack.i.l.bf16 %v14494_v21 }
 0x38b   : > { %v4104_v1 = vsel %vm4097_vm10, %v10995_v24, %v11029_v62  ;;  %v4105_v45 = vsel %vm4097_vm10, %v11029_v62, %v11030_v37  ;;  %v4173_v49 = vsel %vm4166_vm11, %v11000_v58, %v11034_v19  ;;  %v4174_v55 = vsel %vm4166_vm11, %v11034_v19, %v11035_v31 }
 0x38c   : > { %v4131_v8 = vmax.f32 %v14246_v41, %v4104_v1  ;;  %v4132_v50 = vmax.f32 %v14252_v48, %v4105_v45  ;;  %v14517_v42 = vpop.permute.xlu0 %11042  ;;  %v14519_v54 = vpop.permute.xlu1 %11037  ;;  %v4242_v41 = vsel %vm4241_vm12, %v11004_v15, %v11019_v25  ;;  %v4345_v25 = vmax.f32 %v4271_v59, %v4317_v13  ;;  %v11223_v1 = vld [vmem:[%s16477_s4 + $0x260] ss:$12 sps:$4 sm:$0xff]   ;;  %v11230_v13 = vld [vmem:[%s16477_s4 + $0x1c8] ss:$12 sps:$4 sm:$0xff]  }
 0x38d   : > { %v11045_v10 = vunpack.i.h.bf16 %v14517_v42  ;;  %v11044_v16 = vunpack.i.l.bf16 %v14517_v42  ;;  %v11040_v43 = vunpack.i.h.bf16 %v14519_v54  ;;  %v11039_v5 = vunpack.i.l.bf16 %v14519_v54  ;;  %v11254_v54 = vld [vmem:[%s16477_s4 + $0x230] ss:$12 sps:$4 sm:$0xff]  }
 0x38e   : > { %v4200_v52 = vmax.f32 %v4131_v8, %v4173_v49  ;;  %v4201_v56 = vmax.f32 %v4132_v50, %v4174_v55  ;;  %v4270_v44 = vmax.f32 %v4193_v27, %v4242_v41  ;;  %v11220_v50 = vld [vmem:[%s16477_s4 + $0x198] ss:$12 sps:$4 sm:$0xff]   ;;  %v11260_v42 = vld [vmem:[%s16477_s4 + $0x25c] ss:$12 sps:$4 sm:$0xff]  }
 0x38f   : > { %v4249_v48 = vsel %vm4241_vm12, %v11005_v36, %v11039_v5  ;;  %v4250_v17 = vsel %vm4241_vm12, %v11039_v5, %v11040_v43  ;;  %v4324_v24 = vsel %vm567_vm4, %v11044_v16, %v11045_v10 }
 0x390   : > { %v4278_v4 = vmax.f32 %v4201_v56, %v4250_v17  ;;  %v11048_v12 = vpop.permute.xlu1 %11047  ;;  %v4277_v35 = vmax.f32 %v4200_v52, %v4249_v48  ;;  %v11227_v52 = vld [vmem:[%s16477_s4 + $0x1b4] ss:$12 sps:$4 sm:$0xff]   ;;  %v11228_v56 = vld [vmem:[%s16477_s4 + $0x278] ss:$12 sps:$4 sm:$0xff]   ;;  %v11225_v48 = vld [vmem:[%s16477_s4 + $0x1b0] ss:$12 sps:$4 sm:$0xff]  }
 0x391   : > { %v11050_v6 = vunpack.i.h.bf16 %v11048_v12  ;;  %v11049_v58 = vunpack.i.l.bf16 %v11048_v12  ;;  %v11229_v17 = vld [vmem:[%s16477_s4 + $0x1b8] ss:$12 sps:$4 sm:$0xff]   ;;  %v11233_v12 = vld [vmem:[%s16477_s4 + $0x290] ss:$12 sps:$4 sm:$0xff]  }
 0x392   : > { %v4352_v36 = vmax.f32 %v4278_v4, %v4324_v24  ;;  %v11232_v4 = vld [vmem:[%s16477_s4 + $0x1cc] ss:$12 sps:$4 sm:$0xff]   ;;  %v11234_v24 = vld [vmem:[%s16477_s4 + $0x1d0] ss:$12 sps:$4 sm:$0xff]  }
 0x393   : > { %v4323_v15 = vsel %vm567_vm4, %v11050_v6, %v11044_v16  ;;  %v4316_v30 = vsel %vm567_vm4, %v11049_v58, %v11024_v3  ;;  %v11222_v3 = vld [vmem:[%s16477_s4 + $0x19c] ss:$12 sps:$4 sm:$0xff]   ;;  %v11224_v16 = vld [vmem:[%s16477_s4 + $0x1a0] ss:$12 sps:$4 sm:$0xff]   ;;  %v11237_v58 = vld [vmem:[%s16477_s4 + $0x1e4] ss:$12 sps:$4 sm:$0xff]  }
 0x394   : > { %v14538_v19 = vpack.c.bf16 %v4352_v36, %v4345_v25  ;;  %v4344_v62 = vmax.f32 %v4270_v44, %v4316_v30  ;;  %v4351_v23 = vmax.f32 %v4277_v35, %v4323_v15  ;;  %v11238_v44 = vld [vmem:[%s16477_s4 + $0x2a8] ss:$12 sps:$4 sm:$0xff]   ;;  %v11235_v25 = vld [vmem:[%s16477_s4 + $0x1e0] ss:$12 sps:$4 sm:$0xff]  }
 0x395   : > { %v11239_v30 = vld [vmem:[%s16477_s4 + $0x1e8] ss:$12 sps:$4 sm:$0xff]  }
 0x396   : > { %v14546_v40 = vpack.c.bf16 %v4351_v23, %v4344_v62  ;;  %7765 = vmatprep.mubr.bf16.mxu0 %v14538_v19  ;;  %8238 = vmatprep.mubr.bf16.mxu1 %v14538_v19  ;;  %v4375_v45 = vshll.u32 %v14538_v19, 16  ;;  %v4373_v49 = vshrl.u32 %v14538_v19, 16  ;;  %v11242_v62 = vld [vmem:[%s16477_s4 + $0x1fc] ss:$12 sps:$4 sm:$0xff]   ;;  %v11243_v23 = vld [vmem:[%s16477_s4 + $0x2c0] ss:$12 sps:$4 sm:$0xff]  }
 0x398   : > { %7766 = vmatmul.mubr.bf16.vlgmr.msra.gmra.mrb[32].mxu0 %v14546_v40  ;;  %8239 = vmatmul.mubr.bf16.vlgmr.msra.gmra.mrb[64].mxu1 %v14546_v40  ;;  %v4377_v55 = vrot.slane %v4375_v45, 1  ;;  %v4368_v8 = vshll.u32 %v14546_v40, 16  ;;  %v4366_v27 = vshrl.u32 %v14546_v40, 16 }
 0x399   : > { %7777 = vmatpush1.bf16.msra.mxu0 %v11215_v20  ;;  %10473 = vmatpush3.bf16.msra.mxu1 %v11219_v34 }
 0x39a   : > { %7778 = vmatprep.subr.bf16.mxu0 %v11222_v3  ;;  %10474 = vmatprep.subr.bf16.mxu1 %v11223_v1  ;;  %v4378_v5 = vor.u32 %v4377_v55, %v4373_v49  ;;  %v4370_v59 = vrot.slane %v4368_v8, 1  ;;  %v11240_v1 = vld [vmem:[%s16477_s4 + $0x1f8] ss:$12 sps:$4 sm:$0xff]  }
 0x39c   : > { %4416 = vrot.lane.b32.xlu1 %v4378_v5, %s11912_s20  ;;  %v4371_v41 = vor.u32 %v4370_v59, %v4366_v27 }
 0x39d   : > { %7779 = vmatpush1.bf16.msra.mxu0 %v11220_v50  ;;  %10475 = vmatpush3.bf16.msra.mxu1 %v11224_v16  ;;  %v11244_v16 = vld [vmem:[%s16477_s4 + $0x200] ss:$12 sps:$4 sm:$0xff]  }
 0x39e   : > { %4414 = vrot.lane.b32.xlu0 %v4371_v41, %s11912_s20  ;;  %7780 = vmatprep.subr.bf16.mxu0 %v11227_v52 }
 0x39f   : > { %10476 = vmatprep.subr.bf16.mxu1 %v11228_v56 }
 0x3a1   : > { %7781 = vmatpush1.bf16.msra.mxu0 %v11225_v48  ;;  %10477 = vmatpush3.bf16.msra.mxu1 %v11229_v17 }
 0x3a2   : > { %7782 = vmatprep.subr.bf16.mxu0 %v11232_v4  ;;  %10478 = vmatprep.subr.bf16.mxu1 %v11233_v12  ;;  %v11245_v4 = vld [vmem:[%s16477_s4 + $0x210] ss:$12 sps:$4 sm:$0xff]  }
 0x3a5   : > { %7783 = vmatpush1.bf16.msra.mxu0 %v11230_v13  ;;  %10479 = vmatpush3.bf16.msra.mxu1 %v11234_v24 }
 0x3a6   : > { %7784 = vmatprep.subr.bf16.mxu0 %v11237_v58  ;;  %10480 = vmatprep.subr.bf16.mxu1 %v11238_v44  ;;  %v11252_v44 = vld [vmem:[%s16477_s4 + $0x22c] ss:$12 sps:$4 sm:$0xff]  }
 0x3a9   : > { %7785 = vmatpush1.bf16.msra.mxu0 %v11235_v25  ;;  %10481 = vmatpush3.bf16.msra.mxu1 %v11239_v30  ;;  %v11253_v25 = vld [vmem:[%s16477_s4 + $0x2f0] ss:$12 sps:$4 sm:$0xff]  }
 0x3aa   : > { %v14594_v6 = vpop.permute.xlu0 %11052  ;;  %7786 = vmatprep.subr.bf16.mxu0 %v11242_v62  ;;  %10482 = vmatprep.subr.bf16.mxu1 %v11243_v23 }
 0x3ab   : > { %v11054_v35 = vunpack.i.l.bf16 %v14594_v6  ;;  %v11055_v20 = vunpack.i.h.bf16 %v14594_v6  ;;  %v11296_v6 = vld [vmem:[%s16477_s4 + $0x378] ss:$12 sps:$4 sm:$0xff]  }
 0x3ad   : > { %v4100_v45 = vsel %vm4097_vm10, %v11010_v2, %v11054_v35  ;;  %v11248_v2 = vld [vmem:[%s16477_s4 + $0x2d8] ss:$12 sps:$4 sm:$0xff]   ;;  %v4101_v59 = vsel %vm4097_vm10, %v11054_v35, %v11055_v20  ;;  %7787 = vmatpush1.bf16.msra.mxu0 %v11240_v1  ;;  %10483 = vmatpush3.bf16.msra.mxu1 %v11244_v16 }
 0x3ae   : > { %v14606_v36 = vpop.permute.xlu0 %11057  ;;  %v14608_v15 = vpop.permute.xlu1 %11072  ;;  %v4126_v56 = vmax.f32 %v14365_v61, %v4100_v45  ;;  %7788 = vmatprep.subr.bf16.mxu0 %v11247_v46  ;;  %10484 = vmatprep.subr.bf16.mxu1 %v11248_v2  ;;  %v4127_v35 = vmax.f32 %v14370_v26, %v4101_v59  ;;  %v11294_v2 = vld [vmem:[%s16477_s4 + $0x3c8] ss:$12 sps:$4 sm:$0xff]  }
 0x3af   : > { %v11075_v34 = vunpack.i.h.bf16 %v14608_v15  ;;  %v11074_v3 = vunpack.i.l.bf16 %v14608_v15  ;;  %v11060_v49 = vunpack.i.h.bf16 %v14606_v36  ;;  %v11059_v55 = vunpack.i.l.bf16 %v14606_v36 }
 0x3b1   : > { %v4106_v41 = vsel %vm4097_vm10, %v11030_v37, %v11074_v3  ;;  %v4107_v48 = vsel %vm4097_vm10, %v11074_v3, %v11075_v34  ;;  %v4169_v12 = vsel %vm4166_vm11, %v11015_v18, %v11059_v55  ;;  %v4170_v61 = vsel %vm4166_vm11, %v11059_v55, %v11060_v49  ;;  %7789 = vmatpush1.bf16.msra.mxu0 %v11245_v4 }
 0x3b2   : > { %v14630_v8 = vpop.permute.xlu0 %11062  ;;  %v14632_v50 = vpop.permute.xlu1 %11077  ;;  %v4133_v30 = vmax.f32 %v14385_v22, %v4106_v41  ;;  %v4134_v62 = vmax.f32 %v14390_v9, %v4107_v48  ;;  %v4195_v3 = vmax.f32 %v4126_v56, %v4169_v12  ;;  %v11250_v22 = vld [vmem:[%s16477_s4 + $0x228] ss:$12 sps:$4 sm:$0xff]   ;;  %v4196_v9 = vmax.f32 %v4127_v35, %v4170_v61  ;;  %10485 = vmatpush3.bf16.msra.mxu1 %v11249_v28  ;;  %v11255_v12 = vld [vmem:[%s16477_s4 + $0x240] ss:$12 sps:$4 sm:$0xff]  }
 0x3b3   : > { %v11080_v5 = vunpack.i.h.bf16 %v14632_v50  ;;  %v11079_v27 = vunpack.i.l.bf16 %v14632_v50  ;;  %v11064_v52 = vunpack.i.l.bf16 %v14630_v8  ;;  %v11065_v17 = vunpack.i.h.bf16 %v14630_v8  ;;  %7790 = vmatprep.subr.bf16.mxu0 %v11252_v44  ;;  %10486 = vmatprep.subr.bf16.mxu1 %v11253_v25  ;;  %v11299_v44 = vld [vmem:[%s16477_s4 + $0x3e0] ss:$12 sps:$4 sm:$0xff]  }
 0x3b5   : > { %v4175_v21 = vsel %vm4166_vm11, %v11035_v31, %v11079_v27  ;;  %v4176_v37 = vsel %vm4166_vm11, %v11079_v27, %v11080_v5  ;;  %v4244_v23 = vsel %vm4241_vm12, %v11020_v11, %v11064_v52  ;;  %v4245_v1 = vsel %vm4241_vm12, %v11064_v52, %v11065_v17  ;;  %7791 = vmatpush1.bf16.msra.mxu0 %v11250_v22 }
 0x3b6   : > { %v14672_v13 = vpop.permute.xlu0 %11067  ;;  %v14674_v24 = vpop.permute.xlu1 %11082  ;;  %v4202_v38 = vmax.f32 %v4133_v30, %v4175_v21  ;;  %v4203_v11 = vmax.f32 %v4134_v62, %v4176_v37  ;;  %v4272_v27 = vmax.f32 %v4195_v3, %v4244_v23  ;;  %v4273_v59 = vmax.f32 %v4196_v9, %v4245_v1  ;;  %10487 = vmatpush3.bf16.msra.mxu1 %v11254_v54  ;;  %v11263_v30 = vld [vmem:[%s16477_s4 + $0x274] ss:$12 sps:$4 sm:$0xff]   ;;  %v11305_v54 = vld [vmem:[%s16477_s4 + $0x338] ss:$12 sps:$4 sm:$0xff]  }
 0x3b7   : > { %v11070_v18 = vunpack.i.h.bf16 %v14672_v13  ;;  %v11069_v58 = vunpack.i.l.bf16 %v14672_v13  ;;  %v11085_v63 = vunpack.i.h.bf16 %v14674_v24  ;;  %v11084_v31 = vunpack.i.l.bf16 %v14674_v24  ;;  %10494 = vmatprep.subr.bf16.mxu1 %v11294_v2  ;;  %v11272_v2 = vld [vmem:[%s16477_s4 + $0x2bc] ss:$12 sps:$4 sm:$0xff]   ;;  %v11313_v13 = vld [vmem:[%s16477_s4 + $0x3c4] ss:$12 sps:$4 sm:$0xff]  }
 0x3b8   : > { %v11306_v24 = vld [vmem:[%s16477_s4 + $0x3a8] ss:$12 sps:$4 sm:$0xff]  }
 0x3b9   : > { %v4251_v45 = vsel %vm4241_vm12, %v11040_v43, %v11084_v31  ;;  %v4252_v26 = vsel %vm4241_vm12, %v11084_v31, %v11085_v63  ;;  %v4318_v55 = vsel %vm567_vm4, %v11025_v53, %v11069_v58  ;;  %v11257_v43 = vld [vmem:[%s16477_s4 + $0x244] ss:$12 sps:$4 sm:$0xff]   ;;  %v4319_v46 = vsel %vm567_vm4, %v11069_v58, %v11070_v18  ;;  %v11295_v58 = vld [vmem:[%s16477_s4 + $0x308] ss:$12 sps:$4 sm:$0xff]  }
 0x3ba   : > { %v14710_v16 = vpop.permute.xlu1 %11087  ;;  %v4279_v52 = vmax.f32 %v4202_v38, %v4251_v45  ;;  %v4280_v56 = vmax.f32 %v4203_v11, %v4252_v26  ;;  %v4346_v41 = vmax.f32 %v4272_v27, %v4318_v55  ;;  %v4347_v61 = vmax.f32 %v4273_v59, %v4319_v46  ;;  %7792 = vmatprep.subr.bf16.mxu0 %v11257_v43  ;;  %v11258_v31 = vld [vmem:[%s16477_s4 + $0x258] ss:$12 sps:$4 sm:$0xff]   ;;  %v11261_v45 = vld [vmem:[%s16477_s4 + $0x270] ss:$12 sps:$4 sm:$0xff]   ;;  %v11300_v26 = vld [vmem:[%s16477_s4 + $0x320] ss:$12 sps:$4 sm:$0xff]  }
 0x3bb   : > { %v11090_v47 = vunpack.i.h.bf16 %v14710_v16  ;;  %v11089_v53 = vunpack.i.l.bf16 %v14710_v16  ;;  %7793 = vmatpush1.bf16.msra.mxu0 %v11255_v12  ;;  %v11266_v38 = vld [vmem:[%s16477_s4 + $0x28c] ss:$12 sps:$4 sm:$0xff]   ;;  %v11264_v55 = vld [vmem:[%s16477_s4 + $0x288] ss:$12 sps:$4 sm:$0xff]   ;;  %v11269_v43 = vld [vmem:[%s16477_s4 + $0x2a4] ss:$12 sps:$4 sm:$0xff]  }
 0x3bc   : > { %7794 = vmatprep.subr.bf16.mxu0 %v11260_v42  ;;  %v11304_v11 = vld [vmem:[%s16477_s4 + $0x3f8] ss:$12 sps:$4 sm:$0xff]   ;;  %v11309_v27 = vld [vmem:[%s16477_s4 + $0x410] ss:$12 sps:$4 sm:$0xff]   ;;  %v11267_v46 = vld [vmem:[%s16477_s4 + $0x2a0] ss:$12 sps:$4 sm:$0xff]  }
 0x3bd   : > { %v4325_v48 = vsel %vm567_vm4, %v11045_v10, %v11089_v53  ;;  %v4326_v4 = vsel %vm567_vm4, %v11089_v53, %v11090_v47  ;;  %v11310_v53 = vld [vmem:[%s16477_s4 + $0x350] ss:$12 sps:$4 sm:$0xff]   ;;  %v11314_v59 = vld [vmem:[%s16477_s4 + $0x428] ss:$12 sps:$4 sm:$0xff]   ;;  %v11320_v12 = vld [vmem:[%s16477_s4 + $0x380] ss:$12 sps:$4 sm:$0xff]  }
 0x3be   : > { %v4353_v21 = vmax.f32 %v4279_v52, %v4325_v48  ;;  %v4354_v37 = vmax.f32 %v4280_v56, %v4326_v4  ;;  %v11270_v52 = vld [vmem:[%s16477_s4 + $0x2b8] ss:$12 sps:$4 sm:$0xff]   ;;  %v11315_v56 = vld [vmem:[%s16477_s4 + $0x368] ss:$12 sps:$4 sm:$0xff]   ;;  %v11319_v48 = vld [vmem:[%s16477_s4 + $0x440] ss:$12 sps:$4 sm:$0xff]  }
 0x3bf   : > { %7795 = vmatpush1.bf16.msra.mxu0 %v11258_v31  ;;  %v11273_v4 = vld [vmem:[%s16477_s4 + $0x2d0] ss:$12 sps:$4 sm:$0xff]   ;;  %v11325_v42 = vld [vmem:[%s16477_s4 + $0x398] ss:$12 sps:$4 sm:$0xff]   ;;  %v11311_v16 = vld [vmem:[%s16477_s4 + $0x3c0] ss:$12 sps:$4 sm:$0xff]  }
 0x3c0   : > { %v14738_v10 = vpack.c.bf16 %v4353_v21, %v4346_v41  ;;  %v14740_v28 = vpack.c.bf16 %v4354_v37, %v4347_v61  ;;  %7796 = vmatprep.subr.bf16.mxu0 %v11263_v30  ;;  %v11275_v41 = vld [vmem:[%s16477_s4 + $0x2d4] ss:$12 sps:$4 sm:$0xff]   ;;  %v11278_v61 = vld [vmem:[%s16477_s4 + $0x2ec] ss:$12 sps:$4 sm:$0xff]   ;;  %v11329_v31 = vld [vmem:[%s16477_s4 + $0x470] ss:$12 sps:$4 sm:$0xff]  }
 0x3c1   : > { %v11324_v21 = vld [vmem:[%s16477_s4 + $0x458] ss:$12 sps:$4 sm:$0xff]   ;;  %v11276_v37 = vld [vmem:[%s16477_s4 + $0x2e8] ss:$12 sps:$4 sm:$0xff]  }
 0x3c2   : > { %7808 = vmatprep.mubr.bf16.mxu0 %v14740_v28  ;;  %8279 = vmatprep.mubr.bf16.mxu1 %v14740_v28  ;;  %v4389_v25 = vshll.u32 %v14740_v28, 16  ;;  %v4382_v35 = vshll.u32 %v14738_v10, 16  ;;  %v4387_v62 = vshrl.u32 %v14740_v28, 16  ;;  %v4380_v3 = vshrl.u32 %v14738_v10, 16  ;;  %v11334_v30 = vld [vmem:[%s16477_s4 + $0x548] ss:$12 sps:$4 sm:$0xff]  }
 0x3c3   : > { %8280 = vmatmul.mubr.bf16.vlgmr.msra.gmra.mrb[68].mxu1 %v14738_v10  ;;  %7797 = vmatpush1.bf16.msra.mxu0 %v11261_v45 }
 0x3c4   : > { %v4391_v23 = vrot.slane %v4389_v25, 1  ;;  %v4384_v1 = vrot.slane %v4382_v35, 1  ;;  %10495 = vmatpush3.bf16.msra.mxu1 %v11295_v58  ;;  %7798 = vmatprep.subr.bf16.mxu0 %v11266_v38  ;;  %v11281_v58 = vld [vmem:[%s16477_s4 + $0x304] ss:$12 sps:$4 sm:$0xff]   ;;  %v11284_v35 = vld [vmem:[%s16477_s4 + $0x31c] ss:$12 sps:$4 sm:$0xff]  }
 0x3c5   : > { %10496 = vmatprep.subr.bf16.mxu1 %v11299_v44  ;;  %v11279_v44 = vld [vmem:[%s16477_s4 + $0x300] ss:$12 sps:$4 sm:$0xff]   ;;  %v11330_v25 = vld [vmem:[%s16477_s4 + $0x3b0] ss:$12 sps:$4 sm:$0xff]  }
 0x3c6   : > { %v4392_v22 = vor.u32 %v4391_v23, %v4387_v62  ;;  %v4385_v9 = vor.u32 %v4384_v1, %v4380_v3  ;;  %v11282_v62 = vld [vmem:[%s16477_s4 + $0x318] ss:$12 sps:$4 sm:$0xff]   ;;  %v11287_v23 = vld [vmem:[%s16477_s4 + $0x334] ss:$12 sps:$4 sm:$0xff]   ;;  %v11285_v3 = vld [vmem:[%s16477_s4 + $0x330] ss:$12 sps:$4 sm:$0xff]  }
 0x3c7   : > { %7799 = vmatpush1.bf16.msra.mxu0 %v11264_v55  ;;  %v11290_v1 = vld [vmem:[%s16477_s4 + $0x34c] ss:$12 sps:$4 sm:$0xff]  }
 0x3c8   : > { %4420 = vrot.lane.b32.xlu1 %v4392_v22, %s11912_s20  ;;  %4418 = vrot.lane.b32.xlu0 %v4385_v9, %s11912_s20  ;;  %v11293_v22 = vld [vmem:[%s16477_s4 + $0x364] ss:$12 sps:$4 sm:$0xff]  }
 0x3c9   : > { %10497 = vmatpush3.bf16.msra.mxu1 %v11300_v26  ;;  %7800 = vmatprep.subr.bf16.mxu0 %v11269_v43  ;;  %v11288_v26 = vld [vmem:[%s16477_s4 + $0x348] ss:$12 sps:$4 sm:$0xff]   ;;  %v11291_v43 = vld [vmem:[%s16477_s4 + $0x360] ss:$12 sps:$4 sm:$0xff]  }
 0x3ca   : > { %10498 = vmatprep.subr.bf16.mxu1 %v11304_v11 }
 0x3cb   : > { %7801 = vmatpush1.bf16.msra.mxu0 %v11267_v46  ;;  %v11298_v46 = vld [vmem:[%s16477_s4 + $0x37c] ss:$12 sps:$4 sm:$0xff]  }
 0x3cc   : > { %7802 = vmatprep.subr.bf16.mxu0 %v11272_v2 }
 0x3cd   : > { %10499 = vmatpush3.bf16.msra.mxu1 %v11305_v54 }
 0x3ce   : > { %10500 = vmatprep.subr.bf16.mxu1 %v11309_v27 }
 0x3cf   : > { %7803 = vmatpush1.bf16.msra.mxu0 %v11270_v52 }
 0x3d0   : > { %7804 = vmatprep.subr.bf16.mxu0 %v11275_v41 }
 0x3d1   : > { %10501 = vmatpush3.bf16.msra.mxu1 %v11310_v53 }
 0x3d2   : > { %10502 = vmatprep.subr.bf16.mxu1 %v11314_v59 }
 0x3d3   : > { %7805 = vmatpush1.bf16.msra.mxu0 %v11273_v4 }
 0x3d4   : > { %7806 = vmatprep.subr.bf16.mxu0 %v11278_v61 }
 0x3d5   : > { %10503 = vmatpush3.bf16.msra.mxu1 %v11315_v56 }
 0x3d6   : > { %10504 = vmatprep.subr.bf16.mxu1 %v11319_v48 }
 0x3d7   : > { %7807 = vmatpush1.bf16.msra.mxu0 %v11276_v37 }
 0x3d8   : > { %7819 = vmatprep.subr.bf16.mxu0 %v11281_v58 }
 0x3d9   : > { %10505 = vmatpush3.bf16.msra.mxu1 %v11320_v12 }
 0x3da   : > { %10506 = vmatprep.subr.bf16.mxu1 %v11324_v21  ;;  %7809 = vmatmul.mubr.bf16.vlgmr.msra.gmra.mrb[32].mxu0 %v14738_v10 }
 0x3db   : > { %7820 = vmatpush1.bf16.msra.mxu0 %v11279_v44 }
 0x3dc   : > { %7821 = vmatprep.subr.bf16.mxu0 %v11284_v35 }
 0x3dd   : > { %10507 = vmatpush3.bf16.msra.mxu1 %v11325_v42 }
 0x3de   : > { %10508 = vmatprep.subr.bf16.mxu1 %v11329_v31 }
 0x3df   : > { %7822 = vmatpush1.bf16.msra.mxu0 %v11282_v62 }
 0x3e0   : > { %7823 = vmatprep.subr.bf16.mxu0 %v11287_v23 }
 0x3e1   : > { %10509 = vmatpush3.bf16.msra.mxu1 %v11330_v25 }
 0x3e2   : > { %10516 = vmatprep.subr.bf16.mxu1 %v11334_v30  ;;  %v11093_v45 = vpop.permute.xlu0 %11092 }
 0x3e3   : > { %7824 = vmatpush1.bf16.msra.mxu0 %v11285_v3  ;;  %v11095_v9 = vunpack.i.h.bf16 %v11093_v45  ;;  %v11094_v38 = vunpack.i.l.bf16 %v11093_v45  ;;  %v11301_v3 = vld [vmem:[%s16477_s4 + $0x390] ss:$12 sps:$4 sm:$0xff]  }
 0x3e4   : > { %7825 = vmatprep.subr.bf16.mxu0 %v11290_v1  ;;  %v11308_v1 = vld [vmem:[%s16477_s4 + $0x3ac] ss:$12 sps:$4 sm:$0xff]  }
 0x3e5   : > { %v4102_v53 = vsel %vm4097_vm10, %v11055_v20, %v11094_v38  ;;  %v4103_v2 = vsel %vm4097_vm10, %v11094_v38, %v11095_v9  ;;  %v4130_v4 = vmax.f32 %v14452_v39, %v11095_v9  ;;  %v11303_v39 = vld [vmem:[%s16477_s4 + $0x394] ss:$12 sps:$4 sm:$0xff]  }
 0x3e6   : > { %v11098_v11 = vpop.permute.xlu0 %11097  ;;  %v11113_v55 = vpop.permute.xlu1 %11112  ;;  %v4128_v20 = vmax.f32 %v14432_v51, %v4102_v53  ;;  %v4129_v37 = vmax.f32 %v14434_v14, %v4103_v2 }
 0x3e7   : > { %v11099_v54 = vunpack.i.l.bf16 %v11098_v11  ;;  %7826 = vmatpush1.bf16.msra.mxu0 %v11288_v26  ;;  %v11100_v27 = vunpack.i.h.bf16 %v11098_v11  ;;  %v11115_v59 = vunpack.i.h.bf16 %v11113_v55  ;;  %v11114_v52 = vunpack.i.l.bf16 %v11113_v55 }
 0x3e8   : > { %7827 = vmatprep.subr.bf16.mxu0 %v11293_v22 }
 0x3e9   : > { %v4171_v12 = vsel %vm4166_vm11, %v11060_v49, %v11099_v54  ;;  %v4172_v42 = vsel %vm4166_vm11, %v11099_v54, %v11100_v27  ;;  %v14892_v36 = vmax.f32 %v4130_v4, %v11100_v27  ;;  %v4108_v49 = vsel %vm4097_vm10, %v11075_v34, %v11114_v52 }
 0x3ea   : > { %v14876_v56 = vpop.permute.xlu0 %11102  ;;  %v11118_v41 = vpop.permute.xlu1 %11117  ;;  %v4109_v58 = vsel %vm4097_vm10, %v11114_v52, %v11115_v59  ;;  %v4197_v44 = vmax.f32 %v4128_v20, %v4171_v12  ;;  %v4198_v8 = vmax.f32 %v4129_v37, %v4172_v42  ;;  %v4135_v50 = vmax.f32 %v14439_v57, %v4108_v49  ;;  %v11335_v49 = vld [vmem:[%s16477_s4 + $0x488] ss:$12 sps:$4 sm:$0xff]  }
 0x3eb   : > { %v11104_v48 = vunpack.i.l.bf16 %v14876_v56  ;;  %v11120_v61 = vunpack.i.h.bf16 %v11118_v41  ;;  %v11119_v21 = vunpack.i.l.bf16 %v11118_v41  ;;  %7828 = vmatpush1.bf16.msra.mxu0 %v11291_v43  ;;  %v11105_v31 = vunpack.i.h.bf16 %v14876_v56 }
 0x3ec   : > { %7829 = vmatprep.subr.bf16.mxu0 %v11298_v46 }
 0x3ed   : > { %v4246_v25 = vsel %vm4241_vm12, %v11065_v17, %v11104_v48  ;;  %v4177_v35 = vsel %vm4166_vm11, %v11080_v5, %v11119_v21  ;;  %v4178_v34 = vsel %vm4166_vm11, %v11119_v21, %v11120_v61  ;;  %v4137_v17 = vmax.f32 %v14457_v33, %v11115_v59 }
 0x3ee   : > { %v14899_v51 = vpop.permute.xlu0 %11107  ;;  %v11123_v14 = vpop.permute.xlu1 %11122  ;;  %v4136_v5 = vmax.f32 %v14443_v7, %v4109_v58  ;;  %v4247_v45 = vsel %vm4241_vm12, %v11104_v48, %v11105_v31  ;;  %v4274_v26 = vmax.f32 %v4197_v44, %v4246_v25  ;;  %v4204_v11 = vmax.f32 %v4135_v50, %v4177_v35  ;;  %v11318_v58 = vld [vmem:[%s16477_s4 + $0x3dc] ss:$12 sps:$4 sm:$0xff]  }
 0x3ef   : > { %v11110_v15 = vunpack.i.h.bf16 %v14899_v51  ;;  %v11109_v30 = vunpack.i.l.bf16 %v14899_v51  ;;  %v11125_v62 = vunpack.i.h.bf16 %v11123_v14  ;;  %v11124_v23 = vunpack.i.l.bf16 %v11123_v14  ;;  %7830 = vmatpush1.bf16.msra.mxu0 %v11296_v6  ;;  %v11339_v14 = vld [vmem:[%s16477_s4 + $0x560] ss:$12 sps:$4 sm:$0xff]  }
 0x3f0   : > { %7831 = vmatprep.subr.bf16.mxu0 %v11303_v39  ;;  %v4205_v57 = vmax.f32 %v4136_v5, %v4178_v34  ;;  %v4206_v53 = vmax.f32 %v4137_v17, %v11120_v61  ;;  %v11344_v5 = vld [vmem:[%s16477_s4 + $0x578] ss:$12 sps:$4 sm:$0xff]  }
 0x3f1   : > { %v4253_v22 = vsel %vm4241_vm12, %v11085_v63, %v11124_v23  ;;  %v4254_v9 = vsel %vm4241_vm12, %v11124_v23, %v11125_v62  ;;  %v4320_v7 = vsel %vm567_vm4, %v11070_v18, %v11109_v30  ;;  %v4321_v55 = vsel %vm567_vm4, %v11109_v30, %v11110_v15  ;;  %v11340_v30 = vld [vmem:[%s16477_s4 + $0x4a0] ss:$12 sps:$4 sm:$0xff]  }
 0x3f2   : > { %v11128_v38 = vpop.permute.xlu1 %11127  ;;  %v11133_v33 = vpop.permute.xlu0 %11132  ;;  %v4275_v63 = vmax.f32 %v4198_v8, %v4247_v45  ;;  %v4281_v2 = vmax.f32 %v4204_v11, %v4253_v22  ;;  %v4282_v59 = vmax.f32 %v4205_v57, %v4254_v9  ;;  %v4348_v4 = vmax.f32 %v4274_v26, %v4320_v7  ;;  %v11321_v26 = vld [vmem:[%s16477_s4 + $0x3f0] ss:$12 sps:$4 sm:$0xff]   ;;  %v11345_v22 = vld [vmem:[%s16477_s4 + $0x4b8] ss:$12 sps:$4 sm:$0xff]  }
 0x3f3   : > { %v11130_v54 = vunpack.i.h.bf16 %v11128_v38  ;;  %v11129_v43 = vunpack.i.l.bf16 %v11128_v38  ;;  %v11135_v27 = vunpack.i.h.bf16 %v11133_v33  ;;  %v11134_v46 = vunpack.i.l.bf16 %v11133_v33  ;;  %7832 = vmatpush1.bf16.msra.mxu0 %v11301_v3  ;;  %v11323_v3 = vld [vmem:[%s16477_s4 + $0x3f4] ss:$12 sps:$4 sm:$0xff]   ;;  %v11328_v33 = vld [vmem:[%s16477_s4 + $0x40c] ss:$12 sps:$4 sm:$0xff]   ;;  %v11349_v57 = vld [vmem:[%s16477_s4 + $0x590] ss:$12 sps:$4 sm:$0xff]  }
 0x3f4   : > { %7833 = vmatprep.subr.bf16.mxu0 %v11308_v1  ;;  %v4349_v12 = vmax.f32 %v4275_v63, %v4321_v55  ;;  %v4448_v7 = vrot.slane %v14546_v40, 1  ;;  %v11326_v55 = vld [vmem:[%s16477_s4 + $0x408] ss:$12 sps:$4 sm:$0xff]  }
 0x3f5   : > { %v4327_v18 = vsel %vm567_vm4, %v11090_v47, %v11129_v43  ;;  %v4328_v52 = vsel %vm567_vm4, %v11129_v43, %v11130_v54  ;;  %v4255_v56 = vsel %vm4241_vm12, %v11125_v62, %v11135_v27  ;;  %v4248_v41 = vsel %vm4241_vm12, %v11105_v31, %v11134_v46  ;;  %v11333_v43 = vld [vmem:[%s16477_s4 + $0x424] ss:$12 sps:$4 sm:$0xff]   ;;  %v11354_v40 = vld [vmem:[%s16477_s4 + $0x5a8] ss:$12 sps:$4 sm:$0xff]   ;;  %v11331_v46 = vld [vmem:[%s16477_s4 + $0x420] ss:$12 sps:$4 sm:$0xff]  }
 0x3f6   : > { %v11138_v48 = vpop.permute.xlu1 %11137  ;;  %v4355_v61 = vmax.f32 %v4281_v2, %v4327_v18  ;;  %v4356_v21 = vmax.f32 %v4282_v59, %v4328_v52  ;;  %v4283_v42 = vmax.f32 %v4206_v53, %v4255_v56  ;;  %v4276_v39 = vmax.f32 %v14892_v36, %v4248_v41  ;;  %v11355_v63 = vld [vmem:[%s16477_s4 + $0x4e8] ss:$12 sps:$4 sm:$0xff]   ;;  %v11336_v2 = vld [vmem:[%s16477_s4 + $0x438] ss:$12 sps:$4 sm:$0xff]   ;;  %v11341_v56 = vld [vmem:[%s16477_s4 + $0x450] ss:$12 sps:$4 sm:$0xff]  }
 0x3f7   : > { %v11140_v6 = vunpack.i.h.bf16 %v11138_v48  ;;  %v11139_v20 = vunpack.i.l.bf16 %v11138_v48  ;;  %7834 = vmatpush1.bf16.msra.mxu0 %v11306_v24  ;;  %v4450_v27 = vrot.slane %v14738_v10, 1  ;;  %v4449_v24 = vrot.slane %v14538_v19, 1  ;;  %v11338_v53 = vld [vmem:[%s16477_s4 + $0x43c] ss:$12 sps:$4 sm:$0xff]   ;;  %v11359_v10 = vld [vmem:[%s16477_s4 + $0x5c0] ss:$12 sps:$4 sm:$0xff]  }
 0x3f8   : > { %v14943_v37 = vpack.c.bf16 %v4355_v61, %v4348_v4  ;;  %v14945_v47 = vpack.c.bf16 %v4356_v21, %v4349_v12  ;;  %7835 = vmatprep.subr.bf16.mxu0 %v11313_v13  ;;  %v4451_v59 = vrot.slane %v14740_v28, 1  ;;  %v11360_v13 = vld [vmem:[%s16477_s4 + $0x500] ss:$12 sps:$4 sm:$0xff]   ;;  %v11364_v52 = vld [vmem:[%s16477_s4 + $0x5d8] ss:$12 sps:$4 sm:$0xff]  }
 0x3f9   : > { %v4329_v31 = vsel %vm567_vm4, %v11130_v54, %v11140_v6  ;;  %v4322_v51 = vsel %vm567_vm4, %v11110_v15, %v11139_v20  ;;  %v11316_v15 = vld [vmem:[%s16477_s4 + $0x3d8] ss:$12 sps:$4 sm:$0xff]   ;;  %v11350_v54 = vld [vmem:[%s16477_s4 + $0x4d0] ss:$12 sps:$4 sm:$0xff]   ;;  %v11343_v18 = vld [vmem:[%s16477_s4 + $0x454] ss:$12 sps:$4 sm:$0xff]  }
 0x3fa   : > { %v4350_v44 = vmax.f32 %v4276_v39, %v4322_v51  ;;  %v4357_v25 = vmax.f32 %v4283_v42, %v4329_v31  ;;  %7851 = vmatprep.mubr.bf16.mxu0 %v14945_v47  ;;  %8320 = vmatprep.mubr.bf16.mxu1 %v14945_v47  ;;  %v4403_v36 = vshll.u32 %v14945_v47, 16  ;;  %v4396_v35 = vshll.u32 %v14943_v37, 16  ;;  %v11365_v48 = vld [vmem:[%s16477_s4 + $0x518] ss:$12 sps:$4 sm:$0xff]   ;;  %v11369_v12 = vld [vmem:[%s16477_s4 + $0x5f0] ss:$12 sps:$4 sm:$0xff]  }
 0x3fb   : > { %8321 = vmatmul.mubr.bf16.vlgmr.msra.gmra.mrb[72].mxu1 %v14943_v37  ;;  %7836 = vmatpush1.bf16.msra.mxu0 %v11311_v16  ;;  %v4401_v62 = vshrl.u32 %v14945_v47, 16  ;;  %v4394_v8 = vshrl.u32 %v14943_v37, 16  ;;  %v4452_v19 = vrot.slane %v14943_v37, 1  ;;  %v4453_v41 = vrot.slane %v14945_v47, 1  ;;  %v11348_v4 = vld [vmem:[%s16477_s4 + $0x46c] ss:$12 sps:$4 sm:$0xff]  }
 0x3fc   : > { %v14967_v34 = vpack.c.bf16 %v4357_v25, %v4350_v44  ;;  %10517 = vmatpush3.bf16.msra.mxu1 %v11335_v49  ;;  %v4405_v23 = vrot.slane %v4403_v36, 1  ;;  %7837 = vmatprep.subr.bf16.mxu0 %v11318_v58  ;;  %v4398_v17 = vrot.slane %v4396_v35, 1  ;;  %v11346_v20 = vld [vmem:[%s16477_s4 + $0x468] ss:$12 sps:$4 sm:$0xff]   ;;  %v11370_v16 = vld [vmem:[%s16477_s4 + $0x530] ss:$12 sps:$4 sm:$0xff]  }
 0x3fd   : > { %10518 = vmatprep.subr.bf16.mxu1 %v11339_v14  ;;  %v11353_v47 = vld [vmem:[%s16477_s4 + $0x484] ss:$12 sps:$4 sm:$0xff]   ;;  %v11374_v42 = vld [vmem:[%s16477_s4 + $0x6c8] ss:$12 sps:$4 sm:$0xff]   ;;  %v11351_v39 = vld [vmem:[%s16477_s4 + $0x480] ss:$12 sps:$4 sm:$0xff]  }
 0x3fe   : > { %v4406_v50 = vor.u32 %v4405_v23, %v4401_v62  ;;  %v4410_v1 = vshll.u32 %v14967_v34, 16  ;;  %v4399_v45 = vor.u32 %v4398_v17, %v4394_v8  ;;  %v4408_v9 = vshrl.u32 %v14967_v34, 16  ;;  %v11358_v49 = vld [vmem:[%s16477_s4 + $0x49c] ss:$12 sps:$4 sm:$0xff]   ;;  %v11379_v51 = vld [vmem:[%s16477_s4 + $0x6e0] ss:$12 sps:$4 sm:$0xff]  }
 0x3ff   : > { %7838 = vmatpush1.bf16.msra.mxu0 %v11316_v15  ;;  %v4454_v28 = vrot.slane %v14967_v34, 1  ;;  %v11375_v58 = vld [vmem:[%s16477_s4 + $0x608] ss:$12 sps:$4 sm:$0xff]   ;;  %v11356_v14 = vld [vmem:[%s16477_s4 + $0x498] ss:$12 sps:$4 sm:$0xff]  }
 0x400   : > { %10519 = vmatpush3.bf16.msra.mxu1 %v11340_v30  ;;  %v4412_v38 = vrot.slane %v4410_v1, 1  ;;  %7839 = vmatprep.subr.bf16.mxu0 %v11323_v3  ;;  %v11363_v44 = vld [vmem:[%s16477_s4 + $0x4b4] ss:$12 sps:$4 sm:$0xff]   ;;  %v11361_v36 = vld [vmem:[%s16477_s4 + $0x4b0] ss:$12 sps:$4 sm:$0xff]  }
 0x401   : > { %4424 = vrot.lane.b32.xlu1 %v4406_v50, %s11912_s20  ;;  %4422 = vrot.lane.b32.xlu0 %v4399_v45, %s11912_s20  ;;  %v11380_v25 = vld [vmem:[%s16477_s4 + $0x620] ss:$12 sps:$4 sm:$0xff]   ;;  %v11385_v15 = vld [vmem:[%s16477_s4 + $0x638] ss:$12 sps:$4 sm:$0xff]  }
 0x402   : > { %10520 = vmatprep.subr.bf16.mxu1 %v11344_v5  ;;  %v4413_v11 = vor.u32 %v4412_v38, %v4408_v9  ;;  %v11368_v35 = vld [vmem:[%s16477_s4 + $0x4cc] ss:$12 sps:$4 sm:$0xff]   ;;  %v11366_v30 = vld [vmem:[%s16477_s4 + $0x4c8] ss:$12 sps:$4 sm:$0xff]   ;;  %v11373_v62 = vld [vmem:[%s16477_s4 + $0x4e4] ss:$12 sps:$4 sm:$0xff]  }
 0x403   : > { %7840 = vmatpush1.bf16.msra.mxu0 %v11321_v26  ;;  %v11390_v23 = vld [vmem:[%s16477_s4 + $0x650] ss:$12 sps:$4 sm:$0xff]   ;;  %v11394_v3 = vld [vmem:[%s16477_s4 + $0x728] ss:$12 sps:$4 sm:$0xff]   ;;  %v11371_v8 = vld [vmem:[%s16477_s4 + $0x4e0] ss:$12 sps:$4 sm:$0xff]  }
 0x404   : > { %10521 = vmatpush3.bf16.msra.mxu1 %v11345_v22  ;;  %7841 = vmatprep.subr.bf16.mxu0 %v11328_v33  ;;  %v11378_v17 = vld [vmem:[%s16477_s4 + $0x4fc] ss:$12 sps:$4 sm:$0xff]   ;;  %v11399_v5 = vld [vmem:[%s16477_s4 + $0x740] ss:$12 sps:$4 sm:$0xff]   ;;  %v11376_v1 = vld [vmem:[%s16477_s4 + $0x4f8] ss:$12 sps:$4 sm:$0xff]  }
 0x405   : > { %4455 = vrot.lane.b32.xlu1 %v4448_v7, %s16579_s23  ;;  %4426 = vrot.lane.b32.xlu0 %v4413_v11, %s11912_s20  ;;  %v11395_v50 = vld [vmem:[%s16477_s4 + $0x668] ss:$12 sps:$4 sm:$0xff]   ;;  %v11400_v26 = vld [vmem:[%s16477_s4 + $0x680] ss:$12 sps:$4 sm:$0xff]  }
 0x406   : > { %10522 = vmatprep.subr.bf16.mxu1 %v11349_v57  ;;  %v11383_v45 = vld [vmem:[%s16477_s4 + $0x514] ss:$12 sps:$4 sm:$0xff]   ;;  %v11404_v22 = vld [vmem:[%s16477_s4 + $0x758] ss:$12 sps:$4 sm:$0xff]   ;;  %v11381_v9 = vld [vmem:[%s16477_s4 + $0x510] ss:$12 sps:$4 sm:$0xff]  }
 0x407   : > { %7842 = vmatpush1.bf16.msra.mxu0 %v11326_v55  ;;  %v11388_v38 = vld [vmem:[%s16477_s4 + $0x52c] ss:$12 sps:$4 sm:$0xff]   ;;  %v11409_v11 = vld [vmem:[%s16477_s4 + $0x770] ss:$12 sps:$4 sm:$0xff]   ;;  %v11386_v57 = vld [vmem:[%s16477_s4 + $0x528] ss:$12 sps:$4 sm:$0xff]  }
 0x408   : > { %10523 = vmatpush3.bf16.msra.mxu1 %v11350_v54  ;;  %7843 = vmatprep.subr.bf16.mxu0 %v11333_v43  ;;  %v11405_v33 = vld [vmem:[%s16477_s4 + $0x698] ss:$12 sps:$4 sm:$0xff]   ;;  %v11410_v43 = vld [vmem:[%s16477_s4 + $0x6b0] ss:$12 sps:$4 sm:$0xff]  }
 0x409   : > { %4459 = vrot.lane.b32.xlu1 %v4450_v27, %s16579_s23  ;;  %4457 = vrot.lane.b32.xlu0 %v4449_v24, %s16579_s23  ;;  %v11393_v54 = vld [vmem:[%s16477_s4 + $0x544] ss:$12 sps:$4 sm:$0xff]   ;;  %v11432_v27 = vld [vmem:[%s16477_s4 + $0x848] ss:$12 sps:$4 sm:$0xff]  }
 0x40a   : > { %10524 = vmatprep.subr.bf16.mxu1 %v11354_v40  ;;  %v11398_v24 = vld [vmem:[%s16477_s4 + $0x55c] ss:$12 sps:$4 sm:$0xff]  }
 0x40b   : > { %7844 = vmatpush1.bf16.msra.mxu0 %v11331_v46  ;;  %v11391_v46 = vld [vmem:[%s16477_s4 + $0x540] ss:$12 sps:$4 sm:$0xff]  }
 0x40c   : > { %10525 = vmatpush3.bf16.msra.mxu1 %v11355_v63  ;;  %7845 = vmatprep.subr.bf16.mxu0 %v11338_v53  ;;  %v11436_v63 = vld [vmem:[%s16477_s4 + $0x788] ss:$12 sps:$4 sm:$0xff]   ;;  %v11437_v53 = vld [vmem:[%s16477_s4 + $0x860] ss:$12 sps:$4 sm:$0xff]  }
 0x40d   : > { %4463 = vrot.lane.b32.xlu1 %v4452_v19, %s16579_s23  ;;  %4461 = vrot.lane.b32.xlu0 %v4451_v59, %s16579_s23  ;;  %v11396_v19 = vld [vmem:[%s16477_s4 + $0x558] ss:$12 sps:$4 sm:$0xff]   ;;  %v11441_v59 = vld [vmem:[%s16477_s4 + $0x7a0] ss:$12 sps:$4 sm:$0xff]  }
 0x40e   : > { %10526 = vmatprep.subr.bf16.mxu1 %v11359_v10  ;;  %v15059_v61 = vpop.permute.xlu1 %4416 }
 0x40f   : > { %7846 = vmatpush1.bf16.msra.mxu0 %v11336_v2  ;;  %v11403_v2 = vld [vmem:[%s16477_s4 + $0x574] ss:$12 sps:$4 sm:$0xff]  }
 0x410   : > { %10527 = vmatpush3.bf16.msra.mxu1 %v11360_v13  ;;  %7847 = vmatprep.subr.bf16.mxu0 %v11343_v18  ;;  %v4415_v21 = vpop.permute.xlu0 %4414  ;;  %v11442_v13 = vld [vmem:[%s16477_s4 + $0x878] ss:$12 sps:$4 sm:$0xff]   ;;  %v11401_v18 = vld [vmem:[%s16477_s4 + $0x570] ss:$12 sps:$4 sm:$0xff]  }
 0x411   : > { %4467 = vrot.lane.b32.xlu1 %v4454_v28, %s16579_s23  ;;  %4465 = vrot.lane.b32.xlu0 %v4453_v41, %s16579_s23  ;;  %v4429_v6 = vsel %vm4166_vm11, %v4415_v21, %v15059_v61  ;;  %v15086_v31 = vsel %vm4166_vm11, %v14967_v34, %v4415_v21  ;;  %v11389_v34 = vld [vmem:[%s16477_s4 + $0x710] ss:$12 sps:$4 sm:$0xff]   ;;  %v11446_v28 = vld [vmem:[%s16477_s4 + $0x7b8] ss:$12 sps:$4 sm:$0xff]  }
 0x412   : > { %10528 = vmatprep.subr.bf16.mxu1 %v11364_v52  ;;  %8361 = vmatprep.mubr.bf16.mxu1 %v4429_v6  ;;  %v11408_v52 = vld [vmem:[%s16477_s4 + $0x58c] ss:$12 sps:$4 sm:$0xff]   ;;  %v11406_v41 = vld [vmem:[%s16477_s4 + $0x588] ss:$12 sps:$4 sm:$0xff]  }
 0x413   : > { %7848 = vmatpush1.bf16.msra.mxu0 %v11341_v56  ;;  %v11447_v56 = vld [vmem:[%s16477_s4 + $0x890] ss:$12 sps:$4 sm:$0xff]  }
 0x414   : > { %10529 = vmatpush3.bf16.msra.mxu1 %v11365_v48  ;;  %7849 = vmatprep.subr.bf16.mxu0 %v11348_v4  ;;  %v11413_v48 = vld [vmem:[%s16477_s4 + $0x5a4] ss:$12 sps:$4 sm:$0xff]   ;;  %v11416_v21 = vld [vmem:[%s16477_s4 + $0x5bc] ss:$12 sps:$4 sm:$0xff]  }
 0x415   : > { %10530 = vmatprep.subr.bf16.mxu1 %v11369_v12  ;;  %v11451_v4 = vld [vmem:[%s16477_s4 + $0x7d0] ss:$12 sps:$4 sm:$0xff]   ;;  %v11452_v12 = vld [vmem:[%s16477_s4 + $0x8a8] ss:$12 sps:$4 sm:$0xff]  }
 0x417   : > { %7850 = vmatpush1.bf16.msra.mxu0 %v11346_v20  ;;  %v11457_v20 = vld [vmem:[%s16477_s4 + $0x8c0] ss:$12 sps:$4 sm:$0xff]  }
 0x418   : > { %10531 = vmatpush3.bf16.msra.mxu1 %v11370_v16  ;;  %7862 = vmatprep.subr.bf16.mxu0 %v11353_v47  ;;  %v11414_v16 = vld [vmem:[%s16477_s4 + $0x5b8] ss:$12 sps:$4 sm:$0xff]   ;;  %v11419_v47 = vld [vmem:[%s16477_s4 + $0x5d4] ss:$12 sps:$4 sm:$0xff]  }
 0x419   : > { %10538 = vmatprep.subr.bf16.mxu1 %v11374_v42  ;;  %v11461_v42 = vld [vmem:[%s16477_s4 + $0x800] ss:$12 sps:$4 sm:$0xff]  }
 0x41a   : > { %7852 = vmatmul.mubr.bf16.vlgmr.msra.gmra.mrb[32].mxu0 %v14943_v37  ;;  %v11384_v37 = vld [vmem:[%s16477_s4 + $0x6f8] ss:$12 sps:$4 sm:$0xff]  }
 0x41b   : > { %8362 = vmatmul.mubr.bf16.vlgmr.msra.gmra.mrb[76].mxu1 %v15086_v31  ;;  %7863 = vmatpush1.bf16.msra.mxu0 %v11351_v39  ;;  %v11462_v39 = vld [vmem:[%s16477_s4 + $0x8d8] ss:$12 sps:$4 sm:$0xff]  }
 0x41c   : > { %7894 = vmatprep.mubr.bf16.mxu0 %v4429_v6  ;;  %7864 = vmatprep.subr.bf16.mxu0 %v11358_v49  ;;  %v11456_v6 = vld [vmem:[%s16477_s4 + $0x7e8] ss:$12 sps:$4 sm:$0xff]   ;;  %v11417_v49 = vld [vmem:[%s16477_s4 + $0x5d0] ss:$12 sps:$4 sm:$0xff]  }
 0x41d   : > { %10539 = vmatpush3.bf16.msra.mxu1 %v11375_v58  ;;  %v11422_v58 = vld [vmem:[%s16477_s4 + $0x5ec] ss:$12 sps:$4 sm:$0xff]  }
 0x41e   : > { %10540 = vmatprep.subr.bf16.mxu1 %v11379_v51  ;;  %v11466_v51 = vld [vmem:[%s16477_s4 + $0x818] ss:$12 sps:$4 sm:$0xff]  }
 0x41f   : > { %7865 = vmatpush1.bf16.msra.mxu0 %v11356_v14  ;;  %v11467_v14 = vld [vmem:[%s16477_s4 + $0x8f0] ss:$12 sps:$4 sm:$0xff]  }
 0x420   : > { %7866 = vmatprep.subr.bf16.mxu0 %v11363_v44  ;;  %v11420_v44 = vld [vmem:[%s16477_s4 + $0x5e8] ss:$12 sps:$4 sm:$0xff]  }
 0x421   : > { %10541 = vmatpush3.bf16.msra.mxu1 %v11380_v25  ;;  %v11425_v25 = vld [vmem:[%s16477_s4 + $0x604] ss:$12 sps:$4 sm:$0xff]  }
 0x422   : > { %10542 = vmatprep.subr.bf16.mxu1 %v11384_v37  ;;  %v11471_v37 = vld [vmem:[%s16477_s4 + $0x830] ss:$12 sps:$4 sm:$0xff]  }
 0x423   : > { %7867 = vmatpush1.bf16.msra.mxu0 %v11361_v36  ;;  %v11472_v36 = vld [vmem:[%s16477_s4 + $0x9c8] ss:$12 sps:$4 sm:$0xff]  }
 0x424   : > { %7868 = vmatprep.subr.bf16.mxu0 %v11368_v35  ;;  %v11423_v35 = vld [vmem:[%s16477_s4 + $0x600] ss:$12 sps:$4 sm:$0xff]  }
 0x425   : > { %10543 = vmatpush3.bf16.msra.mxu1 %v11385_v15  ;;  %v11428_v15 = vld [vmem:[%s16477_s4 + $0x61c] ss:$12 sps:$4 sm:$0xff]  }
 0x426   : > { %10544 = vmatprep.subr.bf16.mxu1 %v11389_v34  ;;  %v11426_v34 = vld [vmem:[%s16477_s4 + $0x618] ss:$12 sps:$4 sm:$0xff]  }
 0x427   : > { %7869 = vmatpush1.bf16.msra.mxu0 %v11366_v30  ;;  %v11431_v30 = vld [vmem:[%s16477_s4 + $0x634] ss:$12 sps:$4 sm:$0xff]  }
 0x428   : > { %7870 = vmatprep.subr.bf16.mxu0 %v11373_v62  ;;  %v11429_v62 = vld [vmem:[%s16477_s4 + $0x630] ss:$12 sps:$4 sm:$0xff]  }
 0x429   : > { %10545 = vmatpush3.bf16.msra.mxu1 %v11390_v23  ;;  %v11433_v23 = vld [vmem:[%s16477_s4 + $0x648] ss:$12 sps:$4 sm:$0xff]  }
 0x42a   : > { %10546 = vmatprep.subr.bf16.mxu1 %v11394_v3  ;;  %v11440_v3 = vld [vmem:[%s16477_s4 + $0x664] ss:$12 sps:$4 sm:$0xff]  }
 0x42b   : > { %7871 = vmatpush1.bf16.msra.mxu0 %v11371_v8  ;;  %v11438_v8 = vld [vmem:[%s16477_s4 + $0x660] ss:$12 sps:$4 sm:$0xff]  }
 0x42c   : > { %7872 = vmatprep.subr.bf16.mxu0 %v11378_v17  ;;  %v11445_v17 = vld [vmem:[%s16477_s4 + $0x67c] ss:$12 sps:$4 sm:$0xff]  }
 0x42d   : > { %10547 = vmatpush3.bf16.msra.mxu1 %v11395_v50  ;;  %v11443_v50 = vld [vmem:[%s16477_s4 + $0x678] ss:$12 sps:$4 sm:$0xff]  }
 0x42e   : > { %10548 = vmatprep.subr.bf16.mxu1 %v11399_v5  ;;  %v11450_v5 = vld [vmem:[%s16477_s4 + $0x694] ss:$12 sps:$4 sm:$0xff]  }
 0x42f   : > { %7873 = vmatpush1.bf16.msra.mxu0 %v11376_v1 }
 0x430   : > { %7874 = vmatprep.subr.bf16.mxu0 %v11383_v45 }
 0x431   : > { %10549 = vmatpush3.bf16.msra.mxu1 %v11400_v26 }
 0x432   : > { %10550 = vmatprep.subr.bf16.mxu1 %v11404_v22 }
 0x433   : > { %7875 = vmatpush1.bf16.msra.mxu0 %v11381_v9  ;;  %v11448_v9 = vld [vmem:[%s16477_s4 + $0x690] ss:$12 sps:$4 sm:$0xff]  }
 0x434   : > { %7876 = vmatprep.subr.bf16.mxu0 %v11388_v38 }
 0x435   : > { %10551 = vmatpush3.bf16.msra.mxu1 %v11405_v33  ;;  %v11455_v33 = vld [vmem:[%s16477_s4 + $0x6ac] ss:$12 sps:$4 sm:$0xff]  }
 0x436   : > { %10552 = vmatprep.subr.bf16.mxu1 %v11409_v11 }
 0x437   : > { %7877 = vmatpush1.bf16.msra.mxu0 %v11386_v57 }
 0x438   : > { %7878 = vmatprep.subr.bf16.mxu0 %v11393_v54 }
 0x439   : > { %10553 = vmatpush3.bf16.msra.mxu1 %v11410_v43  ;;  %v11476_v43 = vld [vmem:[%s16477_s4 + $0x908] ss:$12 sps:$4 sm:$0xff]  }
 0x43a   : > { %v15168_v7 = vpop.permute.xlu1 %4420  ;;  %v4419_v55 = vpop.permute.xlu0 %4418  ;;  %10560 = vmatprep.subr.bf16.mxu1 %v11432_v27 }
 0x43b   : > { %v15178_v40 = vsel %vm4166_vm11, %v4419_v55, %v15168_v7  ;;  %v15198_v10 = vsel %vm4166_vm11, %v15059_v61, %v4419_v55  ;;  %7879 = vmatpush1.bf16.msra.mxu0 %v11391_v46  ;;  %v11411_v61 = vld [vmem:[%s16477_s4 + $0x5a0] ss:$12 sps:$4 sm:$0xff]   ;;  %v11453_v55 = vld [vmem:[%s16477_s4 + $0x6a8] ss:$12 sps:$4 sm:$0xff]  }
 0x43c   : > { %8402 = vmatprep.mubr.bf16.mxu1 %v15178_v40  ;;  %7880 = vmatprep.subr.bf16.mxu0 %v11398_v24  ;;  %v11477_v24 = vld [vmem:[%s16477_s4 + $0x9e0] ss:$12 sps:$4 sm:$0xff]  }
 0x43d   : > { %8403 = vmatmul.mubr.bf16.vlgmr.msra.gmra.mrb[80].mxu1 %v15198_v10 }
 0x43e   : > { %10561 = vmatpush3.bf16.msra.mxu1 %v11436_v63 }
 0x43f   : > { %10562 = vmatprep.subr.bf16.mxu1 %v11437_v53  ;;  %7881 = vmatpush1.bf16.msra.mxu0 %v11396_v19  ;;  %v11481_v19 = vld [vmem:[%s16477_s4 + $0x920] ss:$12 sps:$4 sm:$0xff]  }
 0x440   : > { %7882 = vmatprep.subr.bf16.mxu0 %v11403_v2  ;;  %v11465_v2 = vld [vmem:[%s16477_s4 + $0x6dc] ss:$12 sps:$4 sm:$0xff]  }
 0x442   : > { %10563 = vmatpush3.bf16.msra.mxu1 %v11441_v59 }
 0x443   : > { %10564 = vmatprep.subr.bf16.mxu1 %v11442_v13  ;;  %7883 = vmatpush1.bf16.msra.mxu0 %v11401_v18  ;;  %v11482_v13 = vld [vmem:[%s16477_s4 + $0x9f8] ss:$12 sps:$4 sm:$0xff]  }
 0x444   : > { %7884 = vmatprep.subr.bf16.mxu0 %v11408_v52  ;;  %v11463_v18 = vld [vmem:[%s16477_s4 + $0x6d8] ss:$12 sps:$4 sm:$0xff]  }
 0x445   : > { %v11486_v52 = vld [vmem:[%s16477_s4 + $0x938] ss:$12 sps:$4 sm:$0xff]  }
 0x446   : > { %10565 = vmatpush3.bf16.msra.mxu1 %v11446_v28  ;;  %v11470_v28 = vld [vmem:[%s16477_s4 + $0x6f4] ss:$12 sps:$4 sm:$0xff]  }
 0x447   : > { %10566 = vmatprep.subr.bf16.mxu1 %v11447_v56  ;;  %7885 = vmatpush1.bf16.msra.mxu0 %v11406_v41  ;;  %v11487_v56 = vld [vmem:[%s16477_s4 + $0xa10] ss:$12 sps:$4 sm:$0xff]  }
 0x448   : > { %7886 = vmatprep.subr.bf16.mxu0 %v11413_v48  ;;  %v11468_v41 = vld [vmem:[%s16477_s4 + $0x6f0] ss:$12 sps:$4 sm:$0xff]  }
 0x449   : > { %v11491_v48 = vld [vmem:[%s16477_s4 + $0x950] ss:$12 sps:$4 sm:$0xff]  }
 0x44a   : > { %10567 = vmatpush3.bf16.msra.mxu1 %v11451_v4  ;;  %v11475_v4 = vld [vmem:[%s16477_s4 + $0x70c] ss:$12 sps:$4 sm:$0xff]  }
 0x44b   : > { %10568 = vmatprep.subr.bf16.mxu1 %v11452_v12  ;;  %7887 = vmatpush1.bf16.msra.mxu0 %v11411_v61  ;;  %v11492_v12 = vld [vmem:[%s16477_s4 + $0xa28] ss:$12 sps:$4 sm:$0xff]  }
 0x44c   : > { %7888 = vmatprep.subr.bf16.mxu0 %v11416_v21  ;;  %v11473_v61 = vld [vmem:[%s16477_s4 + $0x708] ss:$12 sps:$4 sm:$0xff]  }
 0x44d   : > { %v11496_v21 = vld [vmem:[%s16477_s4 + $0x968] ss:$12 sps:$4 sm:$0xff]  }
 0x44e   : > { %10569 = vmatpush3.bf16.msra.mxu1 %v11456_v6  ;;  %v11480_v6 = vld [vmem:[%s16477_s4 + $0x724] ss:$12 sps:$4 sm:$0xff]  }
 0x44f   : > { %10570 = vmatprep.subr.bf16.mxu1 %v11457_v20  ;;  %7889 = vmatpush1.bf16.msra.mxu0 %v11414_v16  ;;  %v11497_v20 = vld [vmem:[%s16477_s4 + $0xa40] ss:$12 sps:$4 sm:$0xff]  }
 0x450   : > { %7890 = vmatprep.subr.bf16.mxu0 %v11419_v47  ;;  %v11478_v16 = vld [vmem:[%s16477_s4 + $0x720] ss:$12 sps:$4 sm:$0xff]  }
 0x451   : > { %v11501_v47 = vld [vmem:[%s16477_s4 + $0x980] ss:$12 sps:$4 sm:$0xff]  }
 0x452   : > { %10571 = vmatpush3.bf16.msra.mxu1 %v11461_v42  ;;  %v11485_v42 = vld [vmem:[%s16477_s4 + $0x73c] ss:$12 sps:$4 sm:$0xff]  }
 0x453   : > { %10572 = vmatprep.subr.bf16.mxu1 %v11462_v39  ;;  %7891 = vmatpush1.bf16.msra.mxu0 %v11417_v49  ;;  %v11502_v39 = vld [vmem:[%s16477_s4 + $0xa58] ss:$12 sps:$4 sm:$0xff]  }
 0x454   : > { %7892 = vmatprep.subr.bf16.mxu0 %v11422_v58  ;;  %v11483_v49 = vld [vmem:[%s16477_s4 + $0x738] ss:$12 sps:$4 sm:$0xff]  }
 0x455   : > { %v11506_v58 = vld [vmem:[%s16477_s4 + $0x998] ss:$12 sps:$4 sm:$0xff]  }
 0x456   : > { %10573 = vmatpush3.bf16.msra.mxu1 %v11466_v51  ;;  %v11490_v51 = vld [vmem:[%s16477_s4 + $0x754] ss:$12 sps:$4 sm:$0xff]  }
 0x457   : > { %10574 = vmatprep.subr.bf16.mxu1 %v11467_v14  ;;  %7893 = vmatpush1.bf16.msra.mxu0 %v11420_v44  ;;  %v11507_v14 = vld [vmem:[%s16477_s4 + $0xa70] ss:$12 sps:$4 sm:$0xff]  }
 0x458   : > { %7905 = vmatprep.subr.bf16.mxu0 %v11425_v25  ;;  %v11488_v44 = vld [vmem:[%s16477_s4 + $0x750] ss:$12 sps:$4 sm:$0xff]  }
 0x459   : > { %v11511_v25 = vld [vmem:[%s16477_s4 + $0x9b0] ss:$12 sps:$4 sm:$0xff]  }
 0x45a   : > { %10575 = vmatpush3.bf16.msra.mxu1 %v11471_v37  ;;  %7895 = vmatmul.mubr.bf16.vlgmr.msra.gmra.mrb[32].mxu0 %v15086_v31  ;;  %v11435_v31 = vld [vmem:[%s16477_s4 + $0x64c] ss:$12 sps:$4 sm:$0xff]  }
 0x45b   : > { %10582 = vmatprep.subr.bf16.mxu1 %v11472_v36  ;;  %7906 = vmatpush1.bf16.msra.mxu0 %v11423_v35  ;;  %v11495_v36 = vld [vmem:[%s16477_s4 + $0x76c] ss:$12 sps:$4 sm:$0xff]   ;;  %v11512_v35 = vld [vmem:[%s16477_s4 + $0xb48] ss:$12 sps:$4 sm:$0xff]  }
 0x45c   : > { %7937 = vmatprep.mubr.bf16.mxu0 %v15178_v40  ;;  %7907 = vmatprep.subr.bf16.mxu0 %v11428_v15  ;;  %v11460_v40 = vld [vmem:[%s16477_s4 + $0x6c4] ss:$12 sps:$4 sm:$0xff]  }
 0x45f   : > { %7908 = vmatpush1.bf16.msra.mxu0 %v11426_v34 }
 0x460   : > { %7909 = vmatprep.subr.bf16.mxu0 %v11431_v30 }
 0x463   : > { %7910 = vmatpush1.bf16.msra.mxu0 %v11429_v62 }
 0x464   : > { %7911 = vmatprep.subr.bf16.mxu0 %v11435_v31  ;;  %v11493_v31 = vld [vmem:[%s16477_s4 + $0x768] ss:$12 sps:$4 sm:$0xff]  }
 0x467   : > { %7912 = vmatpush1.bf16.msra.mxu0 %v11433_v23  ;;  %v11516_v23 = vld [vmem:[%s16477_s4 + $0xa88] ss:$12 sps:$4 sm:$0xff]  }
 0x468   : > { %7913 = vmatprep.subr.bf16.mxu0 %v11440_v3 }
 0x46b   : > { %7914 = vmatpush1.bf16.msra.mxu0 %v11438_v8  ;;  %v10466_v1 = vpop.f32.mrb[64].mxu1 }
 0x46c   : > { %7915 = vmatprep.subr.bf16.mxu0 %v11445_v17  ;;  %v10467_v45 = vpop.f32.mrb[65].mxu1 }
 0x46d   : > { %v15323_v26 = vadd.f32 %v10467_v45, %v10466_v1  ;;  %v10469_v22 = vpop.f32.mrb[66].mxu1  ;;  %v11517_v45 = vld [vmem:[%s16477_s4 + $0xb60] ss:$12 sps:$4 sm:$0xff]  }
 0x46e   : > { %v10470_v38 = vpop.f32.mrb[67].mxu1 }
 0x46f   : > { %7916 = vmatpush1.bf16.msra.mxu0 %v11443_v50  ;;  %v15331_v11 = vadd.f32 %v10470_v38, %v10469_v22  ;;  %v11505_v38 = vld [vmem:[%s16477_s4 + $0x79c] ss:$12 sps:$4 sm:$0xff]  }
 0x470   : > { %7917 = vmatprep.subr.bf16.mxu0 %v11450_v5  ;;  %v11500_v5 = vld [vmem:[%s16477_s4 + $0x784] ss:$12 sps:$4 sm:$0xff]  }
 0x473   : > { %v15333_v57 = vpop.permute.xlu1 %4424  ;;  %7918 = vmatpush1.bf16.msra.mxu0 %v11448_v9  ;;  %v4423_v54 = vpop.permute.xlu0 %4422 }
 0x474   : > { %7919 = vmatprep.subr.bf16.mxu0 %v11455_v33  ;;  %v15346_v27 = vsel %vm4166_vm11, %v15168_v7, %v4423_v54  ;;  %v15350_v46 = vsel %vm4166_vm11, %v4423_v54, %v15333_v57  ;;  %v11458_v7 = vld [vmem:[%s16477_s4 + $0x6c0] ss:$12 sps:$4 sm:$0xff]   ;;  %v11526_v54 = vld [vmem:[%s16477_s4 + $0xab8] ss:$12 sps:$4 sm:$0xff]  }
 0x475   : > { %8443 = vmatprep.mubr.bf16.mxu1 %v15350_v46  ;;  %v11521_v33 = vld [vmem:[%s16477_s4 + $0xaa0] ss:$12 sps:$4 sm:$0xff]  }
 0x476   : > { %8444 = vmatmul.mubr.bf16.vlgmr.msra.gmra.mrb[84].mxu1 %v15346_v27 }
 0x477   : > { %v15357_v63 = vpop.permute.xlu1 %4455  ;;  %7920 = vmatpush1.bf16.msra.mxu0 %v11453_v55  ;;  %10583 = vmatpush3.bf16.msra.mxu1 %v11476_v43  ;;  %v15362_v53 = vpop.permute.xlu0 %4426  ;;  %v11510_v55 = vld [vmem:[%s16477_s4 + $0x7b4] ss:$12 sps:$4 sm:$0xff]   ;;  %v11508_v43 = vld [vmem:[%s16477_s4 + $0x7b0] ss:$12 sps:$4 sm:$0xff]  }
 0x478   : > { %7921 = vmatprep.subr.bf16.mxu0 %v11460_v40  ;;  %10584 = vmatprep.subr.bf16.mxu1 %v11477_v24  ;;  %v15373_v59 = vsel %vm567_vm4, %v15362_v53, %v15357_v63  ;;  %v15470_v1 = vsel %vm4166_vm11, %v15333_v57, %v15362_v53  ;;  %v11503_v57 = vld [vmem:[%s16477_s4 + $0x798] ss:$12 sps:$4 sm:$0xff]   ;;  %v11532_v24 = vld [vmem:[%s16477_s4 + $0xba8] ss:$12 sps:$4 sm:$0xff]  }
 0x479   : > { %8484 = vmatprep.mubr.bf16.mxu1 %v15373_v59  ;;  %v11515_v40 = vld [vmem:[%s16477_s4 + $0x7cc] ss:$12 sps:$4 sm:$0xff]   ;;  %v11520_v53 = vld [vmem:[%s16477_s4 + $0x7e4] ss:$12 sps:$4 sm:$0xff]  }
 0x47b   : > { %7922 = vmatpush1.bf16.msra.mxu0 %v11458_v7  ;;  %10585 = vmatpush3.bf16.msra.mxu1 %v11481_v19  ;;  %v15457_v3 = vpop.permute.xlu1 %4459  ;;  %v15459_v8 = vpop.permute.xlu0 %4457  ;;  %v11513_v7 = vld [vmem:[%s16477_s4 + $0x7c8] ss:$12 sps:$4 sm:$0xff]  }
 0x47c   : > { %7923 = vmatprep.subr.bf16.mxu0 %v11465_v2  ;;  %10586 = vmatprep.subr.bf16.mxu1 %v11482_v13  ;;  %v15485_v9 = vsel %vm567_vm4, %v15459_v8, %v15457_v3  ;;  %v11536_v19 = vld [vmem:[%s16477_s4 + $0xae8] ss:$12 sps:$4 sm:$0xff]   ;;  %v11537_v2 = vld [vmem:[%s16477_s4 + $0xbc0] ss:$12 sps:$4 sm:$0xff]  }
 0x47d   : > { %v11518_v13 = vld [vmem:[%s16477_s4 + $0x7e0] ss:$12 sps:$4 sm:$0xff]  }
 0x47f   : > { %7924 = vmatpush1.bf16.msra.mxu0 %v11463_v18  ;;  %10587 = vmatpush3.bf16.msra.mxu1 %v11486_v52  ;;  %v11525_v18 = vld [vmem:[%s16477_s4 + $0x7fc] ss:$12 sps:$4 sm:$0xff]   ;;  %v11541_v52 = vld [vmem:[%s16477_s4 + $0xb00] ss:$12 sps:$4 sm:$0xff]  }
 0x480   : > { %7925 = vmatprep.subr.bf16.mxu0 %v11470_v28  ;;  %10588 = vmatprep.subr.bf16.mxu1 %v11487_v56  ;;  %v11542_v28 = vld [vmem:[%s16477_s4 + $0xbd8] ss:$12 sps:$4 sm:$0xff]  }
 0x481   : > { %v11523_v56 = vld [vmem:[%s16477_s4 + $0x7f8] ss:$12 sps:$4 sm:$0xff]  }
 0x483   : > { %7926 = vmatpush1.bf16.msra.mxu0 %v11468_v41  ;;  %10589 = vmatpush3.bf16.msra.mxu1 %v11491_v48  ;;  %v11530_v41 = vld [vmem:[%s16477_s4 + $0x814] ss:$12 sps:$4 sm:$0xff]   ;;  %v11546_v48 = vld [vmem:[%s16477_s4 + $0xb18] ss:$12 sps:$4 sm:$0xff]  }
 0x484   : > { %7927 = vmatprep.subr.bf16.mxu0 %v11475_v4  ;;  %10590 = vmatprep.subr.bf16.mxu1 %v11492_v12  ;;  %v11547_v4 = vld [vmem:[%s16477_s4 + $0xbf0] ss:$12 sps:$4 sm:$0xff]  }
 0x485   : > { %v11528_v12 = vld [vmem:[%s16477_s4 + $0x810] ss:$12 sps:$4 sm:$0xff]  }
 0x487   : > { %7928 = vmatpush1.bf16.msra.mxu0 %v11473_v61  ;;  %10591 = vmatpush3.bf16.msra.mxu1 %v11496_v21  ;;  %v11535_v61 = vld [vmem:[%s16477_s4 + $0x82c] ss:$12 sps:$4 sm:$0xff]   ;;  %v11551_v21 = vld [vmem:[%s16477_s4 + $0xb30] ss:$12 sps:$4 sm:$0xff]  }
 0x488   : > { %7929 = vmatprep.subr.bf16.mxu0 %v11480_v6  ;;  %10592 = vmatprep.subr.bf16.mxu1 %v11497_v20  ;;  %v11552_v6 = vld [vmem:[%s16477_s4 + $0xcc8] ss:$12 sps:$4 sm:$0xff]  }
 0x489   : > { %v11533_v20 = vld [vmem:[%s16477_s4 + $0x828] ss:$12 sps:$4 sm:$0xff]  }
 0x48b   : > { %7930 = vmatpush1.bf16.msra.mxu0 %v11478_v16  ;;  %10593 = vmatpush3.bf16.msra.mxu1 %v11501_v47  ;;  %v11540_v16 = vld [vmem:[%s16477_s4 + $0x844] ss:$12 sps:$4 sm:$0xff]   ;;  %v11556_v47 = vld [vmem:[%s16477_s4 + $0xc08] ss:$12 sps:$4 sm:$0xff]  }
 0x48c   : > { %7931 = vmatprep.subr.bf16.mxu0 %v11485_v42  ;;  %10594 = vmatprep.subr.bf16.mxu1 %v11502_v39  ;;  %v15580_v42 = vpop.permute.xlu1 %4463  ;;  %v15582_v39 = vpop.permute.xlu0 %4461 }
 0x48f   : > { %7932 = vmatpush1.bf16.msra.mxu0 %v11483_v49  ;;  %10595 = vmatpush3.bf16.msra.mxu1 %v11506_v58  ;;  %v11557_v49 = vld [vmem:[%s16477_s4 + $0xce0] ss:$12 sps:$4 sm:$0xff]   ;;  %v15590_v58 = vsel %vm567_vm4, %v15357_v63, %v15459_v8  ;;  %v11560_v8 = vld [vmem:[%s16477_s4 + $0x8a4] ss:$12 sps:$4 sm:$0xff]  }
 0x490   : > { %7933 = vmatprep.subr.bf16.mxu0 %v11490_v51  ;;  %10596 = vmatprep.subr.bf16.mxu1 %v11507_v14  ;;  %v11538_v51 = vld [vmem:[%s16477_s4 + $0x840] ss:$12 sps:$4 sm:$0xff]   ;;  %v11545_v14 = vld [vmem:[%s16477_s4 + $0x85c] ss:$12 sps:$4 sm:$0xff]  }
 0x491   : > { %v11561_v63 = vld [vmem:[%s16477_s4 + $0xc20] ss:$12 sps:$4 sm:$0xff]  }
 0x493   : > { %7934 = vmatpush1.bf16.msra.mxu0 %v11488_v44  ;;  %10597 = vmatpush3.bf16.msra.mxu1 %v11511_v25  ;;  %v15602_v44 = vsel %vm567_vm4, %v15582_v39, %v15580_v42  ;;  %v11562_v25 = vld [vmem:[%s16477_s4 + $0xcf8] ss:$12 sps:$4 sm:$0xff]  }
 0x494   : > { %7935 = vmatprep.subr.bf16.mxu0 %v11495_v36  ;;  %10604 = vmatprep.subr.bf16.mxu1 %v11512_v35  ;;  %v11550_v36 = vld [vmem:[%s16477_s4 + $0x874] ss:$12 sps:$4 sm:$0xff]   ;;  %v11566_v35 = vld [vmem:[%s16477_s4 + $0xc38] ss:$12 sps:$4 sm:$0xff]  }
 0x496   : > { %v10488_v37 = vpop.f32.mrb[68].mxu1  ;;  %8485 = vmatmul.mubr.bf16.vlgmr.msra.gmra.mrb[88].mxu1 %v15470_v1 }
 0x497   : > { %v10489_v15 = vpop.f32.mrb[69].mxu1  ;;  %7936 = vmatpush1.bf16.msra.mxu0 %v11493_v31  ;;  %10605 = vmatpush3.bf16.msra.mxu1 %v11516_v23  ;;  %v11572_v31 = vld [vmem:[%s16477_s4 + $0xd28] ss:$12 sps:$4 sm:$0xff]  }
 0x498   : > { %v10490_v34 = vadd.f32 %v10489_v15, %v10488_v37  ;;  %v10491_v30 = vpop.f32.mrb[70].mxu1  ;;  %7948 = vmatprep.subr.bf16.mxu0 %v11500_v5  ;;  %8525 = vmatprep.mubr.bf16.mxu1 %v15485_v9  ;;  %v11543_v37 = vld [vmem:[%s16477_s4 + $0x858] ss:$12 sps:$4 sm:$0xff]   ;;  %v11567_v15 = vld [vmem:[%s16477_s4 + $0xd10] ss:$12 sps:$4 sm:$0xff]  }
 0x499   : > { %v10492_v62 = vpop.f32.mrb[71].mxu1  ;;  %10606 = vmatprep.subr.bf16.mxu1 %v11517_v45  ;;  %v11553_v23 = vld [vmem:[%s16477_s4 + $0x888] ss:$12 sps:$4 sm:$0xff]   ;;  %v11577_v5 = vld [vmem:[%s16477_s4 + $0xd40] ss:$12 sps:$4 sm:$0xff]  }
 0x49a   : > { %v15462_v17 = vadd.f32 %v10490_v34, %v15323_v26  ;;  %v10493_v50 = vadd.f32 %v10492_v62, %v10491_v30  ;;  %v11498_v26 = vld [vmem:[%s16477_s4 + $0x780] ss:$12 sps:$4 sm:$0xff]   ;;  %7938 = vmatmul.mubr.bf16.vlgmr.msra.gmra.mrb[32].mxu0 %v15198_v10  ;;  %v11527_v10 = vld [vmem:[%s16477_s4 + $0xb90] ss:$12 sps:$4 sm:$0xff]  }
 0x49b   : > { %7949 = vmatpush1.bf16.msra.mxu0 %v11498_v26  ;;  %7980 = vmatprep.mubr.bf16.mxu0 %v15350_v46  ;;  %v11531_v46 = vld [vmem:[%s16477_s4 + $0xad0] ss:$12 sps:$4 sm:$0xff]   ;;  %v11555_v30 = vld [vmem:[%s16477_s4 + $0x88c] ss:$12 sps:$4 sm:$0xff]  }
 0x49c   : > { %v15476_v22 = vadd.f32 %v10493_v50, %v15331_v11  ;;  %v11522_v11 = vld [vmem:[%s16477_s4 + $0xb78] ss:$12 sps:$4 sm:$0xff]   ;;  %7950 = vmatprep.subr.bf16.mxu0 %v11505_v38  ;;  %10607 = vmatpush3.bf16.msra.mxu1 %v11521_v33  ;;  %v11548_v34 = vld [vmem:[%s16477_s4 + $0x870] ss:$12 sps:$4 sm:$0xff]   ;;  %v11576_v50 = vld [vmem:[%s16477_s4 + $0xc68] ss:$12 sps:$4 sm:$0xff]  }
 0x49d   : > { %10608 = vmatprep.subr.bf16.mxu1 %v11522_v11  ;;  %v11571_v62 = vld [vmem:[%s16477_s4 + $0xc50] ss:$12 sps:$4 sm:$0xff]   ;;  %v11558_v45 = vld [vmem:[%s16477_s4 + $0x8a0] ss:$12 sps:$4 sm:$0xff]   ;;  %v11582_v33 = vld [vmem:[%s16477_s4 + $0xd58] ss:$12 sps:$4 sm:$0xff]  }
 0x49e   : > { %v11565_v26 = vld [vmem:[%s16477_s4 + $0x8bc] ss:$12 sps:$4 sm:$0xff]   ;;  %v11581_v38 = vld [vmem:[%s16477_s4 + $0xc80] ss:$12 sps:$4 sm:$0xff]   ;;  %v11563_v11 = vld [vmem:[%s16477_s4 + $0x8b8] ss:$12 sps:$4 sm:$0xff]  }
 0x49f   : > { %7951 = vmatpush1.bf16.msra.mxu0 %v11503_v57  ;;  %v11570_v57 = vld [vmem:[%s16477_s4 + $0x8d4] ss:$12 sps:$4 sm:$0xff]  }
 0x4a0   : > { %7952 = vmatprep.subr.bf16.mxu0 %v11510_v55  ;;  %10609 = vmatpush3.bf16.msra.mxu1 %v11526_v54  ;;  %v11586_v55 = vld [vmem:[%s16477_s4 + $0xc98] ss:$12 sps:$4 sm:$0xff]  }
 0x4a1   : > { %10610 = vmatprep.subr.bf16.mxu1 %v11527_v10  ;;  %v11587_v10 = vld [vmem:[%s16477_s4 + $0xd70] ss:$12 sps:$4 sm:$0xff]  }
 0x4a3   : > { %7953 = vmatpush1.bf16.msra.mxu0 %v11508_v43 }
 0x4a4   : > { %7954 = vmatprep.subr.bf16.mxu0 %v11515_v40  ;;  %10611 = vmatpush3.bf16.msra.mxu1 %v11531_v46  ;;  %v11568_v40 = vld [vmem:[%s16477_s4 + $0x8d0] ss:$12 sps:$4 sm:$0xff]  }
 0x4a5   : > { %10612 = vmatprep.subr.bf16.mxu1 %v11532_v24 }
 0x4a7   : > { %7955 = vmatpush1.bf16.msra.mxu0 %v11513_v7  ;;  %v11575_v7 = vld [vmem:[%s16477_s4 + $0x8ec] ss:$12 sps:$4 sm:$0xff]  }
 0x4a8   : > { %7956 = vmatprep.subr.bf16.mxu0 %v11520_v53  ;;  %10613 = vmatpush3.bf16.msra.mxu1 %v11536_v19  ;;  %v11591_v19 = vld [vmem:[%s16477_s4 + $0xcb0] ss:$12 sps:$4 sm:$0xff]  }
 0x4a9   : > { %10614 = vmatprep.subr.bf16.mxu1 %v11537_v2 }
 0x4ab   : > { %7957 = vmatpush1.bf16.msra.mxu0 %v11518_v13 }
 0x4ac   : > { %7958 = vmatprep.subr.bf16.mxu0 %v11525_v18  ;;  %10615 = vmatpush3.bf16.msra.mxu1 %v11541_v52  ;;  %v11592_v18 = vld [vmem:[%s16477_s4 + $0xe48] ss:$12 sps:$4 sm:$0xff]  }
 0x4ad   : > { %10616 = vmatprep.subr.bf16.mxu1 %v11542_v28  ;;  %v11573_v52 = vld [vmem:[%s16477_s4 + $0x8e8] ss:$12 sps:$4 sm:$0xff]  }
 0x4af   : > { %7959 = vmatpush1.bf16.msra.mxu0 %v11523_v56  ;;  %v11596_v56 = vld [vmem:[%s16477_s4 + $0xd88] ss:$12 sps:$4 sm:$0xff]  }
 0x4b0   : > { %7960 = vmatprep.subr.bf16.mxu0 %v11530_v41  ;;  %10617 = vmatpush3.bf16.msra.mxu1 %v11546_v48  ;;  %v15698_v41 = vpop.permute.xlu1 %4467  ;;  %v15700_v48 = vpop.permute.xlu0 %4465 }
 0x4b1   : > { %10618 = vmatprep.subr.bf16.mxu1 %v11547_v4  ;;  %v15708_v4 = vsel %vm567_vm4, %v15457_v3, %v15582_v39  ;;  %v11601_v3 = vld [vmem:[%s16477_s4 + $0xda0] ss:$12 sps:$4 sm:$0xff]  }
 0x4b2   : > { %v11595_v39 = vld [vmem:[%s16477_s4 + $0x94c] ss:$12 sps:$4 sm:$0xff]  }
 0x4b3   : > { %7961 = vmatpush1.bf16.msra.mxu0 %v11528_v12  ;;  %v11578_v12 = vld [vmem:[%s16477_s4 + $0x900] ss:$12 sps:$4 sm:$0xff]  }
 0x4b4   : > { %7962 = vmatprep.subr.bf16.mxu0 %v11535_v61  ;;  %10619 = vmatpush3.bf16.msra.mxu1 %v11551_v21  ;;  %v11585_v61 = vld [vmem:[%s16477_s4 + $0x91c] ss:$12 sps:$4 sm:$0xff]   ;;  %v15720_v21 = vsel %vm567_vm4, %v15700_v48, %v15698_v41 }
 0x4b5   : > { %10626 = vmatprep.subr.bf16.mxu1 %v11552_v6  ;;  %v11602_v6 = vld [vmem:[%s16477_s4 + $0xe78] ss:$12 sps:$4 sm:$0xff]  }
 0x4b7   : > { %7963 = vmatpush1.bf16.msra.mxu0 %v11533_v20  ;;  %8526 = vmatmul.mubr.bf16.vlgmr.msra.gmra.mrb[92].mxu1 %v15590_v58  ;;  %v11583_v20 = vld [vmem:[%s16477_s4 + $0x918] ss:$12 sps:$4 sm:$0xff]  }
 0x4b8   : > { %7964 = vmatprep.subr.bf16.mxu0 %v11540_v16  ;;  %10627 = vmatpush3.bf16.msra.mxu1 %v11556_v47  ;;  %v11590_v16 = vld [vmem:[%s16477_s4 + $0x934] ss:$12 sps:$4 sm:$0xff]   ;;  %v11606_v47 = vld [vmem:[%s16477_s4 + $0xdb8] ss:$12 sps:$4 sm:$0xff]  }
 0x4b9   : > { %8566 = vmatprep.mubr.bf16.mxu1 %v15602_v44  ;;  %10628 = vmatprep.subr.bf16.mxu1 %v11557_v49  ;;  %v11611_v49 = vld [vmem:[%s16477_s4 + $0xdd0] ss:$12 sps:$4 sm:$0xff]  }
 0x4bb   : > { %7965 = vmatpush1.bf16.msra.mxu0 %v11538_v51  ;;  %v11612_v51 = vld [vmem:[%s16477_s4 + $0xea8] ss:$12 sps:$4 sm:$0xff]  }
 0x4bc   : > { %7966 = vmatprep.subr.bf16.mxu0 %v11545_v14  ;;  %10629 = vmatpush3.bf16.msra.mxu1 %v11561_v63  ;;  %v11593_v14 = vld [vmem:[%s16477_s4 + $0x948] ss:$12 sps:$4 sm:$0xff]   ;;  %v11600_v63 = vld [vmem:[%s16477_s4 + $0x964] ss:$12 sps:$4 sm:$0xff]  }
 0x4bd   : > { %10630 = vmatprep.subr.bf16.mxu1 %v11562_v25  ;;  %v11616_v25 = vld [vmem:[%s16477_s4 + $0xde8] ss:$12 sps:$4 sm:$0xff]  }
 0x4bf   : > { %7967 = vmatpush1.bf16.msra.mxu0 %v11543_v37  ;;  %v11617_v37 = vld [vmem:[%s16477_s4 + $0xec0] ss:$12 sps:$4 sm:$0xff]  }
 0x4c0   : > { %7968 = vmatprep.subr.bf16.mxu0 %v11550_v36  ;;  %10631 = vmatpush3.bf16.msra.mxu1 %v11566_v35  ;;  %v11598_v36 = vld [vmem:[%s16477_s4 + $0x960] ss:$12 sps:$4 sm:$0xff]   ;;  %v11605_v35 = vld [vmem:[%s16477_s4 + $0x97c] ss:$12 sps:$4 sm:$0xff]  }
 0x4c1   : > { %10632 = vmatprep.subr.bf16.mxu1 %v11567_v15  ;;  %v11621_v15 = vld [vmem:[%s16477_s4 + $0xe00] ss:$12 sps:$4 sm:$0xff]  }
 0x4c3   : > { %7969 = vmatpush1.bf16.msra.mxu0 %v11548_v34  ;;  %v11622_v34 = vld [vmem:[%s16477_s4 + $0xed8] ss:$12 sps:$4 sm:$0xff]  }
 0x4c4   : > { %7970 = vmatprep.subr.bf16.mxu0 %v11555_v30  ;;  %10633 = vmatpush3.bf16.msra.mxu1 %v11571_v62  ;;  %v11603_v30 = vld [vmem:[%s16477_s4 + $0x978] ss:$12 sps:$4 sm:$0xff]   ;;  %v11610_v62 = vld [vmem:[%s16477_s4 + $0x994] ss:$12 sps:$4 sm:$0xff]  }
 0x4c5   : > { %10634 = vmatprep.subr.bf16.mxu1 %v11572_v31  ;;  %v11626_v31 = vld [vmem:[%s16477_s4 + $0xe18] ss:$12 sps:$4 sm:$0xff]  }
 0x4c7   : > { %7971 = vmatpush1.bf16.msra.mxu0 %v11553_v23 }
 0x4c8   : > { %7972 = vmatprep.subr.bf16.mxu0 %v11560_v8  ;;  %10635 = vmatpush3.bf16.msra.mxu1 %v11576_v50  ;;  %v11627_v8 = vld [vmem:[%s16477_s4 + $0xef0] ss:$12 sps:$4 sm:$0xff]  }
 0x4c9   : > { %10636 = vmatprep.subr.bf16.mxu1 %v11577_v5  ;;  %v11608_v5 = vld [vmem:[%s16477_s4 + $0x990] ss:$12 sps:$4 sm:$0xff]  }
 0x4cb   : > { %7973 = vmatpush1.bf16.msra.mxu0 %v11558_v45 }
 0x4cc   : > { %7974 = vmatprep.subr.bf16.mxu0 %v11565_v26  ;;  %10637 = vmatpush3.bf16.msra.mxu1 %v11581_v38  ;;  %v11615_v38 = vld [vmem:[%s16477_s4 + $0x9ac] ss:$12 sps:$4 sm:$0xff]  }
 0x4cd   : > { %10638 = vmatprep.subr.bf16.mxu1 %v11582_v33 }
 0x4ce   : > { %v10510_v54 = vpop.f32.mrb[72].mxu1 }
 0x4cf   : > { %v10511_v43 = vpop.f32.mrb[73].mxu1  ;;  %7975 = vmatpush1.bf16.msra.mxu0 %v11563_v11  ;;  %v11631_v11 = vld [vmem:[%s16477_s4 + $0xe30] ss:$12 sps:$4 sm:$0xff]  }
 0x4d0   : > { %v10512_v46 = vadd.f32 %v10511_v43, %v10510_v54  ;;  %v10513_v24 = vpop.f32.mrb[74].mxu1  ;;  %7976 = vmatprep.subr.bf16.mxu0 %v11570_v57  ;;  %10639 = vmatpush3.bf16.msra.mxu1 %v11586_v55  ;;  %v11613_v54 = vld [vmem:[%s16477_s4 + $0x9a8] ss:$12 sps:$4 sm:$0xff]   ;;  %v11620_v43 = vld [vmem:[%s16477_s4 + $0x9c4] ss:$12 sps:$4 sm:$0xff]  }
 0x4d1   : > { %v10514_v53 = vpop.f32.mrb[75].mxu1  ;;  %10640 = vmatprep.subr.bf16.mxu1 %v11587_v10 }
 0x4d2   : > { %v15681_v2 = vadd.f32 %v10512_v46, %v15462_v17  ;;  %v10515_v13 = vadd.f32 %v10514_v53, %v10513_v24  ;;  %v11580_v17 = vld [vmem:[%s16477_s4 + $0x904] ss:$12 sps:$4 sm:$0xff]   ;;  %v11618_v46 = vld [vmem:[%s16477_s4 + $0x9c0] ss:$12 sps:$4 sm:$0xff]   ;;  %v11625_v24 = vld [vmem:[%s16477_s4 + $0x9dc] ss:$12 sps:$4 sm:$0xff]  }
 0x4d3   : > { %7977 = vmatpush1.bf16.msra.mxu0 %v11568_v40  ;;  %v15811_v40 = vsel %vm567_vm4, %v15580_v42, %v15700_v48  ;;  %v11623_v42 = vld [vmem:[%s16477_s4 + $0x9d8] ss:$12 sps:$4 sm:$0xff]   ;;  %v11628_v53 = vld [vmem:[%s16477_s4 + $0x9f0] ss:$12 sps:$4 sm:$0xff]  }
 0x4d4   : > { %v15690_v28 = vadd.f32 %v10515_v13, %v15476_v22  ;;  %7978 = vmatprep.subr.bf16.mxu0 %v11575_v7  ;;  %10641 = vmatpush3.bf16.msra.mxu1 %v11591_v19  ;;  %v11597_v22 = vld [vmem:[%s16477_s4 + $0xe60] ss:$12 sps:$4 sm:$0xff]   ;;  %v11637_v13 = vld [vmem:[%s16477_s4 + $0xa24] ss:$12 sps:$4 sm:$0xff]  }
 0x4d5   : > { %10648 = vmatprep.subr.bf16.mxu1 %v11592_v18  ;;  %v11630_v7 = vld [vmem:[%s16477_s4 + $0x9f4] ss:$12 sps:$4 sm:$0xff]   ;;  %v11634_v19 = vld [vmem:[%s16477_s4 + $0xa0c] ss:$12 sps:$4 sm:$0xff]   ;;  %v11641_v48 = vld [vmem:[%s16477_s4 + $0xa50] ss:$12 sps:$4 sm:$0xff]  }
 0x4d6   : > { %v11635_v18 = vld [vmem:[%s16477_s4 + $0xa20] ss:$12 sps:$4 sm:$0xff]  }
 0x4d7   : > { %7979 = vmatpush1.bf16.msra.mxu0 %v11573_v52  ;;  %8567 = vmatmul.mubr.bf16.vlgmr.msra.gmra.mrb[96].mxu1 %v15708_v4  ;;  %v11640_v52 = vld [vmem:[%s16477_s4 + $0xa3c] ss:$12 sps:$4 sm:$0xff]  }
 0x4d8   : > { %7991 = vmatprep.subr.bf16.mxu0 %v11580_v17  ;;  %10649 = vmatpush3.bf16.msra.mxu1 %v11596_v56  ;;  %v11643_v17 = vld [vmem:[%s16477_s4 + $0xa54] ss:$12 sps:$4 sm:$0xff]  }
 0x4d9   : > { %8607 = vmatprep.mubr.bf16.mxu1 %v15720_v21  ;;  %10650 = vmatprep.subr.bf16.mxu1 %v11597_v22 }
 0x4da   : > { %7981 = vmatmul.mubr.bf16.vlgmr.msra.gmra.mrb[32].mxu0 %v15346_v27  ;;  %v11607_v27 = vld [vmem:[%s16477_s4 + $0xe90] ss:$12 sps:$4 sm:$0xff]  }
 0x4db   : > { %7992 = vmatpush1.bf16.msra.mxu0 %v11578_v12  ;;  %8023 = vmatprep.mubr.bf16.mxu0 %v15373_v59  ;;  %v11588_v59 = vld [vmem:[%s16477_s4 + $0x930] ss:$12 sps:$4 sm:$0xff]   ;;  %v11646_v12 = vld [vmem:[%s16477_s4 + $0xa6c] ss:$12 sps:$4 sm:$0xff]  }
 0x4dc   : > { %7993 = vmatprep.subr.bf16.mxu0 %v11585_v61  ;;  %10651 = vmatpush3.bf16.msra.mxu1 %v11601_v3 }
 0x4dd   : > { %10652 = vmatprep.subr.bf16.mxu1 %v11602_v6 }
 0x4df   : > { %7994 = vmatpush1.bf16.msra.mxu0 %v11583_v20 }
 0x4e0   : > { %7995 = vmatprep.subr.bf16.mxu0 %v11590_v16  ;;  %10653 = vmatpush3.bf16.msra.mxu1 %v11606_v47  ;;  %v11644_v47 = vld [vmem:[%s16477_s4 + $0xa68] ss:$12 sps:$4 sm:$0xff]  }
 0x4e1   : > { %10654 = vmatprep.subr.bf16.mxu1 %v11607_v27  ;;  %v11649_v27 = vld [vmem:[%s16477_s4 + $0xa84] ss:$12 sps:$4 sm:$0xff]  }
 0x4e3   : > { %7996 = vmatpush1.bf16.msra.mxu0 %v11588_v59 }
 0x4e4   : > { %7997 = vmatprep.subr.bf16.mxu0 %v11595_v39  ;;  %10655 = vmatpush3.bf16.msra.mxu1 %v11611_v49  ;;  %v11647_v39 = vld [vmem:[%s16477_s4 + $0xa80] ss:$12 sps:$4 sm:$0xff]   ;;  %v11652_v49 = vld [vmem:[%s16477_s4 + $0xa9c] ss:$12 sps:$4 sm:$0xff]  }
 0x4e5   : > { %10656 = vmatprep.subr.bf16.mxu1 %v11612_v51  ;;  %v11650_v51 = vld [vmem:[%s16477_s4 + $0xa98] ss:$12 sps:$4 sm:$0xff]  }
 0x4e7   : > { %7998 = vmatpush1.bf16.msra.mxu0 %v11593_v14  ;;  %v11655_v14 = vld [vmem:[%s16477_s4 + $0xab4] ss:$12 sps:$4 sm:$0xff]  }
 0x4e8   : > { %7999 = vmatprep.subr.bf16.mxu0 %v11600_v63  ;;  %10657 = vmatpush3.bf16.msra.mxu1 %v11616_v25  ;;  %v11653_v63 = vld [vmem:[%s16477_s4 + $0xab0] ss:$12 sps:$4 sm:$0xff]  }
 0x4e9   : > { %10658 = vmatprep.subr.bf16.mxu1 %v11617_v37  ;;  %v11661_v25 = vld [vmem:[%s16477_s4 + $0xae4] ss:$12 sps:$4 sm:$0xff]   ;;  %v11659_v37 = vld [vmem:[%s16477_s4 + $0xae0] ss:$12 sps:$4 sm:$0xff]  }
 0x4eb   : > { %8000 = vmatpush1.bf16.msra.mxu0 %v11598_v36  ;;  %v11664_v36 = vld [vmem:[%s16477_s4 + $0xafc] ss:$12 sps:$4 sm:$0xff]  }
 0x4ec   : > { %8001 = vmatprep.subr.bf16.mxu0 %v11605_v35  ;;  %10659 = vmatpush3.bf16.msra.mxu1 %v11621_v15  ;;  %v11662_v35 = vld [vmem:[%s16477_s4 + $0xaf8] ss:$12 sps:$4 sm:$0xff]   ;;  %v11667_v15 = vld [vmem:[%s16477_s4 + $0xb14] ss:$12 sps:$4 sm:$0xff]  }
 0x4ed   : > { %10660 = vmatprep.subr.bf16.mxu1 %v11622_v34  ;;  %v11665_v34 = vld [vmem:[%s16477_s4 + $0xb10] ss:$12 sps:$4 sm:$0xff]  }
 0x4ee   : > { %v10532_v23 = vpop.f32.mrb[76].mxu1 }
 0x4ef   : > { %v10533_v50 = vpop.f32.mrb[77].mxu1  ;;  %8002 = vmatpush1.bf16.msra.mxu0 %v11603_v30  ;;  %v11670_v30 = vld [vmem:[%s16477_s4 + $0xb2c] ss:$12 sps:$4 sm:$0xff]  }
 0x4f0   : > { %v10534_v45 = vadd.f32 %v10533_v50, %v10532_v23  ;;  %v10535_v26 = vpop.f32.mrb[78].mxu1  ;;  %8003 = vmatprep.subr.bf16.mxu0 %v11610_v62  ;;  %10661 = vmatpush3.bf16.msra.mxu1 %v11626_v31  ;;  %v11668_v62 = vld [vmem:[%s16477_s4 + $0xb28] ss:$12 sps:$4 sm:$0xff]   ;;  %v11673_v31 = vld [vmem:[%s16477_s4 + $0xb44] ss:$12 sps:$4 sm:$0xff]  }
 0x4f1   : > { %v10536_v33 = vpop.f32.mrb[79].mxu1  ;;  %10662 = vmatprep.subr.bf16.mxu1 %v11627_v8  ;;  %v11671_v23 = vld [vmem:[%s16477_s4 + $0xb40] ss:$12 sps:$4 sm:$0xff]   ;;  %v11676_v8 = vld [vmem:[%s16477_s4 + $0xb5c] ss:$12 sps:$4 sm:$0xff]  }
 0x4f2   : > { %v8364_v57 = vadd.f32 %v10534_v45, %v15681_v2  ;;  %v10537_v55 = vadd.f32 %v10536_v33, %v10535_v26  ;;  %v11632_v2 = vld [vmem:[%s16477_s4 + $0xa08] ss:$12 sps:$4 sm:$0xff]   ;;  %v11674_v50 = vld [vmem:[%s16477_s4 + $0xb58] ss:$12 sps:$4 sm:$0xff]   ;;  %v11677_v45 = vld [vmem:[%s16477_s4 + $0xb70] ss:$12 sps:$4 sm:$0xff]  }
 0x4f3   : > { %8004 = vmatpush1.bf16.msra.mxu0 %v11608_v5  ;;  %v11679_v5 = vld [vmem:[%s16477_s4 + $0xb74] ss:$12 sps:$4 sm:$0xff]   ;;  %v11682_v26 = vld [vmem:[%s16477_s4 + $0xb8c] ss:$12 sps:$4 sm:$0xff]   ;;  %v11685_v33 = vld [vmem:[%s16477_s4 + $0xba4] ss:$12 sps:$4 sm:$0xff]  }
 0x4f4   : > { %v8367_v10 = vadd.f32 %v10537_v55, %v15690_v28  ;;  %8005 = vmatprep.subr.bf16.mxu0 %v11615_v38  ;;  %10663 = vmatpush3.bf16.msra.mxu1 %v11631_v11  ;;  %v11638_v28 = vld [vmem:[%s16477_s4 + $0xa38] ss:$12 sps:$4 sm:$0xff]   ;;  %v11680_v38 = vld [vmem:[%s16477_s4 + $0xb88] ss:$12 sps:$4 sm:$0xff]   ;;  %v11683_v11 = vld [vmem:[%s16477_s4 + $0xba0] ss:$12 sps:$4 sm:$0xff]  }
 0x4f7   : > { %8006 = vmatpush1.bf16.msra.mxu0 %v11613_v54  ;;  %8608 = vmatmul.mubr.bf16.vlgmr.msra.gmra.mrb[100].mxu1 %v15811_v40 }
 0x4f8   : > { %8007 = vmatprep.subr.bf16.mxu0 %v11620_v43  ;;  %8818 = vmatprep.mubr.f32.mxu1 %v16559_v0 }
 0x4fb   : > { %8008 = vmatpush1.bf16.msra.mxu0 %v11618_v46 }
 0x4fc   : > { %8009 = vmatprep.subr.bf16.mxu0 %v11625_v24  ;;  %v11691_v24 = vld [vmem:[%s16477_s4 + $0xbd4] ss:$12 sps:$4 sm:$0xff]  }
 0x4ff   : > { %8010 = vmatpush1.bf16.msra.mxu0 %v11623_v42 }
 0x500   : > { %8011 = vmatprep.subr.bf16.mxu0 %v11630_v7 }
 0x503   : > { %8012 = vmatpush1.bf16.msra.mxu0 %v11628_v53 }
 0x504   : > { %8013 = vmatprep.subr.bf16.mxu0 %v11634_v19  ;;  %v11689_v19 = vld [vmem:[%s16477_s4 + $0xbd0] ss:$12 sps:$4 sm:$0xff]  }
 0x507   : > { %8014 = vmatpush1.bf16.msra.mxu0 %v11632_v2 }
 0x508   : > { %8015 = vmatprep.subr.bf16.mxu0 %v11637_v13  ;;  %v11694_v13 = vld [vmem:[%s16477_s4 + $0xbec] ss:$12 sps:$4 sm:$0xff]  }
 0x50b   : > { %8016 = vmatpush1.bf16.msra.mxu0 %v11635_v18  ;;  %v11692_v18 = vld [vmem:[%s16477_s4 + $0xbe8] ss:$12 sps:$4 sm:$0xff]  }
 0x50c   : > { %8017 = vmatprep.subr.bf16.mxu0 %v11640_v52  ;;  %v11697_v52 = vld [vmem:[%s16477_s4 + $0xc04] ss:$12 sps:$4 sm:$0xff]  }
 0x50f   : > { %8018 = vmatpush1.bf16.msra.mxu0 %v11638_v28  ;;  %v11695_v28 = vld [vmem:[%s16477_s4 + $0xc00] ss:$12 sps:$4 sm:$0xff]  }
 0x510   : > { %v10554_v56 = vpop.f32.mrb[80].mxu1  ;;  %8019 = vmatprep.subr.bf16.mxu0 %v11643_v17  ;;  %v11700_v17 = vld [vmem:[%s16477_s4 + $0xc1c] ss:$12 sps:$4 sm:$0xff]  }
 0x511   : > { %v10555_v22 = vpop.f32.mrb[81].mxu1 }
 0x512   : > { %v10556_v61 = vadd.f32 %v10555_v22, %v10554_v56  ;;  %v10557_v3 = vpop.f32.mrb[82].mxu1  ;;  %v11698_v56 = vld [vmem:[%s16477_s4 + $0xc18] ss:$12 sps:$4 sm:$0xff]   ;;  %v11701_v22 = vld [vmem:[%s16477_s4 + $0xc30] ss:$12 sps:$4 sm:$0xff]  }
 0x513   : > { %v10558_v6 = vpop.f32.mrb[83].mxu1  ;;  %8020 = vmatpush1.bf16.msra.mxu0 %v11641_v48  ;;  %v11703_v48 = vld [vmem:[%s16477_s4 + $0xc34] ss:$12 sps:$4 sm:$0xff]  }
 0x514   : > { %v15857_v20 = vadd.f32 %v10556_v61, %v8364_v57  ;;  %v10559_v16 = vadd.f32 %v10558_v6, %v10557_v3  ;;  %8021 = vmatprep.subr.bf16.mxu0 %v11646_v12  ;;  %v11688_v57 = vld [vmem:[%s16477_s4 + $0xbbc] ss:$12 sps:$4 sm:$0xff]   ;;  %v11709_v12 = vld [vmem:[%s16477_s4 + $0xc64] ss:$12 sps:$4 sm:$0xff]   ;;  %v11707_v61 = vld [vmem:[%s16477_s4 + $0xc60] ss:$12 sps:$4 sm:$0xff]  }
 0x515   : > { %v11712_v3 = vld [vmem:[%s16477_s4 + $0xc7c] ss:$12 sps:$4 sm:$0xff]  }
 0x516   : > { %v15865_v59 = vadd.f32 %v10559_v16, %v8367_v10  ;;  %v11686_v10 = vld [vmem:[%s16477_s4 + $0xbb8] ss:$12 sps:$4 sm:$0xff]  }
 0x517   : > { %8022 = vmatpush1.bf16.msra.mxu0 %v11644_v47  ;;  %v11710_v16 = vld [vmem:[%s16477_s4 + $0xc78] ss:$12 sps:$4 sm:$0xff]  }
 0x518   : > { %8034 = vmatprep.subr.bf16.mxu0 %v11649_v27 }
 0x51a   : > { %8024 = vmatmul.mubr.bf16.vlgmr.msra.gmra.mrb[32].mxu0 %v15470_v1  ;;  %v11658_v1 = vld [vmem:[%s16477_s4 + $0xacc] ss:$12 sps:$4 sm:$0xff]  }
 0x51b   : > { %8035 = vmatpush1.bf16.msra.mxu0 %v11647_v39  ;;  %8066 = vmatprep.mubr.bf16.mxu0 %v15485_v9  ;;  %v11656_v9 = vld [vmem:[%s16477_s4 + $0xac8] ss:$12 sps:$4 sm:$0xff]  }
 0x51c   : > { %8036 = vmatprep.subr.bf16.mxu0 %v11652_v49 }
 0x51f   : > { %8037 = vmatpush1.bf16.msra.mxu0 %v11650_v51 }
 0x520   : > { %8038 = vmatprep.subr.bf16.mxu0 %v11655_v14  ;;  %v11713_v14 = vld [vmem:[%s16477_s4 + $0xc90] ss:$12 sps:$4 sm:$0xff]  }
 0x523   : > { %8039 = vmatpush1.bf16.msra.mxu0 %v11653_v63 }
 0x524   : > { %8040 = vmatprep.subr.bf16.mxu0 %v11658_v1  ;;  %v11718_v1 = vld [vmem:[%s16477_s4 + $0xcac] ss:$12 sps:$4 sm:$0xff]  }
 0x527   : > { %8041 = vmatpush1.bf16.msra.mxu0 %v11656_v9  ;;  %v11716_v9 = vld [vmem:[%s16477_s4 + $0xca8] ss:$12 sps:$4 sm:$0xff]  }
 0x528   : > { %8042 = vmatprep.subr.bf16.mxu0 %v11661_v25  ;;  %v11721_v25 = vld [vmem:[%s16477_s4 + $0xcc4] ss:$12 sps:$4 sm:$0xff]  }
 0x52b   : > { %8043 = vmatpush1.bf16.msra.mxu0 %v11659_v37  ;;  %v11719_v37 = vld [vmem:[%s16477_s4 + $0xcc0] ss:$12 sps:$4 sm:$0xff]  }
 0x52c   : > { %8044 = vmatprep.subr.bf16.mxu0 %v11664_v36  ;;  %v11724_v36 = vld [vmem:[%s16477_s4 + $0xcdc] ss:$12 sps:$4 sm:$0xff]  }
 0x52f   : > { %8045 = vmatpush1.bf16.msra.mxu0 %v11662_v35  ;;  %v11722_v35 = vld [vmem:[%s16477_s4 + $0xcd8] ss:$12 sps:$4 sm:$0xff]  }
 0x530   : > { %8046 = vmatprep.subr.bf16.mxu0 %v11667_v15  ;;  %v11727_v15 = vld [vmem:[%s16477_s4 + $0xcf4] ss:$12 sps:$4 sm:$0xff]  }
 0x533   : > { %8047 = vmatpush1.bf16.msra.mxu0 %v11665_v34  ;;  %v11725_v34 = vld [vmem:[%s16477_s4 + $0xcf0] ss:$12 sps:$4 sm:$0xff]  }
 0x534   : > { %8048 = vmatprep.subr.bf16.mxu0 %v11670_v30  ;;  %v11730_v30 = vld [vmem:[%s16477_s4 + $0xd0c] ss:$12 sps:$4 sm:$0xff]  }
 0x537   : > { %8049 = vmatpush1.bf16.msra.mxu0 %v11668_v62  ;;  %v11728_v62 = vld [vmem:[%s16477_s4 + $0xd08] ss:$12 sps:$4 sm:$0xff]  }
 0x538   : > { %8050 = vmatprep.subr.bf16.mxu0 %v11673_v31  ;;  %v11733_v31 = vld [vmem:[%s16477_s4 + $0xd24] ss:$12 sps:$4 sm:$0xff]  }
 0x53b   : > { %8051 = vmatpush1.bf16.msra.mxu0 %v11671_v23  ;;  %v11731_v23 = vld [vmem:[%s16477_s4 + $0xd20] ss:$12 sps:$4 sm:$0xff]  }
 0x53c   : > { %8052 = vmatprep.subr.bf16.mxu0 %v11676_v8  ;;  %v11736_v8 = vld [vmem:[%s16477_s4 + $0xd3c] ss:$12 sps:$4 sm:$0xff]  }
 0x53f   : > { %8053 = vmatpush1.bf16.msra.mxu0 %v11674_v50 }
 0x540   : > { %8054 = vmatprep.subr.bf16.mxu0 %v11679_v5  ;;  %v11734_v5 = vld [vmem:[%s16477_s4 + $0xd38] ss:$12 sps:$4 sm:$0xff]  }
 0x543   : > { %8055 = vmatpush1.bf16.msra.mxu0 %v11677_v45 }
 0x544   : > { %8056 = vmatprep.subr.bf16.mxu0 %v11682_v26  ;;  %v11739_v26 = vld [vmem:[%s16477_s4 + $0xd54] ss:$12 sps:$4 sm:$0xff]  }
 0x547   : > { %8057 = vmatpush1.bf16.msra.mxu0 %v11680_v38 }
 0x548   : > { %8058 = vmatprep.subr.bf16.mxu0 %v11685_v33 }
 0x549   : > { %v10576_v55 = vpop.f32.mrb[84].mxu1 }
 0x54a   : > { %v10577_v54 = vpop.f32.mrb[85].mxu1 }
 0x54b   : > { %8059 = vmatpush1.bf16.msra.mxu0 %v11683_v11  ;;  %v10578_v43 = vadd.f32 %v10577_v54, %v10576_v55  ;;  %v10579_v46 = vpop.f32.mrb[86].mxu1  ;;  %v11737_v54 = vld [vmem:[%s16477_s4 + $0xd50] ss:$12 sps:$4 sm:$0xff]  }
 0x54c   : > { %8060 = vmatprep.subr.bf16.mxu0 %v11688_v57  ;;  %v10580_v42 = vpop.f32.mrb[87].mxu1 }
 0x54d   : > { %v8446_v7 = vadd.f32 %v10578_v43, %v15857_v20  ;;  %v10581_v53 = vadd.f32 %v10580_v42, %v10579_v46  ;;  %v11740_v46 = vld [vmem:[%s16477_s4 + $0xd68] ss:$12 sps:$4 sm:$0xff]   ;;  %v11743_v42 = vld [vmem:[%s16477_s4 + $0xd80] ss:$12 sps:$4 sm:$0xff]  }
 0x54f   : > { %8061 = vmatpush1.bf16.msra.mxu0 %v11686_v10  ;;  %v8449_v2 = vadd.f32 %v10581_v53, %v15865_v59  ;;  %v11715_v59 = vld [vmem:[%s16477_s4 + $0xc94] ss:$12 sps:$4 sm:$0xff]   ;;  %v11742_v10 = vld [vmem:[%s16477_s4 + $0xd6c] ss:$12 sps:$4 sm:$0xff]  }
 0x550   : > { %8062 = vmatprep.subr.bf16.mxu0 %v11691_v24  ;;  %v11745_v24 = vld [vmem:[%s16477_s4 + $0xd84] ss:$12 sps:$4 sm:$0xff]  }
 0x551   : > { %v11746_v53 = vld [vmem:[%s16477_s4 + $0xd98] ss:$12 sps:$4 sm:$0xff]  }
 0x553   : > { %8063 = vmatpush1.bf16.msra.mxu0 %v11689_v19  ;;  %v11751_v19 = vld [vmem:[%s16477_s4 + $0xdb4] ss:$12 sps:$4 sm:$0xff]  }
 0x554   : > { %8064 = vmatprep.subr.bf16.mxu0 %v11694_v13  ;;  %v11757_v13 = vld [vmem:[%s16477_s4 + $0xde4] ss:$12 sps:$4 sm:$0xff]  }
 0x557   : > { %8065 = vmatpush1.bf16.msra.mxu0 %v11692_v18  ;;  %v11755_v18 = vld [vmem:[%s16477_s4 + $0xde0] ss:$12 sps:$4 sm:$0xff]  }
 0x558   : > { %8077 = vmatprep.subr.bf16.mxu0 %v11697_v52  ;;  %v11760_v52 = vld [vmem:[%s16477_s4 + $0xdfc] ss:$12 sps:$4 sm:$0xff]  }
 0x55a   : > { %8067 = vmatmul.mubr.bf16.vlgmr.msra.gmra.mrb[32].mxu0 %v15590_v58  ;;  %v11706_v58 = vld [vmem:[%s16477_s4 + $0xc4c] ss:$12 sps:$4 sm:$0xff]  }
 0x55b   : > { %8078 = vmatpush1.bf16.msra.mxu0 %v11695_v28  ;;  %8109 = vmatprep.mubr.bf16.mxu0 %v15602_v44  ;;  %v11704_v44 = vld [vmem:[%s16477_s4 + $0xc48] ss:$12 sps:$4 sm:$0xff]  }
 0x55c   : > { %8079 = vmatprep.subr.bf16.mxu0 %v11700_v17  ;;  %v11758_v17 = vld [vmem:[%s16477_s4 + $0xdf8] ss:$12 sps:$4 sm:$0xff]  }
 0x55f   : > { %8080 = vmatpush1.bf16.msra.mxu0 %v11698_v56 }
 0x560   : > { %8081 = vmatprep.subr.bf16.mxu0 %v11703_v48  ;;  %v11763_v48 = vld [vmem:[%s16477_s4 + $0xe14] ss:$12 sps:$4 sm:$0xff]  }
 0x563   : > { %8082 = vmatpush1.bf16.msra.mxu0 %v11701_v22 }
 0x564   : > { %8083 = vmatprep.subr.bf16.mxu0 %v11706_v58 }
 0x567   : > { %8084 = vmatpush1.bf16.msra.mxu0 %v11704_v44 }
 0x568   : > { %8085 = vmatprep.subr.bf16.mxu0 %v11709_v12 }
 0x569   : > { %v10598_v6 = vpop.f32.mrb[88].mxu1 }
 0x56a   : > { %v10599_v20 = vpop.f32.mrb[89].mxu1 }
 0x56b   : > { %8086 = vmatpush1.bf16.msra.mxu0 %v11707_v61  ;;  %v10600_v47 = vadd.f32 %v10599_v20, %v10598_v6  ;;  %v10601_v27 = vpop.f32.mrb[90].mxu1  ;;  %v11766_v6 = vld [vmem:[%s16477_s4 + $0xe2c] ss:$12 sps:$4 sm:$0xff]  }
 0x56c   : > { %8087 = vmatprep.subr.bf16.mxu0 %v11712_v3  ;;  %v10602_v39 = vpop.f32.mrb[91].mxu1  ;;  %v11761_v3 = vld [vmem:[%s16477_s4 + $0xe10] ss:$12 sps:$4 sm:$0xff]  }
 0x56d   : > { %v8487_v49 = vadd.f32 %v10600_v47, %v8446_v7  ;;  %v10603_v51 = vadd.f32 %v10602_v39, %v10601_v27  ;;  %v11748_v7 = vld [vmem:[%s16477_s4 + $0xd9c] ss:$12 sps:$4 sm:$0xff]   ;;  %v11769_v47 = vld [vmem:[%s16477_s4 + $0xe44] ss:$12 sps:$4 sm:$0xff]   ;;  %v11767_v27 = vld [vmem:[%s16477_s4 + $0xe40] ss:$12 sps:$4 sm:$0xff]  }
 0x56e   : > { %v11770_v39 = vld [vmem:[%s16477_s4 + $0xe58] ss:$12 sps:$4 sm:$0xff]  }
 0x56f   : > { %8088 = vmatpush1.bf16.msra.mxu0 %v11710_v16  ;;  %v8490_v63 = vadd.f32 %v10603_v51, %v8449_v2  ;;  %v11749_v2 = vld [vmem:[%s16477_s4 + $0xdb0] ss:$12 sps:$4 sm:$0xff]   ;;  %v11764_v16 = vld [vmem:[%s16477_s4 + $0xe28] ss:$12 sps:$4 sm:$0xff]  }
 0x570   : > { %8089 = vmatprep.subr.bf16.mxu0 %v11715_v59  ;;  %v11772_v59 = vld [vmem:[%s16477_s4 + $0xe5c] ss:$12 sps:$4 sm:$0xff]  }
 0x571   : > { %v11773_v51 = vld [vmem:[%s16477_s4 + $0xe70] ss:$12 sps:$4 sm:$0xff]  }
 0x573   : > { %8090 = vmatpush1.bf16.msra.mxu0 %v11713_v14  ;;  %v11778_v14 = vld [vmem:[%s16477_s4 + $0xe8c] ss:$12 sps:$4 sm:$0xff]  }
 0x574   : > { %8091 = vmatprep.subr.bf16.mxu0 %v11718_v1  ;;  %v11781_v1 = vld [vmem:[%s16477_s4 + $0xea4] ss:$12 sps:$4 sm:$0xff]  }
 0x577   : > { %8092 = vmatpush1.bf16.msra.mxu0 %v11716_v9  ;;  %v11779_v9 = vld [vmem:[%s16477_s4 + $0xea0] ss:$12 sps:$4 sm:$0xff]  }
 0x578   : > { %8093 = vmatprep.subr.bf16.mxu0 %v11721_v25  ;;  %v11784_v25 = vld [vmem:[%s16477_s4 + $0xebc] ss:$12 sps:$4 sm:$0xff]  }
 0x57b   : > { %8094 = vmatpush1.bf16.msra.mxu0 %v11719_v37 }
 0x57c   : > { %8095 = vmatprep.subr.bf16.mxu0 %v11724_v36  ;;  %v11782_v36 = vld [vmem:[%s16477_s4 + $0xeb8] ss:$12 sps:$4 sm:$0xff]  }
 0x57f   : > { %8096 = vmatpush1.bf16.msra.mxu0 %v11722_v35 }
 0x580   : > { %8097 = vmatprep.subr.bf16.mxu0 %v11727_v15  ;;  %v11787_v15 = vld [vmem:[%s16477_s4 + $0xed4] ss:$12 sps:$4 sm:$0xff]  }
 0x583   : > { %8098 = vmatpush1.bf16.msra.mxu0 %v11725_v34 }
 0x584   : > { %8099 = vmatprep.subr.bf16.mxu0 %v11730_v30 }
 0x587   : > { %8100 = vmatpush1.bf16.msra.mxu0 %v11728_v62 }
 0x588   : > { %8101 = vmatprep.subr.bf16.mxu0 %v11733_v31 }
 0x58a   : > { %v10620_v50 = vpop.f32.mrb[92].mxu1 }
 0x58b   : > { %8102 = vmatpush1.bf16.msra.mxu0 %v11731_v23  ;;  %v10621_v45 = vpop.f32.mrb[93].mxu1 }
 0x58c   : > { %8103 = vmatprep.subr.bf16.mxu0 %v11736_v8  ;;  %v10622_v38 = vadd.f32 %v10621_v45, %v10620_v50  ;;  %v10623_v33 = vpop.f32.mrb[94].mxu1  ;;  %v11785_v8 = vld [vmem:[%s16477_s4 + $0xed0] ss:$12 sps:$4 sm:$0xff]   ;;  %v11790_v50 = vld [vmem:[%s16477_s4 + $0xeec] ss:$12 sps:$4 sm:$0xff]  }
 0x58d   : > { %v10624_v11 = vpop.f32.mrb[95].mxu1  ;;  %v11788_v45 = vld [vmem:[%s16477_s4 + $0xee8] ss:$12 sps:$4 sm:$0xff]  }
 0x58e   : > { %v8528_v57 = vadd.f32 %v10622_v38, %v8487_v49  ;;  %v10625_v55 = vadd.f32 %v10624_v11, %v10623_v33  ;;  %v11775_v49 = vld [vmem:[%s16477_s4 + $0xe74] ss:$12 sps:$4 sm:$0xff]   ;;  %v11796_v33 = vld [vmem:[%s16477_s4 + $0xf1c] ss:$12 sps:$4 sm:$0xff]   ;;  %v11794_v11 = vld [vmem:[%s16477_s4 + $0xf18] ss:$12 sps:$4 sm:$0xff]  }
 0x58f   : > { %8104 = vmatpush1.bf16.msra.mxu0 %v11734_v5  ;;  %v11791_v38 = vld [vmem:[%s16477_s4 + $0xf00] ss:$12 sps:$4 sm:$0xff]  }
 0x590   : > { %8105 = vmatprep.subr.bf16.mxu0 %v11739_v26  ;;  %v8531_v43 = vadd.f32 %v10625_v55, %v8490_v63  ;;  %v11776_v63 = vld [vmem:[%s16477_s4 + $0xe88] ss:$12 sps:$4 sm:$0xff]   ;;  %v11793_v26 = vld [vmem:[%s16477_s4 + $0xf04] ss:$12 sps:$4 sm:$0xff]  }
 0x591   : > { %v11797_v55 = vld [vmem:[%s16477_s4 + $0xf08] ss:$12 sps:$4 sm:$0xff]  }
 0x593   : > { %8106 = vmatpush1.bf16.msra.mxu0 %v11737_v54  ;;  %v8657_v54 = vld [vmem:[%s16478_s5] ss:$2 sm:$0x7] }
 0x594   : > { %8107 = vmatprep.subr.bf16.mxu0 %v11742_v10  ;;  %v10395_v10 = vld [vmem:[%s16478_s5 + $0x1] ss:$2 sm:$0x7] }
 0x597   : > { %8108 = vmatpush1.bf16.msra.mxu0 %v11740_v46  ;;  %v8666_v46 = vrot.slane %v8657_v54, %v12971_v32 }
 0x598   : > { %8120 = vmatprep.subr.bf16.mxu0 %v11745_v24  ;;  %v8686_v24 = vrot.slane %v10395_v10, %v12963_v29 }
 0x59a   : > { %8110 = vmatmul.mubr.bf16.vlgmr.msra.gmra.mrb[32].mxu0 %v15708_v4  ;;  %v11754_v4 = vld [vmem:[%s16477_s4 + $0xdcc] ss:$12 sps:$4 sm:$0xff]  }
 0x59b   : > { %8121 = vmatpush1.bf16.msra.mxu0 %v11743_v42  ;;  %8152 = vmatprep.mubr.bf16.mxu0 %v15720_v21  ;;  %v11752_v21 = vld [vmem:[%s16477_s4 + $0xdc8] ss:$12 sps:$4 sm:$0xff]  }
 0x59c   : > { %8122 = vmatprep.subr.bf16.mxu0 %v11748_v7  ;;  %v8690_v7 = vrot.slane %v10395_v10, %v12971_v32 }
 0x59f   : > { %8123 = vmatpush1.bf16.msra.mxu0 %v11746_v53 }
 0x5a0   : > { %8124 = vmatprep.subr.bf16.mxu0 %v11751_v19 }
 0x5a3   : > { %8125 = vmatpush1.bf16.msra.mxu0 %v11749_v2 }
 0x5a4   : > { %8126 = vmatprep.subr.bf16.mxu0 %v11754_v4 }
 0x5a7   : > { %8127 = vmatpush1.bf16.msra.mxu0 %v11752_v21 }
 0x5a8   : > { %8128 = vmatprep.subr.bf16.mxu0 %v11757_v13 }
 0x5aa   : > { %v10642_v28 = vpop.f32.mrb[96].mxu1 }
 0x5ab   : > { %8129 = vmatpush1.bf16.msra.mxu0 %v11755_v18  ;;  %v10643_v56 = vpop.f32.mrb[97].mxu1 }
 0x5ac   : > { %8130 = vmatprep.subr.bf16.mxu0 %v11760_v52  ;;  %v10644_v22 = vadd.f32 %v10643_v56, %v10642_v28  ;;  %v10645_v58 = vpop.f32.mrb[98].mxu1 }
 0x5ad   : > { %v10646_v44 = vpop.f32.mrb[99].mxu1 }
 0x5ae   : > { %v8569_v12 = vadd.f32 %v10644_v22, %v8528_v57  ;;  %v10647_v61 = vadd.f32 %v10646_v44, %v10645_v58  ;;  %v11914_v57 = vmov 0  }
 0x5af   : > { %8131 = vmatpush1.bf16.msra.mxu0 %v11758_v17 }
 0x5b0   : > { %8132 = vmatprep.subr.bf16.mxu0 %v11763_v48  ;;  %v8572_v20 = vadd.f32 %v10647_v61, %v8531_v43  ;;  %v8662_v43 = vrot.slane %v8657_v54, %v12963_v29  ;;  %v8670_v29 = vrot.slane %v8657_v54, %v13281_v60  ;;  %v8694_v61 = vrot.slane %v10395_v10, %v13281_v60  ;;  %v11802_v10 = vld [vmem:[%s16480_s7 + $0x8] sm:$0xff]  }
 0x5b3   : > { %8133 = vmatpush1.bf16.msra.mxu0 %v11761_v3 }
 0x5b4   : > { %8134 = vmatprep.subr.bf16.mxu0 %v11766_v6 }
 0x5b7   : > { %8135 = vmatpush1.bf16.msra.mxu0 %v11764_v16 }
 0x5b8   : > { %8136 = vmatprep.subr.bf16.mxu0 %v11769_v47 }
 0x5bb   : > { %8137 = vmatpush1.bf16.msra.mxu0 %v11767_v27 }
 0x5bc   : > { %8138 = vmatprep.subr.bf16.mxu0 %v11772_v59 }
 0x5bf   : > { %8139 = vmatpush1.bf16.msra.mxu0 %v11770_v39 }
 0x5c0   : > { %8140 = vmatprep.subr.bf16.mxu0 %v11775_v49 }
 0x5c3   : > { %8141 = vmatpush1.bf16.msra.mxu0 %v11773_v51 }
 0x5c4   : > { %8142 = vmatprep.subr.bf16.mxu0 %v11778_v14 }
 0x5c7   : > { %8143 = vmatpush1.bf16.msra.mxu0 %v11776_v63 }
 0x5c8   : > { %8144 = vmatprep.subr.bf16.mxu0 %v11781_v1 }
 0x5ca   : > { %v10664_v37 = vpop.f32.mrb[100].mxu1 }
 0x5cb   : > { %8145 = vmatpush1.bf16.msra.mxu0 %v11779_v9  ;;  %v10665_v35 = vpop.f32.mrb[101].mxu1 }
 0x5cc   : > { %8146 = vmatprep.subr.bf16.mxu0 %v11784_v25  ;;  %v10666_v34 = vadd.f32 %v10665_v35, %v10664_v37  ;;  %v10667_v30 = vpop.f32.mrb[102].mxu1  ;;  %v8740_v35 = vld [vmem:[%s16479_s6] sm:$0x7] }
 0x5cd   : > { %v10668_v62 = vpop.f32.mrb[103].mxu1 }
 0x5ce   : > { %v10669_v31 = vadd.f32 %v10668_v62, %v10667_v30  ;;  %v8610_v23 = vadd.f32 %v10666_v34, %v8569_v12 }
 0x5cf   : > { %8147 = vmatpush1.bf16.msra.mxu0 %v11782_v36 }
 0x5d0   : > { %8148 = vmatprep.subr.bf16.mxu0 %v11787_v15  ;;  %v16157_v5 = vadd.f32 %v10669_v31, %v8572_v20 }
 0x5d3   : > { %8149 = vmatpush1.bf16.msra.mxu0 %v11785_v8 }
 0x5d4   : > { %8150 = vmatprep.subr.bf16.mxu0 %v11790_v50 }
 0x5d7   : > { %8151 = vmatpush1.bf16.msra.mxu0 %v11788_v45 }
 0x5d8   : > { %8163 = vmatprep.subr.bf16.mxu0 %v11793_v26 }
 0x5da   : > { %8153 = vmatmul.mubr.bf16.vlgmr.msra.gmra.mrb[32].mxu0 %v15811_v40  ;;  %v11798_v40 = vld [vmem:[%s16477_s4 + $0xf20] ss:$12 sps:$4 sm:$0xff]  }
 0x5db   : > { %8164 = vmatpush1.bf16.msra.mxu0 %v11791_v38  ;;  %8195 = vmatprep.mubr.bf16.mxu0 %v11914_v57 }
 0x5dc   : > { %8165 = vmatprep.subr.bf16.mxu0 %v11796_v33  ;;  %v11799_v33 = vld [vmem:[%s16480_s7 + $0x40] sm:$0xff]  }
 0x5df   : > { %8166 = vmatpush1.bf16.msra.mxu0 %v11794_v11  ;;  %v11800_v11 = vld [vmem:[%s16480_s7] sm:$0xff]  }
 0x5e0   : > { %10733 = vmatprep.subr.bf16.mxu0 %v16559_v0 }
 0x5e6   : > { %10393 = vmatmul.mubr.msk.bf16.vlgmr.msra.gmra.mrb[32].mxu0 %vm7729_vm13, %v15698_v41 }
 0x5e7   : > { %10734 = vmatpush3.bf16.msra.mxu0 %v11797_v55  ;;  %10737 = vmatprep.mubr.msk.bf16.mxu0 %vm11915_vm14, %v16559_v0  ;;  %v11801_v55 = vld [vmem:[%s16480_s7 + $0x48] sm:$0xff]  }
 0x5e8   : > { %10735 = vmatprep.subr.bf16.mxu0 %v16559_v0 }
 0x5eb   : > { %10736 = vmatpush3.bf16.msra.mxu0 %v11798_v40 }
 0x5ee   : > { %10738 = vmatmul.mubr.msk.bf16.vlgmr.msra.gmra.mrb[36].mxu0 %vm7729_vm13, %v15698_v41 }
 0x6b9   : > { %v8197_v42 = vpop.f32.mrb[32].mxu0 }
 0x6ba   : > { %v8674_v53 = vmul.f32 %v8662_v43, %v8197_v42  ;;  %v8199_v19 = vpop.f32.mrb[33].mxu0  ;;  %v11806_v42 = vld [vmem:[%s16480_s7 + $0x18] sm:$0xff]  }
 0x6bb   : > { %v8675_v41 = vmul.f32 %v8666_v46, %v8199_v19  ;;  %v8201_v2 = vpop.f32.mrb[34].mxu0  ;;  %v11809_v19 = vld [vmem:[%s16480_s7 + $0x68] sm:$0xff]  }
 0x6bc   : > { %v8698_v4 = vadd.f32 %v8686_v24, %v8674_v53  ;;  %v8677_v21 = vmul.f32 %v8662_v43, %v8201_v2  ;;  %v8203_v13 = vpop.f32.mrb[35].mxu0  ;;  %v11803_v43 = vld [vmem:[%s16480_s7 + $0x50] sm:$0xff]   ;;  %v11808_v53 = vld [vmem:[%s16480_s7 + $0x20] sm:$0xff]  }
 0x6bd   : > { %v8699_v18 = vadd.f32 %v8690_v7, %v8675_v41  ;;  %v8678_v52 = vmul.f32 %v8666_v46, %v8203_v13  ;;  %v11804_v46 = vld [vmem:[%s16480_s7 + $0x10] sm:$0xff]   ;;  %v11810_v41 = vld [vmem:[%s16480_s7 + $0x28] sm:$0xff]   ;;  %v11814_v13 = vld [vmem:[%s16480_s7 + $0x38] sm:$0xff]  }
 0x6be   : > { %v8704_v28 = vmax.f32 %v8698_v4, 0.0  ;;  %v8701_v17 = vadd.f32 %v8686_v24, %v8677_v21  ;;  %v11805_v24 = vld [vmem:[%s16480_s7 + $0x58] sm:$0xff]   ;;  %v11811_v2 = vld [vmem:[%s16480_s7 + $0x70] sm:$0xff]  }
 0x6bf   : > { %v8705_v56 = vmax.f32 %v8699_v18, 0.0  ;;  %v8702_v48 = vadd.f32 %v8690_v7, %v8678_v52  ;;  %v11807_v7 = vld [vmem:[%s16480_s7 + $0x60] sm:$0xff]   ;;  %v11812_v4 = vld [vmem:[%s16480_s7 + $0x30] sm:$0xff]   ;;  %v11813_v21 = vld [vmem:[%s16480_s7 + $0x78] sm:$0xff]  }
 0x6c0   : > { %v8713_v22 = vrot.slane %v8704_v28, 1  ;;  %v8707_v58 = vmax.f32 %v8701_v17, 0.0  ;;  %v8725_v6 = vrot.slane %v8704_v28, 2 }
 0x6c1   : > { %v8714_v44 = vrot.slane %v8705_v56, 1  ;;  %v8708_v12 = vmax.f32 %v8702_v48, 0.0  ;;  %v8650_v32 = vpop.f32.mrb[36].mxu0  ;;  %v8728_v59 = vrot.slane %v8705_v56, 2 }
 0x6c2   : > { %v8719_v3 = vmax.f32 %v8704_v28, %v8713_v22  ;;  %v8726_v20 = vrot.slane %v8707_v58, 2  ;;  %v8651_v16 = vadd.f32 %v8650_v32, %v8610_v23  ;;  %v10739_v47 = vpop.f32.mrb[37].mxu0  ;;  %v11815_v28 = vld [vmem:[%s16480_s7 + $0xc0] sm:$0xff]  }
 0x6c3   : > { %v8720_v27 = vmax.f32 %v8705_v56, %v8714_v44  ;;  %v8729_v39 = vrot.slane %v8708_v12, 2  ;;  %v8653_v49 = vpop.f32.mrb[38].mxu0 }
 0x6c4   : > { %v8727_v51 = vsel %vm527_vm6, %v8725_v6, %v8726_v20  ;;  %v8676_v14 = vmul.f32 %v8670_v29, %v8651_v16  ;;  %v8654_v63 = vadd.f32 %v8653_v49, %v16157_v5  ;;  %v10740_v1 = vpop.f32.mrb[39].mxu0 }
 0x6c5   : > { %v8737_v9 = vmax.f32 %v8719_v3, %v8727_v51  ;;  %v8730_v25 = vsel %vm527_vm6, %v8728_v59, %v8729_v39  ;;  %v11816_v51 = vld [vmem:[%s16480_s7 + $0x80] sm:$0xff]  }
 0x6c6   : > { %v8700_v37 = vadd.f32 %v8694_v61, %v8676_v14  ;;  %v8679_v60 = vmul.f32 %v8670_v29, %v8654_v63  ;;  %v8738_v36 = vmax.f32 %v8720_v27, %v8730_v25  ;;  %v11817_v63 = vld [vmem:[%s16480_s7 + $0xc8] sm:$0xff]  }
 0x6c7   : > { %v11818_v25 = vld [vmem:[%s16480_s7 + $0x88] sm:$0xff]  }
 0x6c8   : > { %v8706_v15 = vmax.f32 %v8700_v37, 0.0  ;;  %v8703_v34 = vadd.f32 %v8694_v61, %v8679_v60  ;;  %10396 = vmatprep.subr.msk.mxu1 %vm495_vm5, %v8738_v36  ;;  %v11819_v60 = vld [vmem:[%s16480_s7 + $0xd0] sm:$0xff]  }
 0x6c9   : > { %10397 = vmatpush1.msk.msra.mxu1 %vm495_vm5, %v8737_v9  ;;  %v11820_v36 = vld [vmem:[%s16480_s7 + $0x90] sm:$0xff]  }
 0x6ca   : > { %v8715_v30 = vrot.slane %v8706_v15, 1  ;;  %v8709_v62 = vmax.f32 %v8703_v34, 0.0  ;;  %10398 = vmatmul.mubr.msk.f32.vlgmr.msra.gmra.mrb[104].mxu1 %vm8741_vm15, %v8740_v35  ;;  %10741 = vmatprep.subr.mxu1 %v16559_v0  ;;  %v8731_v23 = vrot.slane %v8706_v15, 2  ;;  %v11823_v34 = vld [vmem:[%s16480_s7 + $0xe0] sm:$0xff]  }
 0x6cb   : > { %10743 = vmatprep.mubr.msk.f32.mxu1 %vm11915_vm14, %v16559_v0 }
 0x6cc   : > { %v8721_v31 = vmax.f32 %v8706_v15, %v8715_v30  ;;  %v8732_v8 = vrot.slane %v8709_v62, 2  ;;  %v11822_v15 = vld [vmem:[%s16480_s7 + $0x98] sm:$0xff]   ;;  %v11824_v30 = vld [vmem:[%s16480_s7 + $0xa0] sm:$0xff]   ;;  %v11825_v62 = vld [vmem:[%s16480_s7 + $0xe8] sm:$0xff]  }
 0x6ce   : > { %v8733_v50 = vsel %vm527_vm6, %v8731_v23, %v8732_v8  ;;  %v11827_v23 = vld [vmem:[%s16480_s7 + $0xf0] sm:$0xff]  }
 0x6cf   : > { %v8739_v5 = vmax.f32 %v8721_v31, %v8733_v50  ;;  %v11826_v31 = vld [vmem:[%s16480_s7 + $0xa8] sm:$0xff]   ;;  %v11828_v8 = vld [vmem:[%s16480_s7 + $0xb0] sm:$0xff]   ;;  %v11829_v50 = vld [vmem:[%s16480_s7 + $0xf8] sm:$0xff]  }
 0x6d1   : > { %10742 = vmatpush3.msk.msra.mxu1 %vm495_vm5, %v8739_v5  ;;  %v11830_v5 = vld [vmem:[%s16480_s7 + $0xb8] sm:$0xff]  }
 0x6d2   : > { %10744 = vmatmul.mubr.msk.f32.vlgmr.msra.gmra.mrb[106].mxu1 %vm8741_vm15, %v8740_v35  ;;  %10675 = vmatprep.subr.bf16.mxu1 %v11799_v33  ;;  %v11821_v35 = vld [vmem:[%s16480_s7 + $0xd8] sm:$0xff]   ;;  %v11832_v33 = vld [vmem:[%s16480_s7 + $0x108] sm:$0xff]  }
 0x6d3   : > { %10676 = vmatpush3.bf16.msra.mxu1 %v11800_v11  ;;  %v11833_v11 = vld [vmem:[%s16480_s7 + $0x110] sm:$0xff]  }
 0x6d4   : > { %10677 = vmatprep.subr.bf16.mxu1 %v11801_v55  ;;  %v11834_v55 = vld [vmem:[%s16480_s7 + $0x118] sm:$0xff]  }
 0x6d7   : > { %10678 = vmatpush3.bf16.msra.mxu1 %v11802_v10  ;;  %v11837_v10 = vld [vmem:[%s16480_s7 + $0x130] sm:$0xff]  }
 0x6d8   : > { %10679 = vmatprep.subr.bf16.mxu1 %v11803_v43  ;;  %v11838_v43 = vld [vmem:[%s16480_s7 + $0x138] sm:$0xff]  }
 0x6db   : > { %10680 = vmatpush3.bf16.msra.mxu1 %v11804_v46  ;;  %v11839_v46 = vld [vmem:[%s16480_s7 + $0x140] sm:$0xff]  }
 0x6dc   : > { %10681 = vmatprep.subr.bf16.mxu1 %v11805_v24  ;;  %v11840_v24 = vld [vmem:[%s16480_s7 + $0x148] sm:$0xff]  }
 0x6df   : > { %10682 = vmatpush3.bf16.msra.mxu1 %v11806_v42 }
 0x6e0   : > { %10683 = vmatprep.subr.bf16.mxu1 %v11807_v7  ;;  %v9414_v7 = vld [vmem:[%s16482_s9] sm:$0xff] }
 0x6e3   : > { %10684 = vmatpush3.bf16.msra.mxu1 %v11808_v53  ;;  %v9415_v53 = vld [vmem:[%s16482_s9 + $0x8] sm:$0xff] }
 0x6e4   : > { %10685 = vmatprep.subr.bf16.mxu1 %v11809_v19  ;;  %v11916_v19 = vmov 0.0|0.0  }
 0x6e7   : > { %10686 = vmatpush3.bf16.msra.mxu1 %v11810_v41  ;;  %v10825_v41 = vpack.c.bf16 %v9415_v53, %v9414_v7 }
 0x6e8   : > { %10687 = vmatprep.subr.bf16.mxu1 %v11811_v2  ;;  %v9417_v2 = vld [vmem:[%s16482_s9 + $0x18] sm:$0xff] }
 0x6eb   : > { %10688 = vmatpush3.bf16.msra.mxu1 %v11812_v4 }
 0x6ec   : > { %10689 = vmatprep.subr.bf16.mxu1 %v11813_v21  ;;  %v9418_v21 = vld [vmem:[%s16482_s9 + $0x20] sm:$0xff] }
 0x6ef   : > { %10690 = vmatpush3.bf16.msra.mxu1 %v11814_v13  ;;  %v9419_v13 = vld [vmem:[%s16482_s9 + $0x28] sm:$0xff] }
 0x6f0   : > { %10697 = vmatprep.subr.bf16.mxu1 %v11815_v28  ;;  %v9421_v28 = vld [vmem:[%s16482_s9 + $0x38] sm:$0xff] }
 0x79d   : > { %v8820_v45 = vpop.f32.mrb[104].mxu1 }
 0x79e   : > { %v8822_v26 = vpop.f32.mrb[105].mxu1 }
 0x79f   : > { %v11146_v38 = vpack.i.bf16 %v8822_v26, %v8820_v45 }
 0x7a1   : > { %11142 = vrot.lane.b32.xlu0 %v11146_v38, %s11912_s20  ;;  %11147 = vrot.lane.b32.xlu1 %v11146_v38, %s16579_s23 }
 0x7a5   : > { %v8891_v40 = vpop.f32.mrb[106].mxu1 }
 0x7a6   : > { %8911 = vrot.lane.b32.xlu0 %v8891_v40, %s16579_s23  ;;  %v10745_v54 = vpop.f32.mrb[107].mxu1  ;;  %v11835_v40 = vld [vmem:[%s16480_s7 + $0x120] sm:$0xff]  }
 0x7a7   : > { %v11836_v54 = vld [vmem:[%s16480_s7 + $0x128] sm:$0xff]  }
 0x813   : > { %v11143_v18 = vpop.permute.xlu0 %11142  ;;  %v11148_v52 = vpop.permute.xlu1 %11147 }
 0x814   : > { %v11145_v17 = vunpack.i.h.bf16 %v11143_v18  ;;  %v11144_v56 = vunpack.i.l.bf16 %v11143_v18  ;;  %v11150_v48 = vunpack.i.h.bf16 %v11148_v52  ;;  %v11149_v22 = vunpack.i.l.bf16 %v11148_v52  ;;  %v9420_v18 = vld [vmem:[%s16482_s9 + $0x30] sm:$0xff] }
 0x815   : > { %v10831_v52 = vpack.c.bf16 %v9419_v13, %v9418_v21 }
 0x816   : > { %v8901_v58 = vsel %vm4166_vm11, %v11144_v56, %v11145_v17  ;;  %v8905_v44 = vmax.f32 %v8822_v26, %v11145_v17  ;;  %v8913_v12 = vsel %vm567_vm4, %v11149_v22, %v11150_v48  ;;  %v10834_v17 = vpack.c.bf16 %v9421_v28, %v9420_v18 }
 0x817   : > { %v8904_v29 = vmax.f32 %v8820_v45, %v8901_v58  ;;  %v11831_v45 = vld [vmem:[%s16480_s7 + $0x100] sm:$0xff]  }
 0x818   : > { %v8912_v32 = vpop.permute.xlu0 %8911 }
 0x819   : > { %v8917_v61 = vmax.f32 %v8904_v29, %v8913_v12  ;;  %v8914_v3 = vsel %vm567_vm4, %v11150_v48, %v8912_v32 }
 0x81a   : > { %v8918_v6 = vmax.f32 %v8905_v44, %v8914_v3 }
 0x81b   : > { %v8919_v20 = vpack.c.bf16 %v8917_v61, %v8917_v61 }
 0x81c   : > { %v8920_v16 = vpack.c.bf16 %v8918_v6, %v8918_v6 }
 0x81d   : > { %v8922_v47 = vshrl.u32 %v8919_v20, 16  ;;  %v8935_v59 = vrot.slane %v8919_v20, 1 }
 0x81e   : > { %v8925_v27 = vshrl.u32 %v8920_v16, 16  ;;  %v8936_v39 = vrot.slane %v8920_v16, 1 }
 0x81f   : > { %8927 = vrot.lane.b32.xlu1 %v8922_v47, %s11912_s20 }
 0x820   : > { %8929 = vrot.lane.b32.xlu0 %v8925_v27, %s11912_s20 }
 0x823   : > { %8937 = vrot.lane.b32.xlu1 %v8935_v59, %s16579_s23  ;;  %v9411_v59 = vld [vmem:[%s16481_s8 + $0x1] sm:$0x1] }
 0x824   : > { %8939 = vrot.lane.b32.xlu0 %v8936_v39, %s16579_s23  ;;  %s432_s23 = scalar_lea.vmem [#allocation2], %s431_s22 }
 0x825   : > { %s9589_s16 = sshll.u32 %s432_s23, 4  ;;  %s16433_s16 = int_to_ptr.vmem [resolvable:$true] %s9589_s16 }
 0x826   : > { %s11845_s19 = scalar_lea.vmem %s16433_s16, 16  ;;  %p11852_p0 = scmp.lt.s32.totalorder %s16433_s16, %s11850_s24 }
 0x827   : > { %p11846_p11 = scmp.ne.s32.totalorder %s16433_s16, %s11845_s19  ;;  %p11853_p1 = scmp.lt.s32.totalorder %s11851_s15, %s11845_s19 }
 0x829   : > { %p11847_p12 = pnand %p11846_p11, %p12026_p5  ;;  %p11854_p2 = por %p11853_p1, %p11852_p0 }
 0x82b   : > { %p11848_p13 = pneg %p11847_p12 }
 0x82d   : > { %p11855_p3 = pnand %p11854_p2, %p11848_p13 }
 0x891   : > { %v8928_v49 = vpop.permute.xlu1 %8927 }
 0x892   : > { %v8944_v14 = vsel %vm4166_vm11, %v8920_v16, %v8928_v49  ;;  %v8930_v1 = vpop.permute.xlu0 %8929  ;;  %v9409_v16 = vld [vmem:[%s16481_s8] sm:$0x1] }
 0x893   : > { %9321 = vmatprep.mubr.bf16.mxu1 %v8944_v14  ;;  %v8931_v26 = vsel %vm4166_vm11, %v8928_v49, %v8930_v1  ;;  %v9497_v14 = vld [vmem:[%s16484_s11] sm:$0xff] }
 0x894   : > { %9322 = vmatmul.mubr.bf16.vlgmr.msra.gmra.mrb[108].mxu1 %v8919_v20 }
 0x895   : > { %10698 = vmatpush3.bf16.msra.mxu1 %v11816_v51  ;;  %v16285_v9 = vpop.permute.xlu1 %8937 }
 0x896   : > { %10699 = vmatprep.subr.bf16.mxu1 %v11817_v63  ;;  %v8948_v37 = vsel %vm567_vm4, %v8930_v1, %v16285_v9  ;;  %v8940_v38 = vpop.permute.xlu0 %8939  ;;  %v9498_v63 = vld [vmem:[%s16484_s11 + $0x8] sm:$0xff] }
 0x897   : > { %9361 = vmatprep.mubr.bf16.mxu1 %v8948_v37  ;;  %v8941_v42 = vsel %vm567_vm4, %v16285_v9, %v8940_v38  ;;  %v10837_v9 = vpack.c.bf16 %v9498_v63, %v9497_v14  ;;  %v9499_v37 = vld [vmem:[%s16484_s11 + $0x10] sm:$0xff] }
 0x899   : > { %10700 = vmatpush3.bf16.msra.mxu1 %v11818_v25 }
 0x89a   : > { %10701 = vmatprep.subr.bf16.mxu1 %v11819_v60  ;;  %v9500_v60 = vld [vmem:[%s16484_s11 + $0x18] sm:$0xff] }
 0x89d   : > { %10702 = vmatpush3.bf16.msra.mxu1 %v11820_v36  ;;  %v10840_v36 = vpack.c.bf16 %v9500_v60, %v9499_v37 }
 0x89e   : > { %10703 = vmatprep.subr.bf16.mxu1 %v11821_v35  ;;  %v9422_v35 = vld [vmem:[%s16483_s10] sm:$0x1] }
 0x8a1   : > { %10704 = vmatpush3.bf16.msra.mxu1 %v11822_v15 }
 0x8a2   : > { %10705 = vmatprep.subr.bf16.mxu1 %v11823_v34 }
 0x8a5   : > { %10706 = vmatpush3.bf16.msra.mxu1 %v11824_v30 }
 0x8a6   : > { %10707 = vmatprep.subr.bf16.mxu1 %v11825_v62 }
 0x8a9   : > { %10708 = vmatpush3.bf16.msra.mxu1 %v11826_v31 }
 0x8aa   : > { %10709 = vmatprep.subr.bf16.mxu1 %v11827_v23 }
 0x8ad   : > { %10710 = vmatpush3.bf16.msra.mxu1 %v11828_v8 }
 0x8ae   : > { %10711 = vmatprep.subr.bf16.mxu1 %v11829_v50 }
 0x8b1   : > { %10712 = vmatpush3.bf16.msra.mxu1 %v11830_v5 }
 0x8b2   : > { %9369 = vmatprep.subr.bf16.mxu1 %v11914_v57 }
 0x8b4   : > { %9362 = vmatmul.mubr.bf16.vlgmr.msra.gmra.mrb[112].mxu1 %v8931_v26 }
 0x8b5   : > { %9370 = vmatpush1.bf16.msra.mxu1 %v11831_v45  ;;  %10443 = vmatprep.mubr.msk.bf16.mxu1 %vm7729_vm13, %v8940_v38 }
 0x8b6   : > { %9371 = vmatprep.subr.bf16.mxu1 %v11914_v57 }
 0x8b9   : > { %9372 = vmatpush1.bf16.msra.mxu1 %v11832_v33 }
 0x8ba   : > { %9373 = vmatprep.subr.bf16.mxu1 %v11914_v57 }
 0x8bd   : > { %9374 = vmatpush1.bf16.msra.mxu1 %v11833_v11 }
 0x8be   : > { %9375 = vmatprep.subr.bf16.mxu1 %v11914_v57 }
 0x8c1   : > { %9376 = vmatpush1.bf16.msra.mxu1 %v11834_v55 }
 0x8c2   : > { %9377 = vmatprep.subr.bf16.mxu1 %v11914_v57 }
 0x8c5   : > { %9378 = vmatpush1.bf16.msra.mxu1 %v11835_v40 }
 0x8c6   : > { %9379 = vmatprep.subr.bf16.mxu1 %v11914_v57 }
 0x8c9   : > { %9380 = vmatpush1.bf16.msra.mxu1 %v11836_v54 }
 0x8ca   : > { %9381 = vmatprep.subr.bf16.mxu1 %v11914_v57 }
 0x8cd   : > { %9382 = vmatpush1.bf16.msra.mxu1 %v11837_v10 }
 0x8ce   : > { %9383 = vmatprep.subr.bf16.mxu1 %v11914_v57 }
 0x8d1   : > { %9384 = vmatpush1.bf16.msra.mxu1 %v11838_v43 }
 0x8d2   : > { %9385 = vmatprep.subr.bf16.mxu1 %v11914_v57 }
 0x8d5   : > { %9386 = vmatpush1.bf16.msra.mxu1 %v11839_v46 }
 0x8d6   : > { %9387 = vmatprep.subr.bf16.mxu1 %v11914_v57  ;;  %v9416_v57 = vld [vmem:[%s16482_s9 + $0x10] sm:$0xff] }
 0x8d7   : > { %v10828_v4 = vpack.c.bf16 %v9417_v2, %v9416_v57 }
 0x8d9   : > { %9388 = vmatpush1.bf16.msra.mxu1 %v11840_v24 }
 0x8da   : > { %10824 = vmatprep.subr.bf16.mxu1 %v11916_v19 }
 0x8dc   : > { %9402 = vmatmul.mubr.bf16.vlgmr.msra.gmra.mrb[116].mxu1 %v8941_v42 }
 0x8dd   : > { %10762 = vmatprep.mubr.msk.f32.mxu1 %vm11915_vm14, %v16559_v0  ;;  %10826 = vmatpush3.bf16.msra.mxu1 %v10825_v41 }
 0x8de   : > { %10827 = vmatprep.subr.bf16.mxu1 %v11916_v19 }
 0x8e1   : > { %10829 = vmatpush3.bf16.msra.mxu1 %v10828_v4 }
 0x8e2   : > { %10830 = vmatprep.subr.bf16.mxu1 %v11916_v19 }
 0x8e5   : > { %10832 = vmatpush3.bf16.msra.mxu1 %v10831_v52 }
 0x8e6   : > { %10833 = vmatprep.subr.bf16.mxu1 %v11916_v19 }
 0x8e9   : > { %10835 = vmatpush3.bf16.msra.mxu1 %v10834_v17 }
 0x8ea   : > { %10836 = vmatprep.subr.bf16.mxu1 %v11916_v19 }
 0x967   : > { %v10691_v56 = vpop.f32.mrb[108].mxu1 }
 0x968   : > { %v10692_v48 = vpop.f32.mrb[109].mxu1 }
 0x969   : > { %v10693_v22 = vadd.f32 %v10692_v48, %v10691_v56  ;;  %v10694_v58 = vpop.f32.mrb[110].mxu1 }
 0x96a   : > { %v10695_v29 = vpop.f32.mrb[111].mxu1 }
 0x987   : > { %v10713_v44 = vpop.f32.mrb[112].mxu1 }
 0x988   : > { %v10714_v12 = vpop.f32.mrb[113].mxu1 }
 0x989   : > { %v10715_v32 = vadd.f32 %v10714_v12, %v10713_v44  ;;  %v10716_v61 = vpop.f32.mrb[114].mxu1 }
 0x98a   : > { %v10717_v3 = vpop.f32.mrb[115].mxu1 }
 0x98b   : > { %v9364_v6 = vadd.f32 %v10715_v32, %v10693_v22 }
 0x9af   : > { %v9403_v20 = vpop.f32.mrb[116].mxu1 }
 0x9b0   : > { %v9404_v47 = vadd.f32 %v9403_v20, %v9364_v6  ;;  %v9405_v27 = vpop.f32.mrb[117].mxu1 }
 0x9b1   : > { %v9406_v39 = vpop.f32.mrb[118].mxu1 }
 0x9b2   : > { %v9410_v49 = vmul.f32 %v9409_v16, %v9404_v47  ;;  %v9407_v51 = vpop.f32.mrb[119].mxu1 }
 0x9b4   : > { %v9412_v1 = vadd.f32 %v9411_v59, %v9410_v49 }
 0x9b6   : > { %v9413_v25 = vmax.f32 %v9412_v1, 0.0 }
 0x9b8   : > { %10763 = vmatmul.mubr.msk.f32.vlgmr.msra.gmra.mrb[120].mxu1 %vm567_vm4, %v9413_v25 }
 0x9b9   : > { %10838 = vmatpush3.bf16.msra.mxu1 %v10837_v9  ;;  %10773 = vmatprep.mubr.msk.f32.mxu1 %vm11915_vm14, %v16559_v0  ;;  %v9501_v0 = vld [vmem:[%s16485_s12] sm:$0x1] }
 0x9ba   : > { %10839 = vmatprep.subr.bf16.mxu1 %v11916_v19 }
 0x9bd   : > { %10841 = vmatpush3.bf16.msra.mxu1 %v10840_v36 }
 0xa8b   : > { %v9492_v15 = vpop.f32.mrb[120].mxu1 }
 0xa8c   : > { %v9493_v34 = vadd.f32 %v9492_v15, %v9422_v35  ;;  %v10764_v30 = vpop.f32.mrb[121].mxu1 }
 0xa8e   : > { %v9496_v62 = vmax.f32 %v9493_v34, 0.0 }
 0xa90   : > { %10774 = vmatmul.mubr.msk.f32.vlgmr.msra.gmra.mrb[122].mxu1 %vm7729_vm13, %v9496_v62 }
 0xb63   : > { %v9571_v31 = vpop.f32.mrb[122].mxu1 }
 0xb64   : > { %v9572_v23 = vadd.f32 %v9571_v31, %v9501_v0  ;;  %v10775_v8 = vpop.f32.mrb[123].mxu1 }
 0xb66   : > { %9575 = vst [vmem:[%s432_s23] sm:$0x1] %v9572_v23 }
 0xb67   : > { %11858 = shalt.err (!%p11855_p3)
}
 0xb68   : > { %s11859_s22 = scalar_lea.hbm %s16431_s14, 16  ;;  %s11863_s17 = scalar_lea.hbm %s16486_s13, 32 }
 0xb69   : > { %p11860_p4 = scmp.ne.s32.totalorder %s16431_s14, %s11859_s22  ;;  %p11864_p9 = scmp.lt.u32.totalorder %s16431_s14, %s16486_s13 }
 0xb6a   : > { %p11865_p10 = scmp.lt.u32.totalorder %s11863_s17, %s11859_s22  ;;  %p11867_p12 = scmp.lt.u32.totalorder %s11859_s22, %s16431_s14 }
 0xb6b   : > { %p11861_p7 = pnand %p11860_p4, %p12026_p5 }
 0xb6c   : > { %p11866_p11 = por %p11865_p10, %p11864_p9 }
 0xb6d   : > { %p11862_p8 = pneg %p11861_p7 }
 0xb6e   : > { %p11868_p13 = por %p11867_p12, %p11866_p11 }
 0xb70   : > { %p11869_p0 = pnand %p11868_p13, %p11862_p8 }
 0xb72   : > { %11872 = shalt.err (!%p11869_p0)
}
 0xb73   : > { %10944 = dma.vmem_to_hbm [thread:$0]  (%p12026_p5), %s16433_s16, 16, %s16431_s14, %s9577_s21  }
 0xb74 PF: > { %s16580_s27 = sld [smem:[#allocation5_spill]]  ;;  %p10950_p1 = scmp.ge.s32.totalorder %s11907_s28, 2 }
 0xb76   : > { %p10947_p2 = pnand %p10950_p1, %p12030_p6 }
 0xb7a   : > { %s9601_s29 = sand.u32 1, %s16580_s27  }
 0xb7b   : > { %s9602_s24 = scalar_lea.sflag [#allocation3], %s9601_s29 }
 0xb7c   : > { %11890 = dma.done.wait (!%p10947_p2), %s9602_s24, 16  }
 0xb7d   : > { %11892 = vsyncadd (!%p10947_p2), %s9602_s24, 4294967280  ;;  %s16582_s28 = sld [smem:[#allocation7_spill]]  ;;  %s16583_s15 = sld [smem:[#allocation6_spill]] }
 0xb7e   : > { %s16584_s27 = sld [smem:[#allocation8_spill]]  ;;  %s16585_s25 = smov %s11899_s26 }
 0xb83   : > { %p23_p3 = scmp.ge.s32.totalorder %s16582_s28, 4   ;;  %s16586_s26 = smov %s16583_s15 }
 0xb85   :  { %25 = sbr.rel (!%p23_p3) target bundleno = 3 (0x3), region = 109 }
 0xb8c   :  { %9606 = vsyncpa [#allocation3], 1 }
 0xb8d   :  { %9608 = vsyncpa [#allocation3 + $0x1], 1 }

</bundles_post_ra>
